<compile_context>
chip_gen: v7x
topology: tpu7x:2x2x1
jax: 0.10.0
libtpu: 0.0.40
codegen_flags: <defaults>
</compile_context>

<pallas_src>
import numpy as np
import jax
import jax.numpy as jnp
from jax.experimental import pallas as pl
from jax.experimental.pallas import tpu as pltpu

# ---------------------- model / shape configuration -----------------------
H = W = 16             # BEV grid (fine scale)
H2 = W2 = 8            # coarse scale after the stride-2 conv
P = H * W              # number of pillars (dense grid) == fine BEV cells
P2 = H2 * W2
NPTS = 8               # points per pillar
PDIM = 4               # (x, y, z, intensity)
C_PFN = 32             # reader (pillar feature net) output channels
C1 = 64                # backbone stage-1 channels
C2 = 128               # backbone stage-2 channels
C_NECK = 64            # neck channels
NUM_CLASSES = 4        # BEV seg head classes
HEAD_PAD = 128         # lane-dense padded head width (real logits in [:, :4])


# ----------------------------- fused kernel --------------------------------
def _shift_rows(x, s):
    """y[r] = x[r + s] on the flattened (rows, C) map, zero where out of range.

    s is a static Python int, so this lowers to static slices + concatenate.
    """
    rows, c = x.shape
    if s == 0:
        return x
    z = jnp.zeros((abs(s), c), dtype=x.dtype)
    if s > 0:
        return jnp.concatenate([x[s:, :], z], axis=0)
    return jnp.concatenate([z, x[: rows + s, :]], axis=0)


def _fused_kernel(pts_ref, pfn_w_ref, pfn_b_ref,
                  c1_w_ref, c1_b_ref, c2_w_ref, c2_b_ref,
                  mask_ref, down_ref, up_ref,
                  lat1_w_ref, lat1_b_ref, lat2_w_ref, lat2_b_ref,
                  m2_wc_ref, m2_wf_ref, m2_b_ref,
                  head_w_ref, head_b_ref, out_ref):
    f32 = jnp.float32
    bf16 = jnp.bfloat16

    # ---- reader (PillarFeatureNet): one block-diagonal matmul replaces the
    #      NPTS tiny per-point dots; per-point Linear+ReLU, max over points.
    pts = pts_ref[...].astype(bf16)                               # (P, NPTS*PDIM)
    y = jnp.dot(pts, pfn_w_ref[...], preferred_element_type=f32)  # (P, NPTS*C_PFN)
    pfn_b = pfn_b_ref[...]                                        # (1, C_PFN)
    feat = jnp.zeros((P, C_PFN), f32)
    for n in range(NPTS):
        f = jnp.maximum(y[:, n * C_PFN:(n + 1) * C_PFN] + pfn_b, 0.0)
        feat = jnp.maximum(feat, f)
    # xyz means (points_mean) only feed the absent image-fusion branch -> not computed.

    # ---- 3x3 conv (padding=1) on the flattened (H*W, C) BEV map: 9 masked
    #      row-shift taps accumulated on the MXU.
    def conv3x3(x, w_ref, b_ref, cout, relu=True):
        acc = jnp.zeros((P, cout), f32)
        k = 0
        for dh in (-1, 0, 1):
            for dw in (-1, 0, 1):
                tap = _shift_rows(x, dh * W + dw) * mask_ref[k]   # zero OOB taps
                acc = acc + jnp.dot(tap.astype(bf16), w_ref[k],
                                    preferred_element_type=f32)
                k += 1
        acc = acc + b_ref[...]
        return jnp.maximum(acc, 0.0) if relu else acc

    # ---- pts_backbone (dense-pillar "scatter" to BEV is the identity here)
    f1 = conv3x3(feat, c1_w_ref, c1_b_ref, C1)              # 16x16x64, stride 1
    f2_full = conv3x3(f1, c2_w_ref, c2_b_ref, C2)           # stride-1 at all 16x16
    f2 = jnp.dot(down_ref[...], f2_full,
                 preferred_element_type=f32)                # pick stride-2 centers -> 8x8x128

    # ---- pts_neck: lateral 1x1 conv + ReLU per scale, 2x nearest upsample
    n1 = jnp.maximum(jnp.dot(f1.astype(bf16), lat1_w_ref[...],
                             preferred_element_type=f32) + lat1_b_ref[...], 0.0)
    n2 = jnp.maximum(jnp.dot(f2.astype(bf16), lat2_w_ref[...],
                             preferred_element_type=f32) + lat2_b_ref[...], 0.0)
    n2_up = jnp.dot(up_ref[...], n2, preferred_element_type=f32)   # (P, C_NECK)

    # ---- x[::-1] then ms2one: concat([n2_up, n1], -1) @ Wm == n2_up@Wc + n1@Wf
    fused = jnp.dot(n2_up.astype(bf16), m2_wc_ref[...], preferred_element_type=f32)
    fused = fused + jnp.dot(n1.astype(bf16), m2_wf_ref[...], preferred_element_type=f32)
    fused = jnp.maximum(fused + m2_b_ref[...], 0.0)

    # ---- BEV seg head: 1x1 conv logits, padded to a lane-dense 128 channels
    logits = jnp.dot(fused.astype(bf16), head_w_ref[...],
                     preferred_element_type=f32) + head_b_ref[...]
    out_ref[...] = logits


# ------------------------ constant gather operands -------------------------
def _tap_masks():
    """mask[k, h*W+w] = 1 if tap k = (dh+1)*3+(dw+1) reads a valid position."""
    m = np.zeros((9, P, 1), np.float32)
    k = 0
    for dh in (-1, 0, 1):
        for dw in (-1, 0, 1):
            for h in range(H):
                for w in range(W):
                    if 0 <= h + dh < H and 0 <= w + dw < W:
                        m[k, h * W + w, 0] = 1.0
            k += 1
    return m


def _downsample_matrix():
    """Selects the stride-2 conv centers (2h, 2w) from the 16x16 map."""
    s = np.zeros((P2, P), np.float32)
    for h in range(H2):
        for w in range(W2):
            s[h * W2 + w, (2 * h) * W + (2 * w)] = 1.0
    return s


def _upsample_matrix():
    """Nearest-neighbour 2x upsample of the 8x8 map to 16x16."""
    u = np.zeros((P, P2), np.float32)
    for h in range(H):
        for w in range(W):
            u[h * W + w, (h // 2) * W2 + (w // 2)] = 1.0
    return u


# ------------------------------- parameters --------------------------------
def init_params(key):
    keys = jax.random.split(key, 7)

    def xavier(k, shape):  # init_cfg: Xavier uniform for Conv2d / Linear
        fan_in, fan_out = shape[0], shape[1]
        limit = (6.0 / (fan_in + fan_out)) ** 0.5
        return jax.random.uniform(k, shape, jnp.float32, -limit, limit)

    return {
        "pfn_w": xavier(keys[0], (PDIM, C_PFN)),
        "pfn_b": jnp.zeros((C_PFN,), jnp.float32),
        "conv1_w": xavier(keys[1], (9 * C_PFN, C1)),     # 3x3, 32->64, stride 1
        "conv1_b": jnp.zeros((C1,), jnp.float32),
        "conv2_w": xavier(keys[2], (9 * C1, C2)),        # 3x3, 64->128, stride 2
        "conv2_b": jnp.zeros((C2,), jnp.float32),
        "lat1_w": xavier(keys[3], (C1, C_NECK)),
        "lat1_b": jnp.zeros((C_NECK,), jnp.float32),
        "lat2_w": xavier(keys[4], (C2, C_NECK)),
        "lat2_b": jnp.zeros((C_NECK,), jnp.float32),
        "ms2one_w": xavier(keys[5], (2 * C_NECK, C_NECK)),
        "ms2one_b": jnp.zeros((C_NECK,), jnp.float32),
        "head_w": xavier(keys[6], (C_NECK, NUM_CLASSES)),
        "head_b": jnp.zeros((NUM_CLASSES,), jnp.float32),
    }


def prepare_params(p):
    """Pre-bake kernel-ready operands once, outside the jitted forward."""
    bf16 = jnp.bfloat16
    # reader: the shared per-point Linear expanded to one block-diagonal weight
    pfn_blk = jnp.kron(jnp.eye(NPTS, dtype=jnp.float32), p["pfn_w"]).astype(bf16)
    head_w = jnp.zeros((C_NECK, HEAD_PAD), jnp.float32).at[:, :NUM_CLASSES].set(p["head_w"])
    head_b = jnp.zeros((1, HEAD_PAD), jnp.float32).at[:, :NUM_CLASSES].set(p["head_b"])
    return (
        pfn_blk,                                           # (NPTS*PDIM, NPTS*C_PFN)
        p["pfn_b"].reshape(1, C_PFN),
        p["conv1_w"].reshape(9, C_PFN, C1).astype(bf16),   # [tap, cin, cout]
        p["conv1_b"].reshape(1, C1),
        p["conv2_w"].reshape(9, C1, C2).astype(bf16),
        p["conv2_b"].reshape(1, C2),
        jnp.asarray(_tap_masks()),                         # (9, P, 1)
        jnp.asarray(_downsample_matrix()),                 # (P2, P)
        jnp.asarray(_upsample_matrix()),                   # (P, P2)
        p["lat1_w"].astype(bf16), p["lat1_b"].reshape(1, C_NECK),
        p["lat2_w"].astype(bf16), p["lat2_b"].reshape(1, C_NECK),
        p["ms2one_w"][:C_NECK].astype(bf16),               # applies to n2_up (x[::-1] order)
        p["ms2one_w"][C_NECK:].astype(bf16),               # applies to n1
        p["ms2one_b"].reshape(1, C_NECK),
        head_w.astype(bf16), head_b,
    )


# ------------------------------ forward pass -------------------------------
def pillar3d_detector_forward(kparams, points):
    """forward_pts_test path (self.training == False): one fused pallas_call."""
    # TODO(synk): reference forward_pts_test unpacks 4 values from
    # extract_pts_feat which returns 3; we follow the 3-tuple signature and
    # drop points_mean (it only feeds the absent image-fusion branch).
    # TODO(synk): reference sets self.head = None when seg_bev=False yet still
    # calls it; we instantiate a SimpleBEVSegHead-like 1x1-conv logits head.
    pts_flat = points.reshape(P, NPTS * PDIM)
    n_in = 1 + len(kparams)
    logits = pl.pallas_call(
        _fused_kernel,
        out_shape=jax.ShapeDtypeStruct((P, HEAD_PAD), jnp.float32),
        in_specs=[pl.BlockSpec(memory_space=pltpu.MemorySpace.VMEM)] * n_in,
        out_specs=pl.BlockSpec(memory_space=pltpu.MemorySpace.VMEM),
    )(pts_flat, *kparams)
    # slice the lane-dense padded logits down to the real classes
    return logits[:, :NUM_CLASSES].reshape(1, H, W, NUM_CLASSES)


# ----------------------------------- main -----------------------------------
if __name__ == "__main__":
    key = jax.random.PRNGKey(0)
    pkey, wkey = jax.random.split(key)
    points = jax.random.normal(pkey, (P, NPTS, PDIM), dtype=jnp.float32)
    params = init_params(wkey)
    kparams = prepare_params(params)

    fwd = jax.jit(pillar3d_detector_forward)
    pred = fwd(kparams, points)
    jax.block_until_ready(pred)
    assert pred.shape == (1, H, W, NUM_CLASSES)
    assert pred.dtype == jnp.float32
    print("KERNEL_OK")
</pallas_src>

<mosaic_0001>
module attributes {stable_mosaic.version = 11 : i64} {
  func.func @_fused_kernel(%arg0: memref<256x32xf32, #tpu.memory_space<vmem>>, %arg1: memref<32x256xbf16, #tpu.memory_space<vmem>>, %arg2: memref<1x32xf32, #tpu.memory_space<vmem>>, %arg3: memref<9x32x64xbf16, #tpu.memory_space<vmem>>, %arg4: memref<1x64xf32, #tpu.memory_space<vmem>>, %arg5: memref<9x64x128xbf16, #tpu.memory_space<vmem>>, %arg6: memref<1x128xf32, #tpu.memory_space<vmem>>, %arg7: memref<9x256x1xf32, #tpu.memory_space<vmem>>, %arg8: memref<64x256xf32, #tpu.memory_space<vmem>>, %arg9: memref<256x64xf32, #tpu.memory_space<vmem>>, %arg10: memref<64x64xbf16, #tpu.memory_space<vmem>>, %arg11: memref<1x64xf32, #tpu.memory_space<vmem>>, %arg12: memref<128x64xbf16, #tpu.memory_space<vmem>>, %arg13: memref<1x64xf32, #tpu.memory_space<vmem>>, %arg14: memref<64x64xbf16, #tpu.memory_space<vmem>>, %arg15: memref<64x64xbf16, #tpu.memory_space<vmem>>, %arg16: memref<1x64xf32, #tpu.memory_space<vmem>>, %arg17: memref<64x128xbf16, #tpu.memory_space<vmem>>, %arg18: memref<1x128xf32, #tpu.memory_space<vmem>>, %arg19: memref<256x128xf32, #tpu.memory_space<vmem>>) attributes {dimension_semantics = [], scalar_prefetch = 0 : i64, scratch_operands = 0 : i64, tpu.core_type = #tpu.core_type<tc>} {
    %c0 = arith.constant 0 : index
    %c0_0 = arith.constant 0 : index
    %0 = vector.load %arg0[%c0, %c0_0] : memref<256x32xf32, #tpu.memory_space<vmem>>, vector<256x32xf32>
    %1 = arith.truncf %0 : vector<256x32xf32> to vector<256x32xbf16>
    %c0_1 = arith.constant 0 : index
    %c0_2 = arith.constant 0 : index
    %2 = vector.load %arg1[%c0_1, %c0_2] : memref<32x256xbf16, #tpu.memory_space<vmem>>, vector<32x256xbf16>
    %cst = arith.constant dense<0.000000e+00> : vector<256x256xf32>
    %3 = tpu.matmul %1, %2, %cst {dimension_numbers = #tpu.dot_dimension_numbers<[1], [0], [0], [1], [0, 0, 1, 1], [], []>} : vector<256x32xbf16>, vector<32x256xbf16>, vector<256x256xf32> -> vector<256x256xf32>
    %c0_3 = arith.constant 0 : index
    %c0_4 = arith.constant 0 : index
    %4 = vector.load %arg2[%c0_3, %c0_4] : memref<1x32xf32, #tpu.memory_space<vmem>>, vector<1x32xf32>
    %cst_5 = arith.constant 0.000000e+00 : f32
    %5 = vector.broadcast %cst_5 : f32 to vector<256x32xf32>
    %6 = vector.extract_strided_slice %3 {offsets = [0, 0], sizes = [256, 32], strides = [1, 1]} : vector<256x256xf32> to vector<256x32xf32>
    %7 = vector.broadcast %4 : vector<1x32xf32> to vector<256x32xf32>
    %8 = arith.addf %6, %7 : vector<256x32xf32>
    %cst_6 = arith.constant 0.000000e+00 : f32
    %9 = vector.broadcast %cst_6 : f32 to vector<256x32xf32>
    %10 = arith.maximumf %8, %9 : vector<256x32xf32>
    %11 = arith.maximumf %5, %10 : vector<256x32xf32>
    %12 = vector.extract_strided_slice %3 {offsets = [0, 32], sizes = [256, 32], strides = [1, 1]} : vector<256x256xf32> to vector<256x32xf32>
    %13 = vector.broadcast %4 : vector<1x32xf32> to vector<256x32xf32>
    %14 = arith.addf %12, %13 : vector<256x32xf32>
    %cst_7 = arith.constant 0.000000e+00 : f32
    %15 = vector.broadcast %cst_7 : f32 to vector<256x32xf32>
    %16 = arith.maximumf %14, %15 : vector<256x32xf32>
    %17 = arith.maximumf %11, %16 : vector<256x32xf32>
    %18 = vector.extract_strided_slice %3 {offsets = [0, 64], sizes = [256, 32], strides = [1, 1]} : vector<256x256xf32> to vector<256x32xf32>
    %19 = vector.broadcast %4 : vector<1x32xf32> to vector<256x32xf32>
    %20 = arith.addf %18, %19 : vector<256x32xf32>
    %cst_8 = arith.constant 0.000000e+00 : f32
    %21 = vector.broadcast %cst_8 : f32 to vector<256x32xf32>
    %22 = arith.maximumf %20, %21 : vector<256x32xf32>
    %23 = arith.maximumf %17, %22 : vector<256x32xf32>
    %24 = vector.extract_strided_slice %3 {offsets = [0, 96], sizes = [256, 32], strides = [1, 1]} : vector<256x256xf32> to vector<256x32xf32>
    %25 = vector.broadcast %4 : vector<1x32xf32> to vector<256x32xf32>
    %26 = arith.addf %24, %25 : vector<256x32xf32>
    %cst_9 = arith.constant 0.000000e+00 : f32
    %27 = vector.broadcast %cst_9 : f32 to vector<256x32xf32>
    %28 = arith.maximumf %26, %27 : vector<256x32xf32>
    %29 = arith.maximumf %23, %28 : vector<256x32xf32>
    %30 = vector.extract_strided_slice %3 {offsets = [0, 128], sizes = [256, 32], strides = [1, 1]} : vector<256x256xf32> to vector<256x32xf32>
    %31 = vector.broadcast %4 : vector<1x32xf32> to vector<256x32xf32>
    %32 = arith.addf %30, %31 : vector<256x32xf32>
    %cst_10 = arith.constant 0.000000e+00 : f32
    %33 = vector.broadcast %cst_10 : f32 to vector<256x32xf32>
    %34 = arith.maximumf %32, %33 : vector<256x32xf32>
    %35 = arith.maximumf %29, %34 : vector<256x32xf32>
    %36 = vector.extract_strided_slice %3 {offsets = [0, 160], sizes = [256, 32], strides = [1, 1]} : vector<256x256xf32> to vector<256x32xf32>
    %37 = vector.broadcast %4 : vector<1x32xf32> to vector<256x32xf32>
    %38 = arith.addf %36, %37 : vector<256x32xf32>
    %cst_11 = arith.constant 0.000000e+00 : f32
    %39 = vector.broadcast %cst_11 : f32 to vector<256x32xf32>
    %40 = arith.maximumf %38, %39 : vector<256x32xf32>
    %41 = arith.maximumf %35, %40 : vector<256x32xf32>
    %42 = vector.extract_strided_slice %3 {offsets = [0, 192], sizes = [256, 32], strides = [1, 1]} : vector<256x256xf32> to vector<256x32xf32>
    %43 = vector.broadcast %4 : vector<1x32xf32> to vector<256x32xf32>
    %44 = arith.addf %42, %43 : vector<256x32xf32>
    %cst_12 = arith.constant 0.000000e+00 : f32
    %45 = vector.broadcast %cst_12 : f32 to vector<256x32xf32>
    %46 = arith.maximumf %44, %45 : vector<256x32xf32>
    %47 = arith.maximumf %41, %46 : vector<256x32xf32>
    %48 = vector.extract_strided_slice %3 {offsets = [0, 224], sizes = [256, 32], strides = [1, 1]} : vector<256x256xf32> to vector<256x32xf32>
    %49 = vector.broadcast %4 : vector<1x32xf32> to vector<256x32xf32>
    %50 = arith.addf %48, %49 : vector<256x32xf32>
    %cst_13 = arith.constant 0.000000e+00 : f32
    %51 = vector.broadcast %cst_13 : f32 to vector<256x32xf32>
    %52 = arith.maximumf %50, %51 : vector<256x32xf32>
    %53 = arith.maximumf %47, %52 : vector<256x32xf32>
    %cst_14 = arith.constant 0.000000e+00 : f32
    %54 = vector.broadcast %cst_14 : f32 to vector<256x64xf32>
    %cst_15 = arith.constant 0.000000e+00 : f32
    %55 = vector.broadcast %cst_15 : f32 to vector<17x32xf32>
    %56 = vector.extract_strided_slice %53 {offsets = [0, 0], sizes = [239, 32], strides = [1, 1]} : vector<256x32xf32> to vector<239x32xf32>
    %57 = tpu.concatenate %55, %56 in 0 : vector<17x32xf32>, vector<239x32xf32> -> vector<256x32xf32>
    %c0_16 = arith.constant 0 : index
    %c0_17 = arith.constant 0 : index
    %c0_18 = arith.constant 0 : index
    %58 = vector.load %arg7[%c0_16, %c0_17, %c0_18] : memref<9x256x1xf32, #tpu.memory_space<vmem>>, vector<1x256x1xf32>
    %59 = vector.shape_cast %58 : vector<1x256x1xf32> to vector<256x1xf32>
    %60 = vector.broadcast %59 : vector<256x1xf32> to vector<256x32xf32>
    %61 = arith.mulf %57, %60 : vector<256x32xf32>
    %62 = arith.truncf %61 : vector<256x32xf32> to vector<256x32xbf16>
    %c0_19 = arith.constant 0 : index
    %c0_20 = arith.constant 0 : index
    %c0_21 = arith.constant 0 : index
    %63 = vector.load %arg3[%c0_19, %c0_20, %c0_21] : memref<9x32x64xbf16, #tpu.memory_space<vmem>>, vector<1x32x64xbf16>
    %64 = vector.shape_cast %63 : vector<1x32x64xbf16> to vector<32x64xbf16>
    %cst_22 = arith.constant dense<0.000000e+00> : vector<256x64xf32>
    %65 = tpu.matmul %62, %64, %cst_22 {dimension_numbers = #tpu.dot_dimension_numbers<[1], [0], [0], [1], [0, 0, 1, 1], [], []>} : vector<256x32xbf16>, vector<32x64xbf16>, vector<256x64xf32> -> vector<256x64xf32>
    %66 = arith.addf %54, %65 : vector<256x64xf32>
    %cst_23 = arith.constant 0.000000e+00 : f32
    %67 = vector.broadcast %cst_23 : f32 to vector<16x32xf32>
    %68 = vector.extract_strided_slice %53 {offsets = [0, 0], sizes = [240, 32], strides = [1, 1]} : vector<256x32xf32> to vector<240x32xf32>
    %69 = tpu.concatenate %67, %68 in 0 : vector<16x32xf32>, vector<240x32xf32> -> vector<256x32xf32>
    %c1 = arith.constant 1 : index
    %c0_24 = arith.constant 0 : index
    %c0_25 = arith.constant 0 : index
    %70 = vector.load %arg7[%c1, %c0_24, %c0_25] : memref<9x256x1xf32, #tpu.memory_space<vmem>>, vector<1x256x1xf32>
    %71 = vector.shape_cast %70 : vector<1x256x1xf32> to vector<256x1xf32>
    %72 = vector.broadcast %71 : vector<256x1xf32> to vector<256x32xf32>
    %73 = arith.mulf %69, %72 : vector<256x32xf32>
    %74 = arith.truncf %73 : vector<256x32xf32> to vector<256x32xbf16>
    %c1_26 = arith.constant 1 : index
    %c0_27 = arith.constant 0 : index
    %c0_28 = arith.constant 0 : index
    %75 = vector.load %arg3[%c1_26, %c0_27, %c0_28] : memref<9x32x64xbf16, #tpu.memory_space<vmem>>, vector<1x32x64xbf16>
    %76 = vector.shape_cast %75 : vector<1x32x64xbf16> to vector<32x64xbf16>
    %cst_29 = arith.constant dense<0.000000e+00> : vector<256x64xf32>
    %77 = tpu.matmul %74, %76, %cst_29 {dimension_numbers = #tpu.dot_dimension_numbers<[1], [0], [0], [1], [0, 0, 1, 1], [], []>} : vector<256x32xbf16>, vector<32x64xbf16>, vector<256x64xf32> -> vector<256x64xf32>
    %78 = arith.addf %66, %77 : vector<256x64xf32>
    %cst_30 = arith.constant 0.000000e+00 : f32
    %79 = vector.broadcast %cst_30 : f32 to vector<15x32xf32>
    %80 = vector.extract_strided_slice %53 {offsets = [0, 0], sizes = [241, 32], strides = [1, 1]} : vector<256x32xf32> to vector<241x32xf32>
    %81 = tpu.concatenate %79, %80 in 0 : vector<15x32xf32>, vector<241x32xf32> -> vector<256x32xf32>
    %c2 = arith.constant 2 : index
    %c0_31 = arith.constant 0 : index
    %c0_32 = arith.constant 0 : index
    %82 = vector.load %arg7[%c2, %c0_31, %c0_32] : memref<9x256x1xf32, #tpu.memory_space<vmem>>, vector<1x256x1xf32>
    %83 = vector.shape_cast %82 : vector<1x256x1xf32> to vector<256x1xf32>
    %84 = vector.broadcast %83 : vector<256x1xf32> to vector<256x32xf32>
    %85 = arith.mulf %81, %84 : vector<256x32xf32>
    %86 = arith.truncf %85 : vector<256x32xf32> to vector<256x32xbf16>
    %c2_33 = arith.constant 2 : index
    %c0_34 = arith.constant 0 : index
    %c0_35 = arith.constant 0 : index
    %87 = vector.load %arg3[%c2_33, %c0_34, %c0_35] : memref<9x32x64xbf16, #tpu.memory_space<vmem>>, vector<1x32x64xbf16>
    %88 = vector.shape_cast %87 : vector<1x32x64xbf16> to vector<32x64xbf16>
    %cst_36 = arith.constant dense<0.000000e+00> : vector<256x64xf32>
    %89 = tpu.matmul %86, %88, %cst_36 {dimension_numbers = #tpu.dot_dimension_numbers<[1], [0], [0], [1], [0, 0, 1, 1], [], []>} : vector<256x32xbf16>, vector<32x64xbf16>, vector<256x64xf32> -> vector<256x64xf32>
    %90 = arith.addf %78, %89 : vector<256x64xf32>
    %cst_37 = arith.constant 0.000000e+00 : f32
    %91 = vector.broadcast %cst_37 : f32 to vector<1x32xf32>
    %92 = vector.extract_strided_slice %53 {offsets = [0, 0], sizes = [255, 32], strides = [1, 1]} : vector<256x32xf32> to vector<255x32xf32>
    %93 = tpu.concatenate %91, %92 in 0 : vector<1x32xf32>, vector<255x32xf32> -> vector<256x32xf32>
    %c3 = arith.constant 3 : index
    %c0_38 = arith.constant 0 : index
    %c0_39 = arith.constant 0 : index
    %94 = vector.load %arg7[%c3, %c0_38, %c0_39] : memref<9x256x1xf32, #tpu.memory_space<vmem>>, vector<1x256x1xf32>
    %95 = vector.shape_cast %94 : vector<1x256x1xf32> to vector<256x1xf32>
    %96 = vector.broadcast %95 : vector<256x1xf32> to vector<256x32xf32>
    %97 = arith.mulf %93, %96 : vector<256x32xf32>
    %98 = arith.truncf %97 : vector<256x32xf32> to vector<256x32xbf16>
    %c3_40 = arith.constant 3 : index
    %c0_41 = arith.constant 0 : index
    %c0_42 = arith.constant 0 : index
    %99 = vector.load %arg3[%c3_40, %c0_41, %c0_42] : memref<9x32x64xbf16, #tpu.memory_space<vmem>>, vector<1x32x64xbf16>
    %100 = vector.shape_cast %99 : vector<1x32x64xbf16> to vector<32x64xbf16>
    %cst_43 = arith.constant dense<0.000000e+00> : vector<256x64xf32>
    %101 = tpu.matmul %98, %100, %cst_43 {dimension_numbers = #tpu.dot_dimension_numbers<[1], [0], [0], [1], [0, 0, 1, 1], [], []>} : vector<256x32xbf16>, vector<32x64xbf16>, vector<256x64xf32> -> vector<256x64xf32>
    %102 = arith.addf %90, %101 : vector<256x64xf32>
    %c4 = arith.constant 4 : index
    %c0_44 = arith.constant 0 : index
    %c0_45 = arith.constant 0 : index
    %103 = vector.load %arg7[%c4, %c0_44, %c0_45] : memref<9x256x1xf32, #tpu.memory_space<vmem>>, vector<1x256x1xf32>
    %104 = vector.shape_cast %103 : vector<1x256x1xf32> to vector<256x1xf32>
    %105 = vector.broadcast %104 : vector<256x1xf32> to vector<256x32xf32>
    %106 = arith.mulf %53, %105 : vector<256x32xf32>
    %107 = arith.truncf %106 : vector<256x32xf32> to vector<256x32xbf16>
    %c4_46 = arith.constant 4 : index
    %c0_47 = arith.constant 0 : index
    %c0_48 = arith.constant 0 : index
    %108 = vector.load %arg3[%c4_46, %c0_47, %c0_48] : memref<9x32x64xbf16, #tpu.memory_space<vmem>>, vector<1x32x64xbf16>
    %109 = vector.shape_cast %108 : vector<1x32x64xbf16> to vector<32x64xbf16>
    %cst_49 = arith.constant dense<0.000000e+00> : vector<256x64xf32>
    %110 = tpu.matmul %107, %109, %cst_49 {dimension_numbers = #tpu.dot_dimension_numbers<[1], [0], [0], [1], [0, 0, 1, 1], [], []>} : vector<256x32xbf16>, vector<32x64xbf16>, vector<256x64xf32> -> vector<256x64xf32>
    %111 = arith.addf %102, %110 : vector<256x64xf32>
    %cst_50 = arith.constant 0.000000e+00 : f32
    %112 = vector.broadcast %cst_50 : f32 to vector<1x32xf32>
    %113 = vector.extract_strided_slice %53 {offsets = [1, 0], sizes = [255, 32], strides = [1, 1]} : vector<256x32xf32> to vector<255x32xf32>
    %114 = tpu.concatenate %113, %112 in 0 : vector<255x32xf32>, vector<1x32xf32> -> vector<256x32xf32>
    %c5 = arith.constant 5 : index
    %c0_51 = arith.constant 0 : index
    %c0_52 = arith.constant 0 : index
    %115 = vector.load %arg7[%c5, %c0_51, %c0_52] : memref<9x256x1xf32, #tpu.memory_space<vmem>>, vector<1x256x1xf32>
    %116 = vector.shape_cast %115 : vector<1x256x1xf32> to vector<256x1xf32>
    %117 = vector.broadcast %116 : vector<256x1xf32> to vector<256x32xf32>
    %118 = arith.mulf %114, %117 : vector<256x32xf32>
    %119 = arith.truncf %118 : vector<256x32xf32> to vector<256x32xbf16>
    %c5_53 = arith.constant 5 : index
    %c0_54 = arith.constant 0 : index
    %c0_55 = arith.constant 0 : index
    %120 = vector.load %arg3[%c5_53, %c0_54, %c0_55] : memref<9x32x64xbf16, #tpu.memory_space<vmem>>, vector<1x32x64xbf16>
    %121 = vector.shape_cast %120 : vector<1x32x64xbf16> to vector<32x64xbf16>
    %cst_56 = arith.constant dense<0.000000e+00> : vector<256x64xf32>
    %122 = tpu.matmul %119, %121, %cst_56 {dimension_numbers = #tpu.dot_dimension_numbers<[1], [0], [0], [1], [0, 0, 1, 1], [], []>} : vector<256x32xbf16>, vector<32x64xbf16>, vector<256x64xf32> -> vector<256x64xf32>
    %123 = arith.addf %111, %122 : vector<256x64xf32>
    %cst_57 = arith.constant 0.000000e+00 : f32
    %124 = vector.broadcast %cst_57 : f32 to vector<15x32xf32>
    %125 = vector.extract_strided_slice %53 {offsets = [15, 0], sizes = [241, 32], strides = [1, 1]} : vector<256x32xf32> to vector<241x32xf32>
    %126 = tpu.concatenate %125, %124 in 0 : vector<241x32xf32>, vector<15x32xf32> -> vector<256x32xf32>
    %c6 = arith.constant 6 : index
    %c0_58 = arith.constant 0 : index
    %c0_59 = arith.constant 0 : index
    %127 = vector.load %arg7[%c6, %c0_58, %c0_59] : memref<9x256x1xf32, #tpu.memory_space<vmem>>, vector<1x256x1xf32>
    %128 = vector.shape_cast %127 : vector<1x256x1xf32> to vector<256x1xf32>
    %129 = vector.broadcast %128 : vector<256x1xf32> to vector<256x32xf32>
    %130 = arith.mulf %126, %129 : vector<256x32xf32>
    %131 = arith.truncf %130 : vector<256x32xf32> to vector<256x32xbf16>
    %c6_60 = arith.constant 6 : index
    %c0_61 = arith.constant 0 : index
    %c0_62 = arith.constant 0 : index
    %132 = vector.load %arg3[%c6_60, %c0_61, %c0_62] : memref<9x32x64xbf16, #tpu.memory_space<vmem>>, vector<1x32x64xbf16>
    %133 = vector.shape_cast %132 : vector<1x32x64xbf16> to vector<32x64xbf16>
    %cst_63 = arith.constant dense<0.000000e+00> : vector<256x64xf32>
    %134 = tpu.matmul %131, %133, %cst_63 {dimension_numbers = #tpu.dot_dimension_numbers<[1], [0], [0], [1], [0, 0, 1, 1], [], []>} : vector<256x32xbf16>, vector<32x64xbf16>, vector<256x64xf32> -> vector<256x64xf32>
    %135 = arith.addf %123, %134 : vector<256x64xf32>
    %cst_64 = arith.constant 0.000000e+00 : f32
    %136 = vector.broadcast %cst_64 : f32 to vector<16x32xf32>
    %137 = vector.extract_strided_slice %53 {offsets = [16, 0], sizes = [240, 32], strides = [1, 1]} : vector<256x32xf32> to vector<240x32xf32>
    %138 = tpu.concatenate %137, %136 in 0 : vector<240x32xf32>, vector<16x32xf32> -> vector<256x32xf32>
    %c7 = arith.constant 7 : index
    %c0_65 = arith.constant 0 : index
    %c0_66 = arith.constant 0 : index
    %139 = vector.load %arg7[%c7, %c0_65, %c0_66] : memref<9x256x1xf32, #tpu.memory_space<vmem>>, vector<1x256x1xf32>
    %140 = vector.shape_cast %139 : vector<1x256x1xf32> to vector<256x1xf32>
    %141 = vector.broadcast %140 : vector<256x1xf32> to vector<256x32xf32>
    %142 = arith.mulf %138, %141 : vector<256x32xf32>
    %143 = arith.truncf %142 : vector<256x32xf32> to vector<256x32xbf16>
    %c7_67 = arith.constant 7 : index
    %c0_68 = arith.constant 0 : index
    %c0_69 = arith.constant 0 : index
    %144 = vector.load %arg3[%c7_67, %c0_68, %c0_69] : memref<9x32x64xbf16, #tpu.memory_space<vmem>>, vector<1x32x64xbf16>
    %145 = vector.shape_cast %144 : vector<1x32x64xbf16> to vector<32x64xbf16>
    %cst_70 = arith.constant dense<0.000000e+00> : vector<256x64xf32>
    %146 = tpu.matmul %143, %145, %cst_70 {dimension_numbers = #tpu.dot_dimension_numbers<[1], [0], [0], [1], [0, 0, 1, 1], [], []>} : vector<256x32xbf16>, vector<32x64xbf16>, vector<256x64xf32> -> vector<256x64xf32>
    %147 = arith.addf %135, %146 : vector<256x64xf32>
    %cst_71 = arith.constant 0.000000e+00 : f32
    %148 = vector.broadcast %cst_71 : f32 to vector<17x32xf32>
    %149 = vector.extract_strided_slice %53 {offsets = [17, 0], sizes = [239, 32], strides = [1, 1]} : vector<256x32xf32> to vector<239x32xf32>
    %150 = tpu.concatenate %149, %148 in 0 : vector<239x32xf32>, vector<17x32xf32> -> vector<256x32xf32>
    %c8 = arith.constant 8 : index
    %c0_72 = arith.constant 0 : index
    %c0_73 = arith.constant 0 : index
    %151 = vector.load %arg7[%c8, %c0_72, %c0_73] : memref<9x256x1xf32, #tpu.memory_space<vmem>>, vector<1x256x1xf32>
    %152 = vector.shape_cast %151 : vector<1x256x1xf32> to vector<256x1xf32>
    %153 = vector.broadcast %152 : vector<256x1xf32> to vector<256x32xf32>
    %154 = arith.mulf %150, %153 : vector<256x32xf32>
    %155 = arith.truncf %154 : vector<256x32xf32> to vector<256x32xbf16>
    %c8_74 = arith.constant 8 : index
    %c0_75 = arith.constant 0 : index
    %c0_76 = arith.constant 0 : index
    %156 = vector.load %arg3[%c8_74, %c0_75, %c0_76] : memref<9x32x64xbf16, #tpu.memory_space<vmem>>, vector<1x32x64xbf16>
    %157 = vector.shape_cast %156 : vector<1x32x64xbf16> to vector<32x64xbf16>
    %cst_77 = arith.constant dense<0.000000e+00> : vector<256x64xf32>
    %158 = tpu.matmul %155, %157, %cst_77 {dimension_numbers = #tpu.dot_dimension_numbers<[1], [0], [0], [1], [0, 0, 1, 1], [], []>} : vector<256x32xbf16>, vector<32x64xbf16>, vector<256x64xf32> -> vector<256x64xf32>
    %159 = arith.addf %147, %158 : vector<256x64xf32>
    %c0_78 = arith.constant 0 : index
    %c0_79 = arith.constant 0 : index
    %160 = vector.load %arg4[%c0_78, %c0_79] : memref<1x64xf32, #tpu.memory_space<vmem>>, vector<1x64xf32>
    %161 = vector.broadcast %160 : vector<1x64xf32> to vector<256x64xf32>
    %162 = arith.addf %159, %161 : vector<256x64xf32>
    %cst_80 = arith.constant 0.000000e+00 : f32
    %163 = vector.broadcast %cst_80 : f32 to vector<256x64xf32>
    %164 = arith.maximumf %162, %163 : vector<256x64xf32>
    %cst_81 = arith.constant 0.000000e+00 : f32
    %165 = vector.broadcast %cst_81 : f32 to vector<256x128xf32>
    %cst_82 = arith.constant 0.000000e+00 : f32
    %166 = vector.broadcast %cst_82 : f32 to vector<17x64xf32>
    %167 = vector.extract_strided_slice %164 {offsets = [0, 0], sizes = [239, 64], strides = [1, 1]} : vector<256x64xf32> to vector<239x64xf32>
    %168 = tpu.concatenate %166, %167 in 0 : vector<17x64xf32>, vector<239x64xf32> -> vector<256x64xf32>
    %c0_83 = arith.constant 0 : index
    %c0_84 = arith.constant 0 : index
    %c0_85 = arith.constant 0 : index
    %169 = vector.load %arg7[%c0_83, %c0_84, %c0_85] : memref<9x256x1xf32, #tpu.memory_space<vmem>>, vector<1x256x1xf32>
    %170 = vector.shape_cast %169 : vector<1x256x1xf32> to vector<256x1xf32>
    %171 = vector.broadcast %170 : vector<256x1xf32> to vector<256x64xf32>
    %172 = arith.mulf %168, %171 : vector<256x64xf32>
    %173 = arith.truncf %172 : vector<256x64xf32> to vector<256x64xbf16>
    %c0_86 = arith.constant 0 : index
    %c0_87 = arith.constant 0 : index
    %c0_88 = arith.constant 0 : index
    %174 = vector.load %arg5[%c0_86, %c0_87, %c0_88] : memref<9x64x128xbf16, #tpu.memory_space<vmem>>, vector<1x64x128xbf16>
    %175 = vector.shape_cast %174 : vector<1x64x128xbf16> to vector<64x128xbf16>
    %cst_89 = arith.constant dense<0.000000e+00> : vector<256x128xf32>
    %176 = tpu.matmul %173, %175, %cst_89 {dimension_numbers = #tpu.dot_dimension_numbers<[1], [0], [0], [1], [0, 0, 1, 1], [], []>} : vector<256x64xbf16>, vector<64x128xbf16>, vector<256x128xf32> -> vector<256x128xf32>
    %177 = arith.addf %165, %176 : vector<256x128xf32>
    %cst_90 = arith.constant 0.000000e+00 : f32
    %178 = vector.broadcast %cst_90 : f32 to vector<16x64xf32>
    %179 = vector.extract_strided_slice %164 {offsets = [0, 0], sizes = [240, 64], strides = [1, 1]} : vector<256x64xf32> to vector<240x64xf32>
    %180 = tpu.concatenate %178, %179 in 0 : vector<16x64xf32>, vector<240x64xf32> -> vector<256x64xf32>
    %c1_91 = arith.constant 1 : index
    %c0_92 = arith.constant 0 : index
    %c0_93 = arith.constant 0 : index
    %181 = vector.load %arg7[%c1_91, %c0_92, %c0_93] : memref<9x256x1xf32, #tpu.memory_space<vmem>>, vector<1x256x1xf32>
    %182 = vector.shape_cast %181 : vector<1x256x1xf32> to vector<256x1xf32>
    %183 = vector.broadcast %182 : vector<256x1xf32> to vector<256x64xf32>
    %184 = arith.mulf %180, %183 : vector<256x64xf32>
    %185 = arith.truncf %184 : vector<256x64xf32> to vector<256x64xbf16>
    %c1_94 = arith.constant 1 : index
    %c0_95 = arith.constant 0 : index
    %c0_96 = arith.constant 0 : index
    %186 = vector.load %arg5[%c1_94, %c0_95, %c0_96] : memref<9x64x128xbf16, #tpu.memory_space<vmem>>, vector<1x64x128xbf16>
    %187 = vector.shape_cast %186 : vector<1x64x128xbf16> to vector<64x128xbf16>
    %cst_97 = arith.constant dense<0.000000e+00> : vector<256x128xf32>
    %188 = tpu.matmul %185, %187, %cst_97 {dimension_numbers = #tpu.dot_dimension_numbers<[1], [0], [0], [1], [0, 0, 1, 1], [], []>} : vector<256x64xbf16>, vector<64x128xbf16>, vector<256x128xf32> -> vector<256x128xf32>
    %189 = arith.addf %177, %188 : vector<256x128xf32>
    %cst_98 = arith.constant 0.000000e+00 : f32
    %190 = vector.broadcast %cst_98 : f32 to vector<15x64xf32>
    %191 = vector.extract_strided_slice %164 {offsets = [0, 0], sizes = [241, 64], strides = [1, 1]} : vector<256x64xf32> to vector<241x64xf32>
    %192 = tpu.concatenate %190, %191 in 0 : vector<15x64xf32>, vector<241x64xf32> -> vector<256x64xf32>
    %c2_99 = arith.constant 2 : index
    %c0_100 = arith.constant 0 : index
    %c0_101 = arith.constant 0 : index
    %193 = vector.load %arg7[%c2_99, %c0_100, %c0_101] : memref<9x256x1xf32, #tpu.memory_space<vmem>>, vector<1x256x1xf32>
    %194 = vector.shape_cast %193 : vector<1x256x1xf32> to vector<256x1xf32>
    %195 = vector.broadcast %194 : vector<256x1xf32> to vector<256x64xf32>
    %196 = arith.mulf %192, %195 : vector<256x64xf32>
    %197 = arith.truncf %196 : vector<256x64xf32> to vector<256x64xbf16>
    %c2_102 = arith.constant 2 : index
    %c0_103 = arith.constant 0 : index
    %c0_104 = arith.constant 0 : index
    %198 = vector.load %arg5[%c2_102, %c0_103, %c0_104] : memref<9x64x128xbf16, #tpu.memory_space<vmem>>, vector<1x64x128xbf16>
    %199 = vector.shape_cast %198 : vector<1x64x128xbf16> to vector<64x128xbf16>
    %cst_105 = arith.constant dense<0.000000e+00> : vector<256x128xf32>
    %200 = tpu.matmul %197, %199, %cst_105 {dimension_numbers = #tpu.dot_dimension_numbers<[1], [0], [0], [1], [0, 0, 1, 1], [], []>} : vector<256x64xbf16>, vector<64x128xbf16>, vector<256x128xf32> -> vector<256x128xf32>
    %201 = arith.addf %189, %200 : vector<256x128xf32>
    %cst_106 = arith.constant 0.000000e+00 : f32
    %202 = vector.broadcast %cst_106 : f32 to vector<1x64xf32>
    %203 = vector.extract_strided_slice %164 {offsets = [0, 0], sizes = [255, 64], strides = [1, 1]} : vector<256x64xf32> to vector<255x64xf32>
    %204 = tpu.concatenate %202, %203 in 0 : vector<1x64xf32>, vector<255x64xf32> -> vector<256x64xf32>
    %c3_107 = arith.constant 3 : index
    %c0_108 = arith.constant 0 : index
    %c0_109 = arith.constant 0 : index
    %205 = vector.load %arg7[%c3_107, %c0_108, %c0_109] : memref<9x256x1xf32, #tpu.memory_space<vmem>>, vector<1x256x1xf32>
    %206 = vector.shape_cast %205 : vector<1x256x1xf32> to vector<256x1xf32>
    %207 = vector.broadcast %206 : vector<256x1xf32> to vector<256x64xf32>
    %208 = arith.mulf %204, %207 : vector<256x64xf32>
    %209 = arith.truncf %208 : vector<256x64xf32> to vector<256x64xbf16>
    %c3_110 = arith.constant 3 : index
    %c0_111 = arith.constant 0 : index
    %c0_112 = arith.constant 0 : index
    %210 = vector.load %arg5[%c3_110, %c0_111, %c0_112] : memref<9x64x128xbf16, #tpu.memory_space<vmem>>, vector<1x64x128xbf16>
    %211 = vector.shape_cast %210 : vector<1x64x128xbf16> to vector<64x128xbf16>
    %cst_113 = arith.constant dense<0.000000e+00> : vector<256x128xf32>
    %212 = tpu.matmul %209, %211, %cst_113 {dimension_numbers = #tpu.dot_dimension_numbers<[1], [0], [0], [1], [0, 0, 1, 1], [], []>} : vector<256x64xbf16>, vector<64x128xbf16>, vector<256x128xf32> -> vector<256x128xf32>
    %213 = arith.addf %201, %212 : vector<256x128xf32>
    %c4_114 = arith.constant 4 : index
    %c0_115 = arith.constant 0 : index
    %c0_116 = arith.constant 0 : index
    %214 = vector.load %arg7[%c4_114, %c0_115, %c0_116] : memref<9x256x1xf32, #tpu.memory_space<vmem>>, vector<1x256x1xf32>
    %215 = vector.shape_cast %214 : vector<1x256x1xf32> to vector<256x1xf32>
    %216 = vector.broadcast %215 : vector<256x1xf32> to vector<256x64xf32>
    %217 = arith.mulf %164, %216 : vector<256x64xf32>
    %218 = arith.truncf %217 : vector<256x64xf32> to vector<256x64xbf16>
    %c4_117 = arith.constant 4 : index
    %c0_118 = arith.constant 0 : index
    %c0_119 = arith.constant 0 : index
    %219 = vector.load %arg5[%c4_117, %c0_118, %c0_119] : memref<9x64x128xbf16, #tpu.memory_space<vmem>>, vector<1x64x128xbf16>
    %220 = vector.shape_cast %219 : vector<1x64x128xbf16> to vector<64x128xbf16>
    %cst_120 = arith.constant dense<0.000000e+00> : vector<256x128xf32>
    %221 = tpu.matmul %218, %220, %cst_120 {dimension_numbers = #tpu.dot_dimension_numbers<[1], [0], [0], [1], [0, 0, 1, 1], [], []>} : vector<256x64xbf16>, vector<64x128xbf16>, vector<256x128xf32> -> vector<256x128xf32>
    %222 = arith.addf %213, %221 : vector<256x128xf32>
    %cst_121 = arith.constant 0.000000e+00 : f32
    %223 = vector.broadcast %cst_121 : f32 to vector<1x64xf32>
    %224 = vector.extract_strided_slice %164 {offsets = [1, 0], sizes = [255, 64], strides = [1, 1]} : vector<256x64xf32> to vector<255x64xf32>
    %225 = tpu.concatenate %224, %223 in 0 : vector<255x64xf32>, vector<1x64xf32> -> vector<256x64xf32>
    %c5_122 = arith.constant 5 : index
    %c0_123 = arith.constant 0 : index
    %c0_124 = arith.constant 0 : index
    %226 = vector.load %arg7[%c5_122, %c0_123, %c0_124] : memref<9x256x1xf32, #tpu.memory_space<vmem>>, vector<1x256x1xf32>
    %227 = vector.shape_cast %226 : vector<1x256x1xf32> to vector<256x1xf32>
    %228 = vector.broadcast %227 : vector<256x1xf32> to vector<256x64xf32>
    %229 = arith.mulf %225, %228 : vector<256x64xf32>
    %230 = arith.truncf %229 : vector<256x64xf32> to vector<256x64xbf16>
    %c5_125 = arith.constant 5 : index
    %c0_126 = arith.constant 0 : index
    %c0_127 = arith.constant 0 : index
    %231 = vector.load %arg5[%c5_125, %c0_126, %c0_127] : memref<9x64x128xbf16, #tpu.memory_space<vmem>>, vector<1x64x128xbf16>
    %232 = vector.shape_cast %231 : vector<1x64x128xbf16> to vector<64x128xbf16>
    %cst_128 = arith.constant dense<0.000000e+00> : vector<256x128xf32>
    %233 = tpu.matmul %230, %232, %cst_128 {dimension_numbers = #tpu.dot_dimension_numbers<[1], [0], [0], [1], [0, 0, 1, 1], [], []>} : vector<256x64xbf16>, vector<64x128xbf16>, vector<256x128xf32> -> vector<256x128xf32>
    %234 = arith.addf %222, %233 : vector<256x128xf32>
    %cst_129 = arith.constant 0.000000e+00 : f32
    %235 = vector.broadcast %cst_129 : f32 to vector<15x64xf32>
    %236 = vector.extract_strided_slice %164 {offsets = [15, 0], sizes = [241, 64], strides = [1, 1]} : vector<256x64xf32> to vector<241x64xf32>
    %237 = tpu.concatenate %236, %235 in 0 : vector<241x64xf32>, vector<15x64xf32> -> vector<256x64xf32>
    %c6_130 = arith.constant 6 : index
    %c0_131 = arith.constant 0 : index
    %c0_132 = arith.constant 0 : index
    %238 = vector.load %arg7[%c6_130, %c0_131, %c0_132] : memref<9x256x1xf32, #tpu.memory_space<vmem>>, vector<1x256x1xf32>
    %239 = vector.shape_cast %238 : vector<1x256x1xf32> to vector<256x1xf32>
    %240 = vector.broadcast %239 : vector<256x1xf32> to vector<256x64xf32>
    %241 = arith.mulf %237, %240 : vector<256x64xf32>
    %242 = arith.truncf %241 : vector<256x64xf32> to vector<256x64xbf16>
    %c6_133 = arith.constant 6 : index
    %c0_134 = arith.constant 0 : index
    %c0_135 = arith.constant 0 : index
    %243 = vector.load %arg5[%c6_133, %c0_134, %c0_135] : memref<9x64x128xbf16, #tpu.memory_space<vmem>>, vector<1x64x128xbf16>
    %244 = vector.shape_cast %243 : vector<1x64x128xbf16> to vector<64x128xbf16>
    %cst_136 = arith.constant dense<0.000000e+00> : vector<256x128xf32>
    %245 = tpu.matmul %242, %244, %cst_136 {dimension_numbers = #tpu.dot_dimension_numbers<[1], [0], [0], [1], [0, 0, 1, 1], [], []>} : vector<256x64xbf16>, vector<64x128xbf16>, vector<256x128xf32> -> vector<256x128xf32>
    %246 = arith.addf %234, %245 : vector<256x128xf32>
    %cst_137 = arith.constant 0.000000e+00 : f32
    %247 = vector.broadcast %cst_137 : f32 to vector<16x64xf32>
    %248 = vector.extract_strided_slice %164 {offsets = [16, 0], sizes = [240, 64], strides = [1, 1]} : vector<256x64xf32> to vector<240x64xf32>
    %249 = tpu.concatenate %248, %247 in 0 : vector<240x64xf32>, vector<16x64xf32> -> vector<256x64xf32>
    %c7_138 = arith.constant 7 : index
    %c0_139 = arith.constant 0 : index
    %c0_140 = arith.constant 0 : index
    %250 = vector.load %arg7[%c7_138, %c0_139, %c0_140] : memref<9x256x1xf32, #tpu.memory_space<vmem>>, vector<1x256x1xf32>
    %251 = vector.shape_cast %250 : vector<1x256x1xf32> to vector<256x1xf32>
    %252 = vector.broadcast %251 : vector<256x1xf32> to vector<256x64xf32>
    %253 = arith.mulf %249, %252 : vector<256x64xf32>
    %254 = arith.truncf %253 : vector<256x64xf32> to vector<256x64xbf16>
    %c7_141 = arith.constant 7 : index
    %c0_142 = arith.constant 0 : index
    %c0_143 = arith.constant 0 : index
    %255 = vector.load %arg5[%c7_141, %c0_142, %c0_143] : memref<9x64x128xbf16, #tpu.memory_space<vmem>>, vector<1x64x128xbf16>
    %256 = vector.shape_cast %255 : vector<1x64x128xbf16> to vector<64x128xbf16>
    %cst_144 = arith.constant dense<0.000000e+00> : vector<256x128xf32>
    %257 = tpu.matmul %254, %256, %cst_144 {dimension_numbers = #tpu.dot_dimension_numbers<[1], [0], [0], [1], [0, 0, 1, 1], [], []>} : vector<256x64xbf16>, vector<64x128xbf16>, vector<256x128xf32> -> vector<256x128xf32>
    %258 = arith.addf %246, %257 : vector<256x128xf32>
    %cst_145 = arith.constant 0.000000e+00 : f32
    %259 = vector.broadcast %cst_145 : f32 to vector<17x64xf32>
    %260 = vector.extract_strided_slice %164 {offsets = [17, 0], sizes = [239, 64], strides = [1, 1]} : vector<256x64xf32> to vector<239x64xf32>
    %261 = tpu.concatenate %260, %259 in 0 : vector<239x64xf32>, vector<17x64xf32> -> vector<256x64xf32>
    %c8_146 = arith.constant 8 : index
    %c0_147 = arith.constant 0 : index
    %c0_148 = arith.constant 0 : index
    %262 = vector.load %arg7[%c8_146, %c0_147, %c0_148] : memref<9x256x1xf32, #tpu.memory_space<vmem>>, vector<1x256x1xf32>
    %263 = vector.shape_cast %262 : vector<1x256x1xf32> to vector<256x1xf32>
    %264 = vector.broadcast %263 : vector<256x1xf32> to vector<256x64xf32>
    %265 = arith.mulf %261, %264 : vector<256x64xf32>
    %266 = arith.truncf %265 : vector<256x64xf32> to vector<256x64xbf16>
    %c8_149 = arith.constant 8 : index
    %c0_150 = arith.constant 0 : index
    %c0_151 = arith.constant 0 : index
    %267 = vector.load %arg5[%c8_149, %c0_150, %c0_151] : memref<9x64x128xbf16, #tpu.memory_space<vmem>>, vector<1x64x128xbf16>
    %268 = vector.shape_cast %267 : vector<1x64x128xbf16> to vector<64x128xbf16>
    %cst_152 = arith.constant dense<0.000000e+00> : vector<256x128xf32>
    %269 = tpu.matmul %266, %268, %cst_152 {dimension_numbers = #tpu.dot_dimension_numbers<[1], [0], [0], [1], [0, 0, 1, 1], [], []>} : vector<256x64xbf16>, vector<64x128xbf16>, vector<256x128xf32> -> vector<256x128xf32>
    %270 = arith.addf %258, %269 : vector<256x128xf32>
    %c0_153 = arith.constant 0 : index
    %c0_154 = arith.constant 0 : index
    %271 = vector.load %arg6[%c0_153, %c0_154] : memref<1x128xf32, #tpu.memory_space<vmem>>, vector<1x128xf32>
    %272 = vector.broadcast %271 : vector<1x128xf32> to vector<256x128xf32>
    %273 = arith.addf %270, %272 : vector<256x128xf32>
    %cst_155 = arith.constant 0.000000e+00 : f32
    %274 = vector.broadcast %cst_155 : f32 to vector<256x128xf32>
    %275 = arith.maximumf %273, %274 : vector<256x128xf32>
    %c0_156 = arith.constant 0 : index
    %c0_157 = arith.constant 0 : index
    %276 = vector.load %arg8[%c0_156, %c0_157] : memref<64x256xf32, #tpu.memory_space<vmem>>, vector<64x256xf32>
    %cst_158 = arith.constant dense<0.000000e+00> : vector<64x128xf32>
    %277 = tpu.matmul %276, %275, %cst_158 {dimension_numbers = #tpu.dot_dimension_numbers<[1], [0], [0], [1], [0, 0, 1, 1], [], []>} : vector<64x256xf32>, vector<256x128xf32>, vector<64x128xf32> -> vector<64x128xf32>
    %278 = arith.truncf %164 : vector<256x64xf32> to vector<256x64xbf16>
    %c0_159 = arith.constant 0 : index
    %c0_160 = arith.constant 0 : index
    %279 = vector.load %arg10[%c0_159, %c0_160] : memref<64x64xbf16, #tpu.memory_space<vmem>>, vector<64x64xbf16>
    %cst_161 = arith.constant dense<0.000000e+00> : vector<256x64xf32>
    %280 = tpu.matmul %278, %279, %cst_161 {dimension_numbers = #tpu.dot_dimension_numbers<[1], [0], [0], [1], [0, 0, 1, 1], [], []>} : vector<256x64xbf16>, vector<64x64xbf16>, vector<256x64xf32> -> vector<256x64xf32>
    %c0_162 = arith.constant 0 : index
    %c0_163 = arith.constant 0 : index
    %281 = vector.load %arg11[%c0_162, %c0_163] : memref<1x64xf32, #tpu.memory_space<vmem>>, vector<1x64xf32>
    %282 = vector.broadcast %281 : vector<1x64xf32> to vector<256x64xf32>
    %283 = arith.addf %280, %282 : vector<256x64xf32>
    %cst_164 = arith.constant 0.000000e+00 : f32
    %284 = vector.broadcast %cst_164 : f32 to vector<256x64xf32>
    %285 = arith.maximumf %283, %284 : vector<256x64xf32>
    %286 = arith.truncf %277 : vector<64x128xf32> to vector<64x128xbf16>
    %c0_165 = arith.constant 0 : index
    %c0_166 = arith.constant 0 : index
    %287 = vector.load %arg12[%c0_165, %c0_166] : memref<128x64xbf16, #tpu.memory_space<vmem>>, vector<128x64xbf16>
    %cst_167 = arith.constant dense<0.000000e+00> : vector<64x64xf32>
    %288 = tpu.matmul %286, %287, %cst_167 {dimension_numbers = #tpu.dot_dimension_numbers<[1], [0], [0], [1], [0, 0, 1, 1], [], []>} : vector<64x128xbf16>, vector<128x64xbf16>, vector<64x64xf32> -> vector<64x64xf32>
    %c0_168 = arith.constant 0 : index
    %c0_169 = arith.constant 0 : index
    %289 = vector.load %arg13[%c0_168, %c0_169] : memref<1x64xf32, #tpu.memory_space<vmem>>, vector<1x64xf32>
    %290 = vector.broadcast %289 : vector<1x64xf32> to vector<64x64xf32>
    %291 = arith.addf %288, %290 : vector<64x64xf32>
    %cst_170 = arith.constant 0.000000e+00 : f32
    %292 = vector.broadcast %cst_170 : f32 to vector<64x64xf32>
    %293 = arith.maximumf %291, %292 : vector<64x64xf32>
    %c0_171 = arith.constant 0 : index
    %c0_172 = arith.constant 0 : index
    %294 = vector.load %arg9[%c0_171, %c0_172] : memref<256x64xf32, #tpu.memory_space<vmem>>, vector<256x64xf32>
    %cst_173 = arith.constant dense<0.000000e+00> : vector<256x64xf32>
    %295 = tpu.matmul %294, %293, %cst_173 {dimension_numbers = #tpu.dot_dimension_numbers<[1], [0], [0], [1], [0, 0, 1, 1], [], []>} : vector<256x64xf32>, vector<64x64xf32>, vector<256x64xf32> -> vector<256x64xf32>
    %296 = arith.truncf %295 : vector<256x64xf32> to vector<256x64xbf16>
    %c0_174 = arith.constant 0 : index
    %c0_175 = arith.constant 0 : index
    %297 = vector.load %arg14[%c0_174, %c0_175] : memref<64x64xbf16, #tpu.memory_space<vmem>>, vector<64x64xbf16>
    %cst_176 = arith.constant dense<0.000000e+00> : vector<256x64xf32>
    %298 = tpu.matmul %296, %297, %cst_176 {dimension_numbers = #tpu.dot_dimension_numbers<[1], [0], [0], [1], [0, 0, 1, 1], [], []>} : vector<256x64xbf16>, vector<64x64xbf16>, vector<256x64xf32> -> vector<256x64xf32>
    %299 = arith.truncf %285 : vector<256x64xf32> to vector<256x64xbf16>
    %c0_177 = arith.constant 0 : index
    %c0_178 = arith.constant 0 : index
    %300 = vector.load %arg15[%c0_177, %c0_178] : memref<64x64xbf16, #tpu.memory_space<vmem>>, vector<64x64xbf16>
    %cst_179 = arith.constant dense<0.000000e+00> : vector<256x64xf32>
    %301 = tpu.matmul %299, %300, %cst_179 {dimension_numbers = #tpu.dot_dimension_numbers<[1], [0], [0], [1], [0, 0, 1, 1], [], []>} : vector<256x64xbf16>, vector<64x64xbf16>, vector<256x64xf32> -> vector<256x64xf32>
    %302 = arith.addf %298, %301 : vector<256x64xf32>
    %c0_180 = arith.constant 0 : index
    %c0_181 = arith.constant 0 : index
    %303 = vector.load %arg16[%c0_180, %c0_181] : memref<1x64xf32, #tpu.memory_space<vmem>>, vector<1x64xf32>
    %304 = vector.broadcast %303 : vector<1x64xf32> to vector<256x64xf32>
    %305 = arith.addf %302, %304 : vector<256x64xf32>
    %cst_182 = arith.constant 0.000000e+00 : f32
    %306 = vector.broadcast %cst_182 : f32 to vector<256x64xf32>
    %307 = arith.maximumf %305, %306 : vector<256x64xf32>
    %308 = arith.truncf %307 : vector<256x64xf32> to vector<256x64xbf16>
    %c0_183 = arith.constant 0 : index
    %c0_184 = arith.constant 0 : index
    %309 = vector.load %arg17[%c0_183, %c0_184] : memref<64x128xbf16, #tpu.memory_space<vmem>>, vector<64x128xbf16>
    %cst_185 = arith.constant dense<0.000000e+00> : vector<256x128xf32>
    %310 = tpu.matmul %308, %309, %cst_185 {dimension_numbers = #tpu.dot_dimension_numbers<[1], [0], [0], [1], [0, 0, 1, 1], [], []>} : vector<256x64xbf16>, vector<64x128xbf16>, vector<256x128xf32> -> vector<256x128xf32>
    %c0_186 = arith.constant 0 : index
    %c0_187 = arith.constant 0 : index
    %311 = vector.load %arg18[%c0_186, %c0_187] : memref<1x128xf32, #tpu.memory_space<vmem>>, vector<1x128xf32>
    %312 = vector.broadcast %311 : vector<1x128xf32> to vector<256x128xf32>
    %313 = arith.addf %310, %312 : vector<256x128xf32>
    %c0_188 = arith.constant 0 : index
    %c0_189 = arith.constant 0 : index
    %314 = vector.load %arg19[%c0_188, %c0_189] : memref<256x128xf32, #tpu.memory_space<vmem>>, vector<256x128xf32>
    tpu.vector_store %arg19[%c0_188, %c0_189], %313 {strides = array<i32>} : memref<256x128xf32, #tpu.memory_space<vmem>>, vector<256x128xf32>,
    return
  }
}

</mosaic_0001>

<bundles_post_ra>
// kernel: pillar3d_detector_forward.1
= control target key start
LH: loop header
LB: loop body
LE: loop exit
PB: predicated region body
PF: predicated region fallthrough
CT: control target
= control target key end

     0   :  { %v14565_v1 = vmov 0   ;;  %vm135_vm0 = vcmask 261120   ;;  %s14567_s27 = smov 96   ;;  %s14568_s30 = smov 64   ;;  %vm6906_vm1 = vcmask 523264   ;;  %vm1959_vm2 = vcmask 1040384   ;;  %s20169_s1 = inlined_call_operand.vmem [shape: bf16[32,256], index: 1, kind: input, shape index: {}]   ;;  %s20170_s0 = inlined_call_operand.vmem [shape: f32[256,32], index: 0, kind: input, shape index: {}]   ;;  %s20171_s2 = inlined_call_operand.vmem [shape: f32[1,32], index: 2, kind: input, shape index: {}]   ;;  %s20172_s7 = inlined_call_operand.vmem [shape: f32[9,256,1], index: 7, kind: input, shape index: {}]   ;;  %s20173_s3 = inlined_call_operand.vmem [shape: bf16[9,32,64], index: 3, kind: input, shape index: {}]   ;;  %s20174_s5 = inlined_call_operand.vmem [shape: bf16[9,64,128], index: 5, kind: input, shape index: {}]   ;;  %s20175_s4 = inlined_call_operand.vmem [shape: f32[1,64], index: 4, kind: input, shape index: {}]   ;;  %s20176_s8 = inlined_call_operand.vmem [shape: f32[64,256], index: 8, kind: input, shape index: {}]   ;;  %s20177_s10 = inlined_call_operand.vmem [shape: bf16[64,64], index: 10, kind: input, shape index: {}]   ;;  %s20178_s6 = inlined_call_operand.vmem [shape: f32[1,128], index: 6, kind: input, shape index: {}]   ;;  %s20179_s12 = inlined_call_operand.vmem [shape: bf16[128,64], index: 12, kind: input, shape index: {}]   ;;  %s20180_s15 = inlined_call_operand.vmem [shape: bf16[64,64], index: 15, kind: input, shape index: {}]   ;;  %s20181_s11 = inlined_call_operand.vmem [shape: f32[1,64], index: 11, kind: input, shape index: {}]   ;;  %s20182_s9 = inlined_call_operand.vmem [shape: f32[256,64], index: 9, kind: input, shape index: {}]   ;;  %s20183_s14 = inlined_call_operand.vmem [shape: bf16[64,64], index: 14, kind: input, shape index: {}]   ;;  %s20184_s13 = inlined_call_operand.vmem [shape: f32[1,64], index: 13, kind: input, shape index: {}]   ;;  %s20185_s17 = inlined_call_operand.vmem [shape: bf16[64,128], index: 17, kind: input, shape index: {}]   ;;  %s20186_s16 = inlined_call_operand.vmem [shape: f32[1,64], index: 16, kind: input, shape index: {}]   ;;  %s20187_s18 = inlined_call_operand.vmem [shape: f32[1,128], index: 18, kind: input, shape index: {}]   ;;  %s20188_s19 = inlined_call_operand.vmem [shape: f32[256,128], index: 19, kind: output, shape index: {}]  }
   0x1   :  { %20722 = sst [smem:[#allocation282_spill]] %s20169_s1  ;;  %216 = vmatprep.mubr.bf16.mxu0 %v14565_v1  ;;  %366 = vmatprep.mubr.bf16.mxu1 %v14565_v1  ;;  %vm2983_vm3 = vcmask 1046528  }
   0x2   :  { %20723 = sst [smem:[#allocation283_spill]] %s20170_s0  ;;  %s20726_s20 = sld [smem:[#allocation282_spill]]  ;;  %14476 = vset.pattern.permute.xlu1 %v14565_v1  ;;  %14477 = vset.pattern.permute.xlu0 %v14565_v1 }
   0x3   :  { %20724 = sst [smem:[#allocation284_spill]] %s20171_s2  ;;  %s20727_s26 = sld [smem:[#allocation283_spill]] }
   0x4   :  { %20725 = sst [smem:[#allocation285_spill]] %s20172_s7  ;;  %s20728_s25 = sld [smem:[#allocation284_spill]] }
   0x5   :  { %s14566_s7 = smov 32   ;;  %s20729_s1 = sld [smem:[#allocation285_spill]] }
   0x8   :  { %v14478_v0 = vld [vmem:[%s20726_s20 + $0x4] ss:$8 sps:$4 sm:$0xff]   ;;  %v14480_v2 = vld [vmem:[%s20726_s20] ss:$8 sps:$4 sm:$0xff]   ;;  %v14481_v3 = vld [vmem:[%s20726_s20 + $0x14] ss:$8 sps:$4 sm:$0xff]  }
   0x9   :  { %184 = vmatprep.subr.bf16.mxu0 %v14478_v0  ;;  %13924 = vmatprep.subr.bf16.mxu1 %v14478_v0  ;;  %v14483_v4 = vld [vmem:[%s20726_s20 + $0x10] ss:$8 sps:$4 sm:$0xff]   ;;  %v63_v5 = vld [vmem:[%s20727_s26] sm:$0xff]  ;;  %v64_v6 = vld [vmem:[%s20727_s26 + $0x8] sm:$0xff] }
   0xa   :  { %185 = vmatpush1.bf16.msra.mxu0 %v14480_v2  ;;  %13926 = vmatpush1.bf16.msra.mxu1 %v14480_v2  ;;  %v93_v7 = vld [vmem:[%s20727_s26 + $0xf0] sm:$0xff]  ;;  %v94_v8 = vld [vmem:[%s20727_s26 + $0xf8] sm:$0xff]  ;;  %v95_v9 = vpack.c.bf16 %v64_v6, %v63_v5  ;;  %v14709_v13 = vld [vmem:[%s20728_s25] ss:$0 sm:$0xff] }
   0xb   :  { %186 = vmatprep.subr.bf16.mxu0 %v14481_v3  ;;  %13925 = vmatprep.subr.bf16.mxu1 %v14481_v3  ;;  %v110_v10 = vpack.c.bf16 %v94_v8, %v93_v7  ;;  %v65_v11 = vld [vmem:[%s20727_s26 + $0x10] sm:$0xff]  ;;  %v66_v12 = vld [vmem:[%s20727_s26 + $0x18] sm:$0xff]  ;;  %v11594_v15 = vld [vmem:[%s20729_s1 + $0x100] sm:$0xff] }
   0xc   :  { %480 = vrot.lane.b32.xlu0 %v14709_v13, %s14566_s7  ;;  %934 = vrot.lane.b32.xlu1 %v14709_v13, %s14567_s27  ;;  %v96_v14 = vpack.c.bf16 %v66_v12, %v65_v11  ;;  %v11597_v16 = vld [vmem:[%s20729_s1 + $0x118] sm:$0xff]  ;;  %v11595_v17 = vld [vmem:[%s20729_s1 + $0x108] sm:$0xff] }
   0xd   :  { %v67_v18 = vld [vmem:[%s20727_s26 + $0x20] sm:$0xff]  ;;  %v68_v19 = vld [vmem:[%s20727_s26 + $0x28] sm:$0xff]  ;;  %v11596_v21 = vld [vmem:[%s20729_s1 + $0x110] sm:$0xff] }
   0xe   :  { %187 = vmatpush1.bf16.msra.mxu0 %v14483_v4  ;;  %13927 = vmatpush1.bf16.msra.mxu1 %v14483_v4  ;;  %v11599_v20 = vld [vmem:[%s20729_s1 + $0x128] sm:$0xff]  ;;  %v97_v22 = vpack.c.bf16 %v68_v19, %v67_v18  ;;  %v11601_v23 = vld [vmem:[%s20729_s1 + $0x138] sm:$0xff]  ;;  %v11598_v24 = vld [vmem:[%s20729_s1 + $0x120] sm:$0xff] }
   0xf   :  { %v69_v25 = vld [vmem:[%s20727_s26 + $0x30] sm:$0xff]  ;;  %v70_v26 = vld [vmem:[%s20727_s26 + $0x38] sm:$0xff]  ;;  %v11603_v27 = vld [vmem:[%s20729_s1 + $0x148] sm:$0xff] }
  0x10   :  { %707 = vrot.lane.b32.xlu0 %v14709_v13, %s14568_s30  ;;  %2329 = vperm.xlu1 %14476, %v11594_v15   ;;  %v11600_v28 = vld [vmem:[%s20729_s1 + $0x130] sm:$0xff]  ;;  %v98_v29 = vpack.c.bf16 %v70_v26, %v69_v25  ;;  %v11605_v30 = vld [vmem:[%s20729_s1 + $0x158] sm:$0xff]  ;;  %v11602_v31 = vld [vmem:[%s20729_s1 + $0x140] sm:$0xff] }
  0x11   :  { %11577 = vmatmul.mubr.msk.bf16.vlgmr.msra.gmra.mrb[0].mxu0 %vm135_vm0, %v95_v9  ;;  %11592 = vmatmul.mubr.msk.bf16.vlgmr.msra.gmra.mrb[0].mxu1 %vm135_vm0, %v110_v10  ;;  %v71_v32 = vld [vmem:[%s20727_s26 + $0x40] sm:$0xff]  ;;  %v72_v33 = vld [vmem:[%s20727_s26 + $0x48] sm:$0xff]  ;;  %v11604_v35 = vld [vmem:[%s20729_s1 + $0x150] sm:$0xff] }
  0x12   :  { %226 = vmatprep.mubr.bf16.mxu0 %v14565_v1  ;;  %v11607_v34 = vld [vmem:[%s20729_s1 + $0x168] sm:$0xff]  ;;  %v99_v36 = vpack.c.bf16 %v72_v33, %v71_v32  ;;  %v11609_v37 = vld [vmem:[%s20729_s1 + $0x178] sm:$0xff]  ;;  %v11606_v38 = vld [vmem:[%s20729_s1 + $0x160] sm:$0xff] }
  0x13   :  { %v73_v39 = vld [vmem:[%s20727_s26 + $0x50] sm:$0xff]  ;;  %v74_v40 = vld [vmem:[%s20727_s26 + $0x58] sm:$0xff]  ;;  %v11611_v41 = vld [vmem:[%s20729_s1 + $0x188] sm:$0xff] }
  0x14   :  { %2344 = vperm.xlu1 %14476, %v11597_v16   ;;  %2334 = vperm.xlu0 %14477, %v11595_v17   ;;  %v11608_v42 = vld [vmem:[%s20729_s1 + $0x170] sm:$0xff]  ;;  %v100_v43 = vpack.c.bf16 %v74_v40, %v73_v39  ;;  %v11613_v44 = vld [vmem:[%s20729_s1 + $0x198] sm:$0xff]  ;;  %v11610_v45 = vld [vmem:[%s20729_s1 + $0x180] sm:$0xff] }
  0x15   :  { %v75_v46 = vld [vmem:[%s20727_s26 + $0x60] sm:$0xff]  ;;  %v76_v47 = vld [vmem:[%s20727_s26 + $0x68] sm:$0xff]  ;;  %v11612_v49 = vld [vmem:[%s20729_s1 + $0x190] sm:$0xff] }
  0x16   :  { %v11615_v48 = vld [vmem:[%s20729_s1 + $0x1a8] sm:$0xff]  ;;  %v101_v50 = vpack.c.bf16 %v76_v47, %v75_v46  ;;  %v11617_v51 = vld [vmem:[%s20729_s1 + $0x1b8] sm:$0xff]  ;;  %v11614_v52 = vld [vmem:[%s20729_s1 + $0x1a0] sm:$0xff] }
  0x17   :  { %v77_v53 = vld [vmem:[%s20727_s26 + $0x70] sm:$0xff]  ;;  %v78_v54 = vld [vmem:[%s20727_s26 + $0x78] sm:$0xff]  ;;  %v79_v57 = vld [vmem:[%s20727_s26 + $0x80] sm:$0xff] }
  0x18   :  { %2354 = vperm.xlu1 %14476, %v11599_v20   ;;  %2339 = vperm.xlu0 %14477, %v11596_v21   ;;  %v11616_v55 = vld [vmem:[%s20729_s1 + $0x1b0] sm:$0xff]  ;;  %v102_v56 = vpack.c.bf16 %v78_v54, %v77_v53  ;;  %v80_v58 = vld [vmem:[%s20727_s26 + $0x88] sm:$0xff]  ;;  %v82_v61 = vld [vmem:[%s20727_s26 + $0x98] sm:$0xff] }
  0x19   :  { %11578 = vmatmul.mubr.msk.bf16.gmra.mrb[4].mxu0 %vm135_vm0, %v96_v14  ;;  %v103_v59 = vpack.c.bf16 %v80_v58, %v79_v57  ;;  %v81_v60 = vld [vmem:[%s20727_s26 + $0x90] sm:$0xff]  ;;  %v83_v63 = vld [vmem:[%s20727_s26 + $0xa0] sm:$0xff]  ;;  %v84_v0 = vld [vmem:[%s20727_s26 + $0xa8] sm:$0xff] }
  0x1a   :  { %236 = vmatprep.mubr.bf16.mxu0 %v14565_v1  ;;  %v104_v62 = vpack.c.bf16 %v82_v61, %v81_v60  ;;  %v105_v2 = vpack.c.bf16 %v84_v0, %v83_v63  ;;  %v85_v3 = vld [vmem:[%s20727_s26 + $0xb0] sm:$0xff]  ;;  %v86_v4 = vld [vmem:[%s20727_s26 + $0xb8] sm:$0xff]  ;;  %v87_v6 = vld [vmem:[%s20727_s26 + $0xc0] sm:$0xff] }
  0x1b   :  { %v106_v5 = vpack.c.bf16 %v86_v4, %v85_v3  ;;  %v88_v7 = vld [vmem:[%s20727_s26 + $0xc8] sm:$0xff]  ;;  %v89_v9 = vld [vmem:[%s20727_s26 + $0xd0] sm:$0xff]  ;;  %v90_v10 = vld [vmem:[%s20727_s26 + $0xd8] sm:$0xff] }
  0x1c   :  { %2364 = vperm.xlu1 %14476, %v11601_v23   ;;  %2349 = vperm.xlu0 %14477, %v11598_v24   ;;  %v107_v8 = vpack.c.bf16 %v88_v7, %v87_v6  ;;  %v108_v11 = vpack.c.bf16 %v90_v10, %v89_v9  ;;  %v91_v12 = vld [vmem:[%s20727_s26 + $0xe0] sm:$0xff]  ;;  %v92_v14 = vld [vmem:[%s20727_s26 + $0xe8] sm:$0xff]  ;;  %v14484_v4 = vld [vmem:[%s20173_s3 + $0x10] sm:$0xff]  }
  0x1d   :  { %v109_v15 = vpack.c.bf16 %v92_v14, %v91_v12  ;;  %12944 = vmatprep.subr.bf16.mxu1 %v14484_v4 }
  0x1e   :  { %12945 = vmatpush3.bf16.msra.mxu1 %v14484_v4 }
  0x20   :  { %2374 = vperm.xlu1 %14476, %v11603_v27   ;;  %2359 = vperm.xlu0 %14477, %v11600_v28  }
  0x21   :  { %11579 = vmatmul.mubr.msk.bf16.gmra.mrb[8].mxu0 %vm135_vm0, %v97_v22 }
  0x22   :  { %246 = vmatprep.mubr.bf16.mxu0 %v14565_v1 }
  0x24   :  { %2384 = vperm.xlu1 %14476, %v11605_v30   ;;  %2369 = vperm.xlu0 %14477, %v11602_v31  }
  0x28   :  { %2394 = vperm.xlu1 %14476, %v11607_v34   ;;  %2379 = vperm.xlu0 %14477, %v11604_v35  }
  0x29   :  { %11580 = vmatmul.mubr.msk.bf16.gmra.mrb[12].mxu0 %vm135_vm0, %v98_v29 }
  0x2a   :  { %256 = vmatprep.mubr.bf16.mxu0 %v14565_v1 }
  0x2c   :  { %2404 = vperm.xlu1 %14476, %v11609_v37   ;;  %2389 = vperm.xlu0 %14477, %v11606_v38  }
  0x30   :  { %2414 = vperm.xlu1 %14476, %v11611_v41   ;;  %2399 = vperm.xlu0 %14477, %v11608_v42  }
  0x31   :  { %11581 = vmatmul.mubr.msk.bf16.gmra.mrb[16].mxu0 %vm135_vm0, %v99_v36 }
  0x32   :  { %266 = vmatprep.mubr.bf16.mxu0 %v14565_v1 }
  0x34   :  { %2424 = vperm.xlu1 %14476, %v11613_v44   ;;  %2409 = vperm.xlu0 %14477, %v11610_v45  }
  0x38   :  { %2434 = vperm.xlu1 %14476, %v11615_v48   ;;  %2419 = vperm.xlu0 %14477, %v11612_v49  }
  0x39   :  { %11582 = vmatmul.mubr.msk.bf16.gmra.mrb[20].mxu0 %vm135_vm0, %v100_v43 }
  0x3a   :  { %276 = vmatprep.mubr.bf16.mxu0 %v14565_v1 }
  0x3c   :  { %2444 = vperm.xlu1 %14476, %v11617_v51   ;;  %2429 = vperm.xlu0 %14477, %v11614_v52  }
  0x40   :  { %2439 = vperm.xlu0 %14477, %v11616_v55  }
  0x41   :  { %11583 = vmatmul.mubr.msk.bf16.gmra.mrb[24].mxu0 %vm135_vm0, %v101_v50 }
  0x42   :  { %286 = vmatprep.mubr.bf16.mxu0 %v14565_v1 }
  0x49   :  { %11584 = vmatmul.mubr.msk.bf16.gmra.mrb[28].mxu0 %vm135_vm0, %v102_v56 }
  0x4a   :  { %296 = vmatprep.mubr.bf16.mxu0 %v14565_v1 }
  0x51   :  { %11585 = vmatmul.mubr.msk.bf16.gmra.mrb[32].mxu0 %vm135_vm0, %v103_v59 }
  0x52   :  { %306 = vmatprep.mubr.bf16.mxu0 %v14565_v1 }
  0x59   :  { %11586 = vmatmul.mubr.msk.bf16.gmra.mrb[36].mxu0 %vm135_vm0, %v104_v62 }
  0x5a   :  { %316 = vmatprep.mubr.bf16.mxu0 %v14565_v1 }
  0x61   :  { %11587 = vmatmul.mubr.msk.bf16.gmra.mrb[40].mxu0 %vm135_vm0, %v105_v2 }
  0x62   :  { %326 = vmatprep.mubr.bf16.mxu0 %v14565_v1 }
  0x69   :  { %11588 = vmatmul.mubr.msk.bf16.gmra.mrb[44].mxu0 %vm135_vm0, %v106_v5  ;;  %v14485_v5 = vld [vmem:[%s20173_s3 + $0x18] sm:$0xff]  }
  0x6a   :  { %336 = vmatprep.mubr.bf16.mxu0 %v14565_v1  ;;  %12946 = vmatprep.subr.bf16.mxu1 %v14485_v5 }
  0x6b   :  { %12947 = vmatpush3.bf16.msra.mxu1 %v14485_v5 }
  0x71   :  { %11589 = vmatmul.mubr.msk.bf16.gmra.mrb[48].mxu0 %vm135_vm0, %v107_v8 }
  0x72   :  { %346 = vmatprep.mubr.bf16.mxu0 %v14565_v1 }
  0x79   :  { %11590 = vmatmul.mubr.msk.bf16.gmra.mrb[52].mxu0 %vm135_vm0, %v108_v11 }
  0x7a   :  { %356 = vmatprep.mubr.bf16.mxu0 %v14565_v1 }
  0x7e   :  { %v14894_v16 = vpop.permute.xlu0 %480  ;;  %v14896_v17 = vpop.permute.xlu1 %934 }
  0x81   :  { %11591 = vmatmul.mubr.msk.bf16.gmra.mrb[56].mxu0 %vm135_vm0, %v109_v15 }
  0x82   :  { %v14898_v18 = vpop.permute.xlu0 %707 }
  0x8f   :  { %v2330_v19 = vpop.permute.xlu1 %2329 }
  0x90   :  { %v2487_v20 = vmul.f32 0.0, %v2330_v19 }
  0x93   :  { %v2335_v1 = vpop.permute.xlu0 %2334 }
  0x94   :  { %v2488_v21 = vmul.f32 0.0, %v2335_v1 }
  0x96   :  { %v2519_v22 = vpack.c.bf16 %v2488_v21, %v2487_v20 }
  0x98   :  { %12948 = vmatprep.mubr.msk.bf16.mxu1 %vm135_vm0, %v2519_v22  ;;  %13276 = vmatprep.mubr.msk.bf16.mxu0 %vm6906_vm1, %v2519_v22 }
  0xe4   :  { %v14902_v23 = vpop.f32.mrb[0].mxu0  ;;  %v14904_v24 = vpop.f32.mrb[0].mxu1 }
  0xe5   :  { %20730 = vst [vmem:[#allocation2_spill] sm:$0xff] %v14904_v24  ;;  %v14906_v25 = vpop.f32.mrb[1].mxu0  ;;  %v14908_v26 = vpop.f32.mrb[1].mxu1  ;;  %v483_v31 = vadd.f32 %v14894_v16, %v14902_v23  ;;  %v710_v35 = vadd.f32 %v14898_v18, %v14902_v23  ;;  %v937_v42 = vadd.f32 %v14896_v17, %v14902_v23 }
  0xe6   :  { %20731 = vst [vmem:[#allocation3_spill] sm:$0xff] %v14908_v26  ;;  %v14910_v27 = vpop.f32.mrb[2].mxu0  ;;  %v14912_v28 = vpop.f32.mrb[2].mxu1  ;;  %v1257_v33 = vadd.f32 %v14894_v16, %v14906_v25  ;;  %v1481_v38 = vadd.f32 %v14898_v18, %v14906_v25  ;;  %v1705_v44 = vadd.f32 %v14896_v17, %v14906_v25 }
  0xe7   :  { %20732 = vst [vmem:[#allocation4_spill] sm:$0xff] %v14912_v28  ;;  %v14914_v29 = vpop.f32.mrb[3].mxu0  ;;  %v14916_v30 = vpop.f32.mrb[3].mxu1  ;;  %v515_v32 = vmax.f32 %v483_v31, 0.0  ;;  %v742_v40 = vmax.f32 %v710_v35, 0.0  ;;  %v969_v45 = vmax.f32 %v937_v42, 0.0  ;;  %v484_v50 = vadd.f32 %v14894_v16, %v14910_v27 }
  0xe8   :  { %20733 = vst [vmem:[#allocation5_spill] sm:$0xff] %v14916_v30  ;;  %v1289_v36 = vmax.f32 %v1257_v33, 0.0  ;;  %v1513_v43 = vmax.f32 %v1481_v38, 0.0  ;;  %v1258_v46 = vadd.f32 %v14894_v16, %v14914_v29  ;;  %v1737_v48 = vmax.f32 %v1705_v44, 0.0 }
  0xe9   :  { %579 = vrot.lane.b32.xlu1 %v515_v32, %s14567_s27  ;;  %v1482_v54 = vadd.f32 %v14898_v18, %v14914_v29  ;;  %v516_v55 = vmax.f32 %v484_v50, 0.0  ;;  %v711_v56 = vadd.f32 %v14898_v18, %v14910_v27  ;;  %v1706_v58 = vadd.f32 %v14896_v17, %v14914_v29 }
  0xea   :  { %1353 = vrot.lane.b32.xlu0 %v1289_v36, %s14567_s27  ;;  %v1290_v52 = vmax.f32 %v1258_v46, 0.0  ;;  %v938_v62 = vadd.f32 %v14896_v17, %v14910_v27 }
  0xeb   :  { %v1514_v57 = vmax.f32 %v1482_v54, 0.0  ;;  %v743_v60 = vmax.f32 %v711_v56, 0.0  ;;  %v1738_v0 = vmax.f32 %v1706_v58, 0.0 }
  0xec   :  { %v14922_v34 = vpop.f32.mrb[4].mxu0  ;;  %v970_v6 = vmax.f32 %v938_v62, 0.0 }
  0xed   :  { %v14927_v37 = vpop.f32.mrb[5].mxu0  ;;  %806 = vrot.lane.b32.xlu1 %v742_v40, %s14568_s30  ;;  %v485_v3 = vadd.f32 %v14894_v16, %v14922_v34  ;;  %v712_v7 = vadd.f32 %v14898_v18, %v14922_v34  ;;  %v939_v14 = vadd.f32 %v14896_v17, %v14922_v34 }
  0xee   :  { %v14931_v39 = vpop.f32.mrb[6].mxu0  ;;  %1577 = vrot.lane.b32.xlu0 %v1513_v43, %s14568_s30  ;;  %v1259_v22 = vadd.f32 %v14894_v16, %v14927_v37  ;;  %v1483_v38 = vadd.f32 %v14898_v18, %v14927_v37  ;;  %v1707_v46 = vadd.f32 %v14896_v17, %v14927_v37 }
  0xef   :  { %v14934_v41 = vpop.f32.mrb[7].mxu0  ;;  %v517_v8 = vmax.f32 %v485_v3, 0.0  ;;  %v486_v9 = vadd.f32 %v14894_v16, %v14931_v39  ;;  %v744_v11 = vmax.f32 %v712_v7, 0.0  ;;  %v713_v1 = vadd.f32 %v14898_v18, %v14931_v39 }
  0xf0   :  { %v971_v21 = vmax.f32 %v939_v14, 0.0  ;;  %v940_v32 = vadd.f32 %v14896_v17, %v14931_v39  ;;  %v1291_v35 = vmax.f32 %v1259_v22, 0.0  ;;  %v1260_v44 = vadd.f32 %v14894_v16, %v14934_v41  ;;  %v15059_v14 = vpop.permute.xlu1 %2344  ;;  %v15066_v22 = vpop.permute.xlu0 %2339 }
  0xf1   :  { %1033 = vrot.lane.b32.xlu1 %v969_v45, %s14566_s7  ;;  %v518_v19 = vmax.f32 %v486_v9, 0.0  ;;  %v745_v31 = vmax.f32 %v713_v1, 0.0  ;;  %v1515_v45 = vmax.f32 %v1483_v38, 0.0  ;;  %v1484_v50 = vadd.f32 %v14898_v18, %v14934_v41  ;;  %20738 = vst [vmem:[#allocation10_spill] sm:$0xff] %v15059_v14  ;;  %20739 = vst [vmem:[#allocation11_spill] sm:$0xff] %v15066_v22 }
  0xf2   :  { %1801 = vrot.lane.b32.xlu0 %v1737_v48, %s14566_s7  ;;  %v972_v42 = vmax.f32 %v940_v32, 0.0  ;;  %v1292_v48 = vmax.f32 %v1260_v44, 0.0  ;;  %v1739_v54 = vmax.f32 %v1707_v46, 0.0  ;;  %v1708_v62 = vadd.f32 %v14896_v17, %v14934_v41 }
  0xf3   :  { %v1516_v58 = vmax.f32 %v1484_v50, 0.0 }
  0xf4   :  { %v14944_v47 = vpop.f32.mrb[8].mxu0  ;;  %v1740_v4 = vmax.f32 %v1708_v62, 0.0  ;;  %v15076_v44 = vpop.permute.xlu1 %2354 }
  0xf5   :  { %v14947_v49 = vpop.f32.mrb[9].mxu0  ;;  %1355 = vrot.lane.b32.xlu1 %v1290_v52, %s14567_s27  ;;  %v487_v56 = vadd.f32 %v14894_v16, %v14944_v47  ;;  %v714_v3 = vadd.f32 %v14898_v18, %v14944_v47  ;;  %v941_v9 = vadd.f32 %v14896_v17, %v14944_v47  ;;  %20740 = vst [vmem:[#allocation12_spill] sm:$0xff] %v15076_v44 }
  0xf6   :  { %v14951_v51 = vpop.f32.mrb[10].mxu0  ;;  %581 = vrot.lane.b32.xlu0 %v516_v55, %s14567_s27  ;;  %v1261_v32 = vadd.f32 %v14894_v16, %v14947_v49 }
  0xf7   :  { %v14954_v53 = vpop.f32.mrb[11].mxu0  ;;  %v488_v5 = vadd.f32 %v14894_v16, %v14951_v51  ;;  %v746_v7 = vmax.f32 %v714_v3, 0.0  ;;  %v942_v38 = vadd.f32 %v14896_v17, %v14951_v51  ;;  %v1709_v3 = vadd.f32 %v14896_v17, %v14947_v49 }
  0xf8   :  { %v1262_v62 = vadd.f32 %v14894_v16, %v14954_v53 }
  0xf9   :  { %1579 = vrot.lane.b32.xlu1 %v1514_v57, %s14568_s30 }
  0xfa   :  { %808 = vrot.lane.b32.xlu0 %v743_v60, %s14568_s30 }
  0xfc   :  { %v14964_v59 = vpop.f32.mrb[12].mxu0 }
  0xfd   :  { %v14967_v61 = vpop.f32.mrb[13].mxu0  ;;  %1803 = vrot.lane.b32.xlu1 %v1738_v0, %s14566_s7  ;;  %v519_v0 = vmax.f32 %v487_v56, 0.0  ;;  %v974_v56 = vmax.f32 %v942_v38, 0.0 }
  0xfe   :  { %v14971_v63 = vpop.f32.mrb[14].mxu0  ;;  %1035 = vrot.lane.b32.xlu0 %v970_v6, %s14566_s7 }
  0xff   :  { %v14974_v2 = vpop.f32.mrb[15].mxu0  ;;  %v717_v24 = vadd.f32 %v14898_v18, %v14971_v63 }
 0x101   :  { %583 = vrot.lane.b32.xlu1 %v517_v8, %s14567_s27 }
 0x102   :  { %810 = vrot.lane.b32.xlu0 %v744_v11, %s14568_s30 }
 0x104   :  { %v14990_v10 = vpop.f32.mrb[16].mxu0 }
 0x105   :  { %v14993_v12 = vpop.f32.mrb[17].mxu0  ;;  %585 = vrot.lane.b32.xlu1 %v518_v19, %s14567_s27  ;;  %v520_v19 = vmax.f32 %v488_v5, 0.0  ;;  %v1294_v5 = vmax.f32 %v1262_v62, 0.0 }
 0x106   :  { %v14997_v15 = vpop.f32.mrb[18].mxu0  ;;  %1037 = vrot.lane.b32.xlu0 %v971_v21, %s14566_s7  ;;  %v715_v21 = vadd.f32 %v14898_v18, %v14951_v51 }
 0x107   :  { %v15000_v20 = vpop.f32.mrb[19].mxu0 }
 0x108   :  { %20734 = vst [vmem:[#allocation6_spill] sm:$0xff] %v15000_v20 }
 0x109   :  { %812 = vrot.lane.b32.xlu1 %v745_v31, %s14568_s30  ;;  %v973_v31 = vmax.f32 %v941_v9, 0.0 }
 0x10a   :  { %1357 = vrot.lane.b32.xlu0 %v1291_v35, %s14567_s27  ;;  %v747_v35 = vmax.f32 %v715_v21, 0.0  ;;  %v1741_v21 = vmax.f32 %v1709_v3, 0.0 }
 0x10c   :  { %v15010_v33 = vpop.f32.mrb[20].mxu0 }
 0x10d   :  { %20735 = vst [vmem:[#allocation7_spill] sm:$0xff] %v15010_v33  ;;  %v15013_v36 = vpop.f32.mrb[21].mxu0  ;;  %1039 = vrot.lane.b32.xlu1 %v972_v42, %s14566_s7 }
 0x10e   :  { %20736 = vst [vmem:[#allocation8_spill] sm:$0xff] %v15013_v36  ;;  %v15017_v40 = vpop.f32.mrb[22].mxu0  ;;  %1581 = vrot.lane.b32.xlu0 %v1515_v45, %s14568_s30  ;;  %v1293_v45 = vmax.f32 %v1261_v32, 0.0  ;;  %v489_v32 = vadd.f32 %v14894_v16, %v14964_v59 }
 0x10f   :  { %20737 = vst [vmem:[#allocation9_spill] sm:$0xff] %v15017_v40  ;;  %v15020_v43 = vpop.f32.mrb[23].mxu0 }
 0x110   :  { %v521_v62 = vmax.f32 %v489_v32, 0.0  ;;  %v943_v32 = vadd.f32 %v14896_v17, %v14964_v59 }
 0x111   :  { %1359 = vrot.lane.b32.xlu1 %v1292_v48, %s14567_s27  ;;  %v1485_v48 = vadd.f32 %v14898_v18, %v14947_v49 }
 0x112   :  { %1805 = vrot.lane.b32.xlu0 %v1739_v54, %s14566_s7  ;;  %v15085_v54 = vpop.permute.xlu0 %2349 }
 0x113   :  { %20741 = vst [vmem:[#allocation13_spill] sm:$0xff] %v15085_v54 }
 0x114   :  { %v15030_v52 = vpop.f32.mrb[24].mxu0 }
 0x115   :  { %v15033_v55 = vpop.f32.mrb[25].mxu0  ;;  %1583 = vrot.lane.b32.xlu1 %v1516_v58, %s14568_s30 }
 0x116   :  { %v15037_v57 = vpop.f32.mrb[26].mxu0  ;;  %587 = vrot.lane.b32.xlu0 %v519_v0, %s14567_s27  ;;  %v1517_v0 = vmax.f32 %v1485_v48, 0.0  ;;  %v1710_v48 = vadd.f32 %v14896_v17, %v14954_v53 }
 0x117   :  { %v15040_v60 = vpop.f32.mrb[27].mxu0 }
 0x119   :  { %1807 = vrot.lane.b32.xlu1 %v1740_v4, %s14566_s7  ;;  %v15095_v4 = vpop.permute.xlu1 %2364 }
 0x11a   :  { %814 = vrot.lane.b32.xlu0 %v746_v7, %s14568_s30  ;;  %20742 = vst [vmem:[#allocation14_spill] sm:$0xff] %v15095_v4  ;;  %v1486_v7 = vadd.f32 %v14898_v18, %v14954_v53 }
 0x11c   :  { %v15050_v6 = vpop.f32.mrb[28].mxu0  ;;  %v1518_v38 = vmax.f32 %v1486_v7, 0.0  ;;  %v490_v7 = vadd.f32 %v14894_v16, %v14971_v63 }
 0x11d   :  { %v15053_v8 = vpop.f32.mrb[29].mxu0  ;;  %589 = vrot.lane.b32.xlu1 %v520_v19, %s14567_s27  ;;  %v15102_v19 = vpop.permute.xlu0 %2359 }
 0x11e   :  { %v15057_v11 = vpop.f32.mrb[30].mxu0  ;;  %1041 = vrot.lane.b32.xlu0 %v973_v31, %s14566_s7  ;;  %20743 = vst [vmem:[#allocation15_spill] sm:$0xff] %v15102_v19 }
 0x11f   :  { %v15062_v1 = vpop.f32.mrb[31].mxu0 }
 0x121   :  { %816 = vrot.lane.b32.xlu1 %v747_v35, %s14568_s30  ;;  %v15121_v3 = vpop.permute.xlu0 %2369 }
 0x122   :  { %1361 = vrot.lane.b32.xlu0 %v1293_v45, %s14567_s27  ;;  %20748 = vst [vmem:[#allocation20_spill] sm:$0xff] %v15121_v3 }
 0x124   :  { %v15074_v42 = vpop.f32.mrb[32].mxu0 }
 0x125   :  { %v15079_v46 = vpop.f32.mrb[33].mxu0  ;;  %1043 = vrot.lane.b32.xlu1 %v974_v56, %s14566_s7  ;;  %v15116_v56 = vpop.permute.xlu1 %2374 }
 0x126   :  { %v15083_v50 = vpop.f32.mrb[34].mxu0  ;;  %1585 = vrot.lane.b32.xlu0 %v1517_v0, %s14568_s30  ;;  %20747 = vst [vmem:[#allocation19_spill] sm:$0xff] %v15116_v56  ;;  %v716_v0 = vadd.f32 %v14898_v18, %v14964_v59 }
 0x127   :  { %v15088_v58 = vpop.f32.mrb[35].mxu0 }
 0x128   :  { %v748_v30 = vmax.f32 %v716_v0, 0.0  ;;  %v975_v0 = vmax.f32 %v943_v32, 0.0  ;;  %v1487_v32 = vadd.f32 %v14898_v18, %v14967_v61 }
 0x129   :  { %1363 = vrot.lane.b32.xlu1 %v1294_v5, %s14567_s27  ;;  %v1742_v5 = vmax.f32 %v1710_v48, 0.0  ;;  %v15135_v26 = vpop.permute.xlu1 %2384  ;;  %v522_v48 = vmax.f32 %v490_v7, 0.0 }
 0x12a   :  { %1809 = vrot.lane.b32.xlu0 %v1741_v21, %s14566_s7  ;;  %20752 = vst [vmem:[#allocation24_spill] sm:$0xff] %v15135_v26 }
 0x12c   :  { %v15100_v9 = vpop.f32.mrb[36].mxu0 }
 0x12d   :  { %v15105_v31 = vpop.f32.mrb[37].mxu0  ;;  %1587 = vrot.lane.b32.xlu1 %v1518_v38, %s14568_s30 }
 0x12e   :  { %20744 = vst [vmem:[#allocation16_spill] sm:$0xff] %v15105_v31  ;;  %v15109_v35 = vpop.f32.mrb[38].mxu0  ;;  %591 = vrot.lane.b32.xlu0 %v521_v62, %s14567_s27 }
 0x12f   :  { %20745 = vst [vmem:[#allocation17_spill] sm:$0xff] %v15109_v35  ;;  %v15112_v45 = vpop.f32.mrb[39].mxu0 }
 0x130   :  { %20746 = vst [vmem:[#allocation18_spill] sm:$0xff] %v15112_v45 }
 0x131   :  { %1811 = vrot.lane.b32.xlu1 %v1742_v5, %s14566_s7  ;;  %v1263_v5 = vadd.f32 %v14894_v16, %v14967_v61 }
 0x132   :  { %818 = vrot.lane.b32.xlu0 %v748_v30, %s14568_s30  ;;  %v944_v30 = vadd.f32 %v14896_v17, %v14971_v63 }
 0x133   :  { %v1295_v26 = vmax.f32 %v1263_v5, 0.0  ;;  %v1711_v5 = vadd.f32 %v14896_v17, %v14967_v61 }
 0x134   :  { %v15126_v21 = vpop.f32.mrb[40].mxu0 }
 0x135   :  { %20749 = vst [vmem:[#allocation21_spill] sm:$0xff] %v15126_v21  ;;  %v15129_v28 = vpop.f32.mrb[41].mxu0  ;;  %v15142_v21 = vpop.permute.xlu0 %2379  ;;  %593 = vrot.lane.b32.xlu1 %v522_v48, %s14567_s27 }
 0x136   :  { %20750 = vst [vmem:[#allocation22_spill] sm:$0xff] %v15129_v28  ;;  %v15133_v38 = vpop.f32.mrb[42].mxu0  ;;  %20754 = vst [vmem:[#allocation26_spill] sm:$0xff] %v15142_v21  ;;  %1045 = vrot.lane.b32.xlu0 %v975_v0, %s14566_s7  ;;  %v749_v28 = vmax.f32 %v717_v24, 0.0  ;;  %v976_v24 = vmax.f32 %v944_v30, 0.0 }
 0x137   :  { %20751 = vst [vmem:[#allocation23_spill] sm:$0xff] %v15133_v38  ;;  %v15138_v62 = vpop.f32.mrb[43].mxu0 }
 0x138   :  { %20753 = vst [vmem:[#allocation25_spill] sm:$0xff] %v15138_v62  ;;  %v15152_v62 = vpop.permute.xlu1 %2394 }
 0x139   :  { %20756 = vst [vmem:[#allocation28_spill] sm:$0xff] %v15152_v62  ;;  %820 = vrot.lane.b32.xlu1 %v749_v28, %s14568_s30  ;;  %v15161_v38 = vpop.permute.xlu0 %2389  ;;  %v1264_v62 = vadd.f32 %v14894_v16, %v14974_v2  ;;  %v1519_v28 = vmax.f32 %v1487_v32, 0.0  ;;  %v491_v32 = vadd.f32 %v14894_v16, %v14990_v10 }
 0x13a   :  { %20759 = vst [vmem:[#allocation31_spill] sm:$0xff] %v15161_v38  ;;  %1365 = vrot.lane.b32.xlu0 %v1295_v26, %s14567_s27  ;;  %v1488_v26 = vadd.f32 %v14898_v18, %v14974_v2  ;;  %v1743_v38 = vmax.f32 %v1711_v5, 0.0  ;;  %v718_v5 = vadd.f32 %v14898_v18, %v14990_v10 }
 0x13c   :  { %v15150_v7 = vpop.f32.mrb[44].mxu0 }
 0x13d   :  { %20755 = vst [vmem:[#allocation27_spill] sm:$0xff] %v15150_v7  ;;  %v15155_v21 = vpop.f32.mrb[45].mxu0  ;;  %1047 = vrot.lane.b32.xlu1 %v976_v24, %s14566_s7 }
 0x13e   :  { %20757 = vst [vmem:[#allocation29_spill] sm:$0xff] %v15155_v21  ;;  %v15159_v48 = vpop.f32.mrb[46].mxu0  ;;  %v15171_v21 = vpop.permute.xlu1 %2404  ;;  %1589 = vrot.lane.b32.xlu0 %v1519_v28, %s14568_s30 }
 0x13f   :  { %20758 = vst [vmem:[#allocation30_spill] sm:$0xff] %v15159_v48  ;;  %v15164_v0 = vpop.f32.mrb[47].mxu0  ;;  %20761 = vst [vmem:[#allocation33_spill] sm:$0xff] %v15171_v21  ;;  %v1296_v48 = vmax.f32 %v1264_v62, 0.0  ;;  %v1520_v62 = vmax.f32 %v1488_v26, 0.0  ;;  %v1712_v21 = vadd.f32 %v14896_v17, %v14974_v2 }
 0x140   :  { %20760 = vst [vmem:[#allocation32_spill] sm:$0xff] %v15164_v0  ;;  %v15178_v0 = vpop.permute.xlu0 %2399 }
 0x141   :  { %20763 = vst [vmem:[#allocation35_spill] sm:$0xff] %v15178_v0  ;;  %1367 = vrot.lane.b32.xlu1 %v1296_v48, %s14567_s27  ;;  %v523_v48 = vmax.f32 %v491_v32, 0.0  ;;  %v1744_v0 = vmax.f32 %v1712_v21, 0.0  ;;  %v945_v32 = vadd.f32 %v14896_v17, %v14990_v10 }
 0x142   :  { %1813 = vrot.lane.b32.xlu0 %v1743_v38, %s14566_s7  ;;  %v492_v38 = vadd.f32 %v14894_v16, %v14997_v15 }
 0x144   :  { %v15176_v30 = vpop.f32.mrb[48].mxu0  ;;  %v524_v21 = vmax.f32 %v492_v38, 0.0 }
 0x145   :  { %20762 = vst [vmem:[#allocation34_spill] sm:$0xff] %v15176_v30  ;;  %v15181_v24 = vpop.f32.mrb[49].mxu0  ;;  %v15192_v30 = vpop.permute.xlu1 %2414  ;;  %1591 = vrot.lane.b32.xlu1 %v1520_v62, %s14568_s30 }
 0x146   :  { %20764 = vst [vmem:[#allocation36_spill] sm:$0xff] %v15181_v24  ;;  %v15185_v7 = vpop.f32.mrb[50].mxu0  ;;  %20767 = vst [vmem:[#allocation39_spill] sm:$0xff] %v15192_v30  ;;  %v15197_v24 = vpop.permute.xlu0 %2409  ;;  %595 = vrot.lane.b32.xlu0 %v523_v48, %s14567_s27 }
 0x147   :  { %20765 = vst [vmem:[#allocation37_spill] sm:$0xff] %v15185_v7  ;;  %v15188_v28 = vpop.f32.mrb[51].mxu0  ;;  %20768 = vst [vmem:[#allocation40_spill] sm:$0xff] %v15197_v24  ;;  %v719_v24 = vadd.f32 %v14898_v18, %v14997_v15 }
 0x148   :  { %20766 = vst [vmem:[#allocation38_spill] sm:$0xff] %v15188_v28  ;;  %v750_v28 = vmax.f32 %v718_v5, 0.0  ;;  %v1265_v5 = vadd.f32 %v14894_v16, %v14993_v12 }
 0x149   :  { %1815 = vrot.lane.b32.xlu1 %v1744_v0, %s14566_s7  ;;  %v15211_v7 = vpop.permute.xlu1 %2424  ;;  %v977_v0 = vmax.f32 %v945_v32, 0.0  ;;  %v1489_v32 = vadd.f32 %v14898_v18, %v14993_v12 }
 0x14a   :  { %20772 = vst [vmem:[#allocation44_spill] sm:$0xff] %v15211_v7  ;;  %822 = vrot.lane.b32.xlu0 %v750_v28, %s14568_s30  ;;  %v946_v28 = vadd.f32 %v14896_v17, %v14997_v15  ;;  %v1297_v7 = vmax.f32 %v1265_v5, 0.0  ;;  %v1713_v5 = vadd.f32 %v14896_v17, %v14993_v12 }
 0x14c   :  { %v15202_v26 = vpop.f32.mrb[52].mxu0 }
 0x14d   :  { %20769 = vst [vmem:[#allocation41_spill] sm:$0xff] %v15202_v26  ;;  %v15205_v30 = vpop.f32.mrb[53].mxu0  ;;  %v15218_v26 = vpop.permute.xlu0 %2419  ;;  %597 = vrot.lane.b32.xlu1 %v524_v21, %s14567_s27 }
 0x14e   :  { %20770 = vst [vmem:[#allocation42_spill] sm:$0xff] %v15205_v30  ;;  %v15209_v62 = vpop.f32.mrb[54].mxu0  ;;  %20774 = vst [vmem:[#allocation46_spill] sm:$0xff] %v15218_v26  ;;  %1049 = vrot.lane.b32.xlu0 %v977_v0, %s14566_s7  ;;  %v751_v30 = vmax.f32 %v719_v24, 0.0  ;;  %v978_v24 = vmax.f32 %v946_v28, 0.0  ;;  %v1490_v28 = vadd.f32 %v14898_v18, %v15000_v20 }
 0x14f   :  { %20771 = vst [vmem:[#allocation43_spill] sm:$0xff] %v15209_v62  ;;  %v15214_v48 = vpop.f32.mrb[55].mxu0 }
 0x150   :  { %20773 = vst [vmem:[#allocation45_spill] sm:$0xff] %v15214_v48  ;;  %v15228_v48 = vpop.permute.xlu1 %2434 }
 0x151   :  { %20776 = vst [vmem:[#allocation48_spill] sm:$0xff] %v15228_v48  ;;  %824 = vrot.lane.b32.xlu1 %v751_v30, %s14568_s30  ;;  %v15237_v62 = vpop.permute.xlu0 %2429  ;;  %v1266_v48 = vadd.f32 %v14894_v16, %v15000_v20  ;;  %v1521_v30 = vmax.f32 %v1489_v32, 0.0  ;;  %v493_v32 = vadd.f32 %v14894_v16, %v15010_v33 }
 0x152   :  { %20779 = vst [vmem:[#allocation51_spill] sm:$0xff] %v15237_v62  ;;  %1369 = vrot.lane.b32.xlu0 %v1297_v7, %s14567_s27 }
 0x153   :  { %v1298_v7 = vmax.f32 %v1266_v48, 0.0 }
 0x154   :  { %v15226_v38 = vpop.f32.mrb[56].mxu0 }
 0x155   :  { %20775 = vst [vmem:[#allocation47_spill] sm:$0xff] %v15226_v38  ;;  %v15231_v26 = vpop.f32.mrb[57].mxu0  ;;  %1051 = vrot.lane.b32.xlu1 %v978_v24, %s14566_s7  ;;  %v15254_v62 = vpop.permute.xlu0 %2439  ;;  %v1745_v24 = vmax.f32 %v1713_v5, 0.0  ;;  %v1522_v38 = vmax.f32 %v1490_v28, 0.0  ;;  %v1161_v28 = vadd.f32 %v14709_v13, %v14906_v25  ;;  %v385_v25 = vadd.f32 %v14709_v13, %v14910_v27 }
 0x156   :  { %20777 = vst [vmem:[#allocation49_spill] sm:$0xff] %v15231_v26  ;;  %v15235_v21 = vpop.f32.mrb[58].mxu0  ;;  %v384_v26 = vadd.f32 %v14709_v13, %v14902_v23  ;;  %1593 = vrot.lane.b32.xlu0 %v1521_v30, %s14568_s30  ;;  %20782 = vst [vmem:[#allocation54_spill] sm:$0xff] %v15254_v62  ;;  %v1714_v30 = vadd.f32 %v14896_v17, %v15000_v20 }
 0x157   :  { %20778 = vst [vmem:[#allocation50_spill] sm:$0xff] %v15235_v21  ;;  %v15240_v0 = vpop.f32.mrb[59].mxu0  ;;  %v15249_v21 = vpop.permute.xlu1 %2444  ;;  %v1193_v56 = vmax.f32 %v1161_v28, 0.0 }
 0x158   :  { %20780 = vst [vmem:[#allocation52_spill] sm:$0xff] %v15240_v0  ;;  %20781 = vst [vmem:[#allocation53_spill] sm:$0xff] %v15249_v21  ;;  %v416_v0 = vmax.f32 %v384_v26, 0.0  ;;  %v525_v21 = vmax.f32 %v493_v32, 0.0  ;;  %v1746_v26 = vmax.f32 %v1714_v30, 0.0  ;;  %v947_v32 = vadd.f32 %v14896_v17, %v15010_v33 }
 0x159   :  { %1371 = vrot.lane.b32.xlu1 %v1298_v7, %s14567_s27  ;;  %v720_v7 = vadd.f32 %v14898_v18, %v15010_v33  ;;  %v721_v30 = vadd.f32 %v14898_v18, %v15017_v40 }
 0x15a   :  { %1817 = vrot.lane.b32.xlu0 %v1745_v24, %s14566_s7  ;;  %v448_v5 = vmax.f32 %v416_v0, 0.0  ;;  %v494_v24 = vadd.f32 %v14894_v16, %v15017_v40 }
 0x15b   :  { %v580_v23 = vpop.permute.xlu1 %579 }
 0x15c   :  { %v15262_v48 = vpop.permute.xlu0 %1353  ;;  %v675_v45 = vmax.f32 %v448_v5, %v580_v23  ;;  %v526_v0 = vmax.f32 %v494_v24, 0.0  ;;  %v1267_v5 = vadd.f32 %v14894_v16, %v15013_v36  ;;  %v948_v24 = vadd.f32 %v14896_v17, %v15017_v40 }
 0x15d   :  { %1595 = vrot.lane.b32.xlu1 %v1522_v38, %s14568_s30  ;;  %v752_v38 = vmax.f32 %v720_v7, 0.0  ;;  %v979_v7 = vmax.f32 %v947_v32, 0.0  ;;  %v386_v32 = vadd.f32 %v14709_v13, %v14922_v34  ;;  %v1492_v40 = vadd.f32 %v14898_v18, %v15020_v43 }
 0x15e   :  { %599 = vrot.lane.b32.xlu0 %v525_v21, %s14567_s27  ;;  %v1299_v27 = vmax.f32 %v1267_v5, 0.0  ;;  %v1162_v5 = vadd.f32 %v14709_v13, %v14914_v29 }
 0x15f   :  { %v807_v62 = vpop.permute.xlu1 %806  ;;  %v418_v34 = vmax.f32 %v386_v32, 0.0 }
 0x160   :  { %v1578_v31 = vpop.permute.xlu0 %1577  ;;  %v902_v20 = vmax.f32 %v675_v45, %v807_v62 }
 0x161   :  { %1819 = vrot.lane.b32.xlu1 %v1746_v26, %s14566_s7  ;;  %v753_v26 = vmax.f32 %v721_v30, 0.0  ;;  %v450_v32 = vmax.f32 %v418_v34, 0.0  ;;  %v496_v34 = vadd.f32 %v14894_v16, %v15037_v57 }
 0x162   :  { %826 = vrot.lane.b32.xlu0 %v752_v38, %s14568_s30  ;;  %v1491_v38 = vadd.f32 %v14898_v18, %v15013_v36 }
 0x163   :  { %v1034_v21 = vpop.permute.xlu1 %1033 }
 0x164   :  { %v1129_v35 = vmax.f32 %v902_v20, %v1034_v21  ;;  %v1802_v23 = vpop.permute.xlu0 %1801  ;;  %v417_v20 = vmax.f32 %v385_v25, 0.0  ;;  %v1268_v21 = vadd.f32 %v14894_v16, %v15020_v43  ;;  %v1523_v25 = vmax.f32 %v1491_v38, 0.0 }
 0x165   :  { %601 = vrot.lane.b32.xlu1 %v526_v0, %s14567_s27  ;;  %v495_v38 = vadd.f32 %v14894_v16, %v15030_v52 }
 0x166   :  { %v1225_v45 = vmax.f32 %v1129_v35, %v1193_v56  ;;  %1053 = vrot.lane.b32.xlu0 %v979_v7, %s14566_s7  ;;  %v980_v56 = vmax.f32 %v948_v24, 0.0  ;;  %v449_v0 = vmax.f32 %v417_v20, 0.0  ;;  %v1715_v7 = vadd.f32 %v14896_v17, %v15013_v36 }
 0x167   :  { %v1356_v62 = vpop.permute.xlu1 %1355  ;;  %v1300_v24 = vmax.f32 %v1268_v21, 0.0  ;;  %v1716_v21 = vadd.f32 %v14896_v17, %v15020_v43  ;;  %v527_v3 = vmax.f32 %v495_v38, 0.0 }
 0x168   :  { %v582_v28 = vpop.permute.xlu0 %581  ;;  %v1449_v20 = vmax.f32 %v1225_v45, %v15262_v48  ;;  %v1747_v36 = vmax.f32 %v1715_v7, 0.0  ;;  %v1524_v45 = vmax.f32 %v1492_v40, 0.0  ;;  %v722_v7 = vadd.f32 %v14898_v18, %v15030_v52 }
 0x169   :  { %828 = vrot.lane.b32.xlu1 %v753_v26, %s14568_s30  ;;  %v676_v26 = vmax.f32 %v449_v0, %v582_v28  ;;  %v1194_v28 = vmax.f32 %v1162_v5, 0.0  ;;  %v387_v0 = vadd.f32 %v14709_v13, %v14931_v39  ;;  %v15317_v13 = vld [vmem:[%s20728_s25] ss:$0 sm:$0xff]  ;;  %v1748_v5 = vmax.f32 %v1716_v21, 0.0 }
 0x16a   :  { %1373 = vrot.lane.b32.xlu0 %v1299_v27, %s14567_s27  ;;  %v1163_v39 = vadd.f32 %v15317_v13, %v14927_v37  ;;  %v1164_v21 = vadd.f32 %v15317_v13, %v14934_v41 }
 0x16b   :  { %v1580_v35 = vpop.permute.xlu1 %1579 }
 0x16c   :  { %v809_v30 = vpop.permute.xlu0 %808 }
 0x16d   :  { %1055 = vrot.lane.b32.xlu1 %v980_v56, %s14566_s7  ;;  %v903_v33 = vmax.f32 %v676_v26, %v809_v30  ;;  %v1673_v30 = vmax.f32 %v1449_v20, %v1578_v31  ;;  %v419_v31 = vmax.f32 %v387_v0, 0.0  ;;  %v1195_v0 = vmax.f32 %v1163_v39, 0.0 }
 0x16e   :  { %1597 = vrot.lane.b32.xlu0 %v1523_v25, %s14568_s30 }
 0x16f   :  { %v1804_v27 = vpop.permute.xlu1 %1803  ;;  %v15324_v20 = vmax.f32 %v1673_v30, %v1802_v23  ;;  %v723_v23 = vadd.f32 %v14898_v18, %v15037_v57 }
 0x170   :  { %v1036_v56 = vpop.permute.xlu0 %1035 }
 0x171   :  { %1375 = vrot.lane.b32.xlu1 %v1300_v24, %s14567_s27  ;;  %v1130_v29 = vmax.f32 %v903_v33, %v1036_v56  ;;  %20783 = vst [vmem:[#allocation55_spill] sm:$0xff] %v15324_v20  ;;  %v754_v56 = vmax.f32 %v722_v7, 0.0  ;;  %v755_v39 = vmax.f32 %v723_v23, 0.0 }
 0x172   :  { %1821 = vrot.lane.b32.xlu0 %v1747_v36, %s14566_s7 }
 0x173   :  { %v584_v48 = vpop.permute.xlu1 %583  ;;  %v1226_v25 = vmax.f32 %v1130_v29, %v1194_v28  ;;  %v949_v29 = vadd.f32 %v14896_v17, %v15030_v52 }
 0x174   :  { %v677_v26 = vmax.f32 %v450_v32, %v584_v48  ;;  %v811_v33 = vpop.permute.xlu0 %810  ;;  %v2489_v48 = vmul.f32 %v15066_v22, %v15324_v20 }
 0x175   :  { %1599 = vrot.lane.b32.xlu1 %v1524_v45, %s14568_s30  ;;  %v1450_v36 = vmax.f32 %v1226_v25, %v1356_v62  ;;  %v451_v62 = vmax.f32 %v419_v31, 0.0  ;;  %v981_v25 = vmax.f32 %v949_v29, 0.0 }
 0x176   :  { %v904_v40 = vmax.f32 %v677_v26, %v811_v33  ;;  %603 = vrot.lane.b32.xlu0 %v527_v3, %s14567_s27  ;;  %v528_v3 = vmax.f32 %v496_v34, 0.0  ;;  %v1269_v26 = vadd.f32 %v14894_v16, %v15033_v55 }
 0x177   :  { %v586_v24 = vpop.permute.xlu1 %585  ;;  %v1674_v38 = vmax.f32 %v1450_v36, %v1580_v35  ;;  %v950_v36 = vadd.f32 %v14896_v17, %v15037_v57 }
 0x178   :  { %v1038_v28 = vpop.permute.xlu0 %1037  ;;  %v678_v45 = vmax.f32 %v451_v62, %v586_v24  ;;  %v1301_v34 = vmax.f32 %v1269_v26, 0.0  ;;  %v1493_v24 = vadd.f32 %v14898_v18, %v15033_v55 }
 0x179   :  { %1823 = vrot.lane.b32.xlu1 %v1748_v5, %s14566_s7  ;;  %v15329_v37 = vmax.f32 %v1674_v38, %v1804_v27  ;;  %v1131_v32 = vmax.f32 %v904_v40, %v1038_v28  ;;  %v1196_v5 = vmax.f32 %v1164_v21, 0.0  ;;  %v982_v29 = vmax.f32 %v950_v36, 0.0 }
 0x17a   :  { %830 = vrot.lane.b32.xlu0 %v754_v56, %s14568_s30  ;;  %v1270_v28 = vadd.f32 %v14894_v16, %v15040_v60  ;;  %v1717_v21 = vadd.f32 %v14896_v17, %v15033_v55 }
 0x17b   :  { %v813_v35 = vpop.permute.xlu1 %812  ;;  %v1227_v30 = vmax.f32 %v1131_v32, %v1195_v0  ;;  %v2490_v27 = vmul.f32 %v15059_v14, %v15329_v37  ;;  %v388_v32 = vadd.f32 %v15317_v13, %v14944_v47  ;;  %v1525_v0 = vmax.f32 %v1493_v24, 0.0 }
 0x17c   :  { %v1358_v41 = vpop.permute.xlu0 %1357  ;;  %v905_v7 = vmax.f32 %v678_v45, %v813_v35  ;;  %v1302_v35 = vmax.f32 %v1270_v28, 0.0  ;;  %v497_v47 = vadd.f32 %v14894_v16, %v15050_v6  ;;  %v1165_v24 = vadd.f32 %v15317_v13, %v14947_v49 }
 0x17d   :  { %605 = vrot.lane.b32.xlu1 %v528_v3, %s14567_s27  ;;  %v2520_v33 = vpack.c.bf16 %v2490_v27, %v2489_v48  ;;  %v1451_v23 = vmax.f32 %v1227_v30, %v1358_v41  ;;  %v1494_v48 = vadd.f32 %v14898_v18, %v15040_v60  ;;  %v420_v26 = vmax.f32 %v388_v32, 0.0 }
 0x17e   :  { %1057 = vrot.lane.b32.xlu0 %v981_v25, %s14566_s7  ;;  %v389_v41 = vadd.f32 %v15317_v13, %v14951_v51 }
 0x17f   :  { %v1040_v40 = vpop.permute.xlu1 %1039  ;;  %12949 = vmatmul.mubr.msk.bf16.vlgmr.msra.gmra.mrb[4].mxu1 %vm135_vm0, %v2520_v33  ;;  %v1526_v36 = vmax.f32 %v1494_v48, 0.0  ;;  %v951_v48 = vadd.f32 %v14896_v17, %v15050_v6 }
 0x180   :  { %v1132_v31 = vmax.f32 %v905_v7, %v1040_v40  ;;  %v1582_v38 = vpop.permute.xlu0 %1581  ;;  %v1749_v7 = vmax.f32 %v1717_v21, 0.0  ;;  %v1718_v40 = vadd.f32 %v14896_v17, %v15040_v60  ;;  %v421_v28 = vmax.f32 %v389_v41, 0.0 }
 0x181   :  { %832 = vrot.lane.b32.xlu1 %v755_v39, %s14568_s30  ;;  %v1675_v27 = vmax.f32 %v1451_v23, %v1582_v38  ;;  %v529_v38 = vmax.f32 %v497_v47, 0.0  ;;  %v498_v21 = vadd.f32 %v14894_v16, %v15057_v11  ;;  %v725_v47 = vadd.f32 %v14898_v18, %v15057_v11 }
 0x182   :  { %v1228_v56 = vmax.f32 %v1132_v31, %v1196_v5  ;;  %1377 = vrot.lane.b32.xlu0 %v1301_v34, %s14567_s27  ;;  %v452_v5 = vmax.f32 %v420_v26, 0.0  ;;  %v1197_v26 = vmax.f32 %v1165_v24, 0.0 }
 0x183   :  { %v1360_v62 = vpop.permute.xlu1 %1359 }
 0x184   :  { %v1806_v3 = vpop.permute.xlu0 %1805  ;;  %v1452_v25 = vmax.f32 %v1228_v56, %v1360_v62  ;;  %v724_v56 = vadd.f32 %v14898_v18, %v15050_v6 }
 0x185   :  { %1059 = vrot.lane.b32.xlu1 %v982_v29, %s14566_s7  ;;  %v15364_v39 = vmax.f32 %v1675_v27, %v1806_v3  ;;  %v453_v27 = vmax.f32 %v421_v28, 0.0 }
 0x186   :  { %1601 = vrot.lane.b32.xlu0 %v1525_v0, %s14568_s30  ;;  %v1750_v0 = vmax.f32 %v1718_v40, 0.0  ;;  %v983_v40 = vmax.f32 %v951_v48, 0.0  ;;  %v1719_v48 = vadd.f32 %v14896_v17, %v15053_v8 }
 0x187   :  { %v1584_v45 = vpop.permute.xlu1 %1583  ;;  %v2491_v62 = vmul.f32 %v15085_v54, %v15364_v39 }
 0x188   :  { %v588_v33 = vpop.permute.xlu0 %587  ;;  %v1676_v30 = vmax.f32 %v1452_v25, %v1584_v45 }
 0x189   :  { %1379 = vrot.lane.b32.xlu1 %v1302_v35, %s14567_s27  ;;  %v679_v51 = vmax.f32 %v452_v5, %v588_v33  ;;  %v756_v35 = vmax.f32 %v724_v56, 0.0  ;;  %v952_v56 = vadd.f32 %v14896_v17, %v15057_v11 }
 0x18a   :  { %1825 = vrot.lane.b32.xlu0 %v1749_v7, %s14566_s7  ;;  %v530_v7 = vmax.f32 %v498_v21, 0.0 }
 0x18b   :  { %v1808_v31 = vpop.permute.xlu1 %1807  ;;  %v984_v21 = vmax.f32 %v952_v56, 0.0 }
 0x18c   :  { %v15371_v34 = vmax.f32 %v1676_v30, %v1808_v31  ;;  %v815_v29 = vpop.permute.xlu0 %814  ;;  %v1166_v30 = vadd.f32 %v15317_v13, %v14954_v53  ;;  %v1271_v31 = vadd.f32 %v14894_v16, %v15053_v8 }
 0x18d   :  { %1603 = vrot.lane.b32.xlu1 %v1526_v36, %s14568_s30  ;;  %v906_v3 = vmax.f32 %v679_v51, %v815_v29 }
 0x18e   :  { %v2492_v32 = vmul.f32 %v15076_v44, %v15371_v34  ;;  %607 = vrot.lane.b32.xlu0 %v529_v38, %s14567_s27  ;;  %v757_v38 = vmax.f32 %v725_v47, 0.0  ;;  %v1198_v28 = vmax.f32 %v1166_v30, 0.0  ;;  %v1303_v53 = vmax.f32 %v1271_v31, 0.0 }
 0x18f   :  { %v590_v49 = vpop.permute.xlu1 %589 }
 0x190   :  { %v2521_v23 = vpack.c.bf16 %v2492_v32, %v2491_v62  ;;  %v1042_v45 = vpop.permute.xlu0 %1041  ;;  %v680_v41 = vmax.f32 %v453_v27, %v590_v49  ;;  %v1495_v62 = vadd.f32 %v14898_v18, %v15053_v8  ;;  %v1272_v49 = vadd.f32 %v14894_v16, %v15062_v1 }
 0x191   :  { %1827 = vrot.lane.b32.xlu1 %v1750_v0, %s14566_s7  ;;  %v1133_v25 = vmax.f32 %v906_v3, %v1042_v45 }
 0x192   :  { %12952 = vmatprep.mubr.msk.bf16.mxu1 %vm135_vm0, %v2521_v23  ;;  %834 = vrot.lane.b32.xlu0 %v756_v35, %s14568_s30  ;;  %v390_v23 = vadd.f32 %v15317_v13, %v14964_v59  ;;  %v1527_v35 = vmax.f32 %v1495_v62, 0.0  ;;  %v499_v59 = vadd.f32 %v14894_v16, %v15074_v42  ;;  %v726_v62 = vadd.f32 %v14898_v18, %v15074_v42 }
 0x193   :  { %v817_v33 = vpop.permute.xlu1 %816  ;;  %v1229_v36 = vmax.f32 %v1133_v25, %v1197_v26  ;;  %v1304_v25 = vmax.f32 %v1272_v49, 0.0  ;;  %v1496_v26 = vadd.f32 %v14898_v18, %v15062_v1 }
 0x194   :  { %v1362_v5 = vpop.permute.xlu0 %1361  ;;  %v907_v24 = vmax.f32 %v680_v41, %v817_v33  ;;  %v422_v30 = vmax.f32 %v390_v23, 0.0  ;;  %v1751_v41 = vmax.f32 %v1719_v48, 0.0  ;;  %v500_v23 = vadd.f32 %v14894_v16, %v15083_v50 }
 0x195   :  { %609 = vrot.lane.b32.xlu1 %v530_v7, %s14567_s27  ;;  %v1453_v27 = vmax.f32 %v1229_v36, %v1362_v5  ;;  %v391_v5 = vadd.f32 %v15317_v13, %v14971_v63 }
 0x196   :  { %1061 = vrot.lane.b32.xlu0 %v983_v40, %s14566_s7 }
 0x197   :  { %v1044_v29 = vpop.permute.xlu1 %1043 }
 0x198   :  { %v1134_v51 = vmax.f32 %v907_v24, %v1044_v29  ;;  %v1586_v32 = vpop.permute.xlu0 %1585  ;;  %v1528_v24 = vmax.f32 %v1496_v26, 0.0  ;;  %v454_v29 = vmax.f32 %v422_v30, 0.0  ;;  %v727_v30 = vadd.f32 %v14898_v18, %v15083_v50 }
 0x199   :  { %836 = vrot.lane.b32.xlu1 %v757_v38, %s14568_s30  ;;  %v1677_v47 = vmax.f32 %v1453_v27, %v1586_v32  ;;  %v1720_v38 = vadd.f32 %v14896_v17, %v15062_v1  ;;  %v953_v27 = vadd.f32 %v14896_v17, %v15074_v42 }
 0x19a   :  { %v1230_v0 = vmax.f32 %v1134_v51, %v1198_v28  ;;  %1381 = vrot.lane.b32.xlu0 %v1303_v53, %s14567_s27  ;;  %v1167_v28 = vadd.f32 %v15317_v13, %v14967_v61  ;;  %v531_v53 = vmax.f32 %v499_v59, 0.0  ;;  %v1168_v59 = vadd.f32 %v15317_v13, %v14974_v2 }
 0x19b   :  { %v1364_v3 = vpop.permute.xlu1 %1363 }
 0x19c   :  { %v1810_v45 = vpop.permute.xlu0 %1809  ;;  %v1454_v33 = vmax.f32 %v1230_v0, %v1364_v3  ;;  %v423_v0 = vmax.f32 %v391_v5, 0.0  ;;  %v1752_v3 = vmax.f32 %v1720_v38, 0.0  ;;  %v985_v5 = vmax.f32 %v953_v27, 0.0 }
 0x19d   :  { %1063 = vrot.lane.b32.xlu1 %v984_v21, %s14566_s7  ;;  %v15417_v31 = vmax.f32 %v1677_v47, %v1810_v45  ;;  %v758_v45 = vmax.f32 %v726_v62, 0.0  ;;  %v1199_v47 = vmax.f32 %v1167_v28, 0.0  ;;  %v954_v28 = vadd.f32 %v14896_v17, %v15083_v50 }
 0x19e   :  { %1605 = vrot.lane.b32.xlu0 %v1527_v35, %s14568_s30  ;;  %v455_v26 = vmax.f32 %v423_v0, 0.0 }
 0x19f   :  { %v1588_v7 = vpop.permute.xlu1 %1587  ;;  %20784 = vst [vmem:[#allocation56_spill] sm:$0xff] %v15417_v31  ;;  %v2493_v21 = vmul.f32 %v15102_v19, %v15417_v31 }
 0x1a0   :  { %v592_v40 = vpop.permute.xlu0 %591  ;;  %v1678_v36 = vmax.f32 %v1454_v33, %v1588_v7  ;;  %v532_v33 = vmax.f32 %v500_v23, 0.0 }
 0x1a1   :  { %1383 = vrot.lane.b32.xlu1 %v1304_v25, %s14567_s27  ;;  %v681_v63 = vmax.f32 %v454_v29, %v592_v40  ;;  %v759_v29 = vmax.f32 %v727_v30, 0.0 }
 0x1a2   :  { %1829 = vrot.lane.b32.xlu0 %v1751_v41, %s14566_s7 }
 0x1a3   :  { %v1812_v56 = vpop.permute.xlu1 %1811 }
 0x1a4   :  { %v15424_v51 = vmax.f32 %v1678_v36, %v1812_v56  ;;  %v819_v32 = vpop.permute.xlu0 %818 }
 0x1a5   :  { %1607 = vrot.lane.b32.xlu1 %v1528_v24, %s14568_s30  ;;  %v908_v35 = vmax.f32 %v681_v63, %v819_v32  ;;  %v1273_v24 = vadd.f32 %v14894_v16, %v15079_v46  ;;  %v1200_v32 = vmax.f32 %v1168_v59, 0.0  ;;  %v1497_v63 = vadd.f32 %v14898_v18, %v15079_v46 }
 0x1a6   :  { %v2494_v49 = vmul.f32 %v15095_v4, %v15424_v51  ;;  %611 = vrot.lane.b32.xlu0 %v531_v53, %s14567_s27 }
 0x1a7   :  { %v594_v61 = vpop.permute.xlu1 %593  ;;  %v1305_v2 = vmax.f32 %v1273_v24, 0.0 }
 0x1a8   :  { %v2522_v48 = vpack.c.bf16 %v2494_v49, %v2493_v21  ;;  %v1046_v25 = vpop.permute.xlu0 %1045  ;;  %v682_v40 = vmax.f32 %v455_v26, %v594_v61  ;;  %v986_v49 = vmax.f32 %v954_v28, 0.0  ;;  %v392_v61 = vadd.f32 %v15317_v13, %v14990_v10 }
 0x1a9   :  { %1831 = vrot.lane.b32.xlu1 %v1752_v3, %s14566_s7  ;;  %v1135_v7 = vmax.f32 %v908_v35, %v1046_v25  ;;  %v1274_v3 = vadd.f32 %v14894_v16, %v15088_v58  ;;  %v1529_v35 = vmax.f32 %v1497_v63, 0.0  ;;  %v1498_v26 = vadd.f32 %v14898_v18, %v15088_v58 }
 0x1aa   :  { %12953 = vmatmul.mubr.msk.bf16.gmra.mrb[8].mxu1 %vm135_vm0, %v2522_v48  ;;  %838 = vrot.lane.b32.xlu0 %v758_v45, %s14568_s30  ;;  %v1721_v48 = vadd.f32 %v14896_v17, %v15079_v46  ;;  %v424_v30 = vmax.f32 %v392_v61, 0.0  ;;  %v501_v10 = vadd.f32 %v14894_v16, %v15100_v9  ;;  %v20787_v61 = vld [vmem:[#allocation17_spill] sm:$0xff] }
 0x1ab   :  { %v821_v41 = vpop.permute.xlu1 %820  ;;  %v1231_v36 = vmax.f32 %v1135_v7, %v1199_v47  ;;  %v1306_v25 = vmax.f32 %v1274_v3, 0.0  ;;  %v1530_v24 = vmax.f32 %v1498_v26, 0.0 }
 0x1ac   :  { %v1366_v38 = vpop.permute.xlu0 %1365  ;;  %v909_v56 = vmax.f32 %v682_v40, %v821_v41  ;;  %v1753_v41 = vmax.f32 %v1721_v48, 0.0 }
 0x1ad   :  { %613 = vrot.lane.b32.xlu1 %v532_v33, %s14567_s27  ;;  %v1455_v27 = vmax.f32 %v1231_v36, %v1366_v38  ;;  %v1722_v38 = vadd.f32 %v14896_v17, %v15088_v58 }
 0x1ae   :  { %1065 = vrot.lane.b32.xlu0 %v985_v5, %s14566_s7  ;;  %v393_v5 = vadd.f32 %v15317_v13, %v14997_v15 }
 0x1af   :  { %v1048_v53 = vpop.permute.xlu1 %1047 }
 0x1b0   :  { %v1136_v62 = vmax.f32 %v909_v56, %v1048_v53  ;;  %v1590_v0 = vpop.permute.xlu0 %1589  ;;  %v1169_v53 = vadd.f32 %v15317_v13, %v14993_v12  ;;  %v425_v63 = vmax.f32 %v393_v5, 0.0 }
 0x1b1   :  { %840 = vrot.lane.b32.xlu1 %v759_v29, %s14568_s30  ;;  %v1679_v47 = vmax.f32 %v1455_v27, %v1590_v0  ;;  %v456_v29 = vmax.f32 %v424_v30, 0.0  ;;  %v20785_v0 = vld [vmem:[#allocation20_spill] sm:$0xff] }
 0x1b2   :  { %v1232_v21 = vmax.f32 %v1136_v62, %v1200_v32  ;;  %1385 = vrot.lane.b32.xlu0 %v1305_v2, %s14567_s27  ;;  %v533_v62 = vmax.f32 %v501_v10, 0.0  ;;  %v728_v32 = vadd.f32 %v14898_v18, %v15100_v9 }
 0x1b3   :  { %v1368_v23 = vpop.permute.xlu1 %1367 }
 0x1b4   :  { %v1814_v45 = vpop.permute.xlu0 %1813  ;;  %v1456_v33 = vmax.f32 %v1232_v21, %v1368_v23  ;;  %v1754_v23 = vmax.f32 %v1722_v38, 0.0  ;;  %v760_v27 = vmax.f32 %v728_v32, 0.0 }
 0x1b5   :  { %1067 = vrot.lane.b32.xlu1 %v986_v49, %s14566_s7  ;;  %v15470_v40 = vmax.f32 %v1679_v47, %v1814_v45  ;;  %v20786_v49 = vld [vmem:[#allocation19_spill] sm:$0xff] }
 0x1b6   :  { %1609 = vrot.lane.b32.xlu0 %v1529_v35, %s14568_s30  ;;  %v502_v35 = vadd.f32 %v14894_v16, %v20787_v61 }
 0x1b7   :  { %v1592_v7 = vpop.permute.xlu1 %1591  ;;  %v2495_v21 = vmul.f32 %v20785_v0, %v15470_v40 }
 0x1b8   :  { %v596_v59 = vpop.permute.xlu0 %595  ;;  %v1680_v36 = vmax.f32 %v1456_v33, %v1592_v7  ;;  %v457_v7 = vmax.f32 %v425_v63, 0.0  ;;  %v1201_v33 = vmax.f32 %v1169_v53, 0.0  ;;  %v534_v30 = vmax.f32 %v502_v35, 0.0 }
 0x1b9   :  { %1387 = vrot.lane.b32.xlu1 %v1306_v25, %s14567_s27  ;;  %v683_v15 = vmax.f32 %v456_v29, %v596_v59  ;;  %v955_v25 = vadd.f32 %v14896_v17, %v15100_v9  ;;  %v20788_v59 = vld [vmem:[#allocation6_spill] sm:$0xff] }
 0x1ba   :  { %1833 = vrot.lane.b32.xlu0 %v1753_v41, %s14566_s7  ;;  %v729_v41 = vadd.f32 %v14898_v18, %v20787_v61 }
 0x1bb   :  { %v1816_v56 = vpop.permute.xlu1 %1815  ;;  %v987_v38 = vmax.f32 %v955_v25, 0.0 }
 0x1bc   :  { %v15477_v28 = vmax.f32 %v1680_v36, %v1816_v56  ;;  %v823_v2 = vpop.permute.xlu0 %822  ;;  %v1170_v36 = vadd.f32 %v15317_v13, %v20788_v59  ;;  %v20789_v56 = vld [vmem:[#allocation16_spill] sm:$0xff]  ;;  %v761_v32 = vmax.f32 %v729_v41, 0.0 }
 0x1bd   :  { %1611 = vrot.lane.b32.xlu1 %v1530_v24, %s14568_s30  ;;  %v910_v48 = vmax.f32 %v683_v15, %v823_v2  ;;  %v1275_v29 = vadd.f32 %v14894_v16, %v20789_v56  ;;  %v956_v2 = vadd.f32 %v14896_v17, %v20787_v61 }
 0x1be   :  { %v2496_v3 = vmul.f32 %v20786_v49, %v15477_v28  ;;  %615 = vrot.lane.b32.xlu0 %v533_v62, %s14567_s27 }
 0x1bf   :  { %v598_v12 = vpop.permute.xlu1 %597 }
 0x1c0   :  { %v2523_v45 = vpack.c.bf16 %v2496_v3, %v2495_v21  ;;  %v1050_v26 = vpop.permute.xlu0 %1049  ;;  %v684_v5 = vmax.f32 %v457_v7, %v598_v12  ;;  %v1202_v21 = vmax.f32 %v1170_v36, 0.0  ;;  %v1307_v3 = vmax.f32 %v1275_v29, 0.0 }
 0x1c1   :  { %1835 = vrot.lane.b32.xlu1 %v1754_v23, %s14566_s7  ;;  %v1137_v47 = vmax.f32 %v910_v48, %v1050_v26  ;;  %v1499_v23 = vadd.f32 %v14898_v18, %v20789_v56  ;;  %v988_v48 = vmax.f32 %v956_v2, 0.0  ;;  %v20791_v26 = vld [vmem:[#allocation7_spill] sm:$0xff] }
 0x1c2   :  { %12956 = vmatprep.mubr.msk.bf16.mxu1 %vm135_vm0, %v2523_v45  ;;  %842 = vrot.lane.b32.xlu0 %v760_v27, %s14568_s30  ;;  %v20790_v45 = vld [vmem:[#allocation18_spill] sm:$0xff]  ;;  %v394_v7 = vadd.f32 %v15317_v13, %v20791_v26 }
 0x1c3   :  { %v825_v10 = vpop.permute.xlu1 %824  ;;  %v1233_v24 = vmax.f32 %v1137_v47, %v1201_v33  ;;  %v1276_v27 = vadd.f32 %v14894_v16, %v20790_v45  ;;  %v1531_v47 = vmax.f32 %v1499_v23, 0.0  ;;  %v20792_v33 = vld [vmem:[#allocation21_spill] sm:$0xff]  ;;  %v1500_v36 = vadd.f32 %v14898_v18, %v20790_v45  ;;  %v20794_v23 = vld [vmem:[#allocation23_spill] sm:$0xff] }
 0x1c4   :  { %v1370_v62 = vpop.permute.xlu0 %1369  ;;  %v911_v53 = vmax.f32 %v684_v5, %v825_v10  ;;  %v730_v2 = vadd.f32 %v14898_v18, %v20792_v33 }
 0x1c5   :  { %617 = vrot.lane.b32.xlu1 %v534_v30, %s14567_s27  ;;  %v503_v30 = vadd.f32 %v14894_v16, %v20792_v33  ;;  %v1457_v10 = vmax.f32 %v1233_v24, %v1370_v62  ;;  %v1308_v59 = vmax.f32 %v1276_v27, 0.0  ;;  %v20793_v62 = vld [vmem:[#allocation9_spill] sm:$0xff] }
 0x1c6   :  { %1069 = vrot.lane.b32.xlu0 %v987_v38, %s14566_s7 }
 0x1c7   :  { %v1052_v15 = vpop.permute.xlu1 %1051 }
 0x1c8   :  { %v1138_v63 = vmax.f32 %v911_v53, %v1052_v15  ;;  %v1594_v35 = vpop.permute.xlu0 %1593  ;;  %v426_v53 = vmax.f32 %v394_v7, 0.0  ;;  %v762_v7 = vmax.f32 %v730_v2, 0.0 }
 0x1c9   :  { %844 = vrot.lane.b32.xlu1 %v761_v32, %s14568_s30  ;;  %v1681_v38 = vmax.f32 %v1457_v10, %v1594_v35  ;;  %v535_v32 = vmax.f32 %v503_v30, 0.0 }
 0x1ca   :  { %v1234_v12 = vmax.f32 %v1138_v63, %v1202_v21  ;;  %1389 = vrot.lane.b32.xlu0 %v1307_v3, %s14567_s27  ;;  %v395_v21 = vadd.f32 %v15317_v13, %v20793_v62  ;;  %v1532_v3 = vmax.f32 %v1500_v36, 0.0 }
 0x1cb   :  { %v1372_v25 = vpop.permute.xlu1 %1371 }
 0x1cc   :  { %v1818_v41 = vpop.permute.xlu0 %1817  ;;  %v1458_v29 = vmax.f32 %v1234_v12, %v1372_v25  ;;  %v458_v12 = vmax.f32 %v426_v53, 0.0  ;;  %v20795_v25 = vld [vmem:[#allocation8_spill] sm:$0xff]  ;;  %v427_v10 = vmax.f32 %v395_v21, 0.0  ;;  %v731_v53 = vadd.f32 %v14898_v18, %v20794_v23 }
 0x1cd   :  { %1071 = vrot.lane.b32.xlu1 %v988_v48, %s14566_s7  ;;  %v15523_v63 = vmax.f32 %v1681_v38, %v1818_v41  ;;  %v504_v48 = vadd.f32 %v14894_v16, %v20794_v23  ;;  %v1171_v26 = vadd.f32 %v15317_v13, %v20795_v25 }
 0x1ce   :  { %1613 = vrot.lane.b32.xlu0 %v1531_v47, %s14568_s30  ;;  %v957_v47 = vadd.f32 %v14896_v17, %v20792_v33  ;;  %v763_v25 = vmax.f32 %v731_v53, 0.0  ;;  %v20799_v53 = vld [vmem:[#allocation25_spill] sm:$0xff] }
 0x1cf   :  { %v1596_v5 = vpop.permute.xlu1 %1595 }
 0x1d0   :  { %v600_v15 = vpop.permute.xlu0 %599  ;;  %v1682_v24 = vmax.f32 %v1458_v29, %v1596_v5  ;;  %v20797_v5 = vld [vmem:[#allocation24_spill] sm:$0xff]  ;;  %v536_v29 = vmax.f32 %v504_v48, 0.0  ;;  %v989_v62 = vmax.f32 %v957_v47, 0.0  ;;  %v1203_v48 = vmax.f32 %v1171_v26, 0.0 }
 0x1d1   :  { %1391 = vrot.lane.b32.xlu1 %v1308_v59, %s14567_s27  ;;  %v685_v41 = vmax.f32 %v458_v12, %v600_v15  ;;  %v20796_v59 = vld [vmem:[#allocation26_spill] sm:$0xff]  ;;  %v1172_v47 = vadd.f32 %v15317_v13, %v15020_v43 }
 0x1d2   :  { %619 = vrot.lane.b32.xlu0 %v535_v32, %s14567_s27  ;;  %v2497_v36 = vmul.f32 %v20796_v59, %v15523_v63 }
 0x1d3   :  { %v1820_v35 = vpop.permute.xlu1 %1819 }
 0x1d4   :  { %v15530_v27 = vmax.f32 %v1682_v24, %v1820_v35  ;;  %v827_v30 = vpop.permute.xlu0 %826  ;;  %v20798_v35 = vld [vmem:[#allocation22_spill] sm:$0xff] }
 0x1d5   :  { %1615 = vrot.lane.b32.xlu1 %v1532_v3, %s14568_s30  ;;  %v912_v2 = vmax.f32 %v685_v41, %v827_v30  ;;  %v1277_v15 = vadd.f32 %v14894_v16, %v20798_v35  ;;  %v459_v3 = vmax.f32 %v427_v10, 0.0  ;;  %v1501_v10 = vadd.f32 %v14898_v18, %v20798_v35 }
 0x1d6   :  { %v2498_v38 = vmul.f32 %v20797_v5, %v15530_v27  ;;  %846 = vrot.lane.b32.xlu0 %v762_v7, %s14568_s30  ;;  %v958_v5 = vadd.f32 %v14896_v17, %v20794_v23 }
 0x1d7   :  { %v602_v32 = vpop.permute.xlu1 %601  ;;  %v1533_v43 = vmax.f32 %v1501_v10, 0.0 }
 0x1d8   :  { %v2524_v24 = vpack.c.bf16 %v2498_v38, %v2497_v36  ;;  %v1054_v21 = vpop.permute.xlu0 %1053  ;;  %v686_v30 = vmax.f32 %v459_v3, %v602_v32  ;;  %v1309_v36 = vmax.f32 %v1277_v15, 0.0  ;;  %v20800_v32 = vld [vmem:[#allocation27_spill] sm:$0xff] }
 0x1d9   :  { %621 = vrot.lane.b32.xlu1 %v536_v29, %s14567_s27  ;;  %v1139_v12 = vmax.f32 %v912_v2, %v1054_v21  ;;  %v990_v29 = vmax.f32 %v958_v5, 0.0  ;;  %v1278_v2 = vadd.f32 %v14894_v16, %v20799_v53  ;;  %v1204_v21 = vmax.f32 %v1172_v47, 0.0 }
 0x1da   :  { %12957 = vmatmul.mubr.msk.bf16.gmra.mrb[12].mxu1 %vm135_vm0, %v2524_v24  ;;  %1073 = vrot.lane.b32.xlu0 %v989_v62, %s14566_s7  ;;  %v505_v15 = vadd.f32 %v14894_v16, %v20800_v32  ;;  %v1502_v5 = vadd.f32 %v14898_v18, %v20799_v53  ;;  %v732_v47 = vadd.f32 %v14898_v18, %v20800_v32 }
 0x1db   :  { %v829_v7 = vpop.permute.xlu1 %828  ;;  %v1235_v41 = vmax.f32 %v1139_v12, %v1203_v48  ;;  %v1310_v48 = vmax.f32 %v1278_v2, 0.0 }
 0x1dc   :  { %v1374_v38 = vpop.permute.xlu0 %1373  ;;  %v913_v26 = vmax.f32 %v686_v30, %v829_v7  ;;  %v396_v7 = vadd.f32 %v15317_v13, %v15030_v52  ;;  %v537_v30 = vmax.f32 %v505_v15, 0.0  ;;  %v764_v59 = vmax.f32 %v732_v47, 0.0  ;;  %v20802_v52 = vld [vmem:[#allocation34_spill] sm:$0xff] }
 0x1dd   :  { %848 = vrot.lane.b32.xlu1 %v763_v25, %s14568_s30  ;;  %v1459_v10 = vmax.f32 %v1235_v41, %v1374_v38  ;;  %v507_v15 = vadd.f32 %v14894_v16, %v20802_v52  ;;  %v397_v38 = vadd.f32 %v15317_v13, %v15037_v57  ;;  %v734_v47 = vadd.f32 %v14898_v18, %v20802_v52 }
 0x1de   :  { %1393 = vrot.lane.b32.xlu0 %v1309_v36, %s14567_s27 }
 0x1df   :  { %v1056_v24 = vpop.permute.xlu1 %1055 }
 0x1e0   :  { %v1140_v62 = vmax.f32 %v913_v26, %v1056_v24  ;;  %v1598_v3 = vpop.permute.xlu0 %1597  ;;  %v1534_v26 = vmax.f32 %v1502_v5, 0.0 }
 0x1e1   :  { %1075 = vrot.lane.b32.xlu1 %v990_v29, %s14566_s7  ;;  %v20801_v29 = vld [vmem:[#allocation30_spill] sm:$0xff] }
 0x1e2   :  { %v1236_v12 = vmax.f32 %v1140_v62, %v1204_v21  ;;  %1617 = vrot.lane.b32.xlu0 %v1533_v43, %s14568_s30  ;;  %v506_v2 = vadd.f32 %v14894_v16, %v20801_v29  ;;  %v1683_v62 = vmax.f32 %v1459_v10, %v1598_v3  ;;  %v428_v43 = vmax.f32 %v396_v7, 0.0 }
 0x1e3   :  { %v1376_v25 = vpop.permute.xlu1 %1375  ;;  %v733_v5 = vadd.f32 %v14898_v18, %v20801_v29  ;;  %v1173_v7 = vadd.f32 %v15317_v13, %v15033_v55  ;;  %v429_v10 = vmax.f32 %v397_v38, 0.0 }
 0x1e4   :  { %v1822_v36 = vpop.permute.xlu0 %1821  ;;  %v1460_v21 = vmax.f32 %v1236_v12, %v1376_v25  ;;  %v460_v12 = vmax.f32 %v428_v43, 0.0 }
 0x1e5   :  { %1395 = vrot.lane.b32.xlu1 %v1310_v48, %s14567_s27  ;;  %v15576_v4 = vmax.f32 %v1683_v62, %v1822_v36  ;;  %v538_v48 = vmax.f32 %v506_v2, 0.0  ;;  %v765_v62 = vmax.f32 %v733_v5, 0.0  ;;  %v1205_v5 = vmax.f32 %v1173_v7, 0.0 }
 0x1e6   :  { %623 = vrot.lane.b32.xlu0 %v537_v30, %s14567_s27  ;;  %v539_v30 = vmax.f32 %v507_v15, 0.0 }
 0x1e7   :  { %v1600_v24 = vpop.permute.xlu1 %1599 }
 0x1e8   :  { %v604_v0 = vpop.permute.xlu0 %603  ;;  %v1684_v41 = vmax.f32 %v1460_v21, %v1600_v24  ;;  %v20805_v21 = vld [vmem:[#allocation37_spill] sm:$0xff] }
 0x1e9   :  { %1619 = vrot.lane.b32.xlu1 %v1534_v26, %s14568_s30  ;;  %v687_v57 = vmax.f32 %v460_v12, %v604_v0  ;;  %v20803_v26 = vld [vmem:[#allocation31_spill] sm:$0xff]  ;;  %v508_v43 = vadd.f32 %v14894_v16, %v20805_v21  ;;  %v766_v0 = vmax.f32 %v734_v47, 0.0 }
 0x1ea   :  { %850 = vrot.lane.b32.xlu0 %v764_v59, %s14568_s30  ;;  %v2499_v2 = vmul.f32 %v20803_v26, %v15576_v4  ;;  %v20804_v59 = vld [vmem:[#allocation28_spill] sm:$0xff] }
 0x1eb   :  { %v1824_v3 = vpop.permute.xlu1 %1823  ;;  %v540_v26 = vmax.f32 %v508_v43, 0.0 }
 0x1ec   :  { %v15583_v25 = vmax.f32 %v1684_v41, %v1824_v3  ;;  %v831_v36 = vpop.permute.xlu0 %830  ;;  %v461_v3 = vmax.f32 %v429_v10, 0.0 }
 0x1ed   :  { %625 = vrot.lane.b32.xlu1 %v538_v48, %s14567_s27  ;;  %v914_v15 = vmax.f32 %v687_v57, %v831_v36  ;;  %v959_v48 = vadd.f32 %v14896_v17, %v20800_v32  ;;  %v1174_v36 = vadd.f32 %v15317_v13, %v15040_v60 }
 0x1ee   :  { %v2500_v24 = vmul.f32 %v20804_v59, %v15583_v25  ;;  %627 = vrot.lane.b32.xlu0 %v539_v30, %s14567_s27  ;;  %v735_v59 = vadd.f32 %v14898_v18, %v20805_v21 }
 0x1ef   :  { %v606_v55 = vpop.permute.xlu1 %605  ;;  %v991_v10 = vmax.f32 %v959_v48, 0.0 }
 0x1f0   :  { %v2525_v41 = vpack.c.bf16 %v2500_v24, %v2499_v2  ;;  %v1058_v38 = vpop.permute.xlu0 %1057  ;;  %v688_v57 = vmax.f32 %v461_v3, %v606_v55  ;;  %v1723_v2 = vadd.f32 %v14896_v17, %v20789_v56  ;;  %v767_v43 = vmax.f32 %v735_v59, 0.0 }
 0x1f1   :  { %852 = vrot.lane.b32.xlu1 %v765_v62, %s14568_s30  ;;  %v1141_v12 = vmax.f32 %v914_v15, %v1058_v38  ;;  %v960_v62 = vadd.f32 %v14896_v17, %v20801_v29  ;;  %v961_v55 = vadd.f32 %v14896_v17, %v20802_v52 }
 0x1f2   :  { %12960 = vmatprep.mubr.msk.bf16.mxu1 %vm135_vm0, %v2525_v41  ;;  %854 = vrot.lane.b32.xlu0 %v766_v0, %s14568_s30  ;;  %v1206_v0 = vmax.f32 %v1174_v36, 0.0  ;;  %v1755_v60 = vmax.f32 %v1723_v2, 0.0 }
 0x1f3   :  { %v833_v30 = vpop.permute.xlu1 %832  ;;  %v1237_v47 = vmax.f32 %v1141_v12, %v1205_v5  ;;  %v992_v3 = vmax.f32 %v960_v62, 0.0  ;;  %v398_v12 = vadd.f32 %v15317_v13, %v15050_v6  ;;  %v1725_v5 = vadd.f32 %v14896_v17, %v20798_v35 }
 0x1f4   :  { %v1378_v24 = vpop.permute.xlu0 %1377  ;;  %v915_v7 = vmax.f32 %v688_v57, %v833_v30  ;;  %v993_v30 = vmax.f32 %v961_v55, 0.0 }
 0x1f5   :  { %629 = vrot.lane.b32.xlu1 %v540_v26, %s14567_s27  ;;  %v1724_v26 = vadd.f32 %v14896_v17, %v20790_v45  ;;  %v1461_v57 = vmax.f32 %v1237_v47, %v1378_v24  ;;  %v399_v47 = vadd.f32 %v15317_v13, %v15057_v11  ;;  %v1726_v24 = vadd.f32 %v14896_v17, %v20799_v53 }
 0x1f6   :  { %1077 = vrot.lane.b32.xlu0 %v991_v10, %s14566_s7  ;;  %v962_v10 = vadd.f32 %v14896_v17, %v20805_v21 }
 0x1f7   :  { %v1060_v15 = vpop.permute.xlu1 %1059  ;;  %v1756_v2 = vmax.f32 %v1724_v26, 0.0 }
 0x1f8   :  { %v1142_v41 = vmax.f32 %v915_v7, %v1060_v15  ;;  %v1602_v38 = vpop.permute.xlu0 %1601  ;;  %v430_v15 = vmax.f32 %v398_v12, 0.0  ;;  %v994_v55 = vmax.f32 %v962_v10, 0.0  ;;  %v20806_v12 = vld [vmem:[#allocation41_spill] sm:$0xff] }
 0x1f9   :  { %856 = vrot.lane.b32.xlu1 %v767_v43, %s14568_s30  ;;  %v1685_v62 = vmax.f32 %v1461_v57, %v1602_v38  ;;  %v509_v11 = vadd.f32 %v14894_v16, %v20806_v12  ;;  %v20807_v57 = vld [vmem:[#allocation35_spill] sm:$0xff]  ;;  %v20808_v10 = vld [vmem:[#allocation33_spill] sm:$0xff] }
 0x1fa   :  { %v1238_v48 = vmax.f32 %v1142_v41, %v1206_v0  ;;  %1837 = vrot.lane.b32.xlu0 %v1755_v60, %s14566_s7  ;;  %v1757_v41 = vmax.f32 %v1725_v5, 0.0  ;;  %v462_v38 = vmax.f32 %v430_v15, 0.0 }
 0x1fb   :  { %v1380_v59 = vpop.permute.xlu1 %1379 }
 0x1fc   :  { %v1826_v36 = vpop.permute.xlu0 %1825  ;;  %v1462_v43 = vmax.f32 %v1238_v48, %v1380_v59  ;;  %v1175_v59 = vadd.f32 %v15317_v13, %v15053_v8  ;;  %v20809_v8 = vld [vmem:[#allocation29_spill] sm:$0xff] }
 0x1fd   :  { %1079 = vrot.lane.b32.xlu1 %v992_v3, %s14566_s7  ;;  %v15627_v0 = vmax.f32 %v1685_v62, %v1826_v36  ;;  %v11618_v3 = vld [vmem:[%s20729_s1 + $0x1c0] sm:$0xff]  ;;  %v431_v36 = vmax.f32 %v399_v47, 0.0  ;;  %v1758_v62 = vmax.f32 %v1726_v24, 0.0  ;;  %v11619_v24 = vld [vmem:[%s20729_s1 + $0x1c8] sm:$0xff] }
 0x1fe   :  { %1081 = vrot.lane.b32.xlu0 %v993_v30, %s14566_s7 }
 0x1ff   :  { %v1604_v7 = vpop.permute.xlu1 %1603 }
 0x200   :  { %v608_v6 = vpop.permute.xlu0 %607  ;;  %v1686_v60 = vmax.f32 %v1462_v43, %v1604_v7 }
 0x201   :  { %1839 = vrot.lane.b32.xlu1 %v1756_v2, %s14566_s7  ;;  %v689_v30 = vmax.f32 %v462_v38, %v608_v6  ;;  %v2501_v2 = vmul.f32 %v20807_v57, %v15627_v0  ;;  %v463_v6 = vmax.f32 %v431_v36, 0.0  ;;  %v20810_v38 = vld [vmem:[#allocation43_spill] sm:$0xff] }
 0x202   :  { %1841 = vrot.lane.b32.xlu0 %v1757_v41, %s14566_s7 }
 0x203   :  { %v1828_v26 = vpop.permute.xlu1 %1827 }
 0x204   :  { %v15634_v48 = vmax.f32 %v1686_v60, %v1828_v26  ;;  %v835_v5 = vpop.permute.xlu0 %834  ;;  %v1279_v60 = vadd.f32 %v14894_v16, %v20809_v8  ;;  %v541_v26 = vmax.f32 %v509_v11, 0.0  ;;  %v1176_v11 = vadd.f32 %v15317_v13, %v15062_v1  ;;  %v20812_v1 = vld [vmem:[#allocation47_spill] sm:$0xff] }
 0x205   :  { %1083 = vrot.lane.b32.xlu1 %v994_v55, %s14566_s7  ;;  %v916_v15 = vmax.f32 %v689_v30, %v835_v5  ;;  %v1207_v55 = vmax.f32 %v1175_v59, 0.0  ;;  %v20811_v59 = vld [vmem:[#allocation32_spill] sm:$0xff] }
 0x206   :  { %v2502_v7 = vmul.f32 %v20808_v10, %v15634_v48  ;;  %2449 = vperm.xlu0 %14477, %v11618_v3   ;;  %v510_v3 = vadd.f32 %v14894_v16, %v20810_v38  ;;  %v1311_v36 = vmax.f32 %v1279_v60, 0.0  ;;  %v1208_v57 = vmax.f32 %v1176_v11, 0.0 }
 0x207   :  { %v610_v43 = vpop.permute.xlu1 %609 }
 0x208   :  { %v2526_v41 = vpack.c.bf16 %v2502_v7, %v2501_v2  ;;  %v1062_v19 = vpop.permute.xlu0 %1061  ;;  %v690_v30 = vmax.f32 %v463_v6, %v610_v43  ;;  %v511_v43 = vadd.f32 %v14894_v16, %v20812_v1 }
 0x209   :  { %1843 = vrot.lane.b32.xlu1 %v1758_v62, %s14566_s7  ;;  %v1143_v47 = vmax.f32 %v916_v15, %v1062_v19  ;;  %v1280_v62 = vadd.f32 %v14894_v16, %v20811_v59  ;;  %v542_v15 = vmax.f32 %v510_v3, 0.0  ;;  %v20813_v3 = vld [vmem:[#allocation36_spill] sm:$0xff] }
 0x20a   :  { %12961 = vmatmul.mubr.msk.bf16.gmra.mrb[16].mxu1 %vm135_vm0, %v2526_v41  ;;  %631 = vrot.lane.b32.xlu0 %v541_v26, %s14567_s27  ;;  %v11620_v26 = vld [vmem:[%s20729_s1 + $0x1d0] sm:$0xff] }
 0x20b   :  { %v837_v5 = vpop.permute.xlu1 %836  ;;  %v1239_v2 = vmax.f32 %v1143_v47, %v1207_v55  ;;  %v1312_v47 = vmax.f32 %v1280_v62, 0.0 }
 0x20c   :  { %v1382_v19 = vpop.permute.xlu0 %1381  ;;  %v917_v7 = vmax.f32 %v690_v30, %v837_v5  ;;  %v1281_v5 = vadd.f32 %v14894_v16, %v20813_v3  ;;  %v543_v30 = vmax.f32 %v511_v43, 0.0 }
 0x20d   :  { %2454 = vperm.xlu1 %14476, %v11619_v24   ;;  %v400_v24 = vadd.f32 %v15317_v13, %v15074_v42  ;;  %v1463_v11 = vmax.f32 %v1239_v2, %v1382_v19 }
 0x20e   :  { %1397 = vrot.lane.b32.xlu0 %v1311_v36, %s14567_s27 }
 0x20f   :  { %v1064_v41 = vpop.permute.xlu1 %1063  ;;  %v432_v13 = vmax.f32 %v400_v24, 0.0 }
 0x210   :  { %v1144_v10 = vmax.f32 %v917_v7, %v1064_v41  ;;  %v1606_v60 = vpop.permute.xlu0 %1605  ;;  %v11621_v7 = vld [vmem:[%s20729_s1 + $0x1d8] sm:$0xff]  ;;  %v1313_v41 = vmax.f32 %v1281_v5, 0.0 }
 0x211   :  { %633 = vrot.lane.b32.xlu1 %v542_v15, %s14567_s27  ;;  %v20814_v15 = vld [vmem:[#allocation50_spill] sm:$0xff]  ;;  %v1687_v62 = vmax.f32 %v1463_v11, %v1606_v60  ;;  %v464_v5 = vmax.f32 %v432_v13, 0.0 }
 0x212   :  { %v1240_v6 = vmax.f32 %v1144_v10, %v1208_v57  ;;  %2459 = vperm.xlu0 %14477, %v11620_v26   ;;  %v512_v57 = vadd.f32 %v14894_v16, %v20814_v15  ;;  %v736_v26 = vadd.f32 %v14898_v18, %v20806_v12  ;;  %v20816_v60 = vld [vmem:[#allocation38_spill] sm:$0xff] }
 0x213   :  { %v1384_v55 = vpop.permute.xlu1 %1383 }
 0x214   :  { %v1830_v36 = vpop.permute.xlu0 %1829  ;;  %v1464_v42 = vmax.f32 %v1240_v6, %v1384_v55  ;;  %v1282_v6 = vadd.f32 %v14894_v16, %v20816_v60  ;;  %v544_v55 = vmax.f32 %v512_v57, 0.0  ;;  %v20818_v57 = vld [vmem:[#allocation40_spill] sm:$0xff] }
 0x215   :  { %1399 = vrot.lane.b32.xlu1 %v1312_v47, %s14567_s27  ;;  %v15682_v2 = vmax.f32 %v1687_v62, %v1830_v36  ;;  %v15687_v47 = vld [vmem:[%s20728_s25] ss:$0 sm:$0xff] }
 0x216   :  { %635 = vrot.lane.b32.xlu0 %v543_v30, %s14567_s27  ;;  %v401_v30 = vadd.f32 %v15687_v47, %v15083_v50  ;;  %v1177_v36 = vadd.f32 %v15687_v47, %v15079_v46 }
 0x217   :  { %v1608_v10 = vpop.permute.xlu1 %1607  ;;  %20815 = vst [vmem:[#allocation17_spill] sm:$0xff] %v15682_v2  ;;  %v2503_v49 = vmul.f32 %v20818_v57, %v15682_v2  ;;  %v1504_v57 = vadd.f32 %v14898_v18, %v20811_v59 }
 0x218   :  { %v612_v43 = vpop.permute.xlu0 %611  ;;  %v1688_v19 = vmax.f32 %v1464_v42, %v1608_v10  ;;  %v768_v10 = vmax.f32 %v736_v26, 0.0  ;;  %v433_v42 = vmax.f32 %v401_v30, 0.0 }
 0x219   :  { %2464 = vperm.xlu1 %14476, %v11621_v7   ;;  %v1503_v7 = vadd.f32 %v14898_v18, %v20809_v8  ;;  %v691_v50 = vmax.f32 %v464_v5, %v612_v43  ;;  %v738_v43 = vadd.f32 %v14898_v18, %v20812_v1 }
 0x21a   :  { %1401 = vrot.lane.b32.xlu0 %v1313_v41, %s14567_s27  ;;  %v20819_v41 = vld [vmem:[#allocation39_spill] sm:$0xff] }
 0x21b   :  { %v1832_v24 = vpop.permute.xlu1 %1831  ;;  %v1535_v14 = vmax.f32 %v1503_v7, 0.0 }
 0x21c   :  { %v15694_v11 = vmax.f32 %v1688_v19, %v1832_v24  ;;  %v839_v62 = vpop.permute.xlu0 %838  ;;  %v1314_v19 = vmax.f32 %v1282_v6, 0.0  ;;  %v737_v24 = vadd.f32 %v14898_v18, %v20810_v38  ;;  %v1209_v6 = vmax.f32 %v1177_v36, 0.0 }
 0x21d   :  { %637 = vrot.lane.b32.xlu1 %v544_v55, %s14567_s27  ;;  %v918_v54 = vmax.f32 %v691_v50, %v839_v62  ;;  %v465_v55 = vmax.f32 %v433_v42, 0.0  ;;  %v1505_v50 = vadd.f32 %v14898_v18, %v20813_v3  ;;  %v770_v42 = vmax.f32 %v738_v43, 0.0 }
 0x21e   :  { %20817 = vst [vmem:[#allocation6_spill] sm:$0xff] %v15694_v11  ;;  %v2504_v13 = vmul.f32 %v20819_v41, %v15694_v11  ;;  %858 = vrot.lane.b32.xlu0 %v768_v10, %s14568_s30  ;;  %v769_v41 = vmax.f32 %v737_v24, 0.0 }
 0x21f   :  { %v614_v46 = vpop.permute.xlu1 %613 }
 0x220   :  { %v2527_v26 = vpack.c.bf16 %v2504_v13, %v2503_v49  ;;  %v1066_v30 = vpop.permute.xlu0 %1065  ;;  %v1178_v49 = vadd.f32 %v15687_v47, %v15088_v58  ;;  %v692_v7 = vmax.f32 %v465_v55, %v614_v46  ;;  %v1536_v13 = vmax.f32 %v1504_v57, 0.0 }
 0x221   :  { %1403 = vrot.lane.b32.xlu1 %v1314_v19, %s14567_s27  ;;  %v1145_v5 = vmax.f32 %v918_v54, %v1066_v30  ;;  %v739_v19 = vadd.f32 %v14898_v18, %v20814_v15  ;;  %v1537_v58 = vmax.f32 %v1505_v50, 0.0  ;;  %v963_v46 = vadd.f32 %v14896_v17, %v20806_v12 }
 0x222   :  { %12964 = vmatprep.mubr.msk.bf16.mxu1 %vm135_vm0, %v2527_v26  ;;  %1621 = vrot.lane.b32.xlu0 %v1535_v14, %s14568_s30  ;;  %v1210_v26 = vmax.f32 %v1178_v49, 0.0 }
 0x223   :  { %v841_v10 = vpop.permute.xlu1 %840  ;;  %v1241_v62 = vmax.f32 %v1145_v5, %v1209_v6  ;;  %v771_v57 = vmax.f32 %v739_v19, 0.0  ;;  %v402_v5 = vadd.f32 %v15687_v47, %v15100_v9  ;;  %v1727_v6 = vadd.f32 %v14896_v17, %v20809_v8 }
 0x224   :  { %v1386_v54 = vpop.permute.xlu0 %1385  ;;  %v919_v36 = vmax.f32 %v692_v7, %v841_v10  ;;  %v995_v10 = vmax.f32 %v963_v46, 0.0  ;;  %v965_v9 = vadd.f32 %v14896_v17, %v20812_v1  ;;  %v1728_v46 = vadd.f32 %v14896_v17, %v20811_v59 }
 0x225   :  { %860 = vrot.lane.b32.xlu1 %v769_v41, %s14568_s30  ;;  %v1506_v41 = vadd.f32 %v14898_v18, %v20816_v60  ;;  %v1465_v7 = vmax.f32 %v1241_v62, %v1386_v54  ;;  %v403_v54 = vadd.f32 %v15687_v47, %v20787_v61 }
 0x226   :  { %862 = vrot.lane.b32.xlu0 %v770_v42, %s14568_s30  ;;  %v964_v42 = vadd.f32 %v14896_v17, %v20810_v38 }
 0x227   :  { %v1068_v14 = vpop.permute.xlu1 %1067  ;;  %v1538_v50 = vmax.f32 %v1506_v41, 0.0 }
 0x228   :  { %v1146_v24 = vmax.f32 %v919_v36, %v1068_v14  ;;  %v1610_v30 = vpop.permute.xlu0 %1609  ;;  %v434_v14 = vmax.f32 %v402_v5, 0.0  ;;  %v996_v41 = vmax.f32 %v964_v42, 0.0  ;;  %v1729_v5 = vadd.f32 %v14896_v17, %v20813_v3  ;;  %v20823_v42 = vld [vmem:[#allocation44_spill] sm:$0xff] }
 0x229   :  { %1623 = vrot.lane.b32.xlu1 %v1536_v13, %s14568_s30  ;;  %v1689_v13 = vmax.f32 %v1465_v7, %v1610_v30  ;;  %v20822_v7 = vld [vmem:[#allocation46_spill] sm:$0xff] }
 0x22a   :  { %v1242_v43 = vmax.f32 %v1146_v24, %v1210_v26  ;;  %1625 = vrot.lane.b32.xlu0 %v1537_v58, %s14568_s30  ;;  %v1759_v24 = vmax.f32 %v1727_v6, 0.0  ;;  %v997_v6 = vmax.f32 %v965_v9, 0.0  ;;  %v1761_v9 = vmax.f32 %v1729_v5, 0.0 }
 0x22b   :  { %v1388_v55 = vpop.permute.xlu1 %1387 }
 0x22c   :  { %v1834_v49 = vpop.permute.xlu0 %1833  ;;  %v1466_v19 = vmax.f32 %v1242_v43, %v1388_v55  ;;  %v466_v43 = vmax.f32 %v434_v14, 0.0  ;;  %v1179_v55 = vadd.f32 %v15687_v47, %v20789_v56 }
 0x22d   :  { %864 = vrot.lane.b32.xlu1 %v771_v57, %s14568_s30  ;;  %v15740_v58 = vmax.f32 %v1689_v13, %v1834_v49  ;;  %v435_v49 = vmax.f32 %v403_v54, 0.0  ;;  %v1760_v13 = vmax.f32 %v1728_v46, 0.0  ;;  %v1730_v46 = vadd.f32 %v14896_v17, %v20816_v60 }
 0x22e   :  { %1085 = vrot.lane.b32.xlu0 %v995_v10, %s14566_s7 }
 0x22f   :  { %v1612_v36 = vpop.permute.xlu1 %1611  ;;  %20820 = vst [vmem:[#allocation16_spill] sm:$0xff] %v15740_v58 }
 0x230   :  { %v616_v26 = vpop.permute.xlu0 %615  ;;  %v1690_v62 = vmax.f32 %v1466_v19, %v1612_v36  ;;  %v966_v19 = vadd.f32 %v14896_v17, %v20814_v15 }
 0x231   :  { %1627 = vrot.lane.b32.xlu1 %v1538_v50, %s14568_s30  ;;  %v693_v61 = vmax.f32 %v466_v43, %v616_v26  ;;  %v2505_v50 = vmul.f32 %v20822_v7, %v15740_v58  ;;  %v467_v26 = vmax.f32 %v435_v49, 0.0  ;;  %v20824_v49 = vld [vmem:[#allocation42_spill] sm:$0xff] }
 0x232   :  { %1845 = vrot.lane.b32.xlu0 %v1759_v24, %s14566_s7 }
 0x233   :  { %v1836_v30 = vpop.permute.xlu1 %1835 }
 0x234   :  { %v15747_v57 = vmax.f32 %v1690_v62, %v1836_v30  ;;  %v843_v10 = vpop.permute.xlu0 %842  ;;  %v998_v30 = vmax.f32 %v966_v19, 0.0 }
 0x235   :  { %1087 = vrot.lane.b32.xlu1 %v996_v41, %s14566_s7  ;;  %v920_v14 = vmax.f32 %v693_v61, %v843_v10  ;;  %v1211_v41 = vmax.f32 %v1179_v55, 0.0  ;;  %v11622_v61 = vld [vmem:[%s20729_s1 + $0x1e0] sm:$0xff]  ;;  %v1283_v55 = vadd.f32 %v14894_v16, %v20824_v49 }
 0x236   :  { %20821 = vst [vmem:[#allocation18_spill] sm:$0xff] %v15747_v57  ;;  %v2506_v36 = vmul.f32 %v20823_v42, %v15747_v57  ;;  %1089 = vrot.lane.b32.xlu0 %v997_v6, %s14566_s7  ;;  %v1180_v6 = vadd.f32 %v15687_v47, %v20790_v45 }
 0x237   :  { %v618_v56 = vpop.permute.xlu1 %617 }
 0x238   :  { %v2528_v24 = vpack.c.bf16 %v2506_v36, %v2505_v50  ;;  %v1070_v62 = vpop.permute.xlu0 %1069  ;;  %v694_v10 = vmax.f32 %v467_v26, %v618_v56  ;;  %v1212_v45 = vmax.f32 %v1180_v6, 0.0  ;;  %v404_v56 = vadd.f32 %v15687_v47, %v20792_v33  ;;  %v11623_v26 = vld [vmem:[%s20729_s1 + $0x1e8] sm:$0xff]  ;;  %v11624_v33 = vld [vmem:[%s20729_s1 + $0x1f0] sm:$0xff] }
 0x239   :  { %1847 = vrot.lane.b32.xlu1 %v1760_v13, %s14566_s7  ;;  %v1147_v54 = vmax.f32 %v920_v14, %v1070_v62  ;;  %v1762_v13 = vmax.f32 %v1730_v46, 0.0 }
 0x23a   :  { %12965 = vmatmul.mubr.msk.bf16.gmra.mrb[20].mxu1 %vm135_vm0, %v2528_v24  ;;  %1849 = vrot.lane.b32.xlu0 %v1761_v9, %s14566_s7  ;;  %v1315_v24 = vmax.f32 %v1283_v55, 0.0 }
 0x23b   :  { %v845_v43 = vpop.permute.xlu1 %844  ;;  %v15768_v5 = vmax.f32 %v1147_v54, %v1211_v41  ;;  %v20825_v54 = vld [vmem:[#allocation45_spill] sm:$0xff] }
 0x23c   :  { %v15775_v50 = vpop.permute.xlu0 %1389  ;;  %v921_v36 = vmax.f32 %v694_v10, %v845_v43  ;;  %v1284_v41 = vadd.f32 %v14894_v16, %v20825_v54  ;;  %v20826_v43 = vld [vmem:[#allocation49_spill] sm:$0xff] }
 0x23d   :  { %1091 = vrot.lane.b32.xlu1 %v998_v30, %s14566_s7  ;;  %v436_v30 = vmax.f32 %v404_v56, 0.0  ;;  %v1285_v6 = vadd.f32 %v14894_v16, %v20826_v43  ;;  %v1181_v56 = vadd.f32 %v15687_v47, %v20798_v35 }
 0x23e   :  { %2469 = vperm.xlu0 %14477, %v11622_v61   ;;  %v405_v61 = vadd.f32 %v15687_v47, %v20794_v23  ;;  %v1316_v55 = vmax.f32 %v1284_v41, 0.0  ;;  %v11625_v23 = vld [vmem:[%s20729_s1 + $0x1f8] sm:$0xff]  ;;  %v20827_v41 = vld [vmem:[#allocation52_spill] sm:$0xff] }
 0x23f   :  { %v1072_v19 = vpop.permute.xlu1 %1071 }
 0x240   :  { %v1148_v14 = vmax.f32 %v921_v36, %v1072_v19  ;;  %v15780_v9 = vpop.permute.xlu0 %1613  ;;  %v1507_v19 = vadd.f32 %v14898_v18, %v20824_v49 }
 0x241   :  { %1851 = vrot.lane.b32.xlu1 %v1762_v13, %s14566_s7  ;;  %v468_v13 = vmax.f32 %v436_v30, 0.0 }
 0x242   :  { %v15783_v62 = vmax.f32 %v1148_v14, %v1212_v45  ;;  %1405 = vrot.lane.b32.xlu0 %v1315_v24, %s14567_s27  ;;  %v1317_v14 = vmax.f32 %v1285_v6, 0.0  ;;  %v1539_v6 = vmax.f32 %v1507_v19, 0.0 }
 0x243   :  { %v15791_v46 = vpop.permute.xlu1 %1391 }
 0x244   :  { %v620_v10 = vpop.permute.xlu0 %619 }
 0x245   :  { %2474 = vperm.xlu1 %14476, %v11623_v26   ;;  %v695_v24 = vmax.f32 %v468_v13, %v620_v10  ;;  %v437_v26 = vmax.f32 %v405_v61, 0.0  ;;  %v1213_v61 = vmax.f32 %v1181_v56, 0.0  ;;  %v1508_v13 = vadd.f32 %v14898_v18, %v20825_v54 }
 0x246   :  { %2479 = vperm.xlu0 %14477, %v11624_v33   ;;  %v1286_v33 = vadd.f32 %v14894_v16, %v20827_v41  ;;  %v1510_v56 = vadd.f32 %v14898_v18, %v20827_v41 }
 0x247   :  { %v15800_v36 = vpop.permute.xlu1 %1615  ;;  %v469_v35 = vmax.f32 %v437_v26, 0.0 }
 0x248   :  { %v847_v45 = vpop.permute.xlu0 %846  ;;  %v1318_v22 = vmax.f32 %v1286_v33, 0.0 }
 0x249   :  { %1407 = vrot.lane.b32.xlu1 %v1316_v55, %s14567_s27  ;;  %v922_v42 = vmax.f32 %v695_v24, %v847_v45  ;;  %v1509_v55 = vadd.f32 %v14898_v18, %v20826_v43  ;;  %v1731_v24 = vadd.f32 %v14896_v17, %v20824_v49 }
 0x24a   :  { %1409 = vrot.lane.b32.xlu0 %v1317_v14, %s14567_s27  ;;  %v1182_v14 = vadd.f32 %v15687_v47, %v20799_v53 }
 0x24b   :  { %v622_v30 = vpop.permute.xlu1 %621 }
 0x24c   :  { %v1074_v7 = vpop.permute.xlu0 %1073  ;;  %v696_v45 = vmax.f32 %v469_v35, %v622_v30  ;;  %v1214_v30 = vmax.f32 %v1182_v14, 0.0  ;;  %v1733_v35 = vadd.f32 %v14896_v17, %v20826_v43 }
 0x24d   :  { %2484 = vperm.xlu1 %14476, %v11625_v23   ;;  %v1149_v10 = vmax.f32 %v922_v42, %v1074_v7  ;;  %v1541_v23 = vmax.f32 %v1509_v55, 0.0  ;;  %v1540_v42 = vmax.f32 %v1508_v13, 0.0 }
 0x24e   :  { %1629 = vrot.lane.b32.xlu0 %v1539_v6, %s14568_s30  ;;  %v1763_v6 = vmax.f32 %v1731_v24, 0.0  ;;  %v1765_v13 = vmax.f32 %v1733_v35, 0.0  ;;  %v1734_v24 = vadd.f32 %v14896_v17, %v20827_v41 }
 0x24f   :  { %v849_v44 = vpop.permute.xlu1 %848  ;;  %v15820_v19 = vmax.f32 %v1149_v10, %v1213_v61 }
 0x250   :  { %v15824_v26 = vpop.permute.xlu0 %1393  ;;  %v923_v7 = vmax.f32 %v696_v45, %v849_v44  ;;  %v1542_v44 = vmax.f32 %v1510_v56, 0.0 }
 0x251   :  { %1411 = vrot.lane.b32.xlu1 %v1318_v22, %s14567_s27  ;;  %v1732_v22 = vadd.f32 %v14896_v17, %v20825_v54 }
 0x252   :  { %1633 = vrot.lane.b32.xlu0 %v1541_v23, %s14568_s30 }
 0x253   :  { %v1076_v33 = vpop.permute.xlu1 %1075  ;;  %v1764_v45 = vmax.f32 %v1732_v22, 0.0  ;;  %v2051_v22 = vld [vmem:[%s20729_s1 + $0x8] sm:$0xff] }
 0x254   :  { %v1150_v53 = vmax.f32 %v923_v7, %v1076_v33  ;;  %v15832_v10 = vpop.permute.xlu0 %1617  ;;  %v406_v7 = vadd.f32 %v15687_v47, %v20800_v32  ;;  %v1766_v33 = vmax.f32 %v1734_v24, 0.0  ;;  %v407_v32 = vadd.f32 %v15687_v47, %v20801_v29  ;;  %v2054_v24 = vld [vmem:[%s20729_s1 + $0x20] sm:$0xff] }
 0x255   :  { %1631 = vrot.lane.b32.xlu1 %v1540_v42, %s14568_s30  ;;  %v2050_v42 = vld [vmem:[%s20729_s1] sm:$0xff] }
 0x256   :  { %v15835_v55 = vmax.f32 %v1150_v53, %v1214_v30  ;;  %1853 = vrot.lane.b32.xlu0 %v1763_v6, %s14566_s7  ;;  %v438_v30 = vmax.f32 %v406_v7, 0.0  ;;  %v2052_v6 = vld [vmem:[%s20729_s1 + $0x10] sm:$0xff] }
 0x257   :  { %v15840_v61 = vpop.permute.xlu1 %1395 }
 0x258   :  { %v624_v14 = vpop.permute.xlu0 %623 }
 0x259   :  { %1635 = vrot.lane.b32.xlu1 %v1542_v44, %s14568_s30 }
 0x25a   :  { %1857 = vrot.lane.b32.xlu0 %v1765_v13, %s14566_s7  ;;  %v470_v13 = vmax.f32 %v438_v30, 0.0 }
 0x25b   :  { %v15846_v23 = vpop.permute.xlu1 %1619 }
 0x25c   :  { %v851_v56 = vpop.permute.xlu0 %850  ;;  %v697_v29 = vmax.f32 %v470_v13, %v624_v14 }
 0x25d   :  { %1855 = vrot.lane.b32.xlu1 %v1764_v45, %s14566_s7  ;;  %v408_v45 = vadd.f32 %v15687_v47, %v20802_v52  ;;  %v14486_v52 = vld [vmem:[%s20173_s3] sm:$0xff]  }
 0x25e   :  { %2084 = vperm.xlu0 %14477, %v2050_v42   ;;  %v1183_v42 = vadd.f32 %v15687_v47, %v20809_v8  ;;  %v924_v58 = vmax.f32 %v697_v29, %v851_v56  ;;  %v409_v8 = vadd.f32 %v15687_v47, %v20805_v21  ;;  %12980 = vmatprep.subr.bf16.mxu1 %v14486_v52  ;;  %v14487_v21 = vld [vmem:[%s20173_s3 + $0x8] sm:$0xff]  }
 0x25f   :  { %v626_v53 = vpop.permute.xlu1 %625  ;;  %v440_v57 = vmax.f32 %v408_v45, 0.0  ;;  %12981 = vmatpush3.bf16.msra.mxu1 %v14486_v52  ;;  %v1184_v56 = vadd.f32 %v15687_v47, %v20811_v59  ;;  %v1467_v59 = vmax.f32 %v15768_v5, %v15775_v50  ;;  %v2060_v5 = vld [vmem:[%s20729_s1 + $0x50] sm:$0xff] }
 0x260   :  { %v628_v35 = vpop.permute.xlu0 %627  ;;  %v1215_v11 = vmax.f32 %v1183_v42, 0.0  ;;  %v1185_v42 = vadd.f32 %v15687_v47, %v20813_v3  ;;  %v441_v52 = vmax.f32 %v409_v8, 0.0  ;;  %12982 = vmatprep.subr.bf16.mxu1 %v14487_v21  ;;  %v1468_v3 = vmax.f32 %v15783_v62, %v15791_v46 }
 0x261   :  { %1859 = vrot.lane.b32.xlu1 %v1766_v33, %s14566_s7  ;;  %v439_v33 = vmax.f32 %v407_v32, 0.0 }
 0x262   :  { %2094 = vperm.xlu0 %14477, %v2052_v6   ;;  %v2053_v6 = vld [vmem:[%s20729_s1 + $0x18] sm:$0xff]  ;;  %v473_v50 = vmax.f32 %v441_v52, 0.0  ;;  %v20828_v52 = vld [vmem:[#allocation51_spill] sm:$0xff] }
 0x263   :  { %v853_v44 = vpop.permute.xlu1 %852  ;;  %v471_v32 = vmax.f32 %v439_v33, 0.0  ;;  %12983 = vmatpush3.bf16.msra.mxu1 %v14487_v21 }
 0x264   :  { %v855_v7 = vpop.permute.xlu0 %854 }
 0x265   :  { %2089 = vperm.xlu1 %14476, %v2051_v22   ;;  %v2056_v22 = vld [vmem:[%s20729_s1 + $0x30] sm:$0xff]  ;;  %v698_v29 = vmax.f32 %v471_v32, %v626_v53  ;;  %v1216_v53 = vmax.f32 %v1184_v56, 0.0  ;;  %v1691_v32 = vmax.f32 %v1467_v59, %v15780_v9  ;;  %v2059_v9 = vld [vmem:[%s20729_s1 + $0x48] sm:$0xff] }
 0x266   :  { %2104 = vperm.xlu0 %14477, %v2054_v24   ;;  %v2055_v24 = vld [vmem:[%s20729_s1 + $0x28] sm:$0xff] }
 0x267   :  { %v630_v30 = vpop.permute.xlu1 %629  ;;  %v925_v2 = vmax.f32 %v698_v29, %v853_v44  ;;  %v1217_v44 = vmax.f32 %v1185_v42, 0.0 }
 0x268   :  { %v1078_v14 = vpop.permute.xlu0 %1077 }
 0x269   :  { %2099 = vperm.xlu1 %14476, %v2053_v6   ;;  %v1151_v13 = vmax.f32 %v924_v58, %v1078_v14  ;;  %v472_v6 = vmax.f32 %v440_v57, 0.0  ;;  %v2058_v58 = vld [vmem:[%s20729_s1 + $0x40] sm:$0xff]  ;;  %v2057_v57 = vld [vmem:[%s20729_s1 + $0x38] sm:$0xff] }
 0x26a   :  { %2114 = vperm.xlu0 %14477, %v2056_v22  }
 0x26b   :  { %v857_v45 = vpop.permute.xlu1 %856  ;;  %v15892_v33 = vmax.f32 %v1151_v13, %v1215_v11  ;;  %v699_v22 = vmax.f32 %v472_v6, %v628_v35 }
 0x26c   :  { %v1838_v14 = vpop.permute.xlu0 %1837 }
 0x26d   :  { %2109 = vperm.xlu1 %14476, %v2055_v24   ;;  %v926_v8 = vmax.f32 %v699_v22, %v855_v7  ;;  %v1692_v24 = vmax.f32 %v1468_v3, %v15800_v36  ;;  %v15908_v21 = vmax.f32 %v1691_v32, %v1838_v14  ;;  %v700_v7 = vmax.f32 %v473_v50, %v630_v30  ;;  %v2062_v36 = vld [vmem:[%s20729_s1 + $0x60] sm:$0xff]  ;;  %v20829_v14 = vld [vmem:[#allocation48_spill] sm:$0xff] }
 0x26e   :  { %2124 = vperm.xlu0 %14477, %v2058_v58   ;;  %v1469_v58 = vmax.f32 %v15820_v19, %v15824_v26  ;;  %v1470_v19 = vmax.f32 %v15835_v55, %v15840_v61  ;;  %v2064_v32 = vld [vmem:[%s20729_s1 + $0x70] sm:$0xff]  ;;  %v20832_v50 = vld [vmem:[#allocation54_spill] sm:$0xff] }
 0x26f   :  { %v1080_v11 = vpop.permute.xlu1 %1079  ;;  %v927_v42 = vmax.f32 %v700_v7, %v857_v45  ;;  %v2507_v30 = vmul.f32 %v20828_v52, %v15908_v21  ;;  %v413_v52 = vadd.f32 %v15687_v47, %v20814_v15 }
 0x270   :  { %v1152_v13 = vmax.f32 %v925_v2, %v1080_v11  ;;  %v1082_v35 = vpop.permute.xlu0 %1081  ;;  %v1186_v2 = vadd.f32 %v15687_v47, %v20816_v60  ;;  %v2061_v60 = vld [vmem:[%s20729_s1 + $0x58] sm:$0xff]  ;;  %v1694_v3 = vmax.f32 %v1470_v19, %v15846_v23 }
 0x271   :  { %2119 = vperm.xlu1 %14476, %v2057_v57   ;;  %v1153_v56 = vmax.f32 %v926_v8, %v1082_v35  ;;  %v2065_v23 = vld [vmem:[%s20729_s1 + $0x78] sm:$0xff] }
 0x272   :  { %v15913_v62 = vmax.f32 %v1152_v13, %v1216_v53  ;;  %2134 = vperm.xlu0 %14477, %v2060_v5   ;;  %v1218_v11 = vmax.f32 %v1186_v2, 0.0  ;;  %v1693_v53 = vmax.f32 %v1469_v58, %v15832_v10  ;;  %v2063_v10 = vld [vmem:[%s20729_s1 + $0x68] sm:$0xff]  ;;  %v2066_v5 = vld [vmem:[%s20729_s1 + $0x80] sm:$0xff]  ;;  %v2072_v58 = vld [vmem:[%s20729_s1 + $0xb0] sm:$0xff] }
 0x273   :  { %v1840_v46 = vpop.permute.xlu1 %1839  ;;  %v15922_v6 = vmax.f32 %v1153_v56, %v1217_v44  ;;  %v20833_v44 = vld [vmem:[#allocation53_spill] sm:$0xff]  ;;  %v2067_v2 = vld [vmem:[%s20729_s1 + $0x88] sm:$0xff] }
 0x274   :  { %v15917_v29 = vmax.f32 %v1692_v24, %v1840_v46  ;;  %v1842_v22 = vpop.permute.xlu0 %1841  ;;  %v2070_v46 = vld [vmem:[%s20729_s1 + $0xa0] sm:$0xff] }
 0x275   :  { %2129 = vperm.xlu1 %14476, %v2059_v9   ;;  %v15940_v8 = vmax.f32 %v1693_v53, %v1842_v22  ;;  %v2068_v9 = vld [vmem:[%s20729_s1 + $0x90] sm:$0xff] }
 0x276   :  { %v2508_v59 = vmul.f32 %v20829_v14, %v15917_v29  ;;  %2144 = vperm.xlu0 %14477, %v2062_v36   ;;  %v2069_v36 = vld [vmem:[%s20729_s1 + $0x98] sm:$0xff]  ;;  %v2076_v53 = vld [vmem:[%s20729_s1 + $0xd0] sm:$0xff] }
 0x277   :  { %v1084_v57 = vpop.permute.xlu1 %1083  ;;  %20830 = vst [vmem:[#allocation7_spill] sm:$0xff] %v15940_v8  ;;  %v2509_v35 = vmul.f32 %v20832_v50, %v15940_v8 }
 0x278   :  { %v1154_v26 = vmax.f32 %v927_v42, %v1084_v57  ;;  %v2529_v45 = vpack.c.bf16 %v2508_v59, %v2507_v30  ;;  %v2074_v59 = vld [vmem:[%s20729_s1 + $0xc0] sm:$0xff]  ;;  %v2073_v57 = vld [vmem:[%s20729_s1 + $0xb8] sm:$0xff] }
 0x279   :  { %2139 = vperm.xlu1 %14476, %v2061_v60   ;;  %v2071_v60 = vld [vmem:[%s20729_s1 + $0xa8] sm:$0xff] }
 0x27a   :  { %12968 = vmatprep.mubr.msk.bf16.mxu1 %vm135_vm0, %v2529_v45  ;;  %v15946_v13 = vmax.f32 %v1154_v26, %v1218_v11  ;;  %2154 = vperm.xlu0 %14477, %v2064_v32   ;;  %v2075_v26 = vld [vmem:[%s20729_s1 + $0xc8] sm:$0xff]  ;;  %v2078_v32 = vld [vmem:[%s20729_s1 + $0xe0] sm:$0xff] }
 0x27b   :  { %v1844_v55 = vpop.permute.xlu1 %1843 }
 0x27c   :  { %v15948_v61 = vmax.f32 %v1694_v3, %v1844_v55 }
 0x27d   :  { %2149 = vperm.xlu1 %14476, %v2063_v10   ;;  %v2077_v10 = vld [vmem:[%s20729_s1 + $0xd8] sm:$0xff] }
 0x27e   :  { %20831 = vst [vmem:[#allocation21_spill] sm:$0xff] %v15948_v61  ;;  %v2510_v24 = vmul.f32 %v20833_v44, %v15948_v61  ;;  %2164 = vperm.xlu0 %14477, %v2066_v5   ;;  %v2080_v5 = vld [vmem:[%s20729_s1 + $0xf0] sm:$0xff] }
 0x280   :  { %v2530_v56 = vpack.c.bf16 %v2510_v24, %v2509_v35  ;;  %v2079_v35 = vld [vmem:[%s20729_s1 + $0xe8] sm:$0xff] }
 0x281   :  { %2159 = vperm.xlu1 %14476, %v2065_v23  }
 0x282   :  { %12969 = vmatmul.mubr.msk.bf16.gmra.mrb[24].mxu1 %vm135_vm0, %v2530_v56  ;;  %2174 = vperm.xlu0 %14477, %v2068_v9   ;;  %v11666_v56 = vld [vmem:[%s20729_s1 + $0x200] sm:$0xff] }
 0x285   :  { %2169 = vperm.xlu1 %14476, %v2067_v2   ;;  %v15970_v7 = vpop.permute.xlu0 %2449  ;;  %v2081_v2 = vld [vmem:[%s20729_s1 + $0xf8] sm:$0xff] }
 0x286   :  { %20834 = vst [vmem:[#allocation9_spill] sm:$0xff] %v15970_v7  ;;  %2184 = vperm.xlu0 %14477, %v2070_v46  }
 0x289   :  { %2179 = vperm.xlu1 %14476, %v2069_v36   ;;  %v15978_v42 = vpop.permute.xlu0 %631  ;;  %v11668_v36 = vld [vmem:[%s20729_s1 + $0x210] sm:$0xff] }
 0x28a   :  { %2194 = vperm.xlu0 %14477, %v2072_v58   ;;  %v410_v58 = vadd.f32 %v15687_v47, %v20806_v12  ;;  %v411_v12 = vadd.f32 %v15687_v47, %v20810_v38  ;;  %v11671_v38 = vld [vmem:[%s20729_s1 + $0x228] sm:$0xff] }
 0x28c   :  { %v15983_v30 = vpop.permute.xlu1 %2454  ;;  %v443_v44 = vmax.f32 %v411_v12, 0.0 }
 0x28d   :  { %20835 = vst [vmem:[#allocation23_spill] sm:$0xff] %v15983_v30  ;;  %2189 = vperm.xlu1 %14476, %v2071_v60   ;;  %v15988_v22 = vpop.permute.xlu0 %1397 }
 0x28e   :  { %2204 = vperm.xlu0 %14477, %v2074_v59   ;;  %v11667_v59 = vld [vmem:[%s20729_s1 + $0x208] sm:$0xff]  ;;  %v475_v8 = vmax.f32 %v443_v44, 0.0  ;;  %v1189_v44 = vadd.f32 %v15687_v47, %v20826_v43 }
 0x290   :  { %v15993_v11 = vpop.permute.xlu1 %633 }
 0x291   :  { %2199 = vperm.xlu1 %14476, %v2073_v57   ;;  %v15998_v19 = vpop.permute.xlu0 %2459 }
 0x292   :  { %20836 = vst [vmem:[#allocation8_spill] sm:$0xff] %v15998_v19  ;;  %2214 = vperm.xlu0 %14477, %v2076_v53   ;;  %v11670_v53 = vld [vmem:[%s20729_s1 + $0x220] sm:$0xff] }
 0x294   :  { %v16003_v45 = vpop.permute.xlu1 %1399 }
 0x295   :  { %2209 = vperm.xlu1 %14476, %v2075_v26   ;;  %v16008_v3 = vpop.permute.xlu0 %635  ;;  %v442_v26 = vmax.f32 %v410_v58, 0.0  ;;  %v1472_v43 = vmax.f32 %v15913_v62, %v16003_v45  ;;  %v1190_v62 = vadd.f32 %v15687_v47, %v20827_v41 }
 0x296   :  { %2224 = vperm.xlu0 %14477, %v2078_v32  }
 0x298   :  { %v16013_v55 = vpop.permute.xlu1 %2464 }
 0x299   :  { %20837 = vst [vmem:[#allocation22_spill] sm:$0xff] %v16013_v55  ;;  %2219 = vperm.xlu1 %14476, %v2077_v10   ;;  %v16018_v23 = vpop.permute.xlu0 %1401  ;;  %v11669_v10 = vld [vmem:[%s20729_s1 + $0x218] sm:$0xff] }
 0x29a   :  { %2234 = vperm.xlu0 %14477, %v2080_v5   ;;  %v16052_v5 = vld [vmem:[%s20173_s3 + $0x20] sm:$0xff]  }
 0x29b   :  { %13016 = vmatprep.subr.bf16.mxu1 %v16052_v5 }
 0x29c   :  { %v16023_v24 = vpop.permute.xlu1 %637 }
 0x29d   :  { %2229 = vperm.xlu1 %14476, %v2079_v35   ;;  %v859_v9 = vpop.permute.xlu0 %858 }
 0x29e   :  { %3112 = vperm.xlu0 %14477, %v11666_v56   ;;  %v11672_v56 = vld [vmem:[%s20729_s1 + $0x230] sm:$0xff] }
 0x2a0   :  { %v16031_v46 = vpop.permute.xlu1 %1403 }
 0x2a1   :  { %2239 = vperm.xlu1 %14476, %v2081_v2   ;;  %v1622_v60 = vpop.permute.xlu0 %1621  ;;  %v474_v2 = vmax.f32 %v442_v26, 0.0 }
 0x2a2   :  { %3122 = vperm.xlu0 %14477, %v11668_v36   ;;  %v412_v36 = vadd.f32 %v15687_v47, %v20812_v1  ;;  %v11674_v1 = vld [vmem:[%s20729_s1 + $0x240] sm:$0xff] }
 0x2a4   :  { %v861_v57 = vpop.permute.xlu1 %860 }
 0x2a5   :  { %3117 = vperm.xlu1 %14476, %v11667_v59   ;;  %v863_v32 = vpop.permute.xlu0 %862  ;;  %v1187_v59 = vadd.f32 %v15687_v47, %v20824_v49  ;;  %v11673_v49 = vld [vmem:[%s20729_s1 + $0x238] sm:$0xff] }
 0x2a6   :  { %3132 = vperm.xlu0 %14477, %v11670_v53   ;;  %v701_v53 = vmax.f32 %v474_v2, %v15978_v42 }
 0x2a7   :  { %v1219_v12 = vmax.f32 %v1187_v59, 0.0  ;;  %v1471_v59 = vmax.f32 %v15892_v33, %v15988_v22  ;;  %v11677_v33 = vld [vmem:[%s20729_s1 + $0x258] sm:$0xff]  ;;  %v1221_v22 = vmax.f32 %v1189_v44, 0.0 }
 0x2a8   :  { %v1624_v35 = vpop.permute.xlu1 %1623  ;;  %v928_v50 = vmax.f32 %v701_v53, %v859_v9  ;;  %v11676_v9 = vld [vmem:[%s20729_s1 + $0x250] sm:$0xff] }
 0x2a9   :  { %3127 = vperm.xlu1 %14476, %v11669_v10   ;;  %v16060_v58 = vpop.permute.xlu0 %1625  ;;  %v444_v10 = vmax.f32 %v412_v36, 0.0  ;;  %v702_v36 = vmax.f32 %v475_v8, %v15993_v11  ;;  %v11678_v11 = vld [vmem:[%s20729_s1 + $0x260] sm:$0xff] }
 0x2aa   :  { %3142 = vperm.xlu0 %14477, %v11672_v56   ;;  %v1188_v56 = vadd.f32 %v15687_v47, %v20825_v54  ;;  %v11675_v54 = vld [vmem:[%s20729_s1 + $0x248] sm:$0xff]  ;;  %v1473_v47 = vmax.f32 %v15922_v6, %v16018_v23 }
 0x2ab   :  { %v476_v15 = vmax.f32 %v444_v10, 0.0 }
 0x2ac   :  { %v865_v26 = vpop.permute.xlu1 %864  ;;  %v1220_v10 = vmax.f32 %v1188_v56, 0.0 }
 0x2ad   :  { %3137 = vperm.xlu1 %14476, %v11671_v38   ;;  %v1086_v14 = vpop.permute.xlu0 %1085  ;;  %v703_v53 = vmax.f32 %v476_v15, %v16008_v3  ;;  %v1696_v3 = vmax.f32 %v1472_v43, %v1624_v35 }
 0x2ae   :  { %v1155_v42 = vmax.f32 %v928_v50, %v1086_v14  ;;  %3152 = vperm.xlu0 %14477, %v11674_v1   ;;  %v445_v14 = vmax.f32 %v413_v52, 0.0  ;;  %v929_v1 = vmax.f32 %v702_v36, %v861_v57  ;;  %v1695_v52 = vmax.f32 %v1471_v59, %v1622_v60  ;;  %v11680_v60 = vld [vmem:[%s20729_s1 + $0x270] sm:$0xff] }
 0x2af   :  { %v1474_v59 = vmax.f32 %v15946_v13, %v16031_v46  ;;  %v11684_v46 = vld [vmem:[%s20729_s1 + $0x290] sm:$0xff] }
 0x2b0   :  { %v1628_v2 = vpop.permute.xlu1 %1627  ;;  %v16082_v38 = vmax.f32 %v1155_v42, %v1219_v12  ;;  %v477_v12 = vmax.f32 %v445_v14, 0.0 }
 0x2b1   :  { %3147 = vperm.xlu1 %14476, %v11673_v49   ;;  %v1846_v50 = vpop.permute.xlu0 %1845  ;;  %v930_v49 = vmax.f32 %v703_v53, %v863_v32  ;;  %v1697_v53 = vmax.f32 %v1473_v47, %v16060_v58 }
 0x2b2   :  { %3162 = vperm.xlu0 %14477, %v11676_v9   ;;  %v16100_v57 = vmax.f32 %v1695_v52, %v1846_v50  ;;  %v704_v32 = vmax.f32 %v477_v12, %v16023_v24  ;;  %v11682_v50 = vld [vmem:[%s20729_s1 + $0x280] sm:$0xff] }
 0x2b3   :  { %v11686_v12 = vld [vmem:[%s20729_s1 + $0x2a0] sm:$0xff] }
 0x2b4   :  { %v1088_v8 = vpop.permute.xlu1 %1087  ;;  %v931_v41 = vmax.f32 %v704_v32, %v865_v26  ;;  %v2511_v44 = vmul.f32 %v15970_v7, %v16100_v57 }
 0x2b5   :  { %v1156_v42 = vmax.f32 %v929_v1, %v1088_v8  ;;  %3157 = vperm.xlu1 %14476, %v11675_v54   ;;  %v1090_v61 = vpop.permute.xlu0 %1089  ;;  %v1222_v54 = vmax.f32 %v1190_v62, 0.0  ;;  %v11681_v1 = vld [vmem:[%s20729_s1 + $0x278] sm:$0xff]  ;;  %v1698_v8 = vmax.f32 %v1474_v59, %v1628_v2  ;;  %v11683_v2 = vld [vmem:[%s20729_s1 + $0x288] sm:$0xff]  ;;  %v11688_v62 = vld [vmem:[%s20729_s1 + $0x2b0] sm:$0xff] }
 0x2b6   :  { %v1157_v9 = vmax.f32 %v930_v49, %v1090_v61  ;;  %3172 = vperm.xlu0 %14477, %v11678_v11   ;;  %v11679_v61 = vld [vmem:[%s20729_s1 + $0x268] sm:$0xff] }
 0x2b7   :  { %v16102_v56 = vmax.f32 %v1156_v42, %v1220_v10 }
 0x2b8   :  { %v1848_v45 = vpop.permute.xlu1 %1847  ;;  %v16112_v35 = vmax.f32 %v1157_v9, %v1221_v22 }
 0x2b9   :  { %v16110_v36 = vmax.f32 %v1696_v3, %v1848_v45  ;;  %3167 = vperm.xlu1 %14476, %v11677_v33   ;;  %v1850_v15 = vpop.permute.xlu0 %1849  ;;  %v11685_v3 = vld [vmem:[%s20729_s1 + $0x298] sm:$0xff]  ;;  %v20841_v45 = vld [vmem:[#allocation2_spill] sm:$0xff] }
 0x2ba   :  { %3182 = vperm.xlu0 %14477, %v11680_v60   ;;  %v16134_v11 = vmax.f32 %v1697_v53, %v1850_v15  ;;  %v513_v60 = vadd.f32 %v14894_v16, %v20841_v45  ;;  %v11687_v15 = vld [vmem:[%s20729_s1 + $0x2a8] sm:$0xff]  ;;  %v740_v59 = vadd.f32 %v14898_v18, %v20841_v45 }
 0x2bb   :  { %v2512_v24 = vmul.f32 %v15983_v30, %v16110_v36 }
 0x2bc   :  { %v1092_v14 = vpop.permute.xlu1 %1091  ;;  %v2513_v52 = vmul.f32 %v15998_v19, %v16134_v11  ;;  %v545_v47 = vmax.f32 %v513_v60, 0.0 }
 0x2bd   :  { %v1158_v6 = vmax.f32 %v931_v41, %v1092_v14  ;;  %3177 = vperm.xlu1 %14476, %v11679_v61   ;;  %v2531_v23 = vpack.c.bf16 %v2512_v24, %v2511_v44  ;;  %v16129_v26 = vpop.permute.xlu0 %2469  ;;  %v11689_v44 = vld [vmem:[%s20729_s1 + $0x2b8] sm:$0xff]  ;;  %v11691_v14 = vld [vmem:[%s20729_s1 + $0x2c8] sm:$0xff] }
 0x2be   :  { %20838 = vst [vmem:[#allocation25_spill] sm:$0xff] %v16129_v26  ;;  %3192 = vperm.xlu0 %14477, %v11682_v50  }
 0x2bf   :  { %12972 = vmatprep.mubr.msk.bf16.mxu1 %vm135_vm0, %v2531_v23  ;;  %v16137_v10 = vmax.f32 %v1158_v6, %v1222_v54  ;;  %v11690_v54 = vld [vmem:[%s20729_s1 + $0x2c0] sm:$0xff]  ;;  %v11692_v6 = vld [vmem:[%s20729_s1 + $0x2d0] sm:$0xff]  ;;  %v967_v23 = vadd.f32 %v14896_v17, %v20841_v45 }
 0x2c0   :  { %v1852_v13 = vpop.permute.xlu1 %1851 }
 0x2c1   :  { %v16142_v58 = vmax.f32 %v1698_v8, %v1852_v13  ;;  %3187 = vperm.xlu1 %14476, %v11681_v1   ;;  %v1406_v43 = vpop.permute.xlu0 %1405  ;;  %v772_v8 = vmax.f32 %v740_v59, 0.0 }
 0x2c2   :  { %3202 = vperm.xlu0 %14477, %v11684_v46   ;;  %v1475_v13 = vmax.f32 %v16082_v38, %v1406_v43 }
 0x2c3   :  { %v2514_v49 = vmul.f32 %v16013_v55, %v16142_v58 }
 0x2c4   :  { %v16151_v42 = vpop.permute.xlu1 %2474 }
 0x2c5   :  { %20839 = vst [vmem:[#allocation27_spill] sm:$0xff] %v16151_v42  ;;  %3197 = vperm.xlu1 %14476, %v11683_v2   ;;  %v2532_v33 = vpack.c.bf16 %v2514_v49, %v2513_v52  ;;  %v16156_v22 = vpop.permute.xlu0 %2479  ;;  %v999_v2 = vmax.f32 %v967_v23, 0.0 }
 0x2c6   :  { %20840 = vst [vmem:[#allocation30_spill] sm:$0xff] %v16156_v22  ;;  %3212 = vperm.xlu0 %14477, %v11686_v12   ;;  %v20843_v12 = vld [vmem:[#allocation3_spill] sm:$0xff] }
 0x2c7   :  { %12973 = vmatmul.mubr.msk.bf16.gmra.mrb[28].mxu1 %vm135_vm0, %v2532_v33  ;;  %v1287_v33 = vadd.f32 %v14894_v16, %v20843_v12 }
 0x2c8   :  { %v1408_v9 = vpop.permute.xlu1 %1407 }
 0x2c9   :  { %3207 = vperm.xlu1 %14476, %v11685_v3   ;;  %v1410_v32 = vpop.permute.xlu0 %1409  ;;  %v1476_v52 = vmax.f32 %v16102_v56, %v1408_v9  ;;  %v11694_v56 = vld [vmem:[%s20729_s1 + $0x2e0] sm:$0xff]  ;;  %v1511_v9 = vadd.f32 %v14898_v18, %v20843_v12 }
 0x2ca   :  { %3222 = vperm.xlu0 %14477, %v11688_v62   ;;  %v11693_v62 = vld [vmem:[%s20729_s1 + $0x2d8] sm:$0xff]  ;;  %v1477_v60 = vmax.f32 %v16112_v35, %v1410_v32  ;;  %v1319_v35 = vmax.f32 %v1287_v33, 0.0 }
 0x2cb   :  { %v1543_v23 = vmax.f32 %v1511_v9, 0.0  ;;  %v1963_v9 = vrot.slane %v15364_v39, 7 }
 0x2cc   :  { %v16170_v61 = vpop.permute.xlu1 %2484 }
 0x2cd   :  { %20842 = vst [vmem:[#allocation34_spill] sm:$0xff] %v16170_v61  ;;  %3217 = vperm.xlu1 %14476, %v11687_v15   ;;  %v1630_v41 = vpop.permute.xlu0 %1629 }
 0x2ce   :  { %639 = vrot.lane.b32.xlu0 %v545_v47, %s14567_s27  ;;  %v1699_v49 = vmax.f32 %v1475_v13, %v1630_v41 }
 0x2d0   :  { %v1412_v24 = vpop.permute.xlu1 %1411 }
 0x2d1   :  { %3227 = vperm.xlu1 %14476, %v11689_v44   ;;  %v1634_v50 = vpop.permute.xlu0 %1633  ;;  %v1478_v47 = vmax.f32 %v16137_v10, %v1412_v24 }
 0x2d2   :  { %3237 = vperm.xlu0 %14477, %v11691_v14   ;;  %v1701_v41 = vmax.f32 %v1477_v60, %v1634_v50  ;;  %v11695_v50 = vld [vmem:[%s20729_s1 + $0x2e8] sm:$0xff] }
 0x2d4   :  { %v1632_v53 = vpop.permute.xlu1 %1631 }
 0x2d5   :  { %3232 = vperm.xlu1 %14476, %v11690_v54   ;;  %v1854_v1 = vpop.permute.xlu0 %1853  ;;  %v1700_v15 = vmax.f32 %v1476_v52, %v1632_v53  ;;  %v11697_v52 = vld [vmem:[%s20729_s1 + $0x2f8] sm:$0xff] }
 0x2d6   :  { %3242 = vperm.xlu0 %14477, %v11692_v6   ;;  %v16198_v38 = vmax.f32 %v1699_v49, %v1854_v1 }
 0x2d8   :  { %v1636_v46 = vpop.permute.xlu1 %1635  ;;  %v2515_v59 = vmul.f32 %v16129_v26, %v16198_v38  ;;  %v20866_v26 = vld [vmem:[#allocation17_spill] sm:$0xff] }
 0x2d9   :  { %866 = vrot.lane.b32.xlu1 %v772_v8, %s14568_s30  ;;  %v1858_v3 = vpop.permute.xlu0 %1857  ;;  %v1702_v14 = vmax.f32 %v1478_v47, %v1636_v46  ;;  %v1987_v55 = vrot.slane %v20866_v26, 7 }
 0x2da   :  { %1093 = vrot.lane.b32.xlu0 %v999_v2, %s14566_s7  ;;  %v16209_v54 = vmax.f32 %v1701_v41, %v1858_v3  ;;  %v1961_v2 = vrot.slane %v15329_v37, 7 }
 0x2dc   :  { %v1856_v43 = vpop.permute.xlu1 %1855  ;;  %v2517_v8 = vmul.f32 %v16156_v22, %v16209_v54 }
 0x2dd   :  { %v16207_v44 = vmax.f32 %v1700_v15, %v1856_v43  ;;  %3247 = vperm.xlu1 %14476, %v11693_v62   ;;  %v2085_v32 = vpop.permute.xlu0 %2084  ;;  %v1960_v62 = vrot.slane %v15324_v20, 7  ;;  %v11696_v15 = vld [vmem:[%s20729_s1 + $0x2f0] sm:$0xff]  ;;  %v1735_v43 = vadd.f32 %v14896_v17, %v20843_v12 }
 0x2de   :  { %3252 = vperm.xlu0 %14477, %v11694_v56   ;;  %v2242_v49 = vmul.f32 0.0, %v2085_v32  ;;  %v11720_v32 = vld [vmem:[%s20729_s1 + $0x300] sm:$0xff] }
 0x2df   :  { %v2516_v53 = vmul.f32 %v16151_v42, %v16207_v44  ;;  %v16246_v47 = vsel %vm1959_vm2, %v1960_v62, %v1961_v2 }
 0x2e0   :  { %v1860_v6 = vpop.permute.xlu1 %1859 }
 0x2e1   :  { %v16215_v1 = vmax.f32 %v1702_v14, %v1860_v6  ;;  %1413 = vrot.lane.b32.xlu1 %v1319_v35, %s14567_s27  ;;  %v2533_v10 = vpack.c.bf16 %v2516_v53, %v2515_v59  ;;  %v16218_v24 = vpop.permute.xlu0 %2094  ;;  %v1965_v35 = vrot.slane %v15371_v34, 7  ;;  %v16259_v59 = vsel %vm1959_vm2, 0.0, %v1960_v62  ;;  %v11721_v62 = vld [vmem:[%s20729_s1 + $0x308] sm:$0xff] }
 0x2e2   :  { %20844 = vst [vmem:[#allocation37_spill] sm:$0xff] %v16218_v24  ;;  %1637 = vrot.lane.b32.xlu0 %v1543_v23, %s14568_s30  ;;  %v1767_v6 = vmax.f32 %v1735_v43, 0.0  ;;  %v2244_v23 = vmul.f32 %v16218_v24, %v16259_v59 }
 0x2e3   :  { %12976 = vmatprep.mubr.msk.bf16.mxu1 %vm135_vm0, %v2533_v10  ;;  %v2518_v13 = vmul.f32 %v16170_v61, %v16215_v1  ;;  %v16266_v10 = vsel %vm1959_vm2, %v1961_v2, %v1963_v9  ;;  %v1967_v2 = vrot.slane %v15417_v31, 7 }
 0x2e4   :  { %v2090_v46 = vpop.permute.xlu1 %2089 }
 0x2e5   :  { %v2243_v33 = vmul.f32 0.0, %v2090_v46  ;;  %3257 = vperm.xlu1 %14476, %v11695_v50   ;;  %v2534_v3 = vpack.c.bf16 %v2518_v13, %v2517_v8  ;;  %v16234_v60 = vpop.permute.xlu0 %2104  ;;  %v16269_v50 = vsel %vm1959_vm2, %v1963_v9, %v1965_v35  ;;  %v1969_v13 = vrot.slane %v15424_v51, 7  ;;  %v11722_v46 = vld [vmem:[%s20729_s1 + $0x310] sm:$0xff] }
 0x2e6   :  { %20845 = vst [vmem:[#allocation41_spill] sm:$0xff] %v16234_v60  ;;  %3267 = vperm.xlu0 %14477, %v11697_v52   ;;  %v2246_v52 = vmul.f32 %v16234_v60, %v16266_v10  ;;  %v1971_v9 = vrot.slane %v15470_v40, 7  ;;  %v11725_v60 = vld [vmem:[%s20729_s1 + $0x328] sm:$0xff] }
 0x2e7   :  { %v16241_v56 = vpack.c.bf16 %v2243_v33, %v2242_v49  ;;  %12977 = vmatmul.mubr.msk.bf16.gmra.mrb[32].mxu1 %vm135_vm0, %v2534_v3 }
 0x2e8   :  { %v16248_v41 = vpop.permute.xlu1 %2099 }
 0x2e9   :  { %20846 = vst [vmem:[#allocation29_spill] sm:$0xff] %v16241_v56  ;;  %20847 = vst [vmem:[#allocation43_spill] sm:$0xff] %v16248_v41  ;;  %v2245_v14 = vmul.f32 %v16248_v41, %v16246_v47  ;;  %3262 = vperm.xlu1 %14476, %v11696_v15   ;;  %12984 = vmatprep.mubr.msk.bf16.mxu1 %vm135_vm0, %v16241_v56  ;;  %v16261_v53 = vpop.permute.xlu0 %2114  ;;  %v14489_v15 = vld [vmem:[%s20173_s3 + $0x28] sm:$0xff]  }
 0x2ea   :  { %20848 = vst [vmem:[#allocation32_spill] sm:$0xff] %v16261_v53  ;;  %3618 = vperm.xlu0 %14477, %v11720_v32   ;;  %v16294_v32 = vsel %vm1959_vm2, %v1967_v2, %v1969_v13 }
 0x2eb   :  { %v2275_v49 = vpack.c.bf16 %v2245_v14, %v2244_v23  ;;  %v11724_v23 = vld [vmem:[%s20729_s1 + $0x320] sm:$0xff] }
 0x2ec   :  { %v16271_v8 = vpop.permute.xlu1 %2109 }
 0x2ed   :  { %20849 = vst [vmem:[#allocation47_spill] sm:$0xff] %v16271_v8  ;;  %v2247_v33 = vmul.f32 %v16271_v8, %v16269_v50  ;;  %1861 = vrot.lane.b32.xlu1 %v1767_v6, %s14566_s7  ;;  %v16283_v3 = vpop.permute.xlu0 %2124  ;;  %v1973_v6 = vrot.slane %v15477_v28, 7 }
 0x2ee   :  { %20850 = vst [vmem:[#allocation36_spill] sm:$0xff] %v16283_v3  ;;  %3628 = vperm.xlu0 %14477, %v11722_v46  }
 0x2ef   :  { %v2276_v43 = vpack.c.bf16 %v2247_v33, %v2246_v52  ;;  %12985 = vmatmul.mubr.msk.bf16.vlgmr.msra.gmra.mrb[4].mxu1 %vm135_vm0, %v2275_v49  ;;  %v16309_v52 = vld [vmem:[%s20173_s3 + $0x30] sm:$0xff]   ;;  %v16312_v49 = vsel %vm1959_vm2, %v1965_v35, %v1967_v2  ;;  %v1977_v35 = vrot.slane %v15530_v27, 7 }
 0x2f0   :  { %v16296_v14 = vpop.permute.xlu1 %2119  ;;  %13017 = vmatpush3.bf16.msra.mxu1 %v16052_v5  ;;  %20852 = vst [vmem:[#allocation38_spill] sm:$0xff] %v16312_v49  ;;  %v11723_v5 = vld [vmem:[%s20729_s1 + $0x318] sm:$0xff]  ;;  %v11726_v2 = vld [vmem:[%s20729_s1 + $0x330] sm:$0xff] }
 0x2f1   :  { %20851 = vst [vmem:[#allocation50_spill] sm:$0xff] %v16296_v14  ;;  %v2249_v46 = vmul.f32 %v16296_v14, %v16294_v32  ;;  %3623 = vperm.xlu1 %14476, %v11721_v62   ;;  %12988 = vmatprep.mubr.msk.bf16.mxu1 %vm135_vm0, %v2276_v43  ;;  %v16314_v33 = vpop.permute.xlu0 %2134  ;;  %v2248_v62 = vmul.f32 %v16261_v53, %v16312_v49 }
 0x2f2   :  { %20853 = vst [vmem:[#allocation42_spill] sm:$0xff] %v16314_v33  ;;  %13018 = vmatprep.subr.bf16.mxu1 %v14489_v15  ;;  %3638 = vperm.xlu0 %14477, %v11724_v23   ;;  %v16322_v43 = vsel %vm1959_vm2, %v1969_v13, %v1971_v9  ;;  %v16325_v14 = vsel %vm1959_vm2, %v1971_v9, %v1973_v6  ;;  %v1975_v9 = vrot.slane %v15523_v63, 7 }
 0x2f3   :  { %20854 = vst [vmem:[#allocation45_spill] sm:$0xff] %v16322_v43  ;;  %20855 = vst [vmem:[#allocation49_spill] sm:$0xff] %v16325_v14  ;;  %v2250_v8 = vmul.f32 %v16283_v3, %v16322_v43  ;;  %v2277_v53 = vpack.c.bf16 %v2249_v46, %v2248_v62  ;;  %v1981_v62 = vrot.slane %v15583_v25, 7 }
 0x2f4   :  { %v16327_v24 = vpop.permute.xlu1 %2129  ;;  %13019 = vmatpush3.bf16.msra.mxu1 %v14489_v15  ;;  %v1979_v15 = vrot.slane %v15576_v4, 7  ;;  %v16347_v46 = vsel %vm1959_vm2, %v1975_v9, %v1977_v35 }
 0x2f5   :  { %20856 = vst [vmem:[#allocation52_spill] sm:$0xff] %v16327_v24  ;;  %v2251_v13 = vmul.f32 %v16327_v24, %v16325_v14  ;;  %3633 = vperm.xlu1 %14476, %v11723_v5   ;;  %13052 = vmatprep.subr.bf16.mxu1 %v16309_v52  ;;  %v16339_v23 = vpop.permute.xlu0 %2144  ;;  %20858 = vst [vmem:[#allocation3_spill] sm:$0xff] %v16347_v46  ;;  %v11728_v24 = vld [vmem:[%s20729_s1 + $0x340] sm:$0xff] }
 0x2f6   :  { %20857 = vst [vmem:[#allocation2_spill] sm:$0xff] %v16339_v23  ;;  %3648 = vperm.xlu0 %14477, %v11726_v2   ;;  %v11727_v2 = vld [vmem:[%s20729_s1 + $0x338] sm:$0xff]  ;;  %v16369_v56 = vsel %vm1959_vm2, %v1977_v35, %v1979_v15  ;;  %v1983_v35 = vrot.slane %v15627_v0, 7 }
 0x2f7   :  { %v2278_v41 = vpack.c.bf16 %v2251_v13, %v2250_v8  ;;  %12989 = vmatmul.mubr.msk.bf16.gmra.mrb[8].mxu1 %vm135_vm0, %v2277_v53  ;;  %v16359_v53 = vsel %vm1959_vm2, %v1973_v6, %v1975_v9  ;;  %20862 = vst [vmem:[#allocation60_spill] sm:$0xff] %v16369_v56  ;;  %v1985_v6 = vrot.slane %v15634_v48, 7  ;;  %v11730_v9 = vld [vmem:[%s20729_s1 + $0x350] sm:$0xff] }
 0x2f8   :  { %v16349_v5 = vpop.permute.xlu1 %2139  ;;  %20860 = vst [vmem:[#allocation58_spill] sm:$0xff] %v16359_v53  ;;  %v2252_v13 = vmul.f32 %v16314_v33, %v16359_v53  ;;  %v11729_v33 = vld [vmem:[%s20729_s1 + $0x348] sm:$0xff]  ;;  %v2003_v53 = vrot.slane %v16100_v57, 7 }
 0x2f9   :  { %20859 = vst [vmem:[#allocation57_spill] sm:$0xff] %v16349_v5  ;;  %v2253_v3 = vmul.f32 %v16349_v5, %v16347_v46  ;;  %3643 = vperm.xlu1 %14476, %v11725_v60   ;;  %12992 = vmatprep.mubr.msk.bf16.mxu1 %vm135_vm0, %v2278_v41  ;;  %v16361_v8 = vpop.permute.xlu0 %2154  ;;  %v16372_v60 = vsel %vm1959_vm2, %v1979_v15, %v1981_v62  ;;  %v2011_v46 = vrot.slane %v16198_v38, 7 }
 0x2fa   :  { %20861 = vst [vmem:[#allocation59_spill] sm:$0xff] %v16361_v8  ;;  %3658 = vperm.xlu0 %14477, %v11728_v24   ;;  %20863 = vst [vmem:[#allocation61_spill] sm:$0xff] %v16372_v60  ;;  %v2254_v5 = vmul.f32 %v16339_v23, %v16369_v56  ;;  %v11732_v23 = vld [vmem:[%s20729_s1 + $0x360] sm:$0xff]  ;;  %v16415_v42 = vsel %vm1959_vm2, %v1985_v6, %v1987_v55 }
 0x2fb   :  { %v2279_v61 = vpack.c.bf16 %v2253_v3, %v2252_v13  ;;  %v16393_v3 = vsel %vm1959_vm2, %v1983_v35, %v1985_v6  ;;  %20872 = vst [vmem:[#allocation66_spill] sm:$0xff] %v16415_v42  ;;  %v20876_v6 = vld [vmem:[#allocation16_spill] sm:$0xff] }
 0x2fc   :  { %v16374_v41 = vpop.permute.xlu1 %2149  ;;  %20867 = vst [vmem:[#allocation17_spill] sm:$0xff] %v16393_v3 }
 0x2fd   :  { %20864 = vst [vmem:[#allocation62_spill] sm:$0xff] %v16374_v41  ;;  %v2255_v24 = vmul.f32 %v16374_v41, %v16372_v60  ;;  %3653 = vperm.xlu1 %14476, %v11727_v2   ;;  %v16385_v15 = vpop.permute.xlu0 %2164  ;;  %v20869_v2 = vld [vmem:[#allocation6_spill] sm:$0xff] }
 0x2fe   :  { %20865 = vst [vmem:[#allocation63_spill] sm:$0xff] %v16385_v15  ;;  %3668 = vperm.xlu0 %14477, %v11730_v9   ;;  %v1989_v41 = vrot.slane %v20869_v2, 7  ;;  %v11731_v9 = vld [vmem:[%s20729_s1 + $0x358] sm:$0xff]  ;;  %v2258_v7 = vmul.f32 %v16385_v15, %v16415_v42 }
 0x2ff   :  { %v2280_v22 = vpack.c.bf16 %v2255_v24, %v2254_v5  ;;  %12993 = vmatmul.mubr.msk.bf16.gmra.mrb[12].mxu1 %vm135_vm0, %v2279_v61  ;;  %v16405_v61 = vsel %vm1959_vm2, %v1981_v62, %v1983_v35  ;;  %v20875_v62 = vld [vmem:[#allocation18_spill] sm:$0xff] }
 0x300   :  { %v16395_v13 = vpop.permute.xlu1 %2159  ;;  %20870 = vst [vmem:[#allocation6_spill] sm:$0xff] %v16405_v61  ;;  %v2256_v24 = vmul.f32 %v16361_v8, %v16405_v61  ;;  %v1993_v35 = vrot.slane %v20875_v62, 7  ;;  %v1991_v8 = vrot.slane %v20876_v6, 7  ;;  %v11733_v61 = vld [vmem:[%s20729_s1 + $0x368] sm:$0xff] }
 0x301   :  { %20868 = vst [vmem:[#allocation64_spill] sm:$0xff] %v16395_v13  ;;  %v2257_v19 = vmul.f32 %v16395_v13, %v16393_v3  ;;  %3663 = vperm.xlu1 %14476, %v11729_v33   ;;  %12996 = vmatprep.mubr.msk.bf16.mxu1 %vm135_vm0, %v2280_v22  ;;  %v16407_v5 = vpop.permute.xlu0 %2174  ;;  %v16418_v33 = vsel %vm1959_vm2, %v1987_v55, %v1989_v41  ;;  %v11734_v13 = vld [vmem:[%s20729_s1 + $0x370] sm:$0xff]  ;;  %v1995_v3 = vrot.slane %v15908_v21, 7 }
 0x302   :  { %20871 = vst [vmem:[#allocation65_spill] sm:$0xff] %v16407_v5  ;;  %3678 = vperm.xlu0 %14477, %v11732_v23   ;;  %20873 = vst [vmem:[#allocation67_spill] sm:$0xff] %v16418_v33 }
 0x303   :  { %v2281_v30 = vpack.c.bf16 %v2257_v19, %v2256_v24  ;;  %v16439_v19 = vsel %vm1959_vm2, %v1991_v8, %v1993_v35  ;;  %v16461_v42 = vsel %vm1959_vm2, %v1993_v35, %v1995_v3  ;;  %v20886_v35 = vld [vmem:[#allocation7_spill] sm:$0xff] }
 0x304   :  { %v16420_v22 = vpop.permute.xlu1 %2169  ;;  %20878 = vst [vmem:[#allocation16_spill] sm:$0xff] %v16439_v19  ;;  %20882 = vst [vmem:[#allocation72_spill] sm:$0xff] %v16461_v42 }
 0x305   :  { %20874 = vst [vmem:[#allocation68_spill] sm:$0xff] %v16420_v22  ;;  %v2259_v23 = vmul.f32 %v16420_v22, %v16418_v33  ;;  %3673 = vperm.xlu1 %14476, %v11731_v9   ;;  %v16431_v55 = vpop.permute.xlu0 %2184  ;;  %v1997_v9 = vrot.slane %v15917_v29, 7  ;;  %v11736_v22 = vld [vmem:[%s20729_s1 + $0x380] sm:$0xff] }
 0x306   :  { %20877 = vst [vmem:[#allocation18_spill] sm:$0xff] %v16431_v55  ;;  %3688 = vperm.xlu0 %14477, %v11734_v13   ;;  %v11735_v13 = vld [vmem:[%s20729_s1 + $0x378] sm:$0xff] }
 0x307   :  { %v2282_v56 = vpack.c.bf16 %v2259_v23, %v2258_v7  ;;  %12997 = vmatmul.mubr.msk.bf16.gmra.mrb[16].mxu1 %vm135_vm0, %v2281_v30  ;;  %v16451_v7 = vsel %vm1959_vm2, %v1989_v41, %v1991_v8  ;;  %v20885_v8 = vld [vmem:[#allocation21_spill] sm:$0xff] }
 0x308   :  { %v16441_v24 = vpop.permute.xlu1 %2179  ;;  %20880 = vst [vmem:[#allocation70_spill] sm:$0xff] %v16451_v7  ;;  %v2260_v23 = vmul.f32 %v16407_v5, %v16451_v7  ;;  %v2001_v41 = vrot.slane %v20885_v8, 7  ;;  %v1999_v5 = vrot.slane %v20886_v35, 7  ;;  %v11737_v7 = vld [vmem:[%s20729_s1 + $0x388] sm:$0xff] }
 0x309   :  { %20879 = vst [vmem:[#allocation69_spill] sm:$0xff] %v16441_v24  ;;  %v2261_v15 = vmul.f32 %v16441_v24, %v16439_v19  ;;  %3683 = vperm.xlu1 %14476, %v11733_v61   ;;  %13000 = vmatprep.mubr.msk.bf16.mxu1 %vm135_vm0, %v2282_v56  ;;  %v16453_v30 = vpop.permute.xlu0 %2194  ;;  %v16464_v61 = vsel %vm1959_vm2, %v1995_v3, %v1997_v9  ;;  %v11738_v24 = vld [vmem:[%s20729_s1 + $0x390] sm:$0xff] }
 0x30a   :  { %20881 = vst [vmem:[#allocation71_spill] sm:$0xff] %v16453_v30  ;;  %3698 = vperm.xlu0 %14477, %v11736_v22   ;;  %20883 = vst [vmem:[#allocation73_spill] sm:$0xff] %v16464_v61  ;;  %v2262_v19 = vmul.f32 %v16431_v55, %v16461_v42  ;;  %v16507_v42 = vsel %vm1959_vm2, %v2001_v41, %v2003_v53 }
 0x30b   :  { %v2283_v33 = vpack.c.bf16 %v2261_v15, %v2260_v23  ;;  %v16485_v15 = vsel %vm1959_vm2, %v1999_v5, %v2001_v41  ;;  %20892 = vst [vmem:[#allocation78_spill] sm:$0xff] %v16507_v42 }
 0x30c   :  { %v16466_v56 = vpop.permute.xlu1 %2189  ;;  %20888 = vst [vmem:[#allocation7_spill] sm:$0xff] %v16485_v15 }
 0x30d   :  { %20884 = vst [vmem:[#allocation74_spill] sm:$0xff] %v16466_v56  ;;  %v2263_v22 = vmul.f32 %v16466_v56, %v16464_v61  ;;  %3693 = vperm.xlu1 %14476, %v11735_v13   ;;  %v16477_v3 = vpop.permute.xlu0 %2204  ;;  %v2005_v13 = vrot.slane %v16110_v36, 7  ;;  %v11740_v56 = vld [vmem:[%s20729_s1 + $0x3a0] sm:$0xff]  ;;  %v11741_v61 = vld [vmem:[%s20729_s1 + $0x3a8] sm:$0xff] }
 0x30e   :  { %20887 = vst [vmem:[#allocation21_spill] sm:$0xff] %v16477_v3  ;;  %3708 = vperm.xlu0 %14477, %v11738_v24   ;;  %v11739_v24 = vld [vmem:[%s20729_s1 + $0x398] sm:$0xff] }
 0x30f   :  { %v2284_v60 = vpack.c.bf16 %v2263_v22, %v2262_v19  ;;  %13001 = vmatmul.mubr.msk.bf16.gmra.mrb[20].mxu1 %vm135_vm0, %v2283_v33  ;;  %v16497_v33 = vsel %vm1959_vm2, %v1997_v9, %v1999_v5  ;;  %v2009_v5 = vrot.slane %v16142_v58, 7  ;;  %v11742_v9 = vld [vmem:[%s20729_s1 + $0x3b0] sm:$0xff] }
 0x310   :  { %v16487_v23 = vpop.permute.xlu1 %2199  ;;  %20890 = vst [vmem:[#allocation76_spill] sm:$0xff] %v16497_v33  ;;  %v2264_v22 = vmul.f32 %v16453_v30, %v16497_v33 }
 0x311   :  { %20889 = vst [vmem:[#allocation75_spill] sm:$0xff] %v16487_v23  ;;  %v2265_v55 = vmul.f32 %v16487_v23, %v16485_v15  ;;  %3703 = vperm.xlu1 %14476, %v11737_v7   ;;  %13004 = vmatprep.mubr.msk.bf16.mxu1 %vm135_vm0, %v2284_v60  ;;  %v16499_v19 = vpop.permute.xlu0 %2214  ;;  %v16510_v7 = vsel %vm1959_vm2, %v2003_v53, %v2005_v13  ;;  %v20895_v23 = vld [vmem:[#allocation4_spill] sm:$0xff]  ;;  %v2007_v53 = vrot.slane %v16134_v11, 7 }
 0x312   :  { %20891 = vst [vmem:[#allocation77_spill] sm:$0xff] %v16499_v19  ;;  %3718 = vperm.xlu0 %14477, %v11740_v56   ;;  %20893 = vst [vmem:[#allocation79_spill] sm:$0xff] %v16510_v7  ;;  %v514_v15 = vadd.f32 %v14894_v16, %v20895_v23  ;;  %v2266_v56 = vmul.f32 %v16477_v3, %v16507_v42  ;;  %v741_v42 = vadd.f32 %v14898_v18, %v20895_v23 }
 0x313   :  { %v2285_v30 = vpack.c.bf16 %v2265_v55, %v2264_v22  ;;  %v16533_v55 = vsel %vm1959_vm2, %v2007_v53, %v2009_v5 }
 0x314   :  { %v16512_v60 = vpop.permute.xlu1 %2209  ;;  %20897 = vst [vmem:[#allocation81_spill] sm:$0xff] %v16533_v55 }
 0x315   :  { %20894 = vst [vmem:[#allocation80_spill] sm:$0xff] %v16512_v60  ;;  %v2267_v41 = vmul.f32 %v16512_v60, %v16510_v7  ;;  %3713 = vperm.xlu1 %14476, %v11739_v24   ;;  %v16525_v33 = vpop.permute.xlu0 %2224  ;;  %v2013_v24 = vrot.slane %v16207_v44, 7  ;;  %v546_v60 = vmax.f32 %v514_v15, 0.0  ;;  %v16553_v15 = vsel %vm1959_vm2, %v2009_v5, %v2011_v46 }
 0x316   :  { %20896 = vst [vmem:[#allocation4_spill] sm:$0xff] %v16525_v33  ;;  %3728 = vperm.xlu0 %14477, %v11742_v9   ;;  %v16542_v9 = vsel %vm1959_vm2, %v2005_v13, %v2007_v53  ;;  %v11745_v13 = vld [vmem:[%s20729_s1 + $0x3c8] sm:$0xff]  ;;  %v2015_v5 = vrot.slane %v16209_v54, 7 }
 0x317   :  { %v2286_v43 = vpack.c.bf16 %v2267_v41, %v2266_v56  ;;  %13005 = vmatmul.mubr.msk.bf16.gmra.mrb[24].mxu1 %vm135_vm0, %v2285_v30  ;;  %20899 = vst [vmem:[#allocation83_spill] sm:$0xff] %v16542_v9  ;;  %v11743_v56 = vld [vmem:[%s20729_s1 + $0x3b8] sm:$0xff]  ;;  %v2268_v41 = vmul.f32 %v16499_v19, %v16542_v9 }
 0x318   :  { %v16535_v22 = vpop.permute.xlu1 %2219 }
 0x319   :  { %20898 = vst [vmem:[#allocation82_spill] sm:$0xff] %v16535_v22  ;;  %v2269_v3 = vmul.f32 %v16535_v22, %v16533_v55  ;;  %3723 = vperm.xlu1 %14476, %v11741_v61   ;;  %13008 = vmatprep.mubr.msk.bf16.mxu1 %vm135_vm0, %v2286_v43  ;;  %v16544_v30 = vpop.permute.xlu0 %2234  ;;  %v16556_v61 = vsel %vm1959_vm2, %v2011_v46, %v2013_v24  ;;  %v11744_v55 = vld [vmem:[%s20729_s1 + $0x3c0] sm:$0xff] }
 0x31a   :  { %20900 = vst [vmem:[#allocation84_spill] sm:$0xff] %v16544_v30  ;;  %641 = vrot.lane.b32.xlu0 %v546_v60, %s14567_s27  ;;  %20901 = vst [vmem:[#allocation85_spill] sm:$0xff] %v16556_v61  ;;  %v2270_v22 = vmul.f32 %v16525_v33, %v16553_v15  ;;  %v968_v33 = vadd.f32 %v14896_v17, %v20895_v23 }
 0x31b   :  { %v2287_v19 = vpack.c.bf16 %v2269_v3, %v2268_v41  ;;  %v20904_v3 = vrot.slane %v16215_v1, 7  ;;  %v2984_v41 = vrot.slane %v15324_v20, 1 }
 0x31c   :  { %v16558_v43 = vpop.permute.xlu1 %2229 }
 0x31d   :  { %20902 = vst [vmem:[#allocation86_spill] sm:$0xff] %v16558_v43  ;;  %v2271_v60 = vmul.f32 %v16558_v43, %v16556_v61  ;;  %3733 = vperm.xlu1 %14476, %v11743_v56   ;;  %v3113_v46 = vpop.permute.xlu0 %3112  ;;  %v16580_v56 = vsel %vm1959_vm2, %v2015_v5, %v20904_v3  ;;  %v11746_v43 = vld [vmem:[%s20729_s1 + $0x3d0] sm:$0xff]  ;;  %v3076_v20 = vsel %vm2983_vm3, 0.0, %v2984_v41 }
 0x31e   :  { %3743 = vperm.xlu0 %14477, %v11745_v13   ;;  %20905 = vst [vmem:[#allocation88_spill] sm:$0xff] %v16580_v56 }
 0x31f   :  { %v2288_v9 = vpack.c.bf16 %v2271_v60, %v2270_v22  ;;  %13009 = vmatmul.mubr.msk.bf16.gmra.mrb[28].mxu1 %vm135_vm0, %v2287_v19  ;;  %v16592_v19 = vsel %vm1959_vm2, %v2013_v24, %v2015_v5  ;;  %v773_v60 = vmax.f32 %v741_v42, 0.0  ;;  %v2985_v42 = vrot.slane %v15329_v37, 1 }
 0x320   :  { %v16575_v53 = vpop.permute.xlu1 %2239  ;;  %20906 = vst [vmem:[#allocation89_spill] sm:$0xff] %v16592_v19  ;;  %v2272_v3 = vmul.f32 %v16544_v30, %v16592_v19  ;;  %v20911_v30 = vld [vmem:[#allocation5_spill] sm:$0xff] }
 0x321   :  { %20903 = vst [vmem:[#allocation87_spill] sm:$0xff] %v16575_v53  ;;  %v2273_v22 = vmul.f32 %v16575_v53, %v16580_v56  ;;  %3738 = vperm.xlu1 %14476, %v11744_v55   ;;  %13012 = vmatprep.mubr.msk.bf16.mxu1 %vm135_vm0, %v2288_v9  ;;  %v16594_v13 = vpop.permute.xlu0 %3122  ;;  %v2987_v53 = vrot.slane %v15364_v39, 1  ;;  %v1000_v56 = vmax.f32 %v968_v33, 0.0  ;;  %v16602_v55 = vmul.f32 0.0, %v3113_v46 }
 0x322   :  { %20907 = vst [vmem:[#allocation90_spill] sm:$0xff] %v16594_v13  ;;  %3748 = vperm.xlu0 %14477, %v11746_v43   ;;  %v11747_v43 = vld [vmem:[%s20729_s1 + $0x3d8] sm:$0xff]  ;;  %v1288_v19 = vadd.f32 %v14894_v16, %v20911_v30  ;;  %v1512_v16 = vadd.f32 %v14898_v18, %v20911_v30 }
 0x323   :  { %20909 = vst [vmem:[#allocation92_spill] sm:$0xff] %v16602_v55  ;;  %v2289_v9 = vpack.c.bf16 %v2273_v22, %v2272_v3  ;;  %v16619_v46 = vsel %vm2983_vm3, %v2985_v42, %v2987_v53  ;;  %v11748_v3 = vld [vmem:[%s20729_s1 + $0x3e0] sm:$0xff] }
 0x324   :  { %v16599_v61 = vpop.permute.xlu1 %3117 }
 0x325   :  { %20908 = vst [vmem:[#allocation91_spill] sm:$0xff] %v16599_v61  ;;  %v3271_v24 = vmul.f32 %v16599_v61, %v3076_v20  ;;  %868 = vrot.lane.b32.xlu1 %v773_v60, %s14568_s30  ;;  %v16607_v5 = vpop.permute.xlu0 %3132  ;;  %v2989_v20 = vrot.slane %v15371_v34, 1  ;;  %v2991_v60 = vrot.slane %v15417_v31, 1 }
 0x326   :  { %20910 = vst [vmem:[#allocation93_spill] sm:$0xff] %v16607_v5  ;;  %1095 = vrot.lane.b32.xlu0 %v1000_v56, %s14566_s7 }
 0x327   :  { %v3302_v33 = vpack.c.bf16 %v3271_v24, %v16602_v55  ;;  %13013 = vmatmul.mubr.msk.bf16.gmra.mrb[32].mxu1 %vm135_vm0, %v2289_v9  ;;  %v16633_v9 = vsel %vm2983_vm3, %v2984_v41, %v2985_v42  ;;  %v1320_v55 = vmax.f32 %v1288_v19, 0.0  ;;  %v16640_v31 = vsel %vm2983_vm3, %v2987_v53, %v2989_v20 }
 0x328   :  { %v16621_v22 = vpop.permute.xlu1 %3127  ;;  %v3272_v61 = vmul.f32 %v16594_v13, %v16633_v9  ;;  %20914 = vst [vmem:[#allocation95_spill] sm:$0xff] %v16640_v31  ;;  %v16643_v18 = vsel %vm2983_vm3, %v2989_v20, %v2991_v60  ;;  %v3274_v41 = vmul.f32 %v16607_v5, %v16640_v31  ;;  %v2993_v53 = vrot.slane %v15424_v51, 1  ;;  %v11749_v20 = vld [vmem:[%s20729_s1 + $0x3e8] sm:$0xff] }
 0x329   :  { %20912 = vst [vmem:[#allocation5_spill] sm:$0xff] %v16621_v22  ;;  %v3273_v56 = vmul.f32 %v16621_v22, %v16619_v46  ;;  %3753 = vperm.xlu1 %14476, %v11747_v43   ;;  %13020 = vmatprep.mubr.msk.bf16.mxu1 %vm135_vm0, %v3302_v33  ;;  %v16635_v24 = vpop.permute.xlu0 %3142  ;;  %20915 = vst [vmem:[#allocation96_spill] sm:$0xff] %v16643_v18  ;;  %v2995_v43 = vrot.slane %v15470_v40, 1  ;;  %v1544_v33 = vmax.f32 %v1512_v16, 0.0  ;;  %v14491_v16 = vld [vmem:[%s20173_s3 + $0x38] sm:$0xff]   ;;  %v2999_v5 = vrot.slane %v15523_v63, 1 }
 0x32a   :  { %20913 = vst [vmem:[#allocation94_spill] sm:$0xff] %v16635_v24  ;;  %3758 = vperm.xlu0 %14477, %v11748_v3   ;;  %v3003_v31 = vrot.slane %v15576_v4, 1 }
 0x32b   :  { %v3303_v42 = vpack.c.bf16 %v3273_v56, %v3272_v61  ;;  %v2997_v61 = vrot.slane %v15477_v28, 1 }
 0x32c   :  { %v16645_v22 = vpop.permute.xlu1 %3137 }
 0x32d   :  { %20916 = vst [vmem:[#allocation97_spill] sm:$0xff] %v16645_v22  ;;  %v3275_v19 = vmul.f32 %v16645_v22, %v16643_v18  ;;  %1415 = vrot.lane.b32.xlu1 %v1320_v55, %s14567_s27  ;;  %v16654_v3 = vpop.permute.xlu0 %3152  ;;  %v16666_v55 = vsel %vm2983_vm3, %v2993_v53, %v2995_v43  ;;  %v11751_v22 = vld [vmem:[%s20729_s1 + $0x3f8] sm:$0xff] }
 0x32e   :  { %20917 = vst [vmem:[#allocation98_spill] sm:$0xff] %v16654_v3  ;;  %1639 = vrot.lane.b32.xlu0 %v1544_v33, %s14568_s30  ;;  %20918 = vst [vmem:[#allocation99_spill] sm:$0xff] %v16666_v55 }
 0x32f   :  { %v3304_v13 = vpack.c.bf16 %v3275_v19, %v3274_v41  ;;  %13021 = vmatmul.mubr.msk.bf16.vlgmr.msra.gmra.mrb[4].mxu1 %vm135_vm0, %v3303_v42  ;;  %v16681_v41 = vld [vmem:[%s20173_s3 + $0x40] sm:$0xff]   ;;  %v16684_v42 = vsel %vm2983_vm3, %v2991_v60, %v2993_v53  ;;  %v16699_v60 = vsel %vm2983_vm3, %v2997_v61, %v2999_v5 }
 0x330   :  { %v16668_v56 = vpop.permute.xlu1 %3147  ;;  %13053 = vmatpush3.bf16.msra.mxu1 %v16309_v52  ;;  %20920 = vst [vmem:[#allocation101_spill] sm:$0xff] %v16684_v42  ;;  %v11750_v52 = vld [vmem:[%s20729_s1 + $0x3f0] sm:$0xff]  ;;  %20923 = vst [vmem:[#allocation104_spill] sm:$0xff] %v16699_v60 }
 0x331   :  { %20919 = vst [vmem:[#allocation100_spill] sm:$0xff] %v16668_v56  ;;  %v3277_v33 = vmul.f32 %v16668_v56, %v16666_v55  ;;  %3763 = vperm.xlu1 %14476, %v11749_v20   ;;  %13024 = vmatprep.mubr.msk.bf16.mxu1 %vm135_vm0, %v3304_v13  ;;  %v16686_v19 = vpop.permute.xlu0 %3162  ;;  %v1736_v20 = vadd.f32 %v14896_v17, %v20911_v30  ;;  %v11774_v55 = vld [vmem:[%s20729_s1 + $0x400] sm:$0xff] }
 0x332   :  { %20921 = vst [vmem:[#allocation102_spill] sm:$0xff] %v16686_v19  ;;  %13054 = vmatprep.subr.bf16.mxu1 %v14491_v16  ;;  %v3276_v13 = vmul.f32 %v16635_v24, %v16684_v42  ;;  %3773 = vperm.xlu0 %14477, %v11751_v22   ;;  %v16696_v56 = vsel %vm2983_vm3, %v2995_v43, %v2997_v61  ;;  %v3001_v43 = vrot.slane %v15530_v27, 1 }
 0x333   :  { %20922 = vst [vmem:[#allocation103_spill] sm:$0xff] %v16696_v56  ;;  %v3278_v17 = vmul.f32 %v16654_v3, %v16696_v56  ;;  %v1768_v42 = vmax.f32 %v1736_v20, 0.0 }
 0x334   :  { %v16701_v53 = vpop.permute.xlu1 %3157  ;;  %13055 = vmatpush3.bf16.msra.mxu1 %v14491_v16  ;;  %v3305_v24 = vpack.c.bf16 %v3277_v33, %v3276_v13  ;;  %v3005_v16 = vrot.slane %v15583_v25, 1  ;;  %v16718_v3 = vsel %vm2983_vm3, %v3001_v43, %v3003_v31  ;;  %v11776_v13 = vld [vmem:[%s20729_s1 + $0x410] sm:$0xff] }
 0x335   :  { %20924 = vst [vmem:[#allocation105_spill] sm:$0xff] %v16701_v53  ;;  %v3279_v22 = vmul.f32 %v16701_v53, %v16699_v60  ;;  %3768 = vperm.xlu1 %14476, %v11750_v52   ;;  %13088 = vmatprep.subr.bf16.mxu1 %v16681_v41  ;;  %v16713_v61 = vpop.permute.xlu0 %3172  ;;  %20926 = vst [vmem:[#allocation107_spill] sm:$0xff] %v16718_v3  ;;  %v3007_v52 = vrot.slane %v15627_v0, 1 }
 0x336   :  { %20925 = vst [vmem:[#allocation106_spill] sm:$0xff] %v16713_v61  ;;  %4117 = vperm.xlu0 %14477, %v11774_v55   ;;  %v16741_v53 = vsel %vm2983_vm3, %v3003_v31, %v3005_v16  ;;  %v3009_v31 = vrot.slane %v15634_v48, 1 }
 0x337   :  { %v3306_v18 = vpack.c.bf16 %v3279_v22, %v3278_v17  ;;  %13025 = vmatmul.mubr.msk.bf16.gmra.mrb[8].mxu1 %vm135_vm0, %v3305_v24  ;;  %v16731_v24 = vsel %vm2983_vm3, %v2999_v5, %v3001_v43  ;;  %v11775_v17 = vld [vmem:[%s20729_s1 + $0x408] sm:$0xff]  ;;  %20930 = vst [vmem:[#allocation111_spill] sm:$0xff] %v16741_v53  ;;  %v3011_v5 = vrot.slane %v20866_v26, 1  ;;  %v11778_v43 = vld [vmem:[%s20729_s1 + $0x420] sm:$0xff] }
 0x338   :  { %v16720_v33 = vpop.permute.xlu1 %3167  ;;  %20928 = vst [vmem:[#allocation109_spill] sm:$0xff] %v16731_v24  ;;  %v3280_v22 = vmul.f32 %v16686_v19, %v16731_v24  ;;  %v11777_v19 = vld [vmem:[%s20729_s1 + $0x418] sm:$0xff] }
 0x339   :  { %20927 = vst [vmem:[#allocation108_spill] sm:$0xff] %v16720_v33  ;;  %v3281_v20 = vmul.f32 %v16720_v33, %v16718_v3  ;;  %1863 = vrot.lane.b32.xlu1 %v1768_v42, %s14566_s7  ;;  %13028 = vmatprep.mubr.msk.bf16.mxu1 %vm135_vm0, %v3306_v18  ;;  %v16733_v55 = vpop.permute.xlu0 %3182  ;;  %v16744_v42 = vsel %vm2983_vm3, %v3005_v16, %v3007_v52  ;;  %v3013_v3 = vrot.slane %v20869_v2, 1 }
 0x33a   :  { %20929 = vst [vmem:[#allocation110_spill] sm:$0xff] %v16733_v55  ;;  %4127 = vperm.xlu0 %14477, %v11776_v13   ;;  %20931 = vst [vmem:[#allocation112_spill] sm:$0xff] %v16744_v42  ;;  %v3282_v33 = vmul.f32 %v16713_v61, %v16741_v53  ;;  %v11780_v61 = vld [vmem:[%s20729_s1 + $0x430] sm:$0xff] }
 0x33b   :  { %v3307_v56 = vpack.c.bf16 %v3281_v20, %v3280_v22  ;;  %v16765_v20 = vsel %vm2983_vm3, %v3009_v31, %v3011_v5  ;;  %v16787_v53 = vsel %vm2983_vm3, %v3011_v5, %v3013_v3  ;;  %v3017_v5 = vrot.slane %v20875_v62, 1 }
 0x33c   :  { %v16746_v18 = vpop.permute.xlu1 %3177  ;;  %20934 = vst [vmem:[#allocation115_spill] sm:$0xff] %v16765_v20  ;;  %20938 = vst [vmem:[#allocation119_spill] sm:$0xff] %v16787_v53 }
 0x33d   :  { %20932 = vst [vmem:[#allocation113_spill] sm:$0xff] %v16746_v18  ;;  %v3283_v13 = vmul.f32 %v16746_v18, %v16744_v42  ;;  %4122 = vperm.xlu1 %14476, %v11775_v17   ;;  %v16757_v16 = vpop.permute.xlu0 %3192  ;;  %v3015_v17 = vrot.slane %v20876_v6, 1  ;;  %v3021_v42 = vrot.slane %v15917_v29, 1 }
 0x33e   :  { %20933 = vst [vmem:[#allocation114_spill] sm:$0xff] %v16757_v16  ;;  %4137 = vperm.xlu0 %14477, %v11778_v43   ;;  %v11779_v43 = vld [vmem:[%s20729_s1 + $0x428] sm:$0xff] }
 0x33f   :  { %v3308_v24 = vpack.c.bf16 %v3283_v13, %v3282_v33  ;;  %13029 = vmatmul.mubr.msk.bf16.gmra.mrb[12].mxu1 %vm135_vm0, %v3307_v56  ;;  %v16777_v56 = vsel %vm2983_vm3, %v3007_v52, %v3009_v31  ;;  %v3019_v52 = vrot.slane %v15908_v21, 1  ;;  %v11782_v31 = vld [vmem:[%s20729_s1 + $0x440] sm:$0xff] }
 0x340   :  { %v16767_v22 = vpop.permute.xlu1 %3187  ;;  %20936 = vst [vmem:[#allocation117_spill] sm:$0xff] %v16777_v56  ;;  %v3284_v13 = vmul.f32 %v16733_v55, %v16777_v56  ;;  %v11781_v55 = vld [vmem:[%s20729_s1 + $0x438] sm:$0xff] }
 0x341   :  { %20935 = vst [vmem:[#allocation116_spill] sm:$0xff] %v16767_v22  ;;  %v3285_v18 = vmul.f32 %v16767_v22, %v16765_v20  ;;  %4132 = vperm.xlu1 %14476, %v11777_v19   ;;  %13032 = vmatprep.mubr.msk.bf16.mxu1 %vm135_vm0, %v3308_v24  ;;  %v16779_v33 = vpop.permute.xlu0 %3202  ;;  %v16790_v19 = vsel %vm2983_vm3, %v3013_v3, %v3015_v17 }
 0x342   :  { %20937 = vst [vmem:[#allocation118_spill] sm:$0xff] %v16779_v33  ;;  %4147 = vperm.xlu0 %14477, %v11780_v61   ;;  %20939 = vst [vmem:[#allocation120_spill] sm:$0xff] %v16790_v19  ;;  %v3286_v22 = vmul.f32 %v16757_v16, %v16787_v53  ;;  %v11784_v16 = vld [vmem:[%s20729_s1 + $0x450] sm:$0xff]  ;;  %v16833_v53 = vsel %vm2983_vm3, %v3019_v52, %v3021_v42 }
 0x343   :  { %v3309_v20 = vpack.c.bf16 %v3285_v18, %v3284_v13  ;;  %v16811_v18 = vsel %vm2983_vm3, %v3017_v5, %v3019_v52  ;;  %20946 = vst [vmem:[#allocation127_spill] sm:$0xff] %v16833_v53 }
 0x344   :  { %v16792_v24 = vpop.permute.xlu1 %3197  ;;  %20942 = vst [vmem:[#allocation123_spill] sm:$0xff] %v16811_v18 }
 0x345   :  { %20940 = vst [vmem:[#allocation121_spill] sm:$0xff] %v16792_v24  ;;  %v3287_v61 = vmul.f32 %v16792_v24, %v16790_v19  ;;  %4142 = vperm.xlu1 %14476, %v11779_v43   ;;  %v16803_v3 = vpop.permute.xlu0 %3212  ;;  %v3023_v43 = vrot.slane %v20886_v35, 1 }
 0x346   :  { %20941 = vst [vmem:[#allocation122_spill] sm:$0xff] %v16803_v3  ;;  %4157 = vperm.xlu0 %14477, %v11782_v31   ;;  %v11783_v31 = vld [vmem:[%s20729_s1 + $0x448] sm:$0xff] }
 0x347   :  { %v3310_v56 = vpack.c.bf16 %v3287_v61, %v3286_v22  ;;  %13033 = vmatmul.mubr.msk.bf16.gmra.mrb[16].mxu1 %vm135_vm0, %v3309_v20  ;;  %v16823_v20 = vsel %vm2983_vm3, %v3015_v17, %v3017_v5  ;;  %v11786_v17 = vld [vmem:[%s20729_s1 + $0x460] sm:$0xff]  ;;  %v3027_v5 = vrot.slane %v16100_v57, 1 }
 0x348   :  { %v16813_v13 = vpop.permute.xlu1 %3207  ;;  %20944 = vst [vmem:[#allocation125_spill] sm:$0xff] %v16823_v20  ;;  %v3288_v61 = vmul.f32 %v16779_v33, %v16823_v20  ;;  %v3025_v33 = vrot.slane %v20885_v8, 1 }
 0x349   :  { %20943 = vst [vmem:[#allocation124_spill] sm:$0xff] %v16813_v13  ;;  %v3289_v24 = vmul.f32 %v16813_v13, %v16811_v18  ;;  %4152 = vperm.xlu1 %14476, %v11781_v55   ;;  %13036 = vmatprep.mubr.msk.bf16.mxu1 %vm135_vm0, %v3310_v56  ;;  %v16825_v22 = vpop.permute.xlu0 %3222  ;;  %v16836_v55 = vsel %vm2983_vm3, %v3021_v42, %v3023_v43  ;;  %v16851_v42 = vld [vmem:[%s20728_s25] ss:$0 sm:$0xff] }
 0x34a   :  { %20945 = vst [vmem:[#allocation126_spill] sm:$0xff] %v16825_v22  ;;  %4167 = vperm.xlu0 %14477, %v11784_v16   ;;  %20947 = vst [vmem:[#allocation128_spill] sm:$0xff] %v16836_v55  ;;  %v3290_v13 = vmul.f32 %v16803_v3, %v16833_v53  ;;  %v414_v52 = vadd.f32 %v16851_v42, %v20841_v45  ;;  %v11785_v3 = vld [vmem:[%s20729_s1 + $0x458] sm:$0xff]  ;;  %v3031_v53 = vrot.slane %v16134_v11, 1  ;;  %v3029_v45 = vrot.slane %v16110_v36, 1 }
 0x34b   :  { %v3311_v18 = vpack.c.bf16 %v3289_v24, %v3288_v61  ;;  %v16861_v61 = vsel %vm2983_vm3, %v3025_v33, %v3027_v5 }
 0x34c   :  { %v16838_v56 = vpop.permute.xlu1 %3217  ;;  %20949 = vst [vmem:[#allocation130_spill] sm:$0xff] %v16861_v61 }
 0x34d   :  { %20948 = vst [vmem:[#allocation129_spill] sm:$0xff] %v16838_v56  ;;  %v3291_v16 = vmul.f32 %v16838_v56, %v16836_v55  ;;  %4162 = vperm.xlu1 %14476, %v11783_v31   ;;  %v640_v20 = vpop.permute.xlu0 %639  ;;  %v11788_v31 = vld [vmem:[%s20729_s1 + $0x470] sm:$0xff]  ;;  %v446_v55 = vmax.f32 %v414_v52, 0.0  ;;  %v16884_v52 = vsel %vm2983_vm3, %v3029_v45, %v3031_v53 }
 0x34e   :  { %4177 = vperm.xlu0 %14477, %v11786_v17  }
 0x34f   :  { %v3312_v24 = vpack.c.bf16 %v3291_v16, %v3290_v13  ;;  %13037 = vmatmul.mubr.msk.bf16.gmra.mrb[20].mxu1 %vm135_vm0, %v3311_v18  ;;  %v16874_v18 = vsel %vm2983_vm3, %v3023_v43, %v3025_v33  ;;  %v11787_v16 = vld [vmem:[%s20729_s1 + $0x468] sm:$0xff]  ;;  %v11790_v33 = vld [vmem:[%s20729_s1 + $0x480] sm:$0xff]  ;;  %v478_v43 = vmax.f32 %v446_v55, 0.0 }
 0x350   :  { %v16863_v56 = vpop.permute.xlu1 %3227  ;;  %20951 = vst [vmem:[#allocation132_spill] sm:$0xff] %v16874_v18  ;;  %v3292_v19 = vmul.f32 %v16825_v22, %v16874_v18 }
 0x351   :  { %20950 = vst [vmem:[#allocation131_spill] sm:$0xff] %v16863_v56  ;;  %v3293_v13 = vmul.f32 %v16863_v56, %v16861_v61  ;;  %4172 = vperm.xlu1 %14476, %v11785_v3   ;;  %13040 = vmatprep.mubr.msk.bf16.mxu1 %vm135_vm0, %v3312_v24  ;;  %v16876_v17 = vpop.permute.xlu0 %3237  ;;  %v16887_v3 = vsel %vm2983_vm3, %v3027_v5, %v3029_v45  ;;  %v11789_v5 = vld [vmem:[%s20729_s1 + $0x478] sm:$0xff] }
 0x352   :  { %20952 = vst [vmem:[#allocation133_spill] sm:$0xff] %v16876_v17  ;;  %4187 = vperm.xlu0 %14477, %v11788_v31   ;;  %v3295_v61 = vmul.f32 %v16876_v17, %v16884_v52  ;;  %v1191_v45 = vadd.f32 %v16851_v42, %v20843_v12  ;;  %v705_v18 = vmax.f32 %v478_v43, %v640_v20  ;;  %v11791_v12 = vld [vmem:[%s20729_s1 + $0x488] sm:$0xff] }
 0x353   :  { %v3313_v56 = vpack.c.bf16 %v3293_v13, %v3292_v19  ;;  %v3033_v19 = vrot.slane %v16142_v58, 1  ;;  %v11792_v13 = vld [vmem:[%s20729_s1 + $0x490] sm:$0xff] }
 0x354   :  { %v16889_v24 = vpop.permute.xlu1 %3232 }
 0x355   :  { %20953 = vst [vmem:[#allocation134_spill] sm:$0xff] %v16889_v24  ;;  %v3294_v31 = vmul.f32 %v16889_v24, %v16887_v3  ;;  %4182 = vperm.xlu1 %14476, %v11787_v16   ;;  %v16898_v22 = vpop.permute.xlu0 %3242  ;;  %v3035_v16 = vrot.slane %v16198_v38, 1 }
 0x356   :  { %20954 = vst [vmem:[#allocation135_spill] sm:$0xff] %v16898_v22  ;;  %4197 = vperm.xlu0 %14477, %v11790_v33  }
 0x357   :  { %v3314_v60 = vpack.c.bf16 %v3295_v61, %v3294_v31  ;;  %13041 = vmatmul.mubr.msk.bf16.gmra.mrb[24].mxu1 %vm135_vm0, %v3313_v56  ;;  %v1223_v56 = vmax.f32 %v1191_v45, 0.0  ;;  %v16916_v61 = vsel %vm2983_vm3, %v3031_v53, %v3033_v19  ;;  %v16919_v33 = vsel %vm2983_vm3, %v3033_v19, %v3035_v16  ;;  %v11793_v53 = vld [vmem:[%s20729_s1 + $0x498] sm:$0xff] }
 0x358   :  { %v867_v55 = vpop.permute.xlu1 %866  ;;  %20955 = vst [vmem:[#allocation136_spill] sm:$0xff] %v16916_v61  ;;  %20956 = vst [vmem:[#allocation137_spill] sm:$0xff] %v16919_v33  ;;  %v3037_v45 = vrot.slane %v16207_v44, 1 }
 0x359   :  { %v932_v24 = vmax.f32 %v705_v18, %v867_v55  ;;  %4192 = vperm.xlu1 %14476, %v11789_v5   ;;  %13044 = vmatprep.mubr.msk.bf16.mxu1 %vm135_vm0, %v3314_v60  ;;  %v1094_v17 = vpop.permute.xlu0 %1093  ;;  %v11794_v60 = vld [vmem:[%s20729_s1 + $0x4a0] sm:$0xff]  ;;  %v3296_v18 = vmul.f32 %v16898_v22, %v16916_v61  ;;  %v11796_v55 = vld [vmem:[%s20729_s1 + $0x4b0] sm:$0xff] }
 0x35a   :  { %4207 = vperm.xlu0 %14477, %v11792_v13   ;;  %v11800_v61 = vld [vmem:[%s20729_s1 + $0x4d0] sm:$0xff] }
 0x35b   :  { %v1159_v20 = vmax.f32 %v932_v24, %v1094_v17 }
 0x35c   :  { %v16921_v43 = vpop.permute.xlu1 %3247 }
 0x35d   :  { %20957 = vst [vmem:[#allocation138_spill] sm:$0xff] %v16921_v43  ;;  %v3297_v17 = vmul.f32 %v16921_v43, %v16919_v33  ;;  %4202 = vperm.xlu1 %14476, %v11791_v12   ;;  %v1255_v24 = vmax.f32 %v1159_v20, %v1223_v56  ;;  %v16930_v31 = vpop.permute.xlu0 %3252  ;;  %v3039_v12 = vrot.slane %v16209_v54, 1  ;;  %v11795_v20 = vld [vmem:[%s20729_s1 + $0x4a8] sm:$0xff]  ;;  %v16945_v56 = vsel %vm2983_vm3, %v3035_v16, %v3037_v45  ;;  %v11797_v16 = vld [vmem:[%s20729_s1 + $0x4b8] sm:$0xff] }
 0x35e   :  { %20958 = vst [vmem:[#allocation139_spill] sm:$0xff] %v16930_v31  ;;  %4217 = vperm.xlu0 %14477, %v11794_v60   ;;  %20959 = vst [vmem:[#allocation140_spill] sm:$0xff] %v16945_v56 }
 0x35f   :  { %v3315_v5 = vpack.c.bf16 %v3297_v17, %v3296_v18  ;;  %v16948_v60 = vsel %vm2983_vm3, %v3037_v45, %v3039_v12  ;;  %v11798_v17 = vld [vmem:[%s20729_s1 + $0x4c0] sm:$0xff] }
 0x360   :  { %v1414_v19 = vpop.permute.xlu1 %1413 }
 0x361   :  { %4212 = vperm.xlu1 %14476, %v11793_v53   ;;  %13045 = vmatmul.mubr.msk.bf16.gmra.mrb[28].mxu1 %vm135_vm0, %v3315_v5  ;;  %v1638_v13 = vpop.permute.xlu0 %1637  ;;  %v3298_v53 = vmul.f32 %v16930_v31, %v16945_v56  ;;  %v1479_v45 = vmax.f32 %v1255_v24, %v1414_v19  ;;  %v11802_v19 = vld [vmem:[%s20729_s1 + $0x4e0] sm:$0xff]  ;;  %v11803_v56 = vld [vmem:[%s20729_s1 + $0x4e8] sm:$0xff] }
 0x362   :  { %4227 = vperm.xlu0 %14477, %v11796_v55  }
 0x364   :  { %v16950_v18 = vpop.permute.xlu1 %3257 }
 0x365   :  { %20960 = vst [vmem:[#allocation141_spill] sm:$0xff] %v16950_v18  ;;  %v3299_v5 = vmul.f32 %v16950_v18, %v16948_v60  ;;  %4222 = vperm.xlu1 %14476, %v11795_v20   ;;  %v16959_v55 = vpop.permute.xlu0 %3267  ;;  %v11799_v20 = vld [vmem:[%s20729_s1 + $0x4c8] sm:$0xff]  ;;  %v1703_v18 = vmax.f32 %v1479_v45, %v1638_v13  ;;  %v11804_v13 = vld [vmem:[%s20729_s1 + $0x4f0] sm:$0xff] }
 0x366   :  { %20961 = vst [vmem:[#allocation142_spill] sm:$0xff] %v16959_v55  ;;  %4237 = vperm.xlu0 %14477, %v11798_v17   ;;  %v3041_v17 = vrot.slane %v16215_v1, 1 }
 0x367   :  { %v3316_v43 = vpack.c.bf16 %v3299_v5, %v3298_v53 }
 0x368   :  { %v16964_v22 = vpop.permute.xlu1 %3262  ;;  %v16993_v45 = vsel %vm2983_vm3, %v3039_v12, %v3041_v17 }
 0x369   :  { %20962 = vst [vmem:[#allocation143_spill] sm:$0xff] %v16964_v22  ;;  %4232 = vperm.xlu1 %14476, %v11797_v16   ;;  %13048 = vmatprep.mubr.msk.bf16.mxu1 %vm135_vm0, %v3316_v43  ;;  %v16970_v31 = vpop.permute.xlu0 %3618  ;;  %v11801_v43 = vld [vmem:[%s20729_s1 + $0x4d8] sm:$0xff]  ;;  %20966 = vst [vmem:[#allocation147_spill] sm:$0xff] %v16993_v45 }
 0x36a   :  { %20963 = vst [vmem:[#allocation144_spill] sm:$0xff] %v16970_v31  ;;  %4247 = vperm.xlu0 %14477, %v11800_v61  }
 0x36c   :  { %v1862_v24 = vpop.permute.xlu1 %1861 }
 0x36d   :  { %v16979_v53 = vmax.f32 %v1703_v18, %v1862_v24  ;;  %4242 = vperm.xlu1 %14476, %v11799_v20   ;;  %v16981_v5 = vpop.permute.xlu0 %3628  ;;  %v3300_v24 = vmul.f32 %v16964_v22, %v16993_v45 }
 0x36e   :  { %20964 = vst [vmem:[#allocation145_spill] sm:$0xff] %v16981_v5  ;;  %4257 = vperm.xlu0 %14477, %v11802_v19  }
 0x36f   :  { %v20416_v16 = vrot.slane %v16979_v53, 1 }
 0x370   :  { %v16987_v61 = vpop.permute.xlu1 %3623 }
 0x371   :  { %20965 = vst [vmem:[#allocation146_spill] sm:$0xff] %v16987_v61  ;;  %v3777_v18 = vmul.f32 %v16987_v61, %v16246_v47  ;;  %4252 = vperm.xlu1 %14476, %v11801_v43   ;;  %v17000_v20 = vsel %vm2983_vm3, %v3041_v17, %v20416_v16  ;;  %v17004_v19 = vpop.permute.xlu0 %3638  ;;  %v3776_v47 = vmul.f32 %v16970_v31, %v16259_v59  ;;  %v11828_v17 = vld [vmem:[%s20729_s1 + $0x500] sm:$0xff] }
 0x372   :  { %20967 = vst [vmem:[#allocation148_spill] sm:$0xff] %v17004_v19  ;;  %v3301_v12 = vmul.f32 %v16959_v55, %v17000_v20  ;;  %4267 = vperm.xlu0 %14477, %v11804_v13   ;;  %v11805_v55 = vld [vmem:[%s20729_s1 + $0x4f8] sm:$0xff] }
 0x373   :  { %v3808_v61 = vpack.c.bf16 %v3777_v18, %v3776_v47 }
 0x374   :  { %v17013_v43 = vpop.permute.xlu1 %3633  ;;  %v3317_v16 = vpack.c.bf16 %v3301_v12, %v3300_v24  ;;  %v3780_v12 = vmul.f32 %v17004_v19, %v16312_v49  ;;  %v11833_v19 = vld [vmem:[%s20729_s1 + $0x528] sm:$0xff] }
 0x375   :  { %20968 = vst [vmem:[#allocation149_spill] sm:$0xff] %v17013_v43  ;;  %4262 = vperm.xlu1 %14476, %v11803_v56   ;;  %v17018_v22 = vpop.permute.xlu0 %3648  ;;  %v3779_v59 = vmul.f32 %v17013_v43, %v16269_v50  ;;  %v11830_v56 = vld [vmem:[%s20729_s1 + $0x510] sm:$0xff]  ;;  %v14493_v43 = vld [vmem:[%s20173_s3 + $0x48] sm:$0xff]  }
 0x376   :  { %20969 = vst [vmem:[#allocation150_spill] sm:$0xff] %v17018_v22  ;;  %13049 = vmatmul.mubr.msk.bf16.gmra.mrb[32].mxu1 %vm135_vm0, %v3317_v16  ;;  %4621 = vperm.xlu0 %14477, %v11828_v17   ;;  %v3778_v16 = vmul.f32 %v16981_v5, %v16266_v10 }
 0x377   :  { %13056 = vmatprep.mubr.msk.bf16.mxu1 %vm135_vm0, %v3808_v61  ;;  %v11829_v61 = vld [vmem:[%s20729_s1 + $0x508] sm:$0xff] }
 0x378   :  { %v17027_v13 = vpop.permute.xlu1 %3643  ;;  %v3809_v47 = vpack.c.bf16 %v3779_v59, %v3778_v16  ;;  %v11831_v59 = vld [vmem:[%s20729_s1 + $0x518] sm:$0xff]  ;;  %v11834_v16 = vld [vmem:[%s20729_s1 + $0x530] sm:$0xff] }
 0x379   :  { %20970 = vst [vmem:[#allocation151_spill] sm:$0xff] %v17027_v13  ;;  %v3781_v18 = vmul.f32 %v17027_v13, %v16294_v32  ;;  %4272 = vperm.xlu1 %14476, %v11805_v55   ;;  %v17036_v24 = vpop.permute.xlu0 %3658  ;;  %v11832_v55 = vld [vmem:[%s20729_s1 + $0x520] sm:$0xff] }
 0x37a   :  { %20971 = vst [vmem:[#allocation152_spill] sm:$0xff] %v17036_v24  ;;  %4631 = vperm.xlu0 %14477, %v11830_v56  }
 0x37b   :  { %v3810_v13 = vpack.c.bf16 %v3781_v18, %v3780_v12 }
 0x37c   :  { %v17043_v17 = vpop.permute.xlu1 %3653 }
 0x37d   :  { %20972 = vst [vmem:[#allocation153_spill] sm:$0xff] %v17043_v17  ;;  %4626 = vperm.xlu1 %14476, %v11829_v61   ;;  %v17051_v5 = vpop.permute.xlu0 %3668  ;;  %v3783_v56 = vmul.f32 %v17043_v17, %v16325_v14  ;;  %v20975_v61 = vld [vmem:[#allocation3_spill] sm:$0xff] }
 0x37e   :  { %20973 = vst [vmem:[#allocation154_spill] sm:$0xff] %v17051_v5  ;;  %13057 = vmatmul.mubr.msk.bf16.vlgmr.msra.gmra.mrb[4].mxu1 %vm135_vm0, %v3809_v47  ;;  %4641 = vperm.xlu0 %14477, %v11832_v55   ;;  %v20976_v47 = vld [vmem:[#allocation45_spill] sm:$0xff] }
 0x37f   :  { %13060 = vmatprep.mubr.msk.bf16.mxu1 %vm135_vm0, %v3810_v13  ;;  %13089 = vmatpush3.bf16.msra.mxu1 %v16681_v41  ;;  %v17071_v13 = vld [vmem:[%s20173_s3 + $0x50] sm:$0xff]   ;;  %v3782_v55 = vmul.f32 %v17018_v22, %v20976_v47  ;;  %v20978_v41 = vld [vmem:[#allocation58_spill] sm:$0xff] }
 0x380   :  { %v17060_v18 = vpop.permute.xlu1 %3663  ;;  %13090 = vmatprep.subr.bf16.mxu1 %v14493_v43  ;;  %v3784_v31 = vmul.f32 %v17036_v24, %v20978_v41 }
 0x381   :  { %20974 = vst [vmem:[#allocation155_spill] sm:$0xff] %v17060_v18  ;;  %v3785_v12 = vmul.f32 %v17060_v18, %v20975_v61  ;;  %4636 = vperm.xlu1 %14476, %v11831_v59   ;;  %v17075_v17 = vpop.permute.xlu0 %3678  ;;  %v3811_v59 = vpack.c.bf16 %v3783_v56, %v3782_v55  ;;  %v11836_v61 = vld [vmem:[%s20729_s1 + $0x540] sm:$0xff]  ;;  %v20981_v56 = vld [vmem:[#allocation61_spill] sm:$0xff] }
 0x382   :  { %20977 = vst [vmem:[#allocation156_spill] sm:$0xff] %v17075_v17  ;;  %4651 = vperm.xlu0 %14477, %v11834_v16   ;;  %v11835_v16 = vld [vmem:[%s20729_s1 + $0x538] sm:$0xff] }
 0x383   :  { %13091 = vmatpush3.bf16.msra.mxu1 %v14493_v43  ;;  %v3812_v49 = vpack.c.bf16 %v3785_v12, %v3784_v31  ;;  %v11838_v31 = vld [vmem:[%s20729_s1 + $0x550] sm:$0xff] }
 0x384   :  { %v17082_v18 = vpop.permute.xlu1 %3673  ;;  %13124 = vmatprep.subr.bf16.mxu1 %v17071_v13  ;;  %v20984_v12 = vld [vmem:[#allocation60_spill] sm:$0xff] }
 0x385   :  { %20979 = vst [vmem:[#allocation157_spill] sm:$0xff] %v17082_v18  ;;  %4646 = vperm.xlu1 %14476, %v11833_v19   ;;  %v17088_v22 = vpop.permute.xlu0 %3688  ;;  %v3787_v55 = vmul.f32 %v17082_v18, %v20981_v56  ;;  %v20983_v19 = vld [vmem:[#allocation17_spill] sm:$0xff] }
 0x386   :  { %20980 = vst [vmem:[#allocation158_spill] sm:$0xff] %v17088_v22  ;;  %13061 = vmatmul.mubr.msk.bf16.gmra.mrb[8].mxu1 %vm135_vm0, %v3811_v59  ;;  %4661 = vperm.xlu0 %14477, %v11836_v61   ;;  %v3786_v59 = vmul.f32 %v17051_v5, %v20984_v12  ;;  %v20986_v61 = vld [vmem:[#allocation6_spill] sm:$0xff] }
 0x387   :  { %13064 = vmatprep.mubr.msk.bf16.mxu1 %vm135_vm0, %v3812_v49  ;;  %v11837_v49 = vld [vmem:[%s20729_s1 + $0x548] sm:$0xff]  ;;  %v3788_v18 = vmul.f32 %v17075_v17, %v20986_v61 }
 0x388   :  { %v17097_v24 = vpop.permute.xlu1 %3683  ;;  %v3813_v56 = vpack.c.bf16 %v3787_v55, %v3786_v59  ;;  %v20989_v55 = vld [vmem:[#allocation67_spill] sm:$0xff] }
 0x389   :  { %20982 = vst [vmem:[#allocation159_spill] sm:$0xff] %v17097_v24  ;;  %v3789_v43 = vmul.f32 %v17097_v24, %v20983_v19  ;;  %4656 = vperm.xlu1 %14476, %v11835_v16   ;;  %v17106_v41 = vpop.permute.xlu0 %3698  ;;  %v11840_v16 = vld [vmem:[%s20729_s1 + $0x560] sm:$0xff]  ;;  %v11839_v19 = vld [vmem:[%s20729_s1 + $0x558] sm:$0xff] }
 0x38a   :  { %20985 = vst [vmem:[#allocation160_spill] sm:$0xff] %v17106_v41  ;;  %4671 = vperm.xlu0 %14477, %v11838_v31  }
 0x38b   :  { %v3814_v24 = vpack.c.bf16 %v3789_v43, %v3788_v18  ;;  %v11842_v18 = vld [vmem:[%s20729_s1 + $0x570] sm:$0xff] }
 0x38c   :  { %v17113_v47 = vpop.permute.xlu1 %3693  ;;  %v20991_v43 = vld [vmem:[#allocation16_spill] sm:$0xff] }
 0x38d   :  { %20987 = vst [vmem:[#allocation161_spill] sm:$0xff] %v17113_v47  ;;  %4666 = vperm.xlu1 %14476, %v11837_v49   ;;  %v17118_v5 = vpop.permute.xlu0 %3708  ;;  %v3791_v31 = vmul.f32 %v17113_v47, %v20989_v55 }
 0x38e   :  { %20988 = vst [vmem:[#allocation162_spill] sm:$0xff] %v17118_v5  ;;  %13065 = vmatmul.mubr.msk.bf16.gmra.mrb[12].mxu1 %vm135_vm0, %v3813_v56  ;;  %4681 = vperm.xlu0 %14477, %v11840_v16   ;;  %v20992_v56 = vld [vmem:[#allocation66_spill] sm:$0xff] }
 0x38f   :  { %13068 = vmatprep.mubr.msk.bf16.mxu1 %vm135_vm0, %v3814_v24  ;;  %v3790_v17 = vmul.f32 %v17088_v22, %v20992_v56  ;;  %v11841_v24 = vld [vmem:[%s20729_s1 + $0x568] sm:$0xff]  ;;  %v20994_v16 = vld [vmem:[#allocation70_spill] sm:$0xff] }
 0x390   :  { %v17127_v59 = vpop.permute.xlu1 %3703  ;;  %v3792_v47 = vmul.f32 %v17106_v41, %v20994_v16  ;;  %v21000_v41 = vld [vmem:[#allocation72_spill] sm:$0xff] }
 0x391   :  { %20990 = vst [vmem:[#allocation163_spill] sm:$0xff] %v17127_v59  ;;  %v3793_v49 = vmul.f32 %v17127_v59, %v20991_v43  ;;  %4676 = vperm.xlu1 %14476, %v11839_v19   ;;  %v17136_v61 = vpop.permute.xlu0 %3718  ;;  %v3815_v55 = vpack.c.bf16 %v3791_v31, %v3790_v17  ;;  %v11844_v19 = vld [vmem:[%s20729_s1 + $0x580] sm:$0xff]  ;;  %v11843_v43 = vld [vmem:[%s20729_s1 + $0x578] sm:$0xff]  ;;  %v21001_v16 = vld [vmem:[#allocation76_spill] sm:$0xff] }
 0x392   :  { %20993 = vst [vmem:[#allocation164_spill] sm:$0xff] %v17136_v61  ;;  %4691 = vperm.xlu0 %14477, %v11842_v18   ;;  %v20997_v17 = vld [vmem:[#allocation73_spill] sm:$0xff] }
 0x393   :  { %v3816_v59 = vpack.c.bf16 %v3793_v49, %v3792_v47  ;;  %v11846_v47 = vld [vmem:[%s20729_s1 + $0x590] sm:$0xff]  ;;  %v20999_v49 = vld [vmem:[#allocation7_spill] sm:$0xff] }
 0x394   :  { %v17143_v12 = vpop.permute.xlu1 %3713 }
 0x395   :  { %20995 = vst [vmem:[#allocation165_spill] sm:$0xff] %v17143_v12  ;;  %4686 = vperm.xlu1 %14476, %v11841_v24   ;;  %v17148_v22 = vpop.permute.xlu0 %3728  ;;  %v3795_v31 = vmul.f32 %v17143_v12, %v20997_v17  ;;  %v11845_v12 = vld [vmem:[%s20729_s1 + $0x588] sm:$0xff]  ;;  %v3796_v17 = vmul.f32 %v17136_v61, %v21001_v16  ;;  %v21008_v16 = vld [vmem:[#allocation81_spill] sm:$0xff] }
 0x396   :  { %20996 = vst [vmem:[#allocation166_spill] sm:$0xff] %v17148_v22  ;;  %13069 = vmatmul.mubr.msk.bf16.gmra.mrb[16].mxu1 %vm135_vm0, %v3815_v55  ;;  %4701 = vperm.xlu0 %14477, %v11844_v19   ;;  %v415_v55 = vadd.f32 %v16851_v42, %v20895_v23  ;;  %v3794_v19 = vmul.f32 %v17118_v5, %v21000_v41  ;;  %v11848_v23 = vld [vmem:[%s20729_s1 + $0x5a0] sm:$0xff] }
 0x397   :  { %13072 = vmatprep.mubr.msk.bf16.mxu1 %vm135_vm0, %v3816_v59 }
 0x398   :  { %v17157_v18 = vpop.permute.xlu1 %3723  ;;  %v3817_v56 = vpack.c.bf16 %v3795_v31, %v3794_v19 }
 0x399   :  { %20998 = vst [vmem:[#allocation167_spill] sm:$0xff] %v17157_v18  ;;  %v3797_v24 = vmul.f32 %v17157_v18, %v20999_v49  ;;  %4696 = vperm.xlu1 %14476, %v11843_v43   ;;  %v642_v59 = vpop.permute.xlu0 %641  ;;  %v447_v18 = vmax.f32 %v415_v55, 0.0  ;;  %v11847_v49 = vld [vmem:[%s20729_s1 + $0x598] sm:$0xff]  ;;  %v21006_v55 = vld [vmem:[#allocation78_spill] sm:$0xff] }
 0x39a   :  { %4711 = vperm.xlu0 %14477, %v11846_v47   ;;  %v3798_v19 = vmul.f32 %v17148_v22, %v21006_v55 }
 0x39b   :  { %v3818_v43 = vpack.c.bf16 %v3797_v24, %v3796_v17  ;;  %v479_v17 = vmax.f32 %v447_v18, 0.0  ;;  %v21005_v24 = vld [vmem:[#allocation83_spill] sm:$0xff] }
 0x39c   :  { %v17173_v14 = vpop.permute.xlu1 %3733 }
 0x39d   :  { %21002 = vst [vmem:[#allocation72_spill] sm:$0xff] %v17173_v14  ;;  %4706 = vperm.xlu1 %14476, %v11845_v12   ;;  %v17178_v5 = vpop.permute.xlu0 %3743  ;;  %v3799_v31 = vmul.f32 %v17173_v14, %v16510_v7  ;;  %v11850_v12 = vld [vmem:[%s20729_s1 + $0x5b0] sm:$0xff]  ;;  %v1192_v14 = vadd.f32 %v16851_v42, %v20911_v30  ;;  %v706_v61 = vmax.f32 %v479_v17, %v642_v59  ;;  %v11851_v30 = vld [vmem:[%s20729_s1 + $0x5b8] sm:$0xff] }
 0x39e   :  { %21003 = vst [vmem:[#allocation168_spill] sm:$0xff] %v17178_v5  ;;  %13073 = vmatmul.mubr.msk.bf16.gmra.mrb[20].mxu1 %vm135_vm0, %v3817_v56  ;;  %4721 = vperm.xlu0 %14477, %v11848_v23   ;;  %v3801_v18 = vmul.f32 %v17178_v5, %v21008_v16  ;;  %v11885_v5 = vld [vmem:[%s20729_s1 + $0x618] sm:$0xff] }
 0x39f   :  { %13076 = vmatprep.mubr.msk.bf16.mxu1 %vm135_vm0, %v3818_v43  ;;  %v11849_v43 = vld [vmem:[%s20729_s1 + $0x5a8] sm:$0xff]  ;;  %v3819_v7 = vpack.c.bf16 %v3799_v31, %v3798_v19  ;;  %v1224_v59 = vmax.f32 %v1192_v14, 0.0 }
 0x3a0   :  { %v17187_v47 = vpop.permute.xlu1 %3738  ;;  %v11853_v14 = vld [vmem:[%s20729_s1 + $0x5c8] sm:$0xff] }
 0x3a1   :  { %21004 = vst [vmem:[#allocation169_spill] sm:$0xff] %v17187_v47  ;;  %v3800_v56 = vmul.f32 %v17187_v47, %v21005_v24  ;;  %4716 = vperm.xlu1 %14476, %v11847_v49   ;;  %v17196_v23 = vpop.permute.xlu0 %3748  ;;  %v11852_v49 = vld [vmem:[%s20729_s1 + $0x5c0] sm:$0xff] }
 0x3a2   :  { %21007 = vst [vmem:[#allocation170_spill] sm:$0xff] %v17196_v23  ;;  %4731 = vperm.xlu0 %14477, %v11850_v12   ;;  %v11854_v12 = vld [vmem:[%s20729_s1 + $0x5d0] sm:$0xff] }
 0x3a3   :  { %v3820_v22 = vpack.c.bf16 %v3801_v18, %v3800_v56 }
 0x3a4   :  { %v869_v47 = vpop.permute.xlu1 %868 }
 0x3a5   :  { %v933_v24 = vmax.f32 %v706_v61, %v869_v47  ;;  %4726 = vperm.xlu1 %14476, %v11849_v43   ;;  %v1096_v55 = vpop.permute.xlu0 %1095  ;;  %v3802_v61 = vmul.f32 %v17196_v23, %v16553_v15  ;;  %v21010_v47 = vld [vmem:[#allocation85_spill] sm:$0xff] }
 0x3a6   :  { %13077 = vmatmul.mubr.msk.bf16.gmra.mrb[24].mxu1 %vm135_vm0, %v3819_v7  ;;  %4741 = vperm.xlu0 %14477, %v11852_v49   ;;  %v11855_v43 = vld [vmem:[%s20729_s1 + $0x5d8] sm:$0xff]  ;;  %v11858_v49 = vld [vmem:[%s20729_s1 + $0x5f0] sm:$0xff] }
 0x3a7   :  { %v1160_v42 = vmax.f32 %v933_v24, %v1096_v55  ;;  %13080 = vmatprep.mubr.msk.bf16.mxu1 %vm135_vm0, %v3820_v22  ;;  %v11856_v55 = vld [vmem:[%s20729_s1 + $0x5e0] sm:$0xff] }
 0x3a8   :  { %v17213_v31 = vpop.permute.xlu1 %3753 }
 0x3a9   :  { %21009 = vst [vmem:[#allocation81_spill] sm:$0xff] %v17213_v31  ;;  %v3803_v7 = vmul.f32 %v17213_v31, %v21010_v47  ;;  %4736 = vperm.xlu1 %14476, %v11851_v30   ;;  %v1256_v17 = vmax.f32 %v1160_v42, %v1224_v59  ;;  %v17222_v56 = vpop.permute.xlu0 %3758  ;;  %v21013_v30 = vld [vmem:[#allocation89_spill] sm:$0xff]  ;;  %v21014_v59 = vld [vmem:[#allocation88_spill] sm:$0xff]  ;;  %v11882_v31 = vld [vmem:[%s20729_s1 + $0x600] sm:$0xff] }
 0x3aa   :  { %21011 = vst [vmem:[#allocation85_spill] sm:$0xff] %v17222_v56  ;;  %4751 = vperm.xlu0 %14477, %v11854_v12   ;;  %v3804_v42 = vmul.f32 %v17222_v56, %v21013_v30  ;;  %v21022_v30 = vld [vmem:[#allocation55_spill] sm:$0xff] }
 0x3ab   :  { %v3821_v22 = vpack.c.bf16 %v3803_v7, %v3802_v61  ;;  %v11857_v7 = vld [vmem:[%s20729_s1 + $0x5e8] sm:$0xff] }
 0x3ac   :  { %v1416_v24 = vpop.permute.xlu1 %1415 }
 0x3ad   :  { %4746 = vperm.xlu1 %14476, %v11853_v14   ;;  %v1640_v19 = vpop.permute.xlu0 %1639  ;;  %v1480_v14 = vmax.f32 %v1256_v17, %v1416_v24  ;;  %v11884_v24 = vld [vmem:[%s20729_s1 + $0x610] sm:$0xff] }
 0x3ae   :  { %13081 = vmatmul.mubr.msk.bf16.gmra.mrb[28].mxu1 %vm135_vm0, %v3821_v22  ;;  %4761 = vperm.xlu0 %14477, %v11856_v55  }
 0x3b0   :  { %v17234_v18 = vpop.permute.xlu1 %3763 }
 0x3b1   :  { %21012 = vst [vmem:[#allocation171_spill] sm:$0xff] %v17234_v18  ;;  %v3805_v12 = vmul.f32 %v17234_v18, %v21014_v59  ;;  %4756 = vperm.xlu1 %14476, %v11855_v43   ;;  %v17243_v61 = vpop.permute.xlu0 %3773  ;;  %v11859_v43 = vld [vmem:[%s20729_s1 + $0x5f8] sm:$0xff]  ;;  %v1704_v18 = vmax.f32 %v1480_v14, %v1640_v19  ;;  %v11886_v19 = vld [vmem:[%s20729_s1 + $0x620] sm:$0xff]  ;;  %v21020_v14 = vrot.slane %v16215_v1, 7 }
 0x3b2   :  { %21015 = vst [vmem:[#allocation88_spill] sm:$0xff] %v17243_v61  ;;  %4771 = vperm.xlu0 %14477, %v11858_v49   ;;  %v3577_v49 = vrot.slane %v16979_v53, 7 }
 0x3b3   :  { %v3822_v22 = vpack.c.bf16 %v3805_v12, %v3804_v42 }
 0x3b4   :  { %v17248_v55 = vpop.permute.xlu1 %3768 }
 0x3b5   :  { %21016 = vst [vmem:[#allocation172_spill] sm:$0xff] %v17248_v55  ;;  %4766 = vperm.xlu1 %14476, %v11857_v7   ;;  %13084 = vmatprep.mubr.msk.bf16.mxu1 %vm135_vm0, %v3822_v22  ;;  %v17254_v56 = vpop.permute.xlu0 %4117  ;;  %v11883_v7 = vld [vmem:[%s20729_s1 + $0x608] sm:$0xff] }
 0x3b6   :  { %21017 = vst [vmem:[#allocation173_spill] sm:$0xff] %v17254_v56  ;;  %5122 = vperm.xlu0 %14477, %v11882_v31  }
 0x3b8   :  { %v1864_v17 = vpop.permute.xlu1 %1863 }
 0x3b9   :  { %v17263_v42 = vmax.f32 %v1704_v18, %v1864_v17  ;;  %4776 = vperm.xlu1 %14476, %v11859_v43   ;;  %v17265_v12 = vpop.permute.xlu0 %4127  ;;  %v17279_v18 = vsel %vm1959_vm2, %v21020_v14, %v3577_v49 }
 0x3ba   :  { %21018 = vst [vmem:[#allocation174_spill] sm:$0xff] %v17265_v12  ;;  %5132 = vperm.xlu0 %14477, %v11884_v24   ;;  %v3806_v24 = vmul.f32 %v17248_v55, %v17279_v18 }
 0x3bb   :  { %v20452_v22 = vrot.slane %v17263_v42, 7 }
 0x3bc   :  { %v17271_v31 = vpop.permute.xlu1 %4122 }
 0x3bd   :  { %21019 = vst [vmem:[#allocation175_spill] sm:$0xff] %v17271_v31  ;;  %v4276_v43 = vmul.f32 %v17271_v31, %v15329_v37  ;;  %5127 = vperm.xlu1 %14476, %v11883_v7   ;;  %v17286_v17 = vsel %vm1959_vm2, %v3577_v49, %v20452_v22  ;;  %v17290_v23 = vpop.permute.xlu0 %4137  ;;  %v4275_v37 = vmul.f32 %v17254_v56, %v21022_v30  ;;  %v11888_v49 = vld [vmem:[%s20729_s1 + $0x630] sm:$0xff] }
 0x3be   :  { %21021 = vst [vmem:[#allocation176_spill] sm:$0xff] %v17290_v23  ;;  %v3807_v14 = vmul.f32 %v17243_v61, %v17286_v17  ;;  %5142 = vperm.xlu0 %14477, %v11886_v19   ;;  %v11887_v61 = vld [vmem:[%s20729_s1 + $0x628] sm:$0xff] }
 0x3bf   :  { %v4307_v31 = vpack.c.bf16 %v4276_v43, %v4275_v37 }
 0x3c0   :  { %v17299_v7 = vpop.permute.xlu1 %4132  ;;  %v3823_v22 = vpack.c.bf16 %v3807_v14, %v3806_v24  ;;  %v21027_v14 = vld [vmem:[#allocation56_spill] sm:$0xff] }
 0x3c1   :  { %21023 = vst [vmem:[#allocation55_spill] sm:$0xff] %v17299_v7  ;;  %5137 = vperm.xlu1 %14476, %v11885_v5   ;;  %v17304_v55 = vpop.permute.xlu0 %4147  ;;  %v4278_v30 = vmul.f32 %v17299_v7, %v15371_v34  ;;  %v11890_v5 = vld [vmem:[%s20729_s1 + $0x640] sm:$0xff]  ;;  %v4279_v37 = vmul.f32 %v17290_v23, %v21027_v14 }
 0x3c2   :  { %21024 = vst [vmem:[#allocation177_spill] sm:$0xff] %v17304_v55  ;;  %13085 = vmatmul.mubr.msk.bf16.gmra.mrb[32].mxu1 %vm135_vm0, %v3823_v22  ;;  %5152 = vperm.xlu0 %14477, %v11888_v49   ;;  %v4277_v22 = vmul.f32 %v17265_v12, %v15364_v39  ;;  %v14495_v12 = vld [vmem:[%s20173_s3 + $0x58] sm:$0xff]  }
 0x3c3   :  { %13092 = vmatprep.mubr.msk.bf16.mxu1 %vm135_vm0, %v4307_v31  ;;  %v11889_v31 = vld [vmem:[%s20729_s1 + $0x638] sm:$0xff] }
 0x3c4   :  { %v17313_v19 = vpop.permute.xlu1 %4142  ;;  %v4308_v49 = vpack.c.bf16 %v4278_v30, %v4277_v22  ;;  %v11891_v30 = vld [vmem:[%s20729_s1 + $0x648] sm:$0xff]  ;;  %v11894_v22 = vld [vmem:[%s20729_s1 + $0x660] sm:$0xff] }
 0x3c5   :  { %21025 = vst [vmem:[#allocation178_spill] sm:$0xff] %v17313_v19  ;;  %v4280_v43 = vmul.f32 %v17313_v19, %v15424_v51  ;;  %5147 = vperm.xlu1 %14476, %v11887_v61   ;;  %v17322_v24 = vpop.permute.xlu0 %4157  ;;  %v11892_v61 = vld [vmem:[%s20729_s1 + $0x650] sm:$0xff] }
 0x3c6   :  { %21026 = vst [vmem:[#allocation179_spill] sm:$0xff] %v17322_v24  ;;  %5162 = vperm.xlu0 %14477, %v11890_v5  }
 0x3c7   :  { %v4309_v19 = vpack.c.bf16 %v4280_v43, %v4279_v37  ;;  %v4281_v37 = vmul.f32 %v17304_v55, %v15470_v40 }
 0x3c8   :  { %v17329_v7 = vpop.permute.xlu1 %4152 }
 0x3c9   :  { %21028 = vst [vmem:[#allocation56_spill] sm:$0xff] %v17329_v7  ;;  %5157 = vperm.xlu1 %14476, %v11889_v31   ;;  %v17337_v56 = vpop.permute.xlu0 %4167  ;;  %v4282_v5 = vmul.f32 %v17329_v7, %v15477_v28  ;;  %v11896_v7 = vld [vmem:[%s20729_s1 + $0x670] sm:$0xff] }
 0x3ca   :  { %21029 = vst [vmem:[#allocation180_spill] sm:$0xff] %v17337_v56  ;;  %13093 = vmatmul.mubr.msk.bf16.vlgmr.msra.gmra.mrb[4].mxu1 %vm135_vm0, %v4308_v49  ;;  %5172 = vperm.xlu0 %14477, %v11892_v61   ;;  %v11893_v61 = vld [vmem:[%s20729_s1 + $0x658] sm:$0xff] }
 0x3cb   :  { %13096 = vmatprep.mubr.msk.bf16.mxu1 %vm135_vm0, %v4309_v19  ;;  %13125 = vmatpush3.bf16.msra.mxu1 %v17071_v13  ;;  %v17357_v19 = vld [vmem:[%s20173_s3 + $0x60] sm:$0xff]   ;;  %v4283_v13 = vmul.f32 %v17322_v24, %v15523_v63  ;;  %v11899_v24 = vld [vmem:[%s20729_s1 + $0x688] sm:$0xff] }
 0x3cc   :  { %v17346_v43 = vpop.permute.xlu1 %4162  ;;  %13126 = vmatprep.subr.bf16.mxu1 %v14495_v12 }
 0x3cd   :  { %21030 = vst [vmem:[#allocation181_spill] sm:$0xff] %v17346_v43  ;;  %v4284_v31 = vmul.f32 %v17346_v43, %v15530_v27  ;;  %5167 = vperm.xlu1 %14476, %v11891_v30   ;;  %v17361_v49 = vpop.permute.xlu0 %4177  ;;  %v4310_v30 = vpack.c.bf16 %v4282_v5, %v4281_v37 }
 0x3ce   :  { %21031 = vst [vmem:[#allocation182_spill] sm:$0xff] %v17361_v49  ;;  %5182 = vperm.xlu0 %14477, %v11894_v22   ;;  %v11895_v22 = vld [vmem:[%s20729_s1 + $0x668] sm:$0xff] }
 0x3cf   :  { %13127 = vmatpush3.bf16.msra.mxu1 %v14495_v12  ;;  %v4311_v23 = vpack.c.bf16 %v4284_v31, %v4283_v13  ;;  %v11898_v12 = vld [vmem:[%s20729_s1 + $0x680] sm:$0xff] }
 0x3d0   :  { %v17368_v43 = vpop.permute.xlu1 %4172  ;;  %13160 = vmatprep.subr.bf16.mxu1 %v17357_v19 }
 0x3d1   :  { %21032 = vst [vmem:[#allocation183_spill] sm:$0xff] %v17368_v43  ;;  %5177 = vperm.xlu1 %14476, %v11893_v61   ;;  %v17374_v55 = vpop.permute.xlu0 %4187  ;;  %v4286_v5 = vmul.f32 %v17368_v43, %v15583_v25  ;;  %v4285_v61 = vmul.f32 %v17337_v56, %v15576_v4 }
 0x3d2   :  { %21033 = vst [vmem:[#allocation184_spill] sm:$0xff] %v17374_v55  ;;  %13097 = vmatmul.mubr.msk.bf16.gmra.mrb[8].mxu1 %vm135_vm0, %v4310_v30  ;;  %5192 = vperm.xlu0 %14477, %v11896_v7   ;;  %v4287_v7 = vmul.f32 %v17361_v49, %v15627_v0  ;;  %v11903_v49 = vld [vmem:[%s20729_s1 + $0x6a8] sm:$0xff] }
 0x3d3   :  { %13100 = vmatprep.mubr.msk.bf16.mxu1 %vm135_vm0, %v4311_v23  ;;  %v11897_v23 = vld [vmem:[%s20729_s1 + $0x678] sm:$0xff]  ;;  %v4312_v30 = vpack.c.bf16 %v4286_v5, %v4285_v61 }
 0x3d4   :  { %v17383_v37 = vpop.permute.xlu1 %4182 }
 0x3d5   :  { %21034 = vst [vmem:[#allocation185_spill] sm:$0xff] %v17383_v37  ;;  %v4288_v31 = vmul.f32 %v17383_v37, %v15634_v48  ;;  %5187 = vperm.xlu1 %14476, %v11895_v22   ;;  %v17392_v13 = vpop.permute.xlu0 %4197  ;;  %v11900_v22 = vld [vmem:[%s20729_s1 + $0x690] sm:$0xff] }
 0x3d6   :  { %21035 = vst [vmem:[#allocation186_spill] sm:$0xff] %v17392_v13  ;;  %5202 = vperm.xlu0 %14477, %v11898_v12  }
 0x3d7   :  { %v4313_v37 = vpack.c.bf16 %v4288_v31, %v4287_v7  ;;  %v11902_v31 = vld [vmem:[%s20729_s1 + $0x6a0] sm:$0xff] }
 0x3d8   :  { %v17399_v43 = vpop.permute.xlu1 %4192 }
 0x3d9   :  { %21036 = vst [vmem:[#allocation187_spill] sm:$0xff] %v17399_v43  ;;  %5197 = vperm.xlu1 %14476, %v11897_v23   ;;  %v17404_v56 = vpop.permute.xlu0 %4207  ;;  %v4290_v5 = vmul.f32 %v17399_v43, %v20869_v2  ;;  %v4289_v23 = vmul.f32 %v17374_v55, %v20866_v26 }
 0x3da   :  { %21037 = vst [vmem:[#allocation188_spill] sm:$0xff] %v17404_v56  ;;  %13101 = vmatmul.mubr.msk.bf16.gmra.mrb[12].mxu1 %vm135_vm0, %v4312_v30  ;;  %5212 = vperm.xlu0 %14477, %v11900_v22   ;;  %v4291_v30 = vmul.f32 %v17392_v13, %v20876_v6  ;;  %v11907_v13 = vld [vmem:[%s20729_s1 + $0x6c8] sm:$0xff] }
 0x3db   :  { %13104 = vmatprep.mubr.msk.bf16.mxu1 %vm135_vm0, %v4313_v37  ;;  %v11901_v37 = vld [vmem:[%s20729_s1 + $0x698] sm:$0xff]  ;;  %v4314_v22 = vpack.c.bf16 %v4290_v5, %v4289_v23 }
 0x3dc   :  { %v17413_v12 = vpop.permute.xlu1 %4202 }
 0x3dd   :  { %21038 = vst [vmem:[#allocation189_spill] sm:$0xff] %v17413_v12  ;;  %v4292_v61 = vmul.f32 %v17413_v12, %v20875_v62  ;;  %5207 = vperm.xlu1 %14476, %v11899_v24   ;;  %v17422_v7 = vpop.permute.xlu0 %4217  ;;  %v11904_v24 = vld [vmem:[%s20729_s1 + $0x6b0] sm:$0xff] }
 0x3de   :  { %21039 = vst [vmem:[#allocation190_spill] sm:$0xff] %v17422_v7  ;;  %5222 = vperm.xlu0 %14477, %v11902_v31  }
 0x3df   :  { %v4315_v12 = vpack.c.bf16 %v4292_v61, %v4291_v30  ;;  %v11906_v61 = vld [vmem:[%s20729_s1 + $0x6c0] sm:$0xff] }
 0x3e0   :  { %v17429_v43 = vpop.permute.xlu1 %4212 }
 0x3e1   :  { %21040 = vst [vmem:[#allocation191_spill] sm:$0xff] %v17429_v43  ;;  %5217 = vperm.xlu1 %14476, %v11901_v37   ;;  %v17434_v55 = vpop.permute.xlu0 %4227  ;;  %v4294_v5 = vmul.f32 %v17429_v43, %v15917_v29  ;;  %v4293_v37 = vmul.f32 %v17404_v56, %v15908_v21 }
 0x3e2   :  { %21041 = vst [vmem:[#allocation192_spill] sm:$0xff] %v17434_v55  ;;  %13105 = vmatmul.mubr.msk.bf16.gmra.mrb[16].mxu1 %vm135_vm0, %v4314_v22  ;;  %5232 = vperm.xlu0 %14477, %v11904_v24   ;;  %v4295_v22 = vmul.f32 %v17422_v7, %v20886_v35  ;;  %v11911_v7 = vld [vmem:[%s20729_s1 + $0x6e8] sm:$0xff] }
 0x3e3   :  { %13108 = vmatprep.mubr.msk.bf16.mxu1 %vm135_vm0, %v4315_v12  ;;  %v11905_v12 = vld [vmem:[%s20729_s1 + $0x6b8] sm:$0xff]  ;;  %v4316_v24 = vpack.c.bf16 %v4294_v5, %v4293_v37 }
 0x3e4   :  { %v17443_v31 = vpop.permute.xlu1 %4222 }
 0x3e5   :  { %21042 = vst [vmem:[#allocation193_spill] sm:$0xff] %v17443_v31  ;;  %v4296_v23 = vmul.f32 %v17443_v31, %v20885_v8  ;;  %5227 = vperm.xlu1 %14476, %v11903_v49   ;;  %v17452_v30 = vpop.permute.xlu0 %4237  ;;  %v11908_v49 = vld [vmem:[%s20729_s1 + $0x6d0] sm:$0xff] }
 0x3e6   :  { %21043 = vst [vmem:[#allocation194_spill] sm:$0xff] %v17452_v30  ;;  %5242 = vperm.xlu0 %14477, %v11906_v61  }
 0x3e7   :  { %v4317_v31 = vpack.c.bf16 %v4296_v23, %v4295_v22  ;;  %v11910_v23 = vld [vmem:[%s20729_s1 + $0x6e0] sm:$0xff] }
 0x3e8   :  { %v17459_v43 = vpop.permute.xlu1 %4232 }
 0x3e9   :  { %21044 = vst [vmem:[#allocation195_spill] sm:$0xff] %v17459_v43  ;;  %5237 = vperm.xlu1 %14476, %v11905_v12   ;;  %v17464_v56 = vpop.permute.xlu0 %4247  ;;  %v4298_v5 = vmul.f32 %v17459_v43, %v16110_v36  ;;  %v4297_v12 = vmul.f32 %v17434_v55, %v16100_v57 }
 0x3ea   :  { %21045 = vst [vmem:[#allocation196_spill] sm:$0xff] %v17464_v56  ;;  %13109 = vmatmul.mubr.msk.bf16.gmra.mrb[20].mxu1 %vm135_vm0, %v4316_v24  ;;  %5252 = vperm.xlu0 %14477, %v11908_v49   ;;  %v4299_v24 = vmul.f32 %v17452_v30, %v16134_v11  ;;  %v11937_v30 = vld [vmem:[%s20729_s1 + $0x708] sm:$0xff] }
 0x3eb   :  { %13112 = vmatprep.mubr.msk.bf16.mxu1 %vm135_vm0, %v4317_v31  ;;  %v11909_v31 = vld [vmem:[%s20729_s1 + $0x6d8] sm:$0xff]  ;;  %v4318_v49 = vpack.c.bf16 %v4298_v5, %v4297_v12 }
 0x3ec   :  { %v17473_v61 = vpop.permute.xlu1 %4242 }
 0x3ed   :  { %21046 = vst [vmem:[#allocation197_spill] sm:$0xff] %v17473_v61  ;;  %v4300_v37 = vmul.f32 %v17473_v61, %v16142_v58  ;;  %5247 = vperm.xlu1 %14476, %v11907_v13   ;;  %v17482_v22 = vpop.permute.xlu0 %4257  ;;  %v11912_v13 = vld [vmem:[%s20729_s1 + $0x6f0] sm:$0xff] }
 0x3ee   :  { %21047 = vst [vmem:[#allocation198_spill] sm:$0xff] %v17482_v22  ;;  %5262 = vperm.xlu0 %14477, %v11910_v23  }
 0x3ef   :  { %v4319_v61 = vpack.c.bf16 %v4300_v37, %v4299_v24  ;;  %v11936_v37 = vld [vmem:[%s20729_s1 + $0x700] sm:$0xff] }
 0x3f0   :  { %v17489_v43 = vpop.permute.xlu1 %4252 }
 0x3f1   :  { %21048 = vst [vmem:[#allocation199_spill] sm:$0xff] %v17489_v43  ;;  %5257 = vperm.xlu1 %14476, %v11909_v31   ;;  %v17494_v55 = vpop.permute.xlu0 %4267  ;;  %v4302_v5 = vmul.f32 %v17489_v43, %v16207_v44  ;;  %v4301_v31 = vmul.f32 %v17464_v56, %v16198_v38 }
 0x3f2   :  { %21049 = vst [vmem:[#allocation200_spill] sm:$0xff] %v17494_v55  ;;  %13113 = vmatmul.mubr.msk.bf16.gmra.mrb[24].mxu1 %vm135_vm0, %v4318_v49  ;;  %5272 = vperm.xlu0 %14477, %v11912_v13   ;;  %v4303_v49 = vmul.f32 %v17482_v22, %v16209_v54 }
 0x3f3   :  { %13116 = vmatprep.mubr.msk.bf16.mxu1 %vm135_vm0, %v4319_v61  ;;  %v11913_v61 = vld [vmem:[%s20729_s1 + $0x6f8] sm:$0xff]  ;;  %v4320_v13 = vpack.c.bf16 %v4302_v5, %v4301_v31 }
 0x3f4   :  { %v17503_v23 = vpop.permute.xlu1 %4262 }
 0x3f5   :  { %21050 = vst [vmem:[#allocation201_spill] sm:$0xff] %v17503_v23  ;;  %v4304_v12 = vmul.f32 %v17503_v23, %v16215_v1  ;;  %5267 = vperm.xlu1 %14476, %v11911_v7   ;;  %v17512_v24 = vpop.permute.xlu0 %4621  ;;  %v11938_v7 = vld [vmem:[%s20729_s1 + $0x710] sm:$0xff] }
 0x3f6   :  { %21051 = vst [vmem:[#allocation202_spill] sm:$0xff] %v17512_v24  ;;  %5621 = vperm.xlu0 %14477, %v11936_v37  }
 0x3f7   :  { %v4321_v23 = vpack.c.bf16 %v4304_v12, %v4303_v49  ;;  %v11940_v12 = vld [vmem:[%s20729_s1 + $0x720] sm:$0xff] }
 0x3f8   :  { %v17519_v43 = vpop.permute.xlu1 %4272 }
 0x3f9   :  { %21052 = vst [vmem:[#allocation203_spill] sm:$0xff] %v17519_v43  ;;  %5277 = vperm.xlu1 %14476, %v11913_v61   ;;  %v17524_v56 = vpop.permute.xlu0 %4631  ;;  %v4306_v5 = vmul.f32 %v17519_v43, %v17263_v42  ;;  %v4305_v61 = vmul.f32 %v17494_v55, %v16979_v53 }
 0x3fa   :  { %21053 = vst [vmem:[#allocation204_spill] sm:$0xff] %v17524_v56  ;;  %13117 = vmatmul.mubr.msk.bf16.gmra.mrb[28].mxu1 %vm135_vm0, %v4320_v13  ;;  %5631 = vperm.xlu0 %14477, %v11938_v7   ;;  %v4779_v13 = vmul.f32 %v17512_v24, %v16633_v9  ;;  %v21058_v9 = vld [vmem:[#allocation96_spill] sm:$0xff] }
 0x3fb   :  { %13120 = vmatprep.mubr.msk.bf16.mxu1 %vm135_vm0, %v4321_v23  ;;  %v11939_v23 = vld [vmem:[%s20729_s1 + $0x718] sm:$0xff]  ;;  %v4322_v7 = vpack.c.bf16 %v4306_v5, %v4305_v61  ;;  %v21060_v61 = vld [vmem:[#allocation99_spill] sm:$0xff] }
 0x3fc   :  { %v17533_v37 = vpop.permute.xlu1 %4626 }
 0x3fd   :  { %21054 = vst [vmem:[#allocation205_spill] sm:$0xff] %v17533_v37  ;;  %v4780_v31 = vmul.f32 %v17533_v37, %v16619_v46  ;;  %5626 = vperm.xlu1 %14476, %v11937_v30   ;;  %v17542_v49 = vpop.permute.xlu0 %4641  ;;  %v11942_v46 = vld [vmem:[%s20729_s1 + $0x730] sm:$0xff]  ;;  %v11941_v37 = vld [vmem:[%s20729_s1 + $0x728] sm:$0xff] }
 0x3fe   :  { %21055 = vst [vmem:[#allocation206_spill] sm:$0xff] %v17542_v49  ;;  %5641 = vperm.xlu0 %14477, %v11940_v12  }
 0x3ff   :  { %v4811_v30 = vpack.c.bf16 %v4780_v31, %v4779_v13  ;;  %v11944_v31 = vld [vmem:[%s20729_s1 + $0x740] sm:$0xff]  ;;  %v21061_v13 = vld [vmem:[#allocation95_spill] sm:$0xff] }
 0x400   :  { %v17549_v43 = vpop.permute.xlu1 %4636 }
 0x401   :  { %21056 = vst [vmem:[#allocation207_spill] sm:$0xff] %v17549_v43  ;;  %5636 = vperm.xlu1 %14476, %v11939_v23   ;;  %v17554_v55 = vpop.permute.xlu0 %4651  ;;  %v4782_v5 = vmul.f32 %v17549_v43, %v21058_v9 }
 0x402   :  { %21057 = vst [vmem:[#allocation208_spill] sm:$0xff] %v17554_v55  ;;  %13121 = vmatmul.mubr.msk.bf16.gmra.mrb[32].mxu1 %vm135_vm0, %v4322_v7  ;;  %5651 = vperm.xlu0 %14477, %v11942_v46   ;;  %v4781_v7 = vmul.f32 %v17524_v56, %v21061_v13  ;;  %v11943_v46 = vld [vmem:[%s20729_s1 + $0x738] sm:$0xff]  ;;  %v14497_v56 = vld [vmem:[%s20173_s3 + $0x68] sm:$0xff]  }
 0x403   :  { %13128 = vmatprep.mubr.msk.bf16.mxu1 %vm135_vm0, %v4811_v30  ;;  %v21063_v30 = vld [vmem:[#allocation101_spill] sm:$0xff] }
 0x404   :  { %v17563_v12 = vpop.permute.xlu1 %4646  ;;  %v4783_v43 = vmul.f32 %v17542_v49, %v21063_v30  ;;  %v4812_v22 = vpack.c.bf16 %v4782_v5, %v4781_v7  ;;  %v11945_v5 = vld [vmem:[%s20729_s1 + $0x748] sm:$0xff]  ;;  %v11947_v30 = vld [vmem:[%s20729_s1 + $0x758] sm:$0xff] }
 0x405   :  { %21059 = vst [vmem:[#allocation209_spill] sm:$0xff] %v17563_v12  ;;  %v4784_v23 = vmul.f32 %v17563_v12, %v21060_v61  ;;  %5646 = vperm.xlu1 %14476, %v11941_v37   ;;  %v17572_v24 = vpop.permute.xlu0 %4661  ;;  %v11946_v37 = vld [vmem:[%s20729_s1 + $0x750] sm:$0xff] }
 0x406   :  { %21062 = vst [vmem:[#allocation210_spill] sm:$0xff] %v17572_v24  ;;  %5661 = vperm.xlu0 %14477, %v11944_v31   ;;  %v21066_v31 = vld [vmem:[#allocation104_spill] sm:$0xff] }
 0x407   :  { %v4813_v12 = vpack.c.bf16 %v4784_v23, %v4783_v43  ;;  %v11948_v23 = vld [vmem:[%s20729_s1 + $0x760] sm:$0xff] }
 0x408   :  { %v17579_v9 = vpop.permute.xlu1 %4656 }
 0x409   :  { %21064 = vst [vmem:[#allocation211_spill] sm:$0xff] %v17579_v9  ;;  %5656 = vperm.xlu1 %14476, %v11943_v46   ;;  %v17587_v61 = vpop.permute.xlu0 %4671  ;;  %v4786_v7 = vmul.f32 %v17579_v9, %v21066_v31  ;;  %v21068_v46 = vld [vmem:[#allocation107_spill] sm:$0xff] }
 0x40a   :  { %21065 = vst [vmem:[#allocation212_spill] sm:$0xff] %v17587_v61  ;;  %13129 = vmatmul.mubr.msk.bf16.vlgmr.msra.gmra.mrb[4].mxu1 %vm135_vm0, %v4812_v22  ;;  %5671 = vperm.xlu0 %14477, %v11946_v37   ;;  %v21069_v37 = vld [vmem:[#allocation103_spill] sm:$0xff] }
 0x40b   :  { %13132 = vmatprep.mubr.msk.bf16.mxu1 %vm135_vm0, %v4813_v12  ;;  %13161 = vmatpush3.bf16.msra.mxu1 %v17357_v19  ;;  %v17607_v12 = vld [vmem:[%s20173_s3 + $0x70] sm:$0xff]   ;;  %v4785_v9 = vmul.f32 %v17554_v55, %v21069_v37  ;;  %v21071_v19 = vld [vmem:[#allocation109_spill] sm:$0xff] }
 0x40c   :  { %v17596_v43 = vpop.permute.xlu1 %4666  ;;  %13162 = vmatprep.subr.bf16.mxu1 %v14497_v56  ;;  %v4787_v31 = vmul.f32 %v17572_v24, %v21071_v19 }
 0x40d   :  { %21067 = vst [vmem:[#allocation213_spill] sm:$0xff] %v17596_v43  ;;  %v4788_v22 = vmul.f32 %v17596_v43, %v21068_v46  ;;  %5666 = vperm.xlu1 %14476, %v11945_v5   ;;  %v17611_v49 = vpop.permute.xlu0 %4681  ;;  %v4814_v5 = vpack.c.bf16 %v4786_v7, %v4785_v9  ;;  %v11950_v46 = vld [vmem:[%s20729_s1 + $0x770] sm:$0xff] }
 0x40e   :  { %21070 = vst [vmem:[#allocation214_spill] sm:$0xff] %v17611_v49  ;;  %5681 = vperm.xlu0 %14477, %v11948_v23   ;;  %v11949_v23 = vld [vmem:[%s20729_s1 + $0x768] sm:$0xff]  ;;  %v21074_v9 = vld [vmem:[#allocation112_spill] sm:$0xff] }
 0x40f   :  { %13163 = vmatpush3.bf16.msra.mxu1 %v14497_v56  ;;  %v4815_v13 = vpack.c.bf16 %v4788_v22, %v4787_v31  ;;  %v11952_v56 = vld [vmem:[%s20729_s1 + $0x780] sm:$0xff]  ;;  %v21077_v22 = vld [vmem:[#allocation111_spill] sm:$0xff] }
 0x410   :  { %v17618_v43 = vpop.permute.xlu1 %4676  ;;  %13196 = vmatprep.subr.bf16.mxu1 %v17607_v12 }
 0x411   :  { %21072 = vst [vmem:[#allocation215_spill] sm:$0xff] %v17618_v43  ;;  %5676 = vperm.xlu1 %14476, %v11947_v30   ;;  %v17624_v55 = vpop.permute.xlu0 %4691  ;;  %v4790_v7 = vmul.f32 %v17618_v43, %v21074_v9  ;;  %v21076_v30 = vld [vmem:[#allocation115_spill] sm:$0xff] }
 0x412   :  { %21073 = vst [vmem:[#allocation216_spill] sm:$0xff] %v17624_v55  ;;  %13133 = vmatmul.mubr.msk.bf16.gmra.mrb[8].mxu1 %vm135_vm0, %v4814_v5  ;;  %5691 = vperm.xlu0 %14477, %v11950_v46   ;;  %v4789_v5 = vmul.f32 %v17587_v61, %v21077_v22  ;;  %v21079_v46 = vld [vmem:[#allocation117_spill] sm:$0xff] }
 0x413   :  { %13136 = vmatprep.mubr.msk.bf16.mxu1 %vm135_vm0, %v4815_v13  ;;  %v11951_v13 = vld [vmem:[%s20729_s1 + $0x778] sm:$0xff]  ;;  %v4791_v43 = vmul.f32 %v17611_v49, %v21079_v46 }
 0x414   :  { %v17633_v24 = vpop.permute.xlu1 %4686  ;;  %v4816_v9 = vpack.c.bf16 %v4790_v7, %v4789_v5  ;;  %v21082_v7 = vld [vmem:[#allocation120_spill] sm:$0xff] }
 0x415   :  { %21075 = vst [vmem:[#allocation217_spill] sm:$0xff] %v17633_v24  ;;  %v4792_v31 = vmul.f32 %v17633_v24, %v21076_v30  ;;  %5686 = vperm.xlu1 %14476, %v11949_v23   ;;  %v17642_v19 = vpop.permute.xlu0 %4701  ;;  %v11954_v23 = vld [vmem:[%s20729_s1 + $0x790] sm:$0xff]  ;;  %v11953_v30 = vld [vmem:[%s20729_s1 + $0x788] sm:$0xff] }
 0x416   :  { %21078 = vst [vmem:[#allocation218_spill] sm:$0xff] %v17642_v19  ;;  %5701 = vperm.xlu0 %14477, %v11952_v56  }
 0x417   :  { %v4817_v24 = vpack.c.bf16 %v4792_v31, %v4791_v43  ;;  %v11956_v43 = vld [vmem:[%s20729_s1 + $0x7a0] sm:$0xff]  ;;  %v21084_v31 = vld [vmem:[#allocation123_spill] sm:$0xff] }
 0x418   :  { %v17649_v37 = vpop.permute.xlu1 %4696 }
 0x419   :  { %21080 = vst [vmem:[#allocation219_spill] sm:$0xff] %v17649_v37  ;;  %5696 = vperm.xlu1 %14476, %v11951_v13   ;;  %v17654_v61 = vpop.permute.xlu0 %4711  ;;  %v4794_v56 = vmul.f32 %v17649_v37, %v21082_v7 }
 0x41a   :  { %21081 = vst [vmem:[#allocation220_spill] sm:$0xff] %v17654_v61  ;;  %13137 = vmatmul.mubr.msk.bf16.gmra.mrb[12].mxu1 %vm135_vm0, %v4816_v9  ;;  %5711 = vperm.xlu0 %14477, %v11954_v23   ;;  %v21085_v9 = vld [vmem:[#allocation119_spill] sm:$0xff]  ;;  %v21087_v23 = vld [vmem:[#allocation125_spill] sm:$0xff] }
 0x41b   :  { %13140 = vmatprep.mubr.msk.bf16.mxu1 %vm135_vm0, %v4817_v24  ;;  %v4793_v49 = vmul.f32 %v17624_v55, %v21085_v9  ;;  %v11955_v24 = vld [vmem:[%s20729_s1 + $0x798] sm:$0xff]  ;;  %v4795_v37 = vmul.f32 %v17642_v19, %v21087_v23 }
 0x41c   :  { %v17663_v5 = vpop.permute.xlu1 %4706 }
 0x41d   :  { %21083 = vst [vmem:[#allocation221_spill] sm:$0xff] %v17663_v5  ;;  %v4796_v13 = vmul.f32 %v17663_v5, %v21084_v31  ;;  %5706 = vperm.xlu1 %14476, %v11953_v30   ;;  %v17672_v46 = vpop.permute.xlu0 %4721  ;;  %v4818_v7 = vpack.c.bf16 %v4794_v56, %v4793_v49  ;;  %v11958_v30 = vld [vmem:[%s20729_s1 + $0x7b0] sm:$0xff]  ;;  %v11957_v31 = vld [vmem:[%s20729_s1 + $0x7a8] sm:$0xff] }
 0x41e   :  { %21086 = vst [vmem:[#allocation222_spill] sm:$0xff] %v17672_v46  ;;  %5721 = vperm.xlu0 %14477, %v11956_v43   ;;  %v21090_v49 = vld [vmem:[#allocation128_spill] sm:$0xff] }
 0x41f   :  { %v4819_v5 = vpack.c.bf16 %v4796_v13, %v4795_v37  ;;  %v11960_v37 = vld [vmem:[%s20729_s1 + $0x7c0] sm:$0xff] }
 0x420   :  { %v17679_v22 = vpop.permute.xlu1 %4716  ;;  %v21092_v13 = vld [vmem:[#allocation130_spill] sm:$0xff] }
 0x421   :  { %21088 = vst [vmem:[#allocation223_spill] sm:$0xff] %v17679_v22  ;;  %5716 = vperm.xlu1 %14476, %v11955_v24   ;;  %v17684_v55 = vpop.permute.xlu0 %4731  ;;  %v4798_v56 = vmul.f32 %v17679_v22, %v21090_v49 }
 0x422   :  { %21089 = vst [vmem:[#allocation224_spill] sm:$0xff] %v17684_v55  ;;  %13141 = vmatmul.mubr.msk.bf16.gmra.mrb[16].mxu1 %vm135_vm0, %v4818_v7  ;;  %5731 = vperm.xlu0 %14477, %v11958_v30   ;;  %v21093_v7 = vld [vmem:[#allocation127_spill] sm:$0xff]  ;;  %v21095_v30 = vld [vmem:[#allocation132_spill] sm:$0xff] }
 0x423   :  { %13144 = vmatprep.mubr.msk.bf16.mxu1 %vm135_vm0, %v4819_v5  ;;  %v4797_v19 = vmul.f32 %v17654_v61, %v21093_v7  ;;  %v11959_v5 = vld [vmem:[%s20729_s1 + $0x7b8] sm:$0xff]  ;;  %v4799_v22 = vmul.f32 %v17672_v46, %v21095_v30 }
 0x424   :  { %v17693_v43 = vpop.permute.xlu1 %4726 }
 0x425   :  { %21091 = vst [vmem:[#allocation225_spill] sm:$0xff] %v17693_v43  ;;  %v4800_v24 = vmul.f32 %v17693_v43, %v21092_v13  ;;  %5726 = vperm.xlu1 %14476, %v11957_v31   ;;  %v17702_v23 = vpop.permute.xlu0 %4741  ;;  %v4820_v49 = vpack.c.bf16 %v4798_v56, %v4797_v19  ;;  %v11962_v31 = vld [vmem:[%s20729_s1 + $0x7d0] sm:$0xff]  ;;  %v11961_v13 = vld [vmem:[%s20729_s1 + $0x7c8] sm:$0xff] }
 0x426   :  { %21094 = vst [vmem:[#allocation127_spill] sm:$0xff] %v17702_v23  ;;  %5741 = vperm.xlu0 %14477, %v11960_v37  }
 0x427   :  { %v4821_v43 = vpack.c.bf16 %v4800_v24, %v4799_v22  ;;  %v11964_v22 = vld [vmem:[%s20729_s1 + $0x7e0] sm:$0xff] }
 0x428   :  { %v17709_v9 = vpop.permute.xlu1 %4736 }
 0x429   :  { %21096 = vst [vmem:[#allocation132_spill] sm:$0xff] %v17709_v9  ;;  %5736 = vperm.xlu1 %14476, %v11959_v5   ;;  %v17714_v61 = vpop.permute.xlu0 %4751  ;;  %v4802_v19 = vmul.f32 %v17709_v9, %v16884_v52  ;;  %v21100_v5 = vld [vmem:[#allocation136_spill] sm:$0xff] }
 0x42a   :  { %21097 = vst [vmem:[#allocation226_spill] sm:$0xff] %v17714_v61  ;;  %13145 = vmatmul.mubr.msk.bf16.gmra.mrb[20].mxu1 %vm135_vm0, %v4820_v49  ;;  %5751 = vperm.xlu0 %14477, %v11962_v31   ;;  %v4801_v49 = vmul.f32 %v17684_v55, %v16887_v3  ;;  %v4803_v31 = vmul.f32 %v17702_v23, %v21100_v5 }
 0x42b   :  { %13148 = vmatprep.mubr.msk.bf16.mxu1 %vm135_vm0, %v4821_v43  ;;  %v11963_v43 = vld [vmem:[%s20729_s1 + $0x7d8] sm:$0xff] }
 0x42c   :  { %v17723_v56 = vpop.permute.xlu1 %4746  ;;  %v4822_v9 = vpack.c.bf16 %v4802_v19, %v4801_v49 }
 0x42d   :  { %21098 = vst [vmem:[#allocation227_spill] sm:$0xff] %v17723_v56  ;;  %v4804_v37 = vmul.f32 %v17723_v56, %v16919_v33  ;;  %5746 = vperm.xlu1 %14476, %v11961_v13   ;;  %v17732_v24 = vpop.permute.xlu0 %4761  ;;  %v11966_v13 = vld [vmem:[%s20729_s1 + $0x7f0] sm:$0xff]  ;;  %v11965_v33 = vld [vmem:[%s20729_s1 + $0x7e8] sm:$0xff] }
 0x42e   :  { %21099 = vst [vmem:[#allocation228_spill] sm:$0xff] %v17732_v24  ;;  %5761 = vperm.xlu0 %14477, %v11964_v22  }
 0x42f   :  { %v4823_v56 = vpack.c.bf16 %v4804_v37, %v4803_v31  ;;  %v11990_v37 = vld [vmem:[%s20729_s1 + $0x800] sm:$0xff] }
 0x430   :  { %v17739_v46 = vpop.permute.xlu1 %4756 }
 0x431   :  { %21101 = vst [vmem:[#allocation229_spill] sm:$0xff] %v17739_v46  ;;  %5756 = vperm.xlu1 %14476, %v11963_v43   ;;  %v17744_v55 = vpop.permute.xlu0 %4771  ;;  %v4806_v19 = vmul.f32 %v17739_v46, %v16948_v60  ;;  %v4581_v46 = vrot.slane %v17263_v42, 1 }
 0x432   :  { %21102 = vst [vmem:[#allocation230_spill] sm:$0xff] %v17744_v55  ;;  %13149 = vmatmul.mubr.msk.bf16.gmra.mrb[24].mxu1 %vm135_vm0, %v4822_v9  ;;  %5771 = vperm.xlu0 %14477, %v11966_v13   ;;  %v21104_v9 = vld [vmem:[#allocation140_spill] sm:$0xff]  ;;  %v4807_v13 = vmul.f32 %v17732_v24, %v16993_v45  ;;  %v11991_v24 = vld [vmem:[%s20729_s1 + $0x808] sm:$0xff] }
 0x433   :  { %13152 = vmatprep.mubr.msk.bf16.mxu1 %vm135_vm0, %v4823_v56  ;;  %v4805_v43 = vmul.f32 %v17714_v61, %v21104_v9  ;;  %v11967_v56 = vld [vmem:[%s20729_s1 + $0x7f8] sm:$0xff]  ;;  %v17782_v45 = vsel %vm2983_vm3, %v4581_v46, 0.0 }
 0x434   :  { %v17753_v22 = vpop.permute.xlu1 %4766  ;;  %21108 = vst [vmem:[#allocation234_spill] sm:$0xff] %v17782_v45 }
 0x435   :  { %21103 = vst [vmem:[#allocation231_spill] sm:$0xff] %v17753_v22  ;;  %v4808_v49 = vmul.f32 %v17753_v22, %v17000_v20  ;;  %5766 = vperm.xlu1 %14476, %v11965_v33   ;;  %v17762_v31 = vpop.permute.xlu0 %5122  ;;  %v4824_v23 = vpack.c.bf16 %v4806_v19, %v4805_v43  ;;  %v11992_v33 = vld [vmem:[%s20729_s1 + $0x810] sm:$0xff] }
 0x436   :  { %21105 = vst [vmem:[#allocation140_spill] sm:$0xff] %v17762_v31  ;;  %6120 = vperm.xlu0 %14477, %v11990_v37  }
 0x437   :  { %v4825_v61 = vpack.c.bf16 %v4808_v49, %v4807_v13  ;;  %v11994_v49 = vld [vmem:[%s20729_s1 + $0x820] sm:$0xff] }
 0x438   :  { %v17770_v5 = vpop.permute.xlu1 %4776 }
 0x439   :  { %21106 = vst [vmem:[#allocation232_spill] sm:$0xff] %v17770_v5  ;;  %5776 = vperm.xlu1 %14476, %v11967_v56   ;;  %v17775_v22 = vpop.permute.xlu0 %5132  ;;  %v4810_v19 = vmul.f32 %v17770_v5, %v17782_v45  ;;  %v5280_v5 = vmul.f32 %v17762_v31, %v16266_v10 }
 0x43a   :  { %21107 = vst [vmem:[#allocation233_spill] sm:$0xff] %v17775_v22  ;;  %13153 = vmatmul.mubr.msk.bf16.gmra.mrb[28].mxu1 %vm135_vm0, %v4824_v23  ;;  %6130 = vperm.xlu0 %14477, %v11992_v33   ;;  %v21110_v23 = vrot.slane %v16979_v53, 1  ;;  %v11993_v33 = vld [vmem:[%s20729_s1 + $0x818] sm:$0xff] }
 0x43b   :  { %13156 = vmatprep.mubr.msk.bf16.mxu1 %vm135_vm0, %v4825_v61 }
 0x43c   :  { %v17787_v37 = vpop.permute.xlu1 %5127  ;;  %v17795_v43 = vsel %vm2983_vm3, %v21110_v23, %v4581_v46 }
 0x43d   :  { %21109 = vst [vmem:[#allocation235_spill] sm:$0xff] %v17787_v37  ;;  %v5281_v56 = vmul.f32 %v17787_v37, %v16269_v50  ;;  %6125 = vperm.xlu1 %14476, %v11991_v24   ;;  %v4809_v61 = vmul.f32 %v17744_v55, %v17795_v43  ;;  %v17801_v13 = vpop.permute.xlu0 %5142  ;;  %v11996_v50 = vld [vmem:[%s20729_s1 + $0x830] sm:$0xff]  ;;  %v11995_v37 = vld [vmem:[%s20729_s1 + $0x828] sm:$0xff] }
 0x43e   :  { %21111 = vst [vmem:[#allocation236_spill] sm:$0xff] %v17801_v13  ;;  %6140 = vperm.xlu0 %14477, %v11994_v49   ;;  %v21115_v49 = vld [vmem:[#allocation49_spill] sm:$0xff] }
 0x43f   :  { %v4826_v45 = vpack.c.bf16 %v4810_v19, %v4809_v61  ;;  %v5312_v24 = vpack.c.bf16 %v5281_v56, %v5280_v5  ;;  %v11998_v5 = vld [vmem:[%s20729_s1 + $0x840] sm:$0xff] }
 0x440   :  { %v17808_v46 = vpop.permute.xlu1 %5137 }
 0x441   :  { %21112 = vst [vmem:[#allocation237_spill] sm:$0xff] %v17808_v46  ;;  %6135 = vperm.xlu1 %14476, %v11993_v33   ;;  %v17813_v23 = vpop.permute.xlu0 %5152  ;;  %v5283_v10 = vmul.f32 %v17808_v46, %v16294_v32  ;;  %v21118_v32 = vld [vmem:[#allocation45_spill] sm:$0xff] }
 0x442   :  { %21113 = vst [vmem:[#allocation238_spill] sm:$0xff] %v17813_v23  ;;  %13157 = vmatmul.mubr.msk.bf16.gmra.mrb[32].mxu1 %vm135_vm0, %v4826_v45  ;;  %6150 = vperm.xlu0 %14477, %v11996_v50   ;;  %v21116_v45 = vld [vmem:[#allocation38_spill] sm:$0xff]  ;;  %v11997_v50 = vld [vmem:[%s20729_s1 + $0x838] sm:$0xff] }
 0x443   :  { %13164 = vmatprep.mubr.msk.bf16.mxu1 %vm135_vm0, %v5312_v24  ;;  %v5282_v61 = vmul.f32 %v17775_v22, %v21116_v45  ;;  %v5284_v24 = vmul.f32 %v17801_v13, %v21118_v32  ;;  %v14499_v45 = vld [vmem:[%s20173_s3 + $0x78] sm:$0xff]  }
 0x444   :  { %v17822_v19 = vpop.permute.xlu1 %5147  ;;  %v21123_v32 = vld [vmem:[#allocation61_spill] sm:$0xff] }
 0x445   :  { %21114 = vst [vmem:[#allocation239_spill] sm:$0xff] %v17822_v19  ;;  %v5285_v56 = vmul.f32 %v17822_v19, %v21115_v49  ;;  %6145 = vperm.xlu1 %14476, %v11995_v37   ;;  %v17831_v33 = vpop.permute.xlu0 %5162  ;;  %v5313_v46 = vpack.c.bf16 %v5283_v10, %v5282_v61  ;;  %v12000_v37 = vld [vmem:[%s20729_s1 + $0x850] sm:$0xff]  ;;  %v11999_v10 = vld [vmem:[%s20729_s1 + $0x848] sm:$0xff] }
 0x446   :  { %21117 = vst [vmem:[#allocation49_spill] sm:$0xff] %v17831_v33  ;;  %6160 = vperm.xlu0 %14477, %v11998_v5   ;;  %v21121_v5 = vld [vmem:[#allocation3_spill] sm:$0xff] }
 0x447   :  { %v5314_v49 = vpack.c.bf16 %v5285_v56, %v5284_v24  ;;  %v17866_v24 = vld [vmem:[%s20173_s3 + $0x80] sm:$0xff]  }
 0x448   :  { %v17838_v31 = vpop.permute.xlu1 %5157 }
 0x449   :  { %21119 = vst [vmem:[#allocation38_spill] sm:$0xff] %v17838_v31  ;;  %6155 = vperm.xlu1 %14476, %v11997_v50   ;;  %v17846_v22 = vpop.permute.xlu0 %5172  ;;  %v5287_v61 = vmul.f32 %v17838_v31, %v21121_v5  ;;  %v12002_v50 = vld [vmem:[%s20729_s1 + $0x860] sm:$0xff]  ;;  %v12001_v31 = vld [vmem:[%s20729_s1 + $0x858] sm:$0xff] }
 0x44a   :  { %21120 = vst [vmem:[#allocation45_spill] sm:$0xff] %v17846_v22  ;;  %13165 = vmatmul.mubr.msk.bf16.vlgmr.msra.gmra.mrb[4].mxu1 %vm135_vm0, %v5313_v46  ;;  %6170 = vperm.xlu0 %14477, %v12000_v37   ;;  %v21124_v37 = vld [vmem:[#allocation58_spill] sm:$0xff] }
 0x44b   :  { %13168 = vmatprep.mubr.msk.bf16.mxu1 %vm135_vm0, %v5314_v49  ;;  %13197 = vmatpush3.bf16.msra.mxu1 %v17607_v12  ;;  %v5286_v49 = vmul.f32 %v17813_v23, %v21124_v37  ;;  %v21126_v12 = vld [vmem:[#allocation60_spill] sm:$0xff] }
 0x44c   :  { %v17855_v56 = vpop.permute.xlu1 %5167  ;;  %13198 = vmatprep.subr.bf16.mxu1 %v14499_v45  ;;  %v5288_v19 = vmul.f32 %v17831_v33, %v21126_v12 }
 0x44d   :  { %21122 = vst [vmem:[#allocation3_spill] sm:$0xff] %v17855_v56  ;;  %v5289_v46 = vmul.f32 %v17855_v56, %v21123_v32  ;;  %6165 = vperm.xlu1 %14476, %v11999_v10   ;;  %v17870_v5 = vpop.permute.xlu0 %5182  ;;  %v5315_v10 = vpack.c.bf16 %v5287_v61, %v5286_v49  ;;  %v12004_v56 = vld [vmem:[%s20729_s1 + $0x870] sm:$0xff]  ;;  %v21129_v61 = vld [vmem:[#allocation17_spill] sm:$0xff] }
 0x44e   :  { %21125 = vst [vmem:[#allocation61_spill] sm:$0xff] %v17870_v5  ;;  %6180 = vperm.xlu0 %14477, %v12002_v50   ;;  %v12003_v50 = vld [vmem:[%s20729_s1 + $0x868] sm:$0xff] }
 0x44f   :  { %13199 = vmatpush3.bf16.msra.mxu1 %v14499_v45  ;;  %v5316_v13 = vpack.c.bf16 %v5289_v46, %v5288_v19  ;;  %v21131_v19 = vld [vmem:[#allocation67_spill] sm:$0xff]  ;;  %v21132_v46 = vld [vmem:[#allocation6_spill] sm:$0xff] }
 0x450   :  { %v17877_v32 = vpop.permute.xlu1 %5177  ;;  %13232 = vmatprep.subr.bf16.mxu1 %v17866_v24 }
 0x451   :  { %21127 = vst [vmem:[#allocation58_spill] sm:$0xff] %v17877_v32  ;;  %6175 = vperm.xlu1 %14476, %v12001_v31   ;;  %v17883_v37 = vpop.permute.xlu0 %5192  ;;  %v5291_v49 = vmul.f32 %v17877_v32, %v21129_v61  ;;  %v12006_v31 = vld [vmem:[%s20729_s1 + $0x880] sm:$0xff] }
 0x452   :  { %21128 = vst [vmem:[#allocation60_spill] sm:$0xff] %v17883_v37  ;;  %13169 = vmatmul.mubr.msk.bf16.gmra.mrb[8].mxu1 %vm135_vm0, %v5315_v10  ;;  %6190 = vperm.xlu0 %14477, %v12004_v56   ;;  %v5290_v10 = vmul.f32 %v17846_v22, %v21132_v46  ;;  %v21134_v56 = vld [vmem:[#allocation66_spill] sm:$0xff]  ;;  %v12007_v22 = vld [vmem:[%s20729_s1 + $0x888] sm:$0xff] }
 0x453   :  { %13172 = vmatprep.mubr.msk.bf16.mxu1 %vm135_vm0, %v5316_v13  ;;  %v12005_v13 = vld [vmem:[%s20729_s1 + $0x878] sm:$0xff]  ;;  %v5292_v61 = vmul.f32 %v17870_v5, %v21134_v56 }
 0x454   :  { %v17892_v12 = vpop.permute.xlu1 %5187  ;;  %v5317_v32 = vpack.c.bf16 %v5291_v49, %v5290_v10  ;;  %v21137_v49 = vld [vmem:[#allocation16_spill] sm:$0xff] }
 0x455   :  { %21130 = vst [vmem:[#allocation17_spill] sm:$0xff] %v17892_v12  ;;  %v5293_v45 = vmul.f32 %v17892_v12, %v21131_v19  ;;  %6185 = vperm.xlu1 %14476, %v12003_v50   ;;  %v17901_v23 = vpop.permute.xlu0 %5202  ;;  %v12008_v50 = vld [vmem:[%s20729_s1 + $0x890] sm:$0xff] }
 0x456   :  { %21133 = vst [vmem:[#allocation67_spill] sm:$0xff] %v17901_v23  ;;  %6200 = vperm.xlu0 %14477, %v12006_v31  }
 0x457   :  { %v5318_v19 = vpack.c.bf16 %v5293_v45, %v5292_v61  ;;  %v12010_v45 = vld [vmem:[%s20729_s1 + $0x8a0] sm:$0xff] }
 0x458   :  { %v17908_v33 = vpop.permute.xlu1 %5197 }
 0x459   :  { %21135 = vst [vmem:[#allocation6_spill] sm:$0xff] %v17908_v33  ;;  %6195 = vperm.xlu1 %14476, %v12005_v13   ;;  %v17913_v46 = vpop.permute.xlu0 %5212  ;;  %v5295_v31 = vmul.f32 %v17908_v33, %v21137_v49  ;;  %v21139_v13 = vld [vmem:[#allocation73_spill] sm:$0xff] }
 0x45a   :  { %21136 = vst [vmem:[#allocation66_spill] sm:$0xff] %v17913_v46  ;;  %13173 = vmatmul.mubr.msk.bf16.gmra.mrb[12].mxu1 %vm135_vm0, %v5317_v32  ;;  %6210 = vperm.xlu0 %14477, %v12008_v50   ;;  %v21140_v32 = vld [vmem:[#allocation70_spill] sm:$0xff]  ;;  %v12009_v50 = vld [vmem:[%s20729_s1 + $0x898] sm:$0xff] }
 0x45b   :  { %13176 = vmatprep.mubr.msk.bf16.mxu1 %vm135_vm0, %v5318_v19  ;;  %v5294_v61 = vmul.f32 %v17883_v37, %v21140_v32  ;;  %v5296_v19 = vmul.f32 %v17901_v23, %v21000_v41  ;;  %v12011_v37 = vld [vmem:[%s20729_s1 + $0x8a8] sm:$0xff] }
 0x45c   :  { %v17922_v10 = vpop.permute.xlu1 %5207  ;;  %v21144_v41 = vld [vmem:[#allocation7_spill] sm:$0xff] }
 0x45d   :  { %21138 = vst [vmem:[#allocation16_spill] sm:$0xff] %v17922_v10  ;;  %v5297_v56 = vmul.f32 %v17922_v10, %v21139_v13  ;;  %6205 = vperm.xlu1 %14476, %v12007_v22   ;;  %v17931_v12 = vpop.permute.xlu0 %5222  ;;  %v5319_v49 = vpack.c.bf16 %v5295_v31, %v5294_v61  ;;  %v12012_v22 = vld [vmem:[%s20729_s1 + $0x8b0] sm:$0xff]  ;;  %v21146_v61 = vld [vmem:[#allocation79_spill] sm:$0xff] }
 0x45e   :  { %21141 = vst [vmem:[#allocation73_spill] sm:$0xff] %v17931_v12  ;;  %6220 = vperm.xlu0 %14477, %v12010_v45  }
 0x45f   :  { %v5320_v13 = vpack.c.bf16 %v5297_v56, %v5296_v19  ;;  %v12014_v56 = vld [vmem:[%s20729_s1 + $0x8c0] sm:$0xff]  ;;  %v21147_v19 = vld [vmem:[#allocation76_spill] sm:$0xff] }
 0x460   :  { %v17938_v33 = vpop.permute.xlu1 %5217 }
 0x461   :  { %21142 = vst [vmem:[#allocation70_spill] sm:$0xff] %v17938_v33  ;;  %6215 = vperm.xlu1 %14476, %v12009_v50   ;;  %v17943_v32 = vpop.permute.xlu0 %5232  ;;  %v5299_v31 = vmul.f32 %v17938_v33, %v21144_v41 }
 0x462   :  { %21143 = vst [vmem:[#allocation240_spill] sm:$0xff] %v17943_v32  ;;  %13177 = vmatmul.mubr.msk.bf16.gmra.mrb[16].mxu1 %vm135_vm0, %v5319_v49  ;;  %6230 = vperm.xlu0 %14477, %v12012_v22   ;;  %v5298_v49 = vmul.f32 %v17913_v46, %v21147_v19  ;;  %v12013_v22 = vld [vmem:[%s20729_s1 + $0x8b8] sm:$0xff]  ;;  %v12015_v46 = vld [vmem:[%s20729_s1 + $0x8c8] sm:$0xff] }
 0x463   :  { %13180 = vmatprep.mubr.msk.bf16.mxu1 %vm135_vm0, %v5320_v13  ;;  %v21149_v13 = vld [vmem:[#allocation78_spill] sm:$0xff] }
 0x464   :  { %v17952_v45 = vpop.permute.xlu1 %5227  ;;  %v5300_v41 = vmul.f32 %v17931_v12, %v21149_v13  ;;  %v5321_v33 = vpack.c.bf16 %v5299_v31, %v5298_v49 }
 0x465   :  { %21145 = vst [vmem:[#allocation7_spill] sm:$0xff] %v17952_v45  ;;  %v5301_v50 = vmul.f32 %v17952_v45, %v21146_v61  ;;  %6225 = vperm.xlu1 %14476, %v12011_v37   ;;  %v17961_v10 = vpop.permute.xlu0 %5242  ;;  %v12016_v37 = vld [vmem:[%s20729_s1 + $0x8d0] sm:$0xff] }
 0x466   :  { %21148 = vst [vmem:[#allocation79_spill] sm:$0xff] %v17961_v10  ;;  %6240 = vperm.xlu0 %14477, %v12014_v56  }
 0x467   :  { %v5322_v61 = vpack.c.bf16 %v5301_v50, %v5300_v41  ;;  %v12018_v50 = vld [vmem:[%s20729_s1 + $0x8e0] sm:$0xff]  ;;  %v12017_v41 = vld [vmem:[%s20729_s1 + $0x8d8] sm:$0xff] }
 0x468   :  { %v17968_v23 = vpop.permute.xlu1 %5237 }
 0x469   :  { %21150 = vst [vmem:[#allocation76_spill] sm:$0xff] %v17968_v23  ;;  %6235 = vperm.xlu1 %14476, %v12013_v22   ;;  %v17973_v19 = vpop.permute.xlu0 %5252  ;;  %v5303_v31 = vmul.f32 %v17968_v23, %v21008_v16  ;;  %v5304_v16 = vmul.f32 %v17961_v10, %v16553_v15 }
 0x46a   :  { %21151 = vst [vmem:[#allocation78_spill] sm:$0xff] %v17973_v19  ;;  %13181 = vmatmul.mubr.msk.bf16.gmra.mrb[20].mxu1 %vm135_vm0, %v5321_v33  ;;  %6250 = vperm.xlu0 %14477, %v12016_v37   ;;  %v21153_v33 = vld [vmem:[#allocation83_spill] sm:$0xff] }
 0x46b   :  { %13184 = vmatprep.mubr.msk.bf16.mxu1 %vm135_vm0, %v5322_v61  ;;  %v5302_v22 = vmul.f32 %v17943_v32, %v21153_v33  ;;  %v12019_v32 = vld [vmem:[%s20729_s1 + $0x8e8] sm:$0xff] }
 0x46c   :  { %v17982_v56 = vpop.permute.xlu1 %5247 }
 0x46d   :  { %21152 = vst [vmem:[#allocation241_spill] sm:$0xff] %v17982_v56  ;;  %v5305_v49 = vmul.f32 %v17982_v56, %v21010_v47  ;;  %6245 = vperm.xlu1 %14476, %v12015_v46   ;;  %v17991_v13 = vpop.permute.xlu0 %5262  ;;  %v5323_v37 = vpack.c.bf16 %v5303_v31, %v5302_v22  ;;  %v12020_v47 = vld [vmem:[%s20729_s1 + $0x8f0] sm:$0xff] }
 0x46e   :  { %6260 = vperm.xlu0 %14477, %v12018_v50  }
 0x46f   :  { %v5324_v46 = vpack.c.bf16 %v5305_v49, %v5304_v16  ;;  %v21156_v49 = vld [vmem:[#allocation89_spill] sm:$0xff] }
 0x470   :  { %v17998_v61 = vpop.permute.xlu1 %5257  ;;  %v5306_v22 = vmul.f32 %v17973_v19, %v21156_v49  ;;  %v12021_v16 = vld [vmem:[%s20729_s1 + $0x8f8] sm:$0xff]  ;;  %v21161_v49 = vrot.slane %v17263_v42, 7 }
 0x471   :  { %21154 = vst [vmem:[#allocation83_spill] sm:$0xff] %v17998_v61  ;;  %6255 = vperm.xlu1 %14476, %v12017_v41   ;;  %v18003_v33 = vpop.permute.xlu0 %5272  ;;  %v5307_v15 = vmul.f32 %v17998_v61, %v21014_v59 }
 0x472   :  { %21155 = vst [vmem:[#allocation242_spill] sm:$0xff] %v18003_v33  ;;  %13185 = vmatmul.mubr.msk.bf16.gmra.mrb[24].mxu1 %vm135_vm0, %v5323_v37  ;;  %6270 = vperm.xlu0 %14477, %v12020_v47   ;;  %v5308_v37 = vmul.f32 %v17991_v13, %v17279_v18  ;;  %v5086_v19 = vsel %vm1959_vm2, %v21161_v49, 0.0 }
 0x473   :  { %13188 = vmatprep.mubr.msk.bf16.mxu1 %vm135_vm0, %v5324_v46  ;;  %v5325_v47 = vpack.c.bf16 %v5307_v15, %v5306_v22  ;;  %v5310_v15 = vmul.f32 %v18003_v33, %v5086_v19  ;;  %v21280_v33 = vld [vmem:[#allocation37_spill] sm:$0xff] }
 0x474   :  { %v18012_v31 = vpop.permute.xlu1 %5267 }
 0x475   :  { %v5309_v50 = vmul.f32 %v18012_v31, %v17286_v17  ;;  %6265 = vperm.xlu1 %14476, %v12019_v32   ;;  %v18018_v41 = vpop.permute.xlu0 %5621 }
 0x476   :  { %21157 = vst [vmem:[#allocation89_spill] sm:$0xff] %v18018_v41  ;;  %v5779_v22 = vmul.f32 %v18018_v41, %v15364_v39  ;;  %v14503_v39 = vld [vmem:[%s20174_s5 + $0x28] sm:$0xff]   ;;  %v21278_v41 = vld [vmem:[#allocation41_spill] sm:$0xff] }
 0x477   :  { %v5326_v46 = vpack.c.bf16 %v5309_v50, %v5308_v37 }
 0x478   :  { %v5278_v59 = vpop.permute.xlu1 %5277 }
 0x479   :  { %6275 = vperm.xlu1 %14476, %v12021_v16   ;;  %v18025_v61 = vpop.permute.xlu0 %5631  ;;  %v18029_v17 = vmul.f32 0.0, %v5278_v59 }
 0x47a   :  { %21158 = vst [vmem:[#allocation243_spill] sm:$0xff] %v18025_v61  ;;  %13189 = vmatmul.mubr.msk.bf16.gmra.mrb[28].mxu1 %vm135_vm0, %v5325_v47 }
 0x47b   :  { %13192 = vmatprep.mubr.msk.bf16.mxu1 %vm135_vm0, %v5326_v46  ;;  %21159 = vst [vmem:[#allocation244_spill] sm:$0xff] %v18029_v17  ;;  %v5327_v16 = vpack.c.bf16 %v18029_v17, %v5310_v15 }
 0x47c   :  { %v18031_v32 = vpop.permute.xlu1 %5626 }
 0x47d   :  { %21160 = vst [vmem:[#allocation245_spill] sm:$0xff] %v18031_v32  ;;  %v5780_v18 = vmul.f32 %v18031_v32, %v15371_v34  ;;  %v18039_v50 = vpop.permute.xlu0 %5641  ;;  %v14502_v34 = vld [vmem:[%s20174_s5 + $0x20] sm:$0xff]  }
 0x47e   :  { %21162 = vst [vmem:[#allocation246_spill] sm:$0xff] %v18039_v50  ;;  %13268 = vmatprep.subr.bf16.mxu0 %v14502_v34 }
 0x47f   :  { %v5811_v47 = vpack.c.bf16 %v5780_v18, %v5779_v22  ;;  %v5781_v18 = vmul.f32 %v18025_v61, %v21027_v14  ;;  %v14501_v22 = vld [vmem:[%s20173_s3 + $0x88] sm:$0xff]   ;;  %13269 = vmatpush3.bf16.msra.mxu0 %v14502_v34 }
 0x480   :  { %v18044_v37 = vpop.permute.xlu1 %5636  ;;  %13270 = vmatprep.subr.bf16.mxu0 %v14503_v39 }
 0x481   :  { %21163 = vst [vmem:[#allocation247_spill] sm:$0xff] %v18044_v37  ;;  %v18046_v59 = vpop.permute.xlu0 %5651  ;;  %v5782_v19 = vmul.f32 %v18044_v37, %v15424_v51  ;;  %v14504_v51 = vld [vmem:[%s20174_s5 + $0x30] sm:$0xff]  }
 0x482   :  { %21164 = vst [vmem:[#allocation248_spill] sm:$0xff] %v18046_v59  ;;  %13193 = vmatmul.mubr.msk.bf16.gmra.mrb[32].mxu1 %vm135_vm0, %v5327_v16  ;;  %v5783_v16 = vmul.f32 %v18039_v50, %v15470_v40 }
 0x483   :  { %13200 = vmatprep.mubr.msk.bf16.mxu1 %vm135_vm0, %v5811_v47  ;;  %13271 = vmatpush3.bf16.msra.mxu0 %v14503_v39 }
 0x484   :  { %v18055_v46 = vpop.permute.xlu1 %5646  ;;  %13272 = vmatprep.subr.bf16.mxu0 %v14504_v51 }
 0x485   :  { %21165 = vst [vmem:[#allocation249_spill] sm:$0xff] %v18055_v46  ;;  %v5784_v49 = vmul.f32 %v18055_v46, %v15477_v28  ;;  %v18064_v15 = vpop.permute.xlu0 %5661  ;;  %v5812_v28 = vpack.c.bf16 %v5782_v19, %v5781_v18  ;;  %v5785_v19 = vmul.f32 %v18046_v59, %v15523_v63 }
 0x486   :  { %21166 = vst [vmem:[#allocation250_spill] sm:$0xff] %v18064_v15 }
 0x487   :  { %v5813_v46 = vpack.c.bf16 %v5784_v49, %v5783_v16  ;;  %13273 = vmatpush3.bf16.msra.mxu0 %v14504_v51 }
 0x488   :  { %v18074_v47 = vpop.permute.xlu1 %5656 }
 0x489   :  { %21167 = vst [vmem:[#allocation251_spill] sm:$0xff] %v18074_v47  ;;  %v18076_v14 = vpop.permute.xlu0 %5671  ;;  %v5786_v34 = vmul.f32 %v18074_v47, %v15530_v27 }
 0x48a   :  { %21168 = vst [vmem:[#allocation252_spill] sm:$0xff] %v18076_v14  ;;  %13201 = vmatmul.mubr.msk.bf16.vlgmr.msra.gmra.mrb[4].mxu1 %vm135_vm0, %v5812_v28 }
 0x48b   :  { %13204 = vmatprep.mubr.msk.bf16.mxu1 %vm135_vm0, %v5813_v46  ;;  %13233 = vmatpush3.bf16.msra.mxu1 %v17866_v24  ;;  %v5787_v46 = vmul.f32 %v18064_v15, %v15576_v4  ;;  %v5814_v24 = vpack.c.bf16 %v5786_v34, %v5785_v19  ;;  %v5789_v4 = vmul.f32 %v18076_v14, %v15627_v0 }
 0x48c   :  { %v18083_v61 = vpop.permute.xlu1 %5666  ;;  %13234 = vmatprep.subr.bf16.mxu1 %v14501_v22 }
 0x48d   :  { %21169 = vst [vmem:[#allocation253_spill] sm:$0xff] %v18083_v61  ;;  %v5788_v40 = vmul.f32 %v18083_v61, %v15583_v25  ;;  %v18089_v49 = vpop.permute.xlu0 %5681 }
 0x48e   :  { %21170 = vst [vmem:[#allocation254_spill] sm:$0xff] %v18089_v49  ;;  %v5791_v16 = vmul.f32 %v18089_v49, %v20866_v26 }
 0x48f   :  { %13235 = vmatpush3.bf16.msra.mxu1 %v14501_v22  ;;  %v5815_v27 = vpack.c.bf16 %v5788_v40, %v5787_v46 }
 0x490   :  { %v18093_v39 = vpop.permute.xlu1 %5676 }
 0x491   :  { %21171 = vst [vmem:[#allocation255_spill] sm:$0xff] %v18093_v39  ;;  %v18095_v18 = vpop.permute.xlu0 %5691  ;;  %v5790_v63 = vmul.f32 %v18093_v39, %v15634_v48 }
 0x492   :  { %21172 = vst [vmem:[#allocation256_spill] sm:$0xff] %v18095_v18  ;;  %13205 = vmatmul.mubr.msk.bf16.gmra.mrb[8].mxu1 %vm135_vm0, %v5814_v24  ;;  %v5793_v26 = vmul.f32 %v18095_v18, %v20876_v6 }
 0x493   :  { %13208 = vmatprep.mubr.msk.bf16.mxu1 %vm135_vm0, %v5815_v27  ;;  %v5816_v28 = vpack.c.bf16 %v5790_v63, %v5789_v4 }
 0x494   :  { %v18101_v25 = vpop.permute.xlu1 %5686 }
 0x495   :  { %21173 = vst [vmem:[#allocation257_spill] sm:$0xff] %v18101_v25  ;;  %v5792_v51 = vmul.f32 %v18101_v25, %v20869_v2  ;;  %v18107_v22 = vpop.permute.xlu0 %5701 }
 0x496   :  { %21174 = vst [vmem:[#allocation258_spill] sm:$0xff] %v18107_v22  ;;  %v5795_v24 = vmul.f32 %v18107_v22, %v15908_v21 }
 0x497   :  { %v5817_v40 = vpack.c.bf16 %v5792_v51, %v5791_v16 }
 0x498   :  { %v18111_v34 = vpop.permute.xlu1 %5696 }
 0x499   :  { %21175 = vst [vmem:[#allocation259_spill] sm:$0xff] %v18111_v34  ;;  %v18113_v19 = vpop.permute.xlu0 %5711  ;;  %v5794_v48 = vmul.f32 %v18111_v34, %v20875_v62 }
 0x49a   :  { %21176 = vst [vmem:[#allocation260_spill] sm:$0xff] %v18113_v19  ;;  %13209 = vmatmul.mubr.msk.bf16.gmra.mrb[12].mxu1 %vm135_vm0, %v5816_v28  ;;  %v5797_v21 = vmul.f32 %v18113_v19, %v20886_v35 }
 0x49b   :  { %13212 = vmatprep.mubr.msk.bf16.mxu1 %vm135_vm0, %v5817_v40  ;;  %v5818_v27 = vpack.c.bf16 %v5794_v48, %v5793_v26 }
 0x49c   :  { %v18119_v2 = vpop.permute.xlu1 %5706 }
 0x49d   :  { %21177 = vst [vmem:[#allocation261_spill] sm:$0xff] %v18119_v2  ;;  %v5796_v0 = vmul.f32 %v18119_v2, %v15917_v29  ;;  %v18125_v46 = vpop.permute.xlu0 %5721 }
 0x49e   :  { %21178 = vst [vmem:[#allocation262_spill] sm:$0xff] %v18125_v46  ;;  %v5799_v28 = vmul.f32 %v18125_v46, %v16100_v57 }
 0x49f   :  { %v5819_v51 = vpack.c.bf16 %v5796_v0, %v5795_v24 }
 0x4a0   :  { %v18129_v63 = vpop.permute.xlu1 %5716 }
 0x4a1   :  { %21179 = vst [vmem:[#allocation263_spill] sm:$0xff] %v18129_v63  ;;  %v18131_v4 = vpop.permute.xlu0 %5731  ;;  %v5798_v29 = vmul.f32 %v18129_v63, %v20885_v8 }
 0x4a2   :  { %21180 = vst [vmem:[#allocation264_spill] sm:$0xff] %v18131_v4  ;;  %13213 = vmatmul.mubr.msk.bf16.gmra.mrb[16].mxu1 %vm135_vm0, %v5818_v27  ;;  %v5801_v57 = vmul.f32 %v18131_v4, %v16134_v11 }
 0x4a3   :  { %13216 = vmatprep.mubr.msk.bf16.mxu1 %vm135_vm0, %v5819_v51  ;;  %v5820_v40 = vpack.c.bf16 %v5798_v29, %v5797_v21 }
 0x4a4   :  { %v18137_v62 = vpop.permute.xlu1 %5726 }
 0x4a5   :  { %21181 = vst [vmem:[#allocation265_spill] sm:$0xff] %v18137_v62  ;;  %v5800_v6 = vmul.f32 %v18137_v62, %v16110_v36  ;;  %v18143_v16 = vpop.permute.xlu0 %5741 }
 0x4a6   :  { %21182 = vst [vmem:[#allocation266_spill] sm:$0xff] %v18143_v16  ;;  %v5803_v27 = vmul.f32 %v18143_v16, %v16198_v38 }
 0x4a7   :  { %v5821_v0 = vpack.c.bf16 %v5800_v6, %v5799_v28 }
 0x4a8   :  { %v18147_v48 = vpop.permute.xlu1 %5736 }
 0x4a9   :  { %21183 = vst [vmem:[#allocation267_spill] sm:$0xff] %v18147_v48  ;;  %v18149_v26 = vpop.permute.xlu0 %5751  ;;  %v5802_v36 = vmul.f32 %v18147_v48, %v16142_v58 }
 0x4aa   :  { %21184 = vst [vmem:[#allocation268_spill] sm:$0xff] %v18149_v26  ;;  %13217 = vmatmul.mubr.msk.bf16.gmra.mrb[20].mxu1 %vm135_vm0, %v5820_v40  ;;  %v5805_v38 = vmul.f32 %v18149_v26, %v16209_v54  ;;  %v21193_v26 = vld [vmem:[#allocation95_spill] sm:$0xff] }
 0x4ab   :  { %13220 = vmatprep.mubr.msk.bf16.mxu1 %vm135_vm0, %v5821_v0  ;;  %v5822_v51 = vpack.c.bf16 %v5802_v36, %v5801_v57 }
 0x4ac   :  { %v18155_v8 = vpop.permute.xlu1 %5746 }
 0x4ad   :  { %21185 = vst [vmem:[#allocation269_spill] sm:$0xff] %v18155_v8  ;;  %v5804_v35 = vmul.f32 %v18155_v8, %v16207_v44  ;;  %v18161_v24 = vpop.permute.xlu0 %5761 }
 0x4ae   :  { %21186 = vst [vmem:[#allocation270_spill] sm:$0xff] %v18161_v24  ;;  %v5807_v40 = vmul.f32 %v18161_v24, %v16979_v53 }
 0x4af   :  { %v5823_v6 = vpack.c.bf16 %v5804_v35, %v5803_v27 }
 0x4b0   :  { %v18165_v29 = vpop.permute.xlu1 %5756 }
 0x4b1   :  { %21187 = vst [vmem:[#allocation271_spill] sm:$0xff] %v18165_v29  ;;  %v5772_v21 = vpop.permute.xlu0 %5771  ;;  %v5806_v58 = vmul.f32 %v18165_v29, %v16215_v1 }
 0x4b2   :  { %13221 = vmatmul.mubr.msk.bf16.gmra.mrb[24].mxu1 %vm135_vm0, %v5822_v51  ;;  %v5809_v51 = vmul.f32 0.0, %v5772_v21 }
 0x4b3   :  { %13224 = vmatprep.mubr.msk.bf16.mxu1 %vm135_vm0, %v5823_v6  ;;  %v5824_v0 = vpack.c.bf16 %v5806_v58, %v5805_v38 }
 0x4b4   :  { %v18171_v44 = vpop.permute.xlu1 %5766 }
 0x4b5   :  { %21188 = vst [vmem:[#allocation272_spill] sm:$0xff] %v18171_v44  ;;  %v5808_v11 = vmul.f32 %v18171_v44, %v17263_v42  ;;  %v18177_v28 = vpop.permute.xlu0 %6120  ;;  %v21191_v42 = vld [vmem:[#allocation96_spill] sm:$0xff]  ;;  %v21207_v44 = vld [vmem:[#allocation109_spill] sm:$0xff] }
 0x4b6   :  { %21189 = vst [vmem:[#allocation273_spill] sm:$0xff] %v18177_v28  ;;  %v6278_v53 = vmul.f32 %v18177_v28, %v21193_v26 }
 0x4b7   :  { %v5825_v35 = vpack.c.bf16 %v5808_v11, %v5807_v40 }
 0x4b8   :  { %v5777_v36 = vpop.permute.xlu1 %5776 }
 0x4b9   :  { %v18181_v57 = vpop.permute.xlu0 %6130  ;;  %v5810_v1 = vmul.f32 0.0, %v5777_v36 }
 0x4ba   :  { %13225 = vmatmul.mubr.msk.bf16.gmra.mrb[28].mxu1 %vm135_vm0, %v5824_v0  ;;  %v21196_v0 = vld [vmem:[#allocation99_spill] sm:$0xff] }
 0x4bb   :  { %13228 = vmatprep.mubr.msk.bf16.mxu1 %vm135_vm0, %v5825_v35  ;;  %v18193_v58 = vpack.c.bf16 %v5810_v1, %v5809_v51  ;;  %v21198_v35 = vld [vmem:[#allocation104_spill] sm:$0xff]  ;;  %v21199_v1 = vld [vmem:[#allocation101_spill] sm:$0xff] }
 0x4bc   :  { %v18185_v27 = vpop.permute.xlu1 %6125 }
 0x4bd   :  { %21190 = vst [vmem:[#allocation274_spill] sm:$0xff] %v18185_v27  ;;  %v6279_v54 = vmul.f32 %v18185_v27, %v21191_v42  ;;  %v18189_v6 = vpop.permute.xlu0 %6140  ;;  %21194 = vst [vmem:[#allocation95_spill] sm:$0xff] %v18193_v58  ;;  %v6280_v42 = vmul.f32 %v18181_v57, %v21199_v1  ;;  %v21206_v1 = vld [vmem:[#allocation112_spill] sm:$0xff] }
 0x4be   :  { %21192 = vst [vmem:[#allocation96_spill] sm:$0xff] %v18189_v6 }
 0x4bf   :  { %v6310_v38 = vpack.c.bf16 %v6279_v54, %v6278_v53  ;;  %v21201_v54 = vld [vmem:[#allocation103_spill] sm:$0xff] }
 0x4c0   :  { %v18195_v11 = vpop.permute.xlu1 %6135  ;;  %v6282_v53 = vmul.f32 %v18189_v6, %v21201_v54 }
 0x4c1   :  { %v18197_v40 = vpop.permute.xlu0 %6150  ;;  %v6281_v21 = vmul.f32 %v18195_v11, %v21196_v0  ;;  %v21204_v0 = vld [vmem:[#allocation107_spill] sm:$0xff] }
 0x4c2   :  { %21195 = vst [vmem:[#allocation275_spill] sm:$0xff] %v18197_v40  ;;  %13229 = vmatmul.mubr.msk.bf16.gmra.mrb[32].mxu1 %vm135_vm0, %v18193_v58 }
 0x4c3   :  { %13236 = vmatprep.mubr.msk.bf16.mxu1 %vm135_vm0, %v6310_v38  ;;  %v6311_v28 = vpack.c.bf16 %v6281_v21, %v6280_v42  ;;  %v6284_v21 = vmul.f32 %v18197_v40, %v21207_v44  ;;  %v21214_v44 = vld [vmem:[#allocation120_spill] sm:$0xff]  ;;  %v21215_v40 = vld [vmem:[#allocation117_spill] sm:$0xff] }
 0x4c4   :  { %v18204_v36 = vpop.permute.xlu1 %6145 }
 0x4c5   :  { %21197 = vst [vmem:[#allocation99_spill] sm:$0xff] %v18204_v36  ;;  %v6283_v26 = vmul.f32 %v18204_v36, %v21198_v35  ;;  %v18210_v51 = vpop.permute.xlu0 %6160 }
 0x4c6   :  { %21200 = vst [vmem:[#allocation104_spill] sm:$0xff] %v18210_v51 }
 0x4c7   :  { %v6312_v38 = vpack.c.bf16 %v6283_v26, %v6282_v53  ;;  %v21209_v26 = vld [vmem:[#allocation111_spill] sm:$0xff] }
 0x4c8   :  { %v18214_v58 = vpop.permute.xlu1 %6155  ;;  %v6286_v54 = vmul.f32 %v18210_v51, %v21209_v26 }
 0x4c9   :  { %21202 = vst [vmem:[#allocation101_spill] sm:$0xff] %v18214_v58  ;;  %v18216_v27 = vpop.permute.xlu0 %6170  ;;  %v6285_v35 = vmul.f32 %v18214_v58, %v21204_v0  ;;  %v21212_v0 = vld [vmem:[#allocation115_spill] sm:$0xff] }
 0x4ca   :  { %21203 = vst [vmem:[#allocation103_spill] sm:$0xff] %v18216_v27  ;;  %13237 = vmatmul.mubr.msk.bf16.vlgmr.msra.gmra.mrb[4].mxu1 %vm135_vm0, %v6311_v28 }
 0x4cb   :  { %13240 = vmatprep.mubr.msk.bf16.mxu1 %vm135_vm0, %v6312_v38  ;;  %v6313_v53 = vpack.c.bf16 %v6285_v35, %v6284_v21  ;;  %v6288_v35 = vmul.f32 %v18216_v27, %v21215_v40  ;;  %v21222_v40 = vld [vmem:[#allocation128_spill] sm:$0xff]  ;;  %v21223_v27 = vld [vmem:[#allocation125_spill] sm:$0xff] }
 0x4cc   :  { %v18222_v36 = vpop.permute.xlu1 %6165 }
 0x4cd   :  { %21205 = vst [vmem:[#allocation107_spill] sm:$0xff] %v18222_v36  ;;  %v6287_v24 = vmul.f32 %v18222_v36, %v21206_v1  ;;  %v18228_v42 = vpop.permute.xlu0 %6180 }
 0x4ce   :  { %21208 = vst [vmem:[#allocation112_spill] sm:$0xff] %v18228_v42 }
 0x4cf   :  { %v6314_v38 = vpack.c.bf16 %v6287_v24, %v6286_v54  ;;  %v21217_v24 = vld [vmem:[#allocation119_spill] sm:$0xff] }
 0x4d0   :  { %v18232_v28 = vpop.permute.xlu1 %6175  ;;  %v6290_v26 = vmul.f32 %v18228_v42, %v21217_v24 }
 0x4d1   :  { %21210 = vst [vmem:[#allocation109_spill] sm:$0xff] %v18232_v28  ;;  %v18234_v6 = vpop.permute.xlu0 %6190  ;;  %v6289_v1 = vmul.f32 %v18232_v28, %v21212_v0  ;;  %v21220_v0 = vld [vmem:[#allocation123_spill] sm:$0xff] }
 0x4d2   :  { %21211 = vst [vmem:[#allocation111_spill] sm:$0xff] %v18234_v6  ;;  %13241 = vmatmul.mubr.msk.bf16.gmra.mrb[8].mxu1 %vm135_vm0, %v6313_v53 }
 0x4d3   :  { %13244 = vmatprep.mubr.msk.bf16.mxu1 %vm135_vm0, %v6314_v38  ;;  %v6315_v54 = vpack.c.bf16 %v6289_v1, %v6288_v35  ;;  %v6292_v1 = vmul.f32 %v18234_v6, %v21223_v27 }
 0x4d4   :  { %v18240_v36 = vpop.permute.xlu1 %6185 }
 0x4d5   :  { %21213 = vst [vmem:[#allocation115_spill] sm:$0xff] %v18240_v36  ;;  %v6291_v58 = vmul.f32 %v18240_v36, %v21214_v44  ;;  %v18246_v21 = vpop.permute.xlu0 %6200 }
 0x4d6   :  { %21216 = vst [vmem:[#allocation120_spill] sm:$0xff] %v18246_v21 }
 0x4d7   :  { %v6316_v38 = vpack.c.bf16 %v6291_v58, %v6290_v26  ;;  %v6294_v58 = vmul.f32 %v18246_v21, %v21093_v7 }
 0x4d8   :  { %v18250_v53 = vpop.permute.xlu1 %6195 }
 0x4d9   :  { %21218 = vst [vmem:[#allocation117_spill] sm:$0xff] %v18250_v53  ;;  %v18252_v51 = vpop.permute.xlu0 %6210  ;;  %v6293_v44 = vmul.f32 %v18250_v53, %v21220_v0  ;;  %v21227_v0 = vld [vmem:[#allocation130_spill] sm:$0xff] }
 0x4da   :  { %21219 = vst [vmem:[#allocation119_spill] sm:$0xff] %v18252_v51  ;;  %13245 = vmatmul.mubr.msk.bf16.gmra.mrb[12].mxu1 %vm135_vm0, %v6315_v54  ;;  %v6296_v7 = vmul.f32 %v18252_v51, %v21095_v30 }
 0x4db   :  { %13248 = vmatprep.mubr.msk.bf16.mxu1 %vm135_vm0, %v6316_v38  ;;  %v6317_v24 = vpack.c.bf16 %v6293_v44, %v6292_v1 }
 0x4dc   :  { %v18258_v36 = vpop.permute.xlu1 %6205 }
 0x4dd   :  { %21221 = vst [vmem:[#allocation123_spill] sm:$0xff] %v18258_v36  ;;  %v6295_v28 = vmul.f32 %v18258_v36, %v21222_v40  ;;  %v18264_v35 = vpop.permute.xlu0 %6220 }
 0x4de   :  { %21224 = vst [vmem:[#allocation128_spill] sm:$0xff] %v18264_v35 }
 0x4df   :  { %v6318_v54 = vpack.c.bf16 %v6295_v28, %v6294_v58  ;;  %v6298_v28 = vmul.f32 %v18264_v35, %v16887_v3 }
 0x4e0   :  { %v18268_v26 = vpop.permute.xlu1 %6215 }
 0x4e1   :  { %21225 = vst [vmem:[#allocation125_spill] sm:$0xff] %v18268_v26  ;;  %v18270_v38 = vpop.permute.xlu0 %6230  ;;  %v6297_v40 = vmul.f32 %v18268_v26, %v21227_v0 }
 0x4e2   :  { %21226 = vst [vmem:[#allocation276_spill] sm:$0xff] %v18270_v38  ;;  %13249 = vmatmul.mubr.msk.bf16.gmra.mrb[16].mxu1 %vm135_vm0, %v6317_v24 }
 0x4e3   :  { %13252 = vmatprep.mubr.msk.bf16.mxu1 %vm135_vm0, %v6318_v54  ;;  %v6319_v44 = vpack.c.bf16 %v6297_v40, %v6296_v7  ;;  %v21231_v54 = vld [vmem:[#allocation137_spill] sm:$0xff] }
 0x4e4   :  { %v18276_v36 = vpop.permute.xlu1 %6225 }
 0x4e5   :  { %21228 = vst [vmem:[#allocation130_spill] sm:$0xff] %v18276_v36  ;;  %v6299_v27 = vmul.f32 %v18276_v36, %v16884_v52  ;;  %v18284_v1 = vpop.permute.xlu0 %6240  ;;  %v21233_v36 = vld [vmem:[#allocation136_spill] sm:$0xff] }
 0x4e6   :  { %21229 = vst [vmem:[#allocation277_spill] sm:$0xff] %v18284_v1  ;;  %v6300_v3 = vmul.f32 %v18270_v38, %v21233_v36  ;;  %v21236_v36 = vld [vmem:[#allocation234_spill] sm:$0xff] }
 0x4e7   :  { %v6320_v24 = vpack.c.bf16 %v6299_v27, %v6298_v28  ;;  %v6302_v27 = vmul.f32 %v18284_v1, %v21104_v9  ;;  %v21243_v1 = vld [vmem:[#allocation11_spill] sm:$0xff]  ;;  %v21244_v38 = vld [vmem:[#allocation10_spill] sm:$0xff] }
 0x4e8   :  { %v18286_v58 = vpop.permute.xlu1 %6235 }
 0x4e9   :  { %21230 = vst [vmem:[#allocation278_spill] sm:$0xff] %v18286_v58  ;;  %v6301_v0 = vmul.f32 %v18286_v58, %v21231_v54  ;;  %v18298_v40 = vpop.permute.xlu0 %6250  ;;  %v21237_v58 = vld [vmem:[#allocation147_spill] sm:$0xff] }
 0x4ea   :  { %13253 = vmatmul.mubr.msk.bf16.gmra.mrb[20].mxu1 %vm135_vm0, %v6319_v44  ;;  %21234 = vst [vmem:[#allocation136_spill] sm:$0xff] %v18298_v40  ;;  %v6304_v9 = vmul.f32 %v18298_v40, %v21237_v58  ;;  %v14505_v58 = vld [vmem:[%s20174_s5 + $0x38] sm:$0xff]   ;;  %v21242_v40 = vld [vmem:[#allocation12_spill] sm:$0xff] }
 0x4eb   :  { %13256 = vmatprep.mubr.msk.bf16.mxu1 %vm135_vm0, %v6320_v24  ;;  %v6321_v7 = vpack.c.bf16 %v6301_v0, %v6300_v3  ;;  %13274 = vmatprep.subr.bf16.mxu0 %v14505_v58 }
 0x4ec   :  { %v18292_v52 = vpop.permute.xlu1 %6245  ;;  %13275 = vmatpush3.bf16.msra.mxu0 %v14505_v58 }
 0x4ed   :  { %21232 = vst [vmem:[#allocation137_spill] sm:$0xff] %v18292_v52  ;;  %v6303_v30 = vmul.f32 %v18292_v52, %v16948_v60  ;;  %v18306_v24 = vpop.permute.xlu0 %6260 }
 0x4ee   :  { %v6306_v0 = vmul.f32 %v18306_v24, %v17795_v43  ;;  %v14506_v43 = vld [vmem:[%s20174_s5] sm:$0xff]  }
 0x4ef   :  { %v6322_v44 = vpack.c.bf16 %v6303_v30, %v6302_v27  ;;  %13308 = vmatprep.subr.bf16.mxu0 %v14506_v43 }
 0x4f0   :  { %v18302_v28 = vpop.permute.xlu1 %6255 }
 0x4f1   :  { %21235 = vst [vmem:[#allocation279_spill] sm:$0xff] %v18302_v28  ;;  %v6305_v60 = vmul.f32 %v18302_v28, %v17000_v20 }
 0x4f2   :  { %13257 = vmatmul.mubr.msk.bf16.gmra.mrb[24].mxu1 %vm135_vm0, %v6321_v7  ;;  %v6271_v7 = vpop.permute.xlu0 %6270 }
 0x4f3   :  { %13260 = vmatprep.mubr.msk.bf16.mxu1 %vm135_vm0, %v6322_v44  ;;  %v6323_v30 = vpack.c.bf16 %v6305_v60, %v6304_v9  ;;  %v6308_v44 = vmul.f32 0.0, %v6271_v7 }
 0x4f4   :  { %v18310_v54 = vpop.permute.xlu1 %6265 }
 0x4f5   :  { %v6307_v52 = vmul.f32 %v18310_v54, %v21236_v36 }
 0x4f7   :  { %v6324_v3 = vpack.c.bf16 %v6307_v52, %v6306_v0  ;;  %v18333_v52 = vld [vmem:[%s20175_s4] ss:$0 sm:$0xff] }
 0x4f8   :  { %v6276_v27 = vpop.permute.xlu1 %6275 }
 0x4f9   :  { %v6309_v20 = vmul.f32 0.0, %v6276_v27 }
 0x4fa   :  { %13261 = vmatmul.mubr.msk.bf16.gmra.mrb[28].mxu1 %vm135_vm0, %v6323_v30 }
 0x4fb   :  { %13264 = vmatprep.mubr.msk.bf16.mxu1 %vm135_vm0, %v6324_v3  ;;  %v18320_v28 = vpack.c.bf16 %v6309_v20, %v6308_v44 }
 0x4fd   :  { %21238 = vst [vmem:[#allocation234_spill] sm:$0xff] %v18320_v28 }
 0x502   :  { %13265 = vmatmul.mubr.msk.bf16.gmra.mrb[32].mxu1 %vm135_vm0, %v18320_v28 }
 0x59d   :  { %v13238_v60 = vpop.f32.mrb[4].mxu1 }
 0x59e   :  { %v6593_v36 = vadd.f32 %v13238_v60, %v18333_v52  ;;  %v6425_v9 = vpop.f32.mrb[5].mxu1 }
 0x59f   :  { %v6591_v0 = vadd.f32 %v18333_v52, %v6425_v9  ;;  %v13239_v30 = vpop.f32.mrb[6].mxu1 }
 0x5a0   :  { %v6594_v3 = vadd.f32 %v13239_v30, %v18333_v52  ;;  %v6428_v27 = vpop.f32.mrb[7].mxu1  ;;  %v18341_v44 = vmax.f32 %v6593_v36, 0.0 }
 0x5a1   :  { %v18338_v7 = vmax.f32 %v6591_v0, 0.0  ;;  %v6592_v20 = vadd.f32 %v18333_v52, %v6428_v27  ;;  %v21245_v27 = vld [vmem:[#allocation13_spill] sm:$0xff] }
 0x5a2   :  { %21240 = vst [vmem:[#allocation280_spill] sm:$0xff] %v18341_v44  ;;  %v18343_v58 = vmax.f32 %v6594_v3, 0.0  ;;  %v6830_v36 = vmul.f32 %v18341_v44, %v21245_v27  ;;  %v21249_v27 = vld [vmem:[#allocation15_spill] sm:$0xff] }
 0x5a3   :  { %21239 = vst [vmem:[#allocation147_spill] sm:$0xff] %v18338_v7  ;;  %v18345_v28 = vmax.f32 %v6592_v20, 0.0  ;;  %v6828_v9 = vmul.f32 %v18338_v7, %v21243_v1 }
 0x5a4   :  { %v6831_v60 = vmul.f32 %v18343_v58, %v21242_v40  ;;  %v14507_v40 = vld [vmem:[%s20174_s5 + $0x8] sm:$0xff]  }
 0x5a5   :  { %21241 = vst [vmem:[#allocation281_spill] sm:$0xff] %v18345_v28  ;;  %v6829_v30 = vmul.f32 %v18345_v28, %v21244_v38  ;;  %v13242_v35 = vpop.f32.mrb[8].mxu1 }
 0x5a6   :  { %v6597_v0 = vadd.f32 %v13242_v35, %v18333_v52  ;;  %v6441_v26 = vpop.f32.mrb[9].mxu1  ;;  %v6859_v53 = vpack.c.bf16 %v6831_v60, %v6830_v36  ;;  %v21248_v60 = vld [vmem:[#allocation19_spill] sm:$0xff]  ;;  %v21250_v36 = vld [vmem:[#allocation14_spill] sm:$0xff] }
 0x5a7   :  { %v6858_v3 = vpack.c.bf16 %v6829_v30, %v6828_v9  ;;  %v6595_v20 = vadd.f32 %v18333_v52, %v6441_v26  ;;  %v13243_v51 = vpop.f32.mrb[10].mxu1 }
 0x5a8   :  { %v6598_v1 = vadd.f32 %v13243_v51, %v18333_v52  ;;  %v6444_v21 = vpop.f32.mrb[11].mxu1  ;;  %v18365_v6 = vmax.f32 %v6597_v0, 0.0  ;;  %v14508_v51 = vld [vmem:[%s20174_s5 + $0x10] sm:$0xff]  }
 0x5a9   :  { %v18361_v38 = vmax.f32 %v6595_v20, 0.0  ;;  %v6596_v35 = vadd.f32 %v18333_v52, %v6444_v21  ;;  %13277 = vmatmul.mubr.msk.bf16.vlgmr.msra.gmra.mrb[60].mxu0 %vm6906_vm1, %v6858_v3  ;;  %v21251_v20 = vld [vmem:[#allocation20_spill] sm:$0xff] }
 0x5aa   :  { %v18367_v9 = vmax.f32 %v6598_v1, 0.0  ;;  %13280 = vmatprep.mubr.msk.bf16.mxu0 %vm6906_vm1, %v6859_v53  ;;  %13309 = vmatpush3.bf16.msra.mxu0 %v14506_v43  ;;  %v6834_v1 = vmul.f32 %v18365_v6, %v21251_v20  ;;  %v21254_v20 = vld [vmem:[#allocation24_spill] sm:$0xff] }
 0x5ab   :  { %21246 = vst [vmem:[#allocation12_spill] sm:$0xff] %v18361_v38  ;;  %v18370_v26 = vmax.f32 %v6596_v35, 0.0  ;;  %13310 = vmatprep.subr.bf16.mxu0 %v14507_v40  ;;  %v6832_v0 = vmul.f32 %v18361_v38, %v21249_v27 }
 0x5ac   :  { %v6835_v30 = vmul.f32 %v18367_v9, %v21248_v60  ;;  %v14509_v60 = vld [vmem:[%s20174_s5 + $0x18] sm:$0xff]   ;;  %v6698_v56 = vrot.slane %v18367_v9, 7 }
 0x5ad   :  { %21247 = vst [vmem:[#allocation11_spill] sm:$0xff] %v18370_v26  ;;  %v13246_v21 = vpop.f32.mrb[12].mxu1  ;;  %v6833_v3 = vmul.f32 %v18370_v26, %v21250_v36 }
 0x5ae   :  { %v6601_v53 = vadd.f32 %v13246_v21, %v18333_v52  ;;  %v6457_v43 = vpop.f32.mrb[13].mxu1  ;;  %13311 = vmatpush3.bf16.msra.mxu0 %v14507_v40  ;;  %v6861_v36 = vpack.c.bf16 %v6835_v30, %v6834_v1  ;;  %v21252_v30 = vld [vmem:[#allocation28_spill] sm:$0xff] }
 0x5af   :  { %v6599_v35 = vadd.f32 %v18333_v52, %v6457_v43  ;;  %v13247_v42 = vpop.f32.mrb[14].mxu1  ;;  %v6860_v29 = vpack.c.bf16 %v6833_v3, %v6832_v0  ;;  %13312 = vmatprep.subr.bf16.mxu0 %v14508_v51 }
 0x5b0   :  { %v6602_v27 = vadd.f32 %v13247_v42, %v18333_v52  ;;  %v6460_v16 = vpop.f32.mrb[15].mxu1  ;;  %v18393_v40 = vmax.f32 %v6601_v53, 0.0  ;;  %v18403_v42 = vld [vmem:[%s20174_s5 + $0x40] sm:$0xff]  }
 0x5b1   :  { %v18389_v4 = vmax.f32 %v6599_v35, 0.0  ;;  %v6600_v21 = vadd.f32 %v18333_v52, %v6460_v16  ;;  %13281 = vmatmul.mubr.msk.bf16.gmra.mrb[64].mxu0 %vm6906_vm1, %v6860_v29  ;;  %v21253_v29 = vld [vmem:[#allocation26_spill] sm:$0xff] }
 0x5b2   :  { %v18395_v43 = vmax.f32 %v6602_v27, 0.0  ;;  %13284 = vmatprep.mubr.msk.bf16.mxu0 %vm6906_vm1, %v6861_v36  ;;  %13313 = vmatpush3.bf16.msra.mxu0 %v14508_v51  ;;  %v21255_v27 = vld [vmem:[#allocation31_spill] sm:$0xff]  ;;  %v6704_v45 = vrot.slane %v18393_v40, 7 }
 0x5b3   :  { %v18398_v0 = vmax.f32 %v6600_v21, 0.0  ;;  %13314 = vmatprep.subr.bf16.mxu0 %v14509_v60  ;;  %v6836_v53 = vmul.f32 %v18389_v4, %v21253_v29  ;;  %v6838_v36 = vmul.f32 %v18393_v40, %v21255_v27 }
 0x5b4   :  { %v6839_v16 = vmul.f32 %v18395_v43, %v21252_v30 }
 0x5b5   :  { %v13250_v3 = vpop.f32.mrb[16].mxu1  ;;  %v6837_v1 = vmul.f32 %v18398_v0, %v21254_v20 }
 0x5b6   :  { %v6605_v51 = vadd.f32 %v13250_v3, %v18333_v52  ;;  %v6473_v35 = vpop.f32.mrb[17].mxu1  ;;  %13315 = vmatpush3.bf16.msra.mxu0 %v14509_v60  ;;  %v6863_v29 = vpack.c.bf16 %v6839_v16, %v6838_v36  ;;  %v21258_v36 = vld [vmem:[#allocation33_spill] sm:$0xff] }
 0x5b7   :  { %v6603_v21 = vadd.f32 %v18333_v52, %v6473_v35  ;;  %v13251_v8 = vpop.f32.mrb[18].mxu1  ;;  %v6862_v48 = vpack.c.bf16 %v6837_v1, %v6836_v53  ;;  %13348 = vmatprep.subr.bf16.mxu0 %v18403_v42  ;;  %v21256_v53 = vld [vmem:[#allocation39_spill] sm:$0xff] }
 0x5b8   :  { %v6606_v30 = vadd.f32 %v13251_v8, %v18333_v52  ;;  %v6476_v46 = vpop.f32.mrb[19].mxu1  ;;  %v18421_v3 = vmax.f32 %v6605_v51, 0.0  ;;  %v21257_v35 = vld [vmem:[#allocation35_spill] sm:$0xff] }
 0x5b9   :  { %v18417_v19 = vmax.f32 %v6603_v21, 0.0  ;;  %v6604_v20 = vadd.f32 %v18333_v52, %v6476_v46  ;;  %13285 = vmatmul.mubr.msk.bf16.gmra.mrb[68].mxu0 %vm6906_vm1, %v6862_v48  ;;  %v21259_v21 = vld [vmem:[#allocation40_spill] sm:$0xff] }
 0x5ba   :  { %v18423_v27 = vmax.f32 %v6606_v30, 0.0  ;;  %13288 = vmatprep.mubr.msk.bf16.mxu0 %vm6906_vm1, %v6863_v29  ;;  %v6842_v30 = vmul.f32 %v18421_v3, %v21259_v21 }
 0x5bb   :  { %v18426_v60 = vmax.f32 %v6604_v20, 0.0  ;;  %v6840_v16 = vmul.f32 %v18417_v19, %v21257_v35 }
 0x5bc   :  { %v6843_v1 = vmul.f32 %v18423_v27, %v21256_v53 }
 0x5bd   :  { %v13254_v8 = vpop.f32.mrb[20].mxu1  ;;  %v6841_v46 = vmul.f32 %v18426_v60, %v21258_v36 }
 0x5be   :  { %v6609_v48 = vadd.f32 %v13254_v8, %v18333_v52  ;;  %v6489_v51 = vpop.f32.mrb[21].mxu1  ;;  %v6865_v22 = vpack.c.bf16 %v6843_v1, %v6842_v30  ;;  %v21262_v30 = vld [vmem:[#allocation44_spill] sm:$0xff] }
 0x5bf   :  { %v6607_v29 = vadd.f32 %v18333_v52, %v6489_v51  ;;  %v13255_v20 = vpop.f32.mrb[22].mxu1  ;;  %v6864_v62 = vpack.c.bf16 %v6841_v46, %v6840_v16  ;;  %v21260_v51 = vld [vmem:[#allocation48_spill] sm:$0xff] }
 0x5c0   :  { %v6610_v63 = vadd.f32 %v13255_v20, %v18333_v52  ;;  %v6492_v53 = vpop.f32.mrb[23].mxu1  ;;  %v18443_v36 = vmax.f32 %v6609_v48, 0.0  ;;  %v21261_v20 = vld [vmem:[#allocation46_spill] sm:$0xff] }
 0x5c1   :  { %v18439_v18 = vmax.f32 %v6607_v29, 0.0  ;;  %v6608_v35 = vadd.f32 %v18333_v52, %v6492_v53  ;;  %13289 = vmatmul.mubr.msk.bf16.gmra.mrb[72].mxu0 %vm6906_vm1, %v6864_v62  ;;  %v21263_v53 = vld [vmem:[#allocation51_spill] sm:$0xff] }
 0x5c2   :  { %v18445_v8 = vmax.f32 %v6610_v63, 0.0  ;;  %13292 = vmatprep.mubr.msk.bf16.mxu0 %vm6906_vm1, %v6865_v22  ;;  %v6846_v63 = vmul.f32 %v18443_v36, %v21263_v53 }
 0x5c3   :  { %v18448_v21 = vmax.f32 %v6608_v35, 0.0  ;;  %v6844_v1 = vmul.f32 %v18439_v18, %v21261_v20 }
 0x5c4   :  { %v6847_v16 = vmul.f32 %v18445_v8, %v21260_v51 }
 0x5c5   :  { %v13258_v46 = vpop.f32.mrb[24].mxu1  ;;  %v6845_v29 = vmul.f32 %v18448_v21, %v21262_v30 }
 0x5c6   :  { %v6613_v62 = vadd.f32 %v13258_v46, %v18333_v52  ;;  %v6505_v48 = vpop.f32.mrb[25].mxu1  ;;  %v6867_v49 = vpack.c.bf16 %v6847_v16, %v6846_v63  ;;  %v21266_v63 = vld [vmem:[#allocation53_spill] sm:$0xff] }
 0x5c7   :  { %v6611_v22 = vadd.f32 %v18333_v52, %v6505_v48  ;;  %v13259_v35 = vpop.f32.mrb[26].mxu1  ;;  %v6866_v2 = vpack.c.bf16 %v6845_v29, %v6844_v1  ;;  %v21264_v48 = vld [vmem:[#allocation23_spill] sm:$0xff] }
 0x5c8   :  { %v6614_v34 = vadd.f32 %v13259_v35, %v18333_v52  ;;  %v6508_v51 = vpop.f32.mrb[27].mxu1  ;;  %v18465_v30 = vmax.f32 %v6613_v62, 0.0  ;;  %v21265_v35 = vld [vmem:[#allocation54_spill] sm:$0xff] }
 0x5c9   :  { %v18461_v14 = vmax.f32 %v6611_v22, 0.0  ;;  %v6612_v20 = vadd.f32 %v18333_v52, %v6508_v51  ;;  %13293 = vmatmul.mubr.msk.bf16.gmra.mrb[76].mxu0 %vm6906_vm1, %v6866_v2  ;;  %v21267_v51 = vld [vmem:[#allocation9_spill] sm:$0xff] }
 0x5ca   :  { %v18467_v46 = vmax.f32 %v6614_v34, 0.0  ;;  %13296 = vmatprep.mubr.msk.bf16.mxu0 %vm6906_vm1, %v6867_v49  ;;  %v6850_v34 = vmul.f32 %v18465_v30, %v21267_v51 }
 0x5cb   :  { %v18470_v53 = vmax.f32 %v6612_v20, 0.0  ;;  %v6848_v16 = vmul.f32 %v18461_v14, %v21265_v35 }
 0x5cc   :  { %v6851_v1 = vmul.f32 %v18467_v46, %v21264_v48 }
 0x5cd   :  { %v13262_v29 = vpop.f32.mrb[28].mxu1  ;;  %v6849_v22 = vmul.f32 %v18470_v53, %v21266_v63 }
 0x5ce   :  { %v6617_v2 = vadd.f32 %v13262_v29, %v18333_v52  ;;  %v6521_v62 = vpop.f32.mrb[29].mxu1  ;;  %v6869_v15 = vpack.c.bf16 %v6851_v1, %v6850_v34  ;;  %v21270_v34 = vld [vmem:[#allocation22_spill] sm:$0xff] }
 0x5cf   :  { %v6615_v49 = vadd.f32 %v18333_v52, %v6521_v62  ;;  %v13263_v20 = vpop.f32.mrb[30].mxu1  ;;  %v6868_v25 = vpack.c.bf16 %v6849_v22, %v6848_v16  ;;  %v21268_v62 = vld [vmem:[#allocation27_spill] sm:$0xff] }
 0x5d0   :  { %v6618_v39 = vadd.f32 %v13263_v20, %v18333_v52  ;;  %v6524_v48 = vpop.f32.mrb[31].mxu1  ;;  %v18487_v63 = vmax.f32 %v6617_v2, 0.0  ;;  %v21269_v20 = vld [vmem:[#allocation8_spill] sm:$0xff] }
 0x5d1   :  { %v18483_v59 = vmax.f32 %v6615_v49, 0.0  ;;  %v6616_v35 = vadd.f32 %v18333_v52, %v6524_v48  ;;  %13297 = vmatmul.mubr.msk.bf16.gmra.mrb[80].mxu0 %vm6906_vm1, %v6868_v25 }
 0x5d2   :  { %v18489_v29 = vmax.f32 %v6618_v39, 0.0  ;;  %13300 = vmatprep.mubr.msk.bf16.mxu0 %vm6906_vm1, %v6869_v15  ;;  %v21271_v39 = vld [vmem:[#allocation25_spill] sm:$0xff] }
 0x5d3   :  { %v18492_v51 = vmax.f32 %v6616_v35, 0.0  ;;  %v6852_v1 = vmul.f32 %v18483_v59, %v21269_v20  ;;  %v6854_v48 = vmul.f32 %v18487_v63, %v21271_v39  ;;  %v6686_v39 = vrot.slane %v18345_v28, 7 }
 0x5d4   :  { %v6855_v16 = vmul.f32 %v18489_v29, %v21268_v62 }
 0x5d5   :  { %v13266_v22 = vpop.f32.mrb[32].mxu1  ;;  %v6853_v49 = vmul.f32 %v18492_v51, %v21270_v34 }
 0x5d6   :  { %v18501_v25 = vadd.f32 %v13266_v22, %v18333_v52  ;;  %v6537_v2 = vpop.f32.mrb[33].mxu1  ;;  %v6871_v50 = vpack.c.bf16 %v6855_v16, %v6854_v48  ;;  %v21273_v48 = vld [vmem:[#allocation34_spill] sm:$0xff] }
 0x5d7   :  { %v6619_v15 = vadd.f32 %v18333_v52, %v6537_v2  ;;  %v13267_v35 = vpop.f32.mrb[34].mxu1  ;;  %v6870_v61 = vpack.c.bf16 %v6853_v49, %v6852_v1  ;;  %v20600_v2 = vrot.slane %v18361_v38, 1  ;;  %v7357_v1 = vrot.slane %v18370_v26, 1 }
 0x5d8   :  { %v18507_v62 = vadd.f32 %v13267_v35, %v18333_v52  ;;  %v6540_v47 = vpop.f32.mrb[35].mxu1  ;;  %v20601_v49 = vrot.slane %v18365_v6, 1  ;;  %v21272_v35 = vld [vmem:[#allocation30_spill] sm:$0xff] }
 0x5d9   :  { %v18509_v20 = vmax.f32 %v6619_v15, 0.0  ;;  %v6620_v34 = vadd.f32 %v18333_v52, %v6540_v47  ;;  %13301 = vmatmul.mubr.msk.bf16.gmra.mrb[84].mxu0 %vm6906_vm1, %v6870_v61  ;;  %v6690_v61 = vrot.slane %v18343_v58, 7  ;;  %v18529_v52 = vsel %vm2983_vm3, %v20600_v2, %v7357_v1 }
 0x5da   :  { %13304 = vmatprep.mubr.msk.bf16.mxu0 %vm6906_vm1, %v6871_v50  ;;  %v6685_v50 = vrot.slane %v18338_v7, 7  ;;  %v18534_v15 = vsel %vm2983_vm3, %v7357_v1, %v20601_v49  ;;  %v21277_v49 = vld [vmem:[#allocation43_spill] sm:$0xff] }
 0x5db   :  { %v18514_v22 = vmax.f32 %v6620_v34, 0.0  ;;  %v6856_v16 = vmul.f32 %v18509_v20, %v21272_v35  ;;  %v6688_v35 = vrot.slane %v18341_v44, 7  ;;  %v18546_v17 = vmul.f32 %v18534_v15, %v18195_v11 }
 0x5dc   :  { %v18538_v37 = vsel %vm1959_vm2, %v6685_v50, %v6686_v39 }
 0x5dd   :  { %v6857_v47 = vmul.f32 %v18514_v22, %v21273_v48  ;;  %v18542_v48 = vmul.f32 %v18529_v52, %v18181_v57  ;;  %21275 = vst [vmem:[#allocation13_spill] sm:$0xff] %v18546_v17  ;;  %v18550_v2 = vsel %vm1959_vm2, %v6686_v39, %v6688_v35  ;;  %v18553_v1 = vsel %vm1959_vm2, %v6688_v35, %v6690_v61  ;;  %v21279_v39 = vld [vmem:[#allocation47_spill] sm:$0xff] }
 0x5de   :  { %v6776_v11 = vmul.f32 %v18538_v37, %v21277_v49  ;;  %v6778_v32 = vmul.f32 %v18553_v1, %v21279_v39  ;;  %v6694_v35 = vrot.slane %v18370_v26, 7  ;;  %v6696_v57 = vrot.slane %v18365_v6, 7  ;;  %v14511_v49 = vld [vmem:[%s20174_s5 + $0x48] sm:$0xff]  }
 0x5df   :  { %v6872_v34 = vpack.c.bf16 %v6857_v47, %v6856_v16  ;;  %21274 = vst [vmem:[#allocation10_spill] sm:$0xff] %v18542_v48  ;;  %v18556_v16 = vsel %vm1959_vm2, 0.0, %v6685_v50  ;;  %v21276_v47 = vld [vmem:[#allocation29_spill] sm:$0xff]  ;;  %v6712_v26 = vrot.slane %v18421_v3, 7 }
 0x5e0   :  { %v6775_v50 = vmul.f32 %v18556_v16, %v21280_v33  ;;  %v18582_v39 = vsel %vm1959_vm2, %v6694_v35, %v6696_v57  ;;  %v18585_v33 = vsel %vm1959_vm2, %v6696_v57, %v6698_v56  ;;  %v21287_v57 = vld [vmem:[#allocation52_spill] sm:$0xff] }
 0x5e1   :  { %13305 = vmatmul.mubr.msk.bf16.gmra.mrb[88].mxu0 %vm6906_vm1, %v6872_v34  ;;  %v6777_v34 = vmul.f32 %v18550_v2, %v21278_v41  ;;  %21282 = vst [vmem:[#allocation15_spill] sm:$0xff] %v18582_v39  ;;  %21283 = vst [vmem:[#allocation14_spill] sm:$0xff] %v18585_v33  ;;  %v6782_v17 = vmul.f32 %v18585_v33, %v21287_v57 }
 0x5e2   :  { %13316 = vmatprep.mubr.msk.bf16.mxu0 %vm6906_vm1, %v21276_v47  ;;  %v6692_v47 = vrot.slane %v18361_v38, 7  ;;  %v6805_v10 = vpack.c.bf16 %v6776_v11, %v6775_v50  ;;  %v21285_v50 = vld [vmem:[#allocation50_spill] sm:$0xff] }
 0x5e3   :  { %v6806_v41 = vpack.c.bf16 %v6778_v32, %v6777_v34  ;;  %v21286_v34 = vld [vmem:[#allocation36_spill] sm:$0xff] }
 0x5e4   :  { %v18578_v48 = vsel %vm1959_vm2, %v6692_v47, %v6694_v35  ;;  %v18589_v11 = vsel %vm1959_vm2, %v6690_v61, %v6692_v47  ;;  %v6781_v35 = vmul.f32 %v18582_v39, %v21286_v34  ;;  %v21288_v61 = vld [vmem:[#allocation32_spill] sm:$0xff]  ;;  %v14513_v34 = vld [vmem:[%s20174_s5 + $0x58] sm:$0xff]  }
 0x5e5   :  { %21281 = vst [vmem:[#allocation19_spill] sm:$0xff] %v18578_v48  ;;  %21284 = vst [vmem:[#allocation20_spill] sm:$0xff] %v18589_v11  ;;  %v6780_v32 = vmul.f32 %v18578_v48, %v21285_v50  ;;  %v6779_v47 = vmul.f32 %v18589_v11, %v21288_v61  ;;  %v6700_v50 = vrot.slane %v18389_v4, 7 }
 0x5e6   :  { %v6808_v12 = vpack.c.bf16 %v6782_v17, %v6781_v35  ;;  %v21294_v35 = vld [vmem:[#allocation2_spill] sm:$0xff] }
 0x5e7   :  { %v6807_v23 = vpack.c.bf16 %v6780_v32, %v6779_v47  ;;  %v21293_v32 = vld [vmem:[#allocation57_spill] sm:$0xff] }
 0x5e9   :  { %13317 = vmatmul.mubr.msk.bf16.vlgmr.msra.gmra.mrb[60].mxu0 %vm6906_vm1, %v6805_v10  ;;  %v14512_v10 = vld [vmem:[%s20174_s5 + $0x50] sm:$0xff]  }
 0x5ea   :  { %13320 = vmatprep.mubr.msk.bf16.mxu0 %vm6906_vm1, %v6806_v41  ;;  %13349 = vmatpush3.bf16.msra.mxu0 %v18403_v42  ;;  %v6702_v41 = vrot.slane %v18398_v0, 7  ;;  %v6706_v42 = vrot.slane %v18395_v43, 7 }
 0x5eb   :  { %13350 = vmatprep.subr.bf16.mxu0 %v14511_v49 }
 0x5ec   :  { %v18611_v57 = vsel %vm1959_vm2, %v6700_v50, %v6702_v41  ;;  %v18615_v61 = vsel %vm1959_vm2, %v6702_v41, %v6704_v45  ;;  %v18618_v5 = vsel %vm1959_vm2, %v6704_v45, %v6706_v42  ;;  %v21295_v45 = vld [vmem:[#allocation62_spill] sm:$0xff] }
 0x5ed   :  { %21289 = vst [vmem:[#allocation28_spill] sm:$0xff] %v18611_v57  ;;  %21290 = vst [vmem:[#allocation26_spill] sm:$0xff] %v18615_v61  ;;  %v6784_v17 = vmul.f32 %v18611_v57, %v21293_v32  ;;  %v6785_v41 = vmul.f32 %v18615_v61, %v21294_v35  ;;  %v6786_v47 = vmul.f32 %v18618_v5, %v21295_v45  ;;  %v6708_v32 = vrot.slane %v18417_v19, 7  ;;  %v21304_v61 = vld [vmem:[#allocation59_spill] sm:$0xff] }
 0x5ee   :  { %13351 = vmatpush3.bf16.msra.mxu0 %v14511_v49  ;;  %21291 = vst [vmem:[#allocation24_spill] sm:$0xff] %v18618_v5  ;;  %v18622_v49 = vsel %vm1959_vm2, %v6698_v56, %v6700_v50  ;;  %v21296_v56 = vld [vmem:[#allocation42_spill] sm:$0xff]  ;;  %v6714_v50 = vrot.slane %v18423_v27, 7  ;;  %v21303_v5 = vld [vmem:[#allocation68_spill] sm:$0xff] }
 0x5ef   :  { %13352 = vmatprep.subr.bf16.mxu0 %v14512_v10  ;;  %21292 = vst [vmem:[#allocation31_spill] sm:$0xff] %v18622_v49  ;;  %v6810_v57 = vpack.c.bf16 %v6786_v47, %v6785_v41  ;;  %v21302_v41 = vld [vmem:[#allocation63_spill] sm:$0xff] }
 0x5f1   :  { %13321 = vmatmul.mubr.msk.bf16.gmra.mrb[64].mxu0 %vm6906_vm1, %v6807_v23  ;;  %v18629_v23 = vld [vmem:[%s20174_s5 + $0x60] sm:$0xff]  }
 0x5f2   :  { %13324 = vmatprep.mubr.msk.bf16.mxu0 %vm6906_vm1, %v6808_v12  ;;  %13353 = vmatpush3.bf16.msra.mxu0 %v14512_v10  ;;  %v6710_v12 = vrot.slane %v18426_v60, 7  ;;  %v6783_v10 = vmul.f32 %v18622_v49, %v21296_v56  ;;  %v18650_v56 = vsel %vm1959_vm2, %v6712_v26, %v6714_v50  ;;  %v6722_v49 = vrot.slane %v18445_v8, 7 }
 0x5f3   :  { %13354 = vmatprep.subr.bf16.mxu0 %v14513_v34  ;;  %21299 = vst [vmem:[#allocation33_spill] sm:$0xff] %v18650_v56 }
 0x5f4   :  { %v6809_v55 = vpack.c.bf16 %v6784_v17, %v6783_v10  ;;  %v18643_v35 = vsel %vm1959_vm2, %v6708_v32, %v6710_v12  ;;  %v18647_v45 = vsel %vm1959_vm2, %v6710_v12, %v6712_v26  ;;  %v21301_v17 = vld [vmem:[#allocation64_spill] sm:$0xff]  ;;  %v6718_v12 = vrot.slane %v18448_v21, 7 }
 0x5f5   :  { %21297 = vst [vmem:[#allocation39_spill] sm:$0xff] %v18643_v35  ;;  %21298 = vst [vmem:[#allocation35_spill] sm:$0xff] %v18647_v45  ;;  %v6788_v10 = vmul.f32 %v18643_v35, %v21301_v17  ;;  %v6789_v47 = vmul.f32 %v18647_v45, %v21302_v41  ;;  %v21312_v45 = vld [vmem:[#allocation65_spill] sm:$0xff] }
 0x5f6   :  { %13355 = vmatpush3.bf16.msra.mxu0 %v14513_v34  ;;  %v18654_v34 = vsel %vm1959_vm2, %v6706_v42, %v6708_v32  ;;  %v6720_v32 = vrot.slane %v18443_v36, 7 }
 0x5f7   :  { %13388 = vmatprep.subr.bf16.mxu0 %v18629_v23  ;;  %21300 = vst [vmem:[#allocation40_spill] sm:$0xff] %v18654_v34  ;;  %v6787_v26 = vmul.f32 %v18654_v34, %v21304_v61  ;;  %v6730_v34 = vrot.slane %v18467_v46, 7 }
 0x5f8   :  { %v18676_v41 = vsel %vm1959_vm2, %v6720_v32, %v6722_v49 }
 0x5f9   :  { %13325 = vmatmul.mubr.msk.bf16.gmra.mrb[68].mxu0 %vm6906_vm1, %v6809_v55  ;;  %v6790_v55 = vmul.f32 %v18650_v56, %v21303_v5  ;;  %v6811_v42 = vpack.c.bf16 %v6788_v10, %v6787_v26  ;;  %v18673_v5 = vsel %vm1959_vm2, %v6718_v12, %v6720_v32  ;;  %21307 = vst [vmem:[#allocation44_spill] sm:$0xff] %v18676_v41  ;;  %v21309_v10 = vld [vmem:[#allocation69_spill] sm:$0xff]  ;;  %v21311_v56 = vld [vmem:[#allocation74_spill] sm:$0xff] }
 0x5fa   :  { %13328 = vmatprep.mubr.msk.bf16.mxu0 %vm6906_vm1, %v6810_v57  ;;  %v6716_v57 = vrot.slane %v18439_v18, 7  ;;  %21306 = vst [vmem:[#allocation46_spill] sm:$0xff] %v18673_v5 }
 0x5fb   :  { %v6812_v33 = vpack.c.bf16 %v6790_v55, %v6789_v47  ;;  %v21310_v47 = vld [vmem:[#allocation18_spill] sm:$0xff] }
 0x5fc   :  { %v18669_v17 = vsel %vm1959_vm2, %v6716_v57, %v6718_v12  ;;  %v18680_v61 = vsel %vm1959_vm2, %v6714_v50, %v6716_v57  ;;  %v6793_v55 = vmul.f32 %v18673_v5, %v21310_v47  ;;  %v6726_v12 = vrot.slane %v18470_v53, 7  ;;  %v21320_v5 = vld [vmem:[#allocation71_spill] sm:$0xff] }
 0x5fd   :  { %21305 = vst [vmem:[#allocation48_spill] sm:$0xff] %v18669_v17  ;;  %21308 = vst [vmem:[#allocation51_spill] sm:$0xff] %v18680_v61  ;;  %v6792_v26 = vmul.f32 %v18669_v17, %v21309_v10  ;;  %v6791_v32 = vmul.f32 %v18680_v61, %v21312_v45  ;;  %v6728_v57 = vrot.slane %v18465_v30, 7  ;;  %v6738_v61 = vrot.slane %v18489_v29, 7 }
 0x5ff   :  { %v6813_v50 = vpack.c.bf16 %v6792_v26, %v6791_v32  ;;  %v18702_v47 = vsel %vm1959_vm2, %v6728_v57, %v6730_v34  ;;  %v21317_v26 = vld [vmem:[#allocation75_spill] sm:$0xff] }
 0x600   :  { %21315 = vst [vmem:[#allocation53_spill] sm:$0xff] %v18702_v47 }
 0x601   :  { %13329 = vmatmul.mubr.msk.bf16.gmra.mrb[72].mxu0 %vm6906_vm1, %v6811_v42  ;;  %v6794_v42 = vmul.f32 %v18676_v41, %v21311_v56  ;;  %v18699_v56 = vsel %vm1959_vm2, %v6726_v12, %v6728_v57  ;;  %v21319_v41 = vld [vmem:[#allocation80_spill] sm:$0xff] }
 0x602   :  { %13332 = vmatprep.mubr.msk.bf16.mxu0 %vm6906_vm1, %v6812_v33  ;;  %v6724_v33 = vrot.slane %v18461_v14, 7  ;;  %21314 = vst [vmem:[#allocation54_spill] sm:$0xff] %v18699_v56 }
 0x603   :  { %v6814_v35 = vpack.c.bf16 %v6794_v42, %v6793_v55  ;;  %v21318_v55 = vld [vmem:[#allocation21_spill] sm:$0xff] }
 0x604   :  { %v18695_v10 = vsel %vm1959_vm2, %v6724_v33, %v6726_v12  ;;  %v18706_v45 = vsel %vm1959_vm2, %v6722_v49, %v6724_v33  ;;  %v6797_v42 = vmul.f32 %v18699_v56, %v21318_v55  ;;  %v6734_v12 = vrot.slane %v18492_v51, 7  ;;  %v21323_v33 = vld [vmem:[#allocation209_spill] sm:$0xff] }
 0x605   :  { %21313 = vst [vmem:[#allocation23_spill] sm:$0xff] %v18695_v10  ;;  %21316 = vst [vmem:[#allocation9_spill] sm:$0xff] %v18706_v45  ;;  %v6796_v32 = vmul.f32 %v18695_v10, %v21317_v26  ;;  %v6795_v57 = vmul.f32 %v18706_v45, %v21320_v5  ;;  %v18724_v26 = vmul.f32 %v18534_v15, %v21323_v33  ;;  %v6732_v55 = vrot.slane %v18483_v59, 7 }
 0x606   :  { %v7348_v45 = vrot.slane %v18338_v7, 1  ;;  %v21334_v7 = vld [vmem:[#allocation87_spill] sm:$0xff] }
 0x607   :  { %21324 = vst [vmem:[#allocation8_spill] sm:$0xff] %v18724_v26  ;;  %v6815_v56 = vpack.c.bf16 %v6796_v32, %v6795_v57  ;;  %v18731_v5 = vsel %vm1959_vm2, %v6732_v55, %v6734_v12  ;;  %v18742_v32 = vsel %vm1959_vm2, %v6730_v34, %v6732_v55  ;;  %v21329_v57 = vld [vmem:[#allocation82_spill] sm:$0xff]  ;;  %v21332_v26 = vld [vmem:[#allocation77_spill] sm:$0xff]  ;;  %v18756_v34 = vmax.f32 %v18507_v62, 0.0 }
 0x608   :  { %21325 = vst [vmem:[#allocation22_spill] sm:$0xff] %v18731_v5  ;;  %21328 = vst [vmem:[#allocation34_spill] sm:$0xff] %v18742_v32 }
 0x609   :  { %13333 = vmatmul.mubr.msk.bf16.gmra.mrb[76].mxu0 %vm6906_vm1, %v6813_v50  ;;  %v6798_v50 = vmul.f32 %v18702_v47, %v21319_v41  ;;  %v6736_v41 = vrot.slane %v18487_v63, 7  ;;  %v6800_v47 = vmul.f32 %v18731_v5, %v21329_v57  ;;  %v20660_v62 = vrot.slane %v18756_v34, 7 }
 0x60a   :  { %13336 = vmatprep.mubr.msk.bf16.mxu0 %vm6906_vm1, %v6814_v35  ;;  %v21321_v35 = vld [vmem:[#allocation206_spill] sm:$0xff] }
 0x60b   :  { %v18720_v49 = vmul.f32 %v18529_v52, %v21321_v35  ;;  %v6816_v10 = vpack.c.bf16 %v6798_v50, %v6797_v42  ;;  %v18735_v35 = vsel %vm1959_vm2, %v6734_v12, %v6736_v41  ;;  %v18738_v33 = vsel %vm1959_vm2, %v6736_v41, %v6738_v61  ;;  %v21330_v42 = vld [vmem:[#allocation4_spill] sm:$0xff] }
 0x60c   :  { %21326 = vst [vmem:[#allocation25_spill] sm:$0xff] %v18735_v35  ;;  %21327 = vst [vmem:[#allocation30_spill] sm:$0xff] %v18738_v33  ;;  %v6801_v50 = vmul.f32 %v18735_v35, %v21330_v42  ;;  %v6742_v12 = vrot.slane %v18514_v22, 7  ;;  %v6799_v41 = vmul.f32 %v18742_v32, %v21332_v26  ;;  %v18762_v42 = vmax.f32 %v18501_v25, 0.0 }
 0x60d   :  { %21322 = vst [vmem:[#allocation27_spill] sm:$0xff] %v18720_v49  ;;  %v21331_v49 = vld [vmem:[#allocation86_spill] sm:$0xff]  ;;  %v7351_v35 = vrot.slane %v18341_v44, 1 }
 0x60e   :  { %v6817_v55 = vpack.c.bf16 %v6800_v47, %v6799_v41  ;;  %v7763_v25 = vrot.slane %v18762_v42, 7 }
 0x611   :  { %13337 = vmatmul.mubr.msk.bf16.gmra.mrb[80].mxu0 %vm6906_vm1, %v6815_v56  ;;  %v6802_v56 = vmul.f32 %v18738_v33, %v21331_v49  ;;  %v7440_v49 = vsel %vm2983_vm3, 0.0, %v7348_v45  ;;  %v21336_v33 = vld [vmem:[#allocation84_spill] sm:$0xff] }
 0x612   :  { %13340 = vmatprep.mubr.msk.bf16.mxu0 %vm6906_vm1, %v6816_v10  ;;  %v6740_v10 = vrot.slane %v18509_v20, 7 }
 0x613   :  { %v6818_v57 = vpack.c.bf16 %v6802_v56, %v6801_v50  ;;  %v7349_v50 = vrot.slane %v18345_v28, 1  ;;  %v21335_v56 = vld [vmem:[#allocation91_spill] sm:$0xff] }
 0x614   :  { %v18759_v5 = vsel %vm1959_vm2, %v6740_v10, %v6742_v12  ;;  %v18768_v26 = vsel %vm1959_vm2, %v6738_v61, %v6740_v10  ;;  %v7441_v41 = vmul.f32 %v7440_v49, %v21335_v56  ;;  %v7353_v61 = vrot.slane %v18343_v58, 1 }
 0x615   :  { %21333 = vst [vmem:[#allocation29_spill] sm:$0xff] %v18759_v5  ;;  %v6804_v47 = vmul.f32 %v18759_v5, %v21334_v7  ;;  %v18781_v10 = vsel %vm1959_vm2, %v6742_v12, %v7763_v25  ;;  %v18786_v7 = vsel %vm1959_vm2, %v7763_v25, %v20660_v62  ;;  %v18789_v49 = vsel %vm2983_vm3, %v7349_v50, %v7351_v35 }
 0x616   :  { %v18792_v56 = vsel %vm2983_vm3, %v7348_v45, %v7349_v50  ;;  %v18804_v25 = vmul.f32 %v18781_v10, %v17991_v13  ;;  %v21342_v45 = vld [vmem:[#allocation5_spill] sm:$0xff]  ;;  %v7363_v62 = vrot.slane %v18389_v4, 1  ;;  %v21350_v13 = vrot.slane %v18365_v6, 1 }
 0x617   :  { %v7443_v50 = vmul.f32 %v18789_v49, %v21342_v45  ;;  %v7361_v45 = vrot.slane %v18367_v9, 1 }
 0x618   :  { %21340 = vst [vmem:[#allocation41_spill] sm:$0xff] %v18804_v25 }
 0x619   :  { %13341 = vmatmul.mubr.msk.bf16.gmra.mrb[84].mxu0 %vm6906_vm1, %v6817_v55  ;;  %v6803_v55 = vmul.f32 %v18768_v26, %v21336_v33  ;;  %v21337_v33 = vld [vmem:[#allocation92_spill] sm:$0xff]  ;;  %v18841_v25 = vsel %vm2983_vm3, %v21350_v13, %v7361_v45 }
 0x61a   :  { %13344 = vmatprep.mubr.msk.bf16.mxu0 %vm6906_vm1, %v6818_v57  ;;  %v7472_v28 = vpack.c.bf16 %v7441_v41, %v21337_v33  ;;  %v21343_v41 = vld [vmem:[#allocation90_spill] sm:$0xff]  ;;  %v18815_v33 = vsel %vm2983_vm3, %v7351_v35, %v7353_v61  ;;  %21351 = vst [vmem:[#allocation36_spill] sm:$0xff] %v18841_v25 }
 0x61b   :  { %v6819_v57 = vpack.c.bf16 %v6804_v47, %v6803_v55  ;;  %v21338_v47 = vrot.slane %v18361_v38, 1  ;;  %v18808_v55 = vmul.f32 %v18786_v7, %v18012_v31  ;;  %21344 = vst [vmem:[#allocation37_spill] sm:$0xff] %v18815_v33  ;;  %v21346_v38 = vld [vmem:[#allocation93_spill] sm:$0xff] }
 0x61c   :  { %v7444_v31 = vmul.f32 %v18815_v33, %v21346_v38 }
 0x61d   :  { %v18799_v12 = vsel %vm2983_vm3, %v7353_v61, %v21338_v47  ;;  %21341 = vst [vmem:[#allocation47_spill] sm:$0xff] %v18808_v55  ;;  %v21345_v47 = vld [vmem:[#allocation97_spill] sm:$0xff]  ;;  %v18830_v61 = vsel %vm2983_vm3, %v7361_v45, %v7363_v62  ;;  %v7369_v45 = vrot.slane %v18395_v43, 1 }
 0x61e   :  { %21339 = vst [vmem:[#allocation43_spill] sm:$0xff] %v18799_v12  ;;  %21347 = vst [vmem:[#allocation50_spill] sm:$0xff] %v18830_v61 }
 0x621   :  { %13345 = vmatmul.mubr.msk.bf16.gmra.mrb[88].mxu0 %vm6906_vm1, %v6819_v57  ;;  %v7442_v57 = vmul.f32 %v18792_v56, %v21343_v41  ;;  %v14515_v41 = vld [vmem:[%s20174_s5 + $0x68] sm:$0xff]  }
 0x622   :  { %13356 = vmatprep.mubr.msk.bf16.mxu0 %vm6906_vm1, %v7472_v28  ;;  %v7445_v28 = vmul.f32 %v18799_v12, %v21345_v47  ;;  %v21348_v47 = vld [vmem:[#allocation94_spill] sm:$0xff] }
 0x623   :  { %v7473_v44 = vpack.c.bf16 %v7443_v50, %v7442_v57  ;;  %v7446_v38 = vmul.f32 %v18529_v52, %v21348_v47  ;;  %v21349_v50 = vld [vmem:[#allocation100_spill] sm:$0xff]  ;;  %v7371_v52 = vrot.slane %v18417_v19, 1  ;;  %v7367_v47 = vrot.slane %v18393_v40, 1 }
 0x624   :  { %v7474_v35 = vpack.c.bf16 %v7445_v28, %v7444_v31  ;;  %v7447_v57 = vmul.f32 %v18534_v15, %v21349_v50  ;;  %v21352_v28 = vld [vmem:[#allocation105_spill] sm:$0xff] }
 0x625   :  { %v7449_v31 = vmul.f32 %v18830_v61, %v21352_v28  ;;  %v14517_v50 = vld [vmem:[%s20174_s5 + $0x78] sm:$0xff]  }
 0x626   :  { %v7475_v13 = vpack.c.bf16 %v7447_v57, %v7446_v38  ;;  %v21357_v57 = vld [vmem:[#allocation102_spill] sm:$0xff]  ;;  %v7379_v38 = vrot.slane %v18439_v18, 1 }
 0x629   :  { %13357 = vmatmul.mubr.msk.bf16.vlgmr.msra.gmra.mrb[60].mxu0 %vm6906_vm1, %v7473_v44  ;;  %v14516_v44 = vld [vmem:[%s20174_s5 + $0x70] sm:$0xff]  }
 0x62a   :  { %13360 = vmatprep.mubr.msk.bf16.mxu0 %vm6906_vm1, %v7474_v35  ;;  %13389 = vmatpush3.bf16.msra.mxu0 %v18629_v23  ;;  %v7365_v23 = vrot.slane %v18398_v0, 1  ;;  %v21353_v35 = vld [vmem:[#allocation98_spill] sm:$0xff] }
 0x62b   :  { %13390 = vmatprep.subr.bf16.mxu0 %v14515_v41  ;;  %v7448_v15 = vmul.f32 %v18841_v25, %v21353_v35  ;;  %v18865_v35 = vsel %vm2983_vm3, %v7369_v45, %v7371_v52  ;;  %v21360_v25 = vld [vmem:[#allocation113_spill] sm:$0xff] }
 0x62c   :  { %v18858_v28 = vsel %vm2983_vm3, %v7363_v62, %v7365_v23  ;;  %v18861_v61 = vsel %vm2983_vm3, %v7365_v23, %v7367_v47  ;;  %21356 = vst [vmem:[#allocation57_spill] sm:$0xff] %v18865_v35  ;;  %v21358_v62 = vld [vmem:[#allocation108_spill] sm:$0xff]  ;;  %v18875_v23 = vsel %vm2983_vm3, %v7367_v47, %v7369_v45  ;;  %v21363_v47 = vld [vmem:[#allocation106_spill] sm:$0xff] }
 0x62d   :  { %v7476_v55 = vpack.c.bf16 %v7449_v31, %v7448_v15  ;;  %21354 = vst [vmem:[#allocation52_spill] sm:$0xff] %v18858_v28  ;;  %21355 = vst [vmem:[#allocation32_spill] sm:$0xff] %v18861_v61  ;;  %v7450_v31 = vmul.f32 %v18858_v28, %v21357_v57  ;;  %v7451_v15 = vmul.f32 %v18861_v61, %v21358_v62  ;;  %v21361_v57 = vrot.slane %v18762_v42, 1 }
 0x62e   :  { %13391 = vmatpush3.bf16.msra.mxu0 %v14515_v41  ;;  %v8413_v41 = vrot.slane %v18756_v34, 1  ;;  %21359 = vst [vmem:[#allocation2_spill] sm:$0xff] %v18875_v23  ;;  %v7452_v45 = vmul.f32 %v18875_v23, %v21363_v47  ;;  %v7375_v61 = vrot.slane %v18421_v3, 1 }
 0x62f   :  { %13392 = vmatprep.subr.bf16.mxu0 %v14516_v44  ;;  %v7477_v33 = vpack.c.bf16 %v7451_v15, %v7450_v31  ;;  %v21371_v15 = vld [vmem:[#allocation116_spill] sm:$0xff] }
 0x630   :  { %v18889_v62 = vsel %vm2983_vm3, %v21361_v57, %v8413_v41  ;;  %v18895_v28 = vsel %vm2983_vm3, %v8413_v41, 0.0 }
 0x631   :  { %13361 = vmatmul.mubr.msk.bf16.gmra.mrb[64].mxu0 %vm6906_vm1, %v7475_v13  ;;  %v18880_v13 = vld [vmem:[%s20174_s5 + $0x80] sm:$0xff]   ;;  %21362 = vst [vmem:[#allocation62_spill] sm:$0xff] %v18889_v62  ;;  %21364 = vst [vmem:[#allocation42_spill] sm:$0xff] %v18895_v28  ;;  %v18907_v47 = vmul.f32 %v18889_v62, %v18306_v24  ;;  %v18915_v41 = vmul.f32 %v18895_v28, %v18310_v54  ;;  %v7381_v54 = vrot.slane %v18448_v21, 1  ;;  %v7387_v28 = vrot.slane %v18461_v14, 1 }
 0x632   :  { %13364 = vmatprep.mubr.msk.bf16.mxu0 %vm6906_vm1, %v7476_v55  ;;  %13393 = vmatpush3.bf16.msra.mxu0 %v14516_v44  ;;  %v7453_v55 = vmul.f32 %v18865_v35, %v21360_v25  ;;  %v7373_v44 = vrot.slane %v18426_v60, 1  ;;  %v7377_v25 = vrot.slane %v18423_v27, 1 }
 0x633   :  { %13394 = vmatprep.subr.bf16.mxu0 %v14517_v50  ;;  %21367 = vst [vmem:[#allocation68_spill] sm:$0xff] %v18907_v47  ;;  %21369 = vst [vmem:[#allocation69_spill] sm:$0xff] %v18915_v41  ;;  %v21382_v41 = vld [vmem:[#allocation122_spill] sm:$0xff] }
 0x634   :  { %v7478_v35 = vpack.c.bf16 %v7453_v55, %v7452_v45  ;;  %v18900_v12 = vsel %vm2983_vm3, %v7371_v52, %v7373_v44  ;;  %v18903_v57 = vsel %vm2983_vm3, %v7373_v44, %v7375_v61  ;;  %v21370_v52 = vld [vmem:[#allocation110_spill] sm:$0xff]  ;;  %v18923_v24 = vsel %vm2983_vm3, %v7375_v61, %v7377_v25  ;;  %v21373_v44 = vld [vmem:[#allocation121_spill] sm:$0xff] }
 0x635   :  { %21365 = vst [vmem:[#allocation64_spill] sm:$0xff] %v18900_v12  ;;  %21366 = vst [vmem:[#allocation63_spill] sm:$0xff] %v18903_v57  ;;  %v7454_v31 = vmul.f32 %v18900_v12, %v21370_v52  ;;  %v7455_v55 = vmul.f32 %v18903_v57, %v21371_v15  ;;  %v7383_v52 = vrot.slane %v18443_v36, 1  ;;  %v7385_v15 = vrot.slane %v18445_v8, 1 }
 0x636   :  { %13395 = vmatpush3.bf16.msra.mxu0 %v14517_v50  ;;  %v18911_v50 = vsel %vm2983_vm3, %v7377_v25, %v7379_v38  ;;  %21372 = vst [vmem:[#allocation18_spill] sm:$0xff] %v18923_v24  ;;  %v18936_v25 = vsel %vm2983_vm3, %v7379_v38, %v7381_v54  ;;  %v21381_v38 = vld [vmem:[#allocation129_spill] sm:$0xff] }
 0x637   :  { %13428 = vmatprep.subr.bf16.mxu0 %v18880_v13  ;;  %21368 = vst [vmem:[#allocation59_spill] sm:$0xff] %v18911_v50  ;;  %v7457_v45 = vmul.f32 %v18911_v50, %v21373_v44  ;;  %v7479_v23 = vpack.c.bf16 %v7455_v55, %v7454_v31  ;;  %21375 = vst [vmem:[#allocation74_spill] sm:$0xff] %v18936_v25  ;;  %v18943_v44 = vsel %vm2983_vm3, %v7385_v15, %v7387_v28  ;;  %v21379_v31 = vld [vmem:[#allocation124_spill] sm:$0xff] }
 0x638   :  { %21377 = vst [vmem:[#allocation75_spill] sm:$0xff] %v18943_v44 }
 0x639   :  { %13365 = vmatmul.mubr.msk.bf16.gmra.mrb[68].mxu0 %vm6906_vm1, %v7477_v33  ;;  %v18939_v33 = vsel %vm2983_vm3, %v7381_v54, %v7383_v52  ;;  %v7389_v54 = vrot.slane %v18470_v53, 1 }
 0x63a   :  { %13368 = vmatprep.mubr.msk.bf16.mxu0 %vm6906_vm1, %v7478_v35  ;;  %v21374_v35 = vld [vmem:[#allocation114_spill] sm:$0xff]  ;;  %21376 = vst [vmem:[#allocation65_spill] sm:$0xff] %v18939_v33  ;;  %v7459_v55 = vmul.f32 %v18939_v33, %v21379_v31 }
 0x63b   :  { %v7456_v62 = vmul.f32 %v18923_v24, %v21374_v35  ;;  %v21378_v35 = vld [vmem:[#allocation118_spill] sm:$0xff]  ;;  %v18962_v31 = vsel %vm2983_vm3, %v7387_v28, %v7389_v54  ;;  %v21389_v28 = vld [vmem:[#allocation133_spill] sm:$0xff] }
 0x63c   :  { %v7458_v47 = vmul.f32 %v18936_v25, %v21378_v35  ;;  %v7393_v35 = vrot.slane %v18467_v46, 1  ;;  %21383 = vst [vmem:[#allocation80_spill] sm:$0xff] %v18962_v31 }
 0x63d   :  { %v7480_v61 = vpack.c.bf16 %v7457_v45, %v7456_v62  ;;  %v18951_v62 = vsel %vm2983_vm3, %v7383_v52, %v7385_v15  ;;  %v7461_v45 = vmul.f32 %v18943_v44, %v21381_v38 }
 0x63e   :  { %21380 = vst [vmem:[#allocation21_spill] sm:$0xff] %v18951_v62  ;;  %v7460_v24 = vmul.f32 %v18951_v62, %v21382_v41  ;;  %v7481_v50 = vpack.c.bf16 %v7459_v55, %v7458_v47  ;;  %v21386_v41 = vld [vmem:[#allocation126_spill] sm:$0xff]  ;;  %v21387_v47 = vld [vmem:[#allocation131_spill] sm:$0xff] }
 0x63f   :  { %v7462_v38 = vmul.f32 %v18962_v31, %v21386_v41  ;;  %v21390_v62 = vld [vmem:[#allocation134_spill] sm:$0xff]  ;;  %v7401_v41 = vrot.slane %v18489_v29, 1 }
 0x640   :  { %v7482_v25 = vpack.c.bf16 %v7461_v45, %v7460_v24 }
 0x641   :  { %13369 = vmatmul.mubr.msk.bf16.gmra.mrb[72].mxu0 %vm6906_vm1, %v7479_v23  ;;  %v7395_v23 = vrot.slane %v18483_v59, 1 }
 0x642   :  { %13372 = vmatprep.mubr.msk.bf16.mxu0 %vm6906_vm1, %v7480_v61  ;;  %v7391_v61 = vrot.slane %v18465_v30, 1 }
 0x643   :  { %v18969_v15 = vsel %vm2983_vm3, %v7393_v35, %v7395_v23 }
 0x644   :  { %v18965_v52 = vsel %vm2983_vm3, %v7389_v54, %v7391_v61  ;;  %21385 = vst [vmem:[#allocation206_spill] sm:$0xff] %v18969_v15  ;;  %v18977_v24 = vsel %vm2983_vm3, %v7391_v61, %v7393_v35  ;;  %v7465_v45 = vmul.f32 %v18969_v15, %v21389_v28  ;;  %v7397_v54 = vrot.slane %v18492_v51, 1 }
 0x645   :  { %21384 = vst [vmem:[#allocation71_spill] sm:$0xff] %v18965_v52  ;;  %v7463_v55 = vmul.f32 %v18965_v52, %v21387_v47  ;;  %21388 = vst [vmem:[#allocation209_spill] sm:$0xff] %v18977_v24  ;;  %v7464_v44 = vmul.f32 %v18977_v24, %v21390_v62  ;;  %v21393_v62 = vld [vmem:[#allocation135_spill] sm:$0xff] }
 0x646   :  { %v18988_v47 = vsel %vm2983_vm3, %v7395_v23, %v7397_v54  ;;  %v21396_v23 = vld [vmem:[#allocation141_spill] sm:$0xff] }
 0x647   :  { %v7483_v33 = vpack.c.bf16 %v7463_v55, %v7462_v38  ;;  %v7484_v31 = vpack.c.bf16 %v7465_v45, %v7464_v44  ;;  %21391 = vst [vmem:[#allocation82_spill] sm:$0xff] %v18988_v47  ;;  %v7466_v28 = vmul.f32 %v18988_v47, %v21393_v62  ;;  %v21394_v38 = vld [vmem:[#allocation138_spill] sm:$0xff]  ;;  %v21399_v62 = vrot.slane %v18762_v42, 1 }
 0x649   :  { %13373 = vmatmul.mubr.msk.bf16.gmra.mrb[76].mxu0 %vm6906_vm1, %v7481_v50  ;;  %v7403_v50 = vrot.slane %v18509_v20, 1 }
 0x64a   :  { %13376 = vmatprep.mubr.msk.bf16.mxu0 %vm6906_vm1, %v7482_v25  ;;  %v7399_v25 = vrot.slane %v18487_v63, 1 }
 0x64b   :  { %v18995_v35 = vsel %vm2983_vm3, %v7401_v41, %v7403_v50 }
 0x64c   :  { %v18991_v61 = vsel %vm2983_vm3, %v7397_v54, %v7399_v25  ;;  %v19003_v44 = vsel %vm2983_vm3, %v7399_v25, %v7401_v41  ;;  %v7469_v45 = vmul.f32 %v18995_v35, %v21396_v23  ;;  %v7405_v54 = vrot.slane %v18514_v22, 1  ;;  %v21401_v25 = vld [vmem:[#allocation143_spill] sm:$0xff]  ;;  %v21402_v23 = vld [vmem:[#allocation142_spill] sm:$0xff] }
 0x64d   :  { %21392 = vst [vmem:[#allocation4_spill] sm:$0xff] %v18991_v61  ;;  %v7467_v55 = vmul.f32 %v18991_v61, %v21394_v38  ;;  %21395 = vst [vmem:[#allocation86_spill] sm:$0xff] %v19003_v44 }
 0x64e   :  { %v19016_v38 = vsel %vm2983_vm3, %v7405_v54, %v21399_v62 }
 0x64f   :  { %v7485_v15 = vpack.c.bf16 %v7467_v55, %v7466_v28  ;;  %21400 = vst [vmem:[#allocation87_spill] sm:$0xff] %v19016_v38  ;;  %v21403_v28 = vld [vmem:[#allocation146_spill] sm:$0xff] }
 0x651   :  { %13377 = vmatmul.mubr.msk.bf16.gmra.mrb[80].mxu0 %vm6906_vm1, %v7483_v33  ;;  %v21397_v33 = vld [vmem:[#allocation139_spill] sm:$0xff] }
 0x652   :  { %13380 = vmatprep.mubr.msk.bf16.mxu0 %vm6906_vm1, %v7484_v31  ;;  %v7468_v24 = vmul.f32 %v19003_v44, %v21397_v33  ;;  %v19011_v31 = vsel %vm2983_vm3, %v7403_v50, %v7405_v54  ;;  %v7471_v33 = vmul.f32 %v19016_v38, %v21402_v23  ;;  %v21404_v50 = vld [vmem:[#allocation144_spill] sm:$0xff]  ;;  %v21406_v54 = vld [vmem:[#allocation149_spill] sm:$0xff] }
 0x653   :  { %21398 = vst [vmem:[#allocation77_spill] sm:$0xff] %v19011_v31  ;;  %v7470_v41 = vmul.f32 %v19011_v31, %v21401_v25  ;;  %v7769_v55 = vmul.f32 %v18556_v16, %v21404_v50  ;;  %v7772_v62 = vmul.f32 %v18553_v1, %v21406_v54  ;;  %v21407_v25 = vld [vmem:[#allocation151_spill] sm:$0xff]  ;;  %v21408_v38 = vld [vmem:[#allocation148_spill] sm:$0xff]  ;;  %v21411_v50 = vld [vmem:[#allocation14_spill] sm:$0xff] }
 0x654   :  { %v7486_v52 = vpack.c.bf16 %v7469_v45, %v7468_v24  ;;  %v7770_v24 = vmul.f32 %v18538_v37, %v21403_v28  ;;  %v7774_v23 = vmul.f32 %v18578_v48, %v21407_v25  ;;  %v7773_v37 = vmul.f32 %v18589_v11, %v21408_v38  ;;  %v14519_v16 = vld [vmem:[%s20174_s5 + $0x88] sm:$0xff]   ;;  %v14520_v38 = vld [vmem:[%s20174_s5 + $0x90] sm:$0xff]  }
 0x655   :  { %v7487_v45 = vpack.c.bf16 %v7471_v33, %v7470_v41  ;;  %v21414_v54 = vld [vmem:[#allocation152_spill] sm:$0xff] }
 0x656   :  { %v7801_v44 = vpack.c.bf16 %v7770_v24, %v7769_v55  ;;  %v7803_v41 = vpack.c.bf16 %v7774_v23, %v7773_v37  ;;  %v21410_v24 = vld [vmem:[#allocation153_spill] sm:$0xff] }
 0x657   :  { %v7776_v55 = vmul.f32 %v21411_v50, %v21410_v24  ;;  %v21418_v24 = vld [vmem:[#allocation157_spill] sm:$0xff]  ;;  %v21428_v50 = vld [vmem:[#allocation163_spill] sm:$0xff] }
 0x659   :  { %13381 = vmatmul.mubr.msk.bf16.gmra.mrb[84].mxu0 %vm6906_vm1, %v7485_v15  ;;  %v21405_v15 = vld [vmem:[#allocation145_spill] sm:$0xff] }
 0x65a   :  { %13384 = vmatprep.mubr.msk.bf16.mxu0 %vm6906_vm1, %v7486_v52  ;;  %v7771_v52 = vmul.f32 %v18550_v2, %v21405_v15  ;;  %v21413_v15 = vld [vmem:[#allocation28_spill] sm:$0xff] }
 0x65c   :  { %v7802_v28 = vpack.c.bf16 %v7772_v62, %v7771_v52  ;;  %v21415_v62 = vld [vmem:[#allocation31_spill] sm:$0xff] }
 0x65d   :  { %v7777_v25 = vmul.f32 %v21415_v62, %v21414_v54 }
 0x661   :  { %13385 = vmatmul.mubr.msk.bf16.gmra.mrb[88].mxu0 %vm6906_vm1, %v7487_v45  ;;  %v21412_v45 = vld [vmem:[#allocation155_spill] sm:$0xff] }
 0x662   :  { %13396 = vmatprep.mubr.msk.bf16.mxu0 %vm6906_vm1, %v7801_v44  ;;  %v21409_v44 = vld [vmem:[#allocation150_spill] sm:$0xff]  ;;  %v7778_v52 = vmul.f32 %v21413_v15, %v21412_v45  ;;  %v21419_v45 = vld [vmem:[#allocation24_spill] sm:$0xff] }
 0x663   :  { %v7775_v33 = vmul.f32 %v18582_v39, %v21409_v44  ;;  %v7780_v15 = vmul.f32 %v21419_v45, %v21418_v24  ;;  %v21425_v24 = vld [vmem:[#allocation35_spill] sm:$0xff]  ;;  %v21426_v45 = vld [vmem:[#allocation161_spill] sm:$0xff] }
 0x664   :  { %v7805_v37 = vpack.c.bf16 %v7778_v52, %v7777_v25  ;;  %v21422_v52 = vld [vmem:[#allocation156_spill] sm:$0xff]  ;;  %v21430_v39 = vld [vmem:[#allocation51_spill] sm:$0xff] }
 0x665   :  { %v7804_v23 = vpack.c.bf16 %v7776_v55, %v7775_v33  ;;  %v21420_v33 = vld [vmem:[#allocation159_spill] sm:$0xff]  ;;  %v21423_v25 = vld [vmem:[#allocation40_spill] sm:$0xff] }
 0x666   :  { %v21421_v55 = vld [vmem:[#allocation39_spill] sm:$0xff] }
 0x667   :  { %v7782_v54 = vmul.f32 %v21421_v55, %v21420_v33  ;;  %v7786_v33 = vmul.f32 %v18669_v17, %v21428_v50  ;;  %v21429_v55 = vld [vmem:[#allocation160_spill] sm:$0xff]  ;;  %v21438_v50 = vld [vmem:[#allocation9_spill] sm:$0xff] }
 0x669   :  { %13397 = vmatmul.mubr.msk.bf16.vlgmr.msra.gmra.mrb[60].mxu0 %vm6906_vm1, %v7802_v28  ;;  %v21416_v28 = vld [vmem:[#allocation154_spill] sm:$0xff] }
 0x66a   :  { %13400 = vmatprep.mubr.msk.bf16.mxu0 %vm6906_vm1, %v7803_v41  ;;  %13429 = vmatpush3.bf16.msra.mxu0 %v18880_v13  ;;  %v14521_v13 = vld [vmem:[%s20174_s5 + $0x98] sm:$0xff]   ;;  %v21417_v41 = vld [vmem:[#allocation26_spill] sm:$0xff] }
 0x66b   :  { %13430 = vmatprep.subr.bf16.mxu0 %v14519_v16  ;;  %v7779_v44 = vmul.f32 %v21417_v41, %v21416_v28  ;;  %v21424_v28 = vld [vmem:[#allocation158_spill] sm:$0xff]  ;;  %v21427_v41 = vld [vmem:[#allocation33_spill] sm:$0xff] }
 0x66c   :  { %v7783_v62 = vmul.f32 %v21425_v24, %v21424_v28  ;;  %v7784_v11 = vmul.f32 %v21427_v41, %v21426_v45  ;;  %v21436_v45 = vld [vmem:[#allocation23_spill] sm:$0xff]  ;;  %v21437_v24 = vld [vmem:[#allocation164_spill] sm:$0xff] }
 0x66d   :  { %v7789_v17 = vmul.f32 %v21438_v50, %v21437_v24  ;;  %v21451_v50 = vld [vmem:[#allocation85_spill] sm:$0xff] }
 0x66e   :  { %13431 = vmatpush3.bf16.msra.mxu0 %v14519_v16  ;;  %v14522_v16 = vld [vmem:[%s20174_s5 + $0xa0] sm:$0xff]  }
 0x66f   :  { %13432 = vmatprep.subr.bf16.mxu0 %v14520_v38 }
 0x671   :  { %13401 = vmatmul.mubr.msk.bf16.gmra.mrb[64].mxu0 %vm6906_vm1, %v7804_v23  ;;  %v7781_v23 = vmul.f32 %v21423_v25, %v21422_v52  ;;  %v7785_v52 = vmul.f32 %v21430_v39, %v21429_v55  ;;  %v21435_v25 = vld [vmem:[#allocation167_spill] sm:$0xff] }
 0x672   :  { %13404 = vmatprep.mubr.msk.bf16.mxu0 %vm6906_vm1, %v7805_v37  ;;  %13433 = vmatpush3.bf16.msra.mxu0 %v14520_v38  ;;  %v7806_v37 = vpack.c.bf16 %v7780_v15, %v7779_v44  ;;  %v21431_v44 = vld [vmem:[#allocation162_spill] sm:$0xff]  ;;  %v7790_v41 = vmul.f32 %v21436_v45, %v21435_v25 }
 0x673   :  { %13434 = vmatprep.subr.bf16.mxu0 %v14521_v13  ;;  %v7807_v38 = vpack.c.bf16 %v7782_v54, %v7781_v23  ;;  %v7809_v15 = vpack.c.bf16 %v7786_v33, %v7785_v52  ;;  %v21432_v54 = vld [vmem:[#allocation46_spill] sm:$0xff]  ;;  %v21441_v52 = vld [vmem:[#allocation72_spill] sm:$0xff] }
 0x674   :  { %v7787_v23 = vmul.f32 %v21432_v54, %v21431_v44  ;;  %v7811_v55 = vpack.c.bf16 %v7790_v41, %v7789_v17  ;;  %v21443_v44 = vld [vmem:[#allocation168_spill] sm:$0xff]  ;;  %v21447_v17 = vld [vmem:[#allocation25_spill] sm:$0xff] }
 0x676   :  { %13435 = vmatpush3.bf16.msra.mxu0 %v14521_v13  ;;  %v7808_v13 = vpack.c.bf16 %v7784_v11, %v7783_v62  ;;  %v21439_v11 = vld [vmem:[#allocation166_spill] sm:$0xff] }
 0x677   :  { %13468 = vmatprep.subr.bf16.mxu0 %v14522_v16  ;;  %v21440_v62 = vld [vmem:[#allocation54_spill] sm:$0xff] }
 0x678   :  { %v7791_v33 = vmul.f32 %v21440_v62, %v21439_v11  ;;  %v21450_v11 = vld [vmem:[#allocation171_spill] sm:$0xff] }
 0x679   :  { %13405 = vmatmul.mubr.msk.bf16.gmra.mrb[68].mxu0 %vm6906_vm1, %v7806_v37  ;;  %v21433_v37 = vld [vmem:[#allocation165_spill] sm:$0xff] }
 0x67a   :  { %13408 = vmatprep.mubr.msk.bf16.mxu0 %vm6906_vm1, %v7807_v38  ;;  %v21434_v38 = vld [vmem:[#allocation44_spill] sm:$0xff] }
 0x67b   :  { %v7788_v28 = vmul.f32 %v21434_v38, %v21433_v37  ;;  %v21444_v37 = vld [vmem:[#allocation22_spill] sm:$0xff]  ;;  %v21445_v38 = vld [vmem:[#allocation169_spill] sm:$0xff] }
 0x67c   :  { %v7794_v39 = vmul.f32 %v21444_v37, %v21443_v44  ;;  %v7793_v25 = vmul.f32 %v18742_v32, %v21445_v38  ;;  %v7797_v44 = vmul.f32 %v18768_v26, %v21451_v50 }
 0x67d   :  { %v7810_v48 = vpack.c.bf16 %v7788_v28, %v7787_v23  ;;  %v21448_v23 = vld [vmem:[#allocation81_spill] sm:$0xff]  ;;  %v21449_v28 = vld [vmem:[#allocation30_spill] sm:$0xff] }
 0x67e   :  { %v7813_v24 = vpack.c.bf16 %v7794_v39, %v7793_v25  ;;  %v21452_v39 = vld [vmem:[#allocation172_spill] sm:$0xff]  ;;  %v21454_v25 = vld [vmem:[#allocation175_spill] sm:$0xff] }
 0x681   :  { %13409 = vmatmul.mubr.msk.bf16.gmra.mrb[72].mxu0 %vm6906_vm1, %v7808_v13  ;;  %v21442_v13 = vld [vmem:[#allocation53_spill] sm:$0xff] }
 0x682   :  { %13412 = vmatprep.mubr.msk.bf16.mxu0 %vm6906_vm1, %v7809_v15  ;;  %v7792_v15 = vmul.f32 %v21442_v13, %v21441_v52  ;;  %v7798_v52 = vmul.f32 %v18759_v5, %v21450_v11  ;;  %v21457_v11 = vld [vmem:[#allocation147_spill] sm:$0xff] }
 0x684   :  { %v7812_v45 = vpack.c.bf16 %v7792_v15, %v7791_v33  ;;  %v7815_v38 = vpack.c.bf16 %v7798_v52, %v7797_v44  ;;  %v21453_v33 = vld [vmem:[#allocation88_spill] sm:$0xff]  ;;  %v21461_v44 = vld [vmem:[#allocation174_spill] sm:$0xff] }
 0x685   :  { %v7800_v15 = vmul.f32 %v18786_v7, %v21453_v33  ;;  %v21462_v7 = vld [vmem:[#allocation280_spill] sm:$0xff] }
 0x686   :  { %v21464_v33 = vld [vmem:[#allocation12_spill] sm:$0xff] }
 0x689   :  { %13413 = vmatmul.mubr.msk.bf16.gmra.mrb[76].mxu0 %vm6906_vm1, %v7810_v48  ;;  %v21446_v48 = vld [vmem:[#allocation170_spill] sm:$0xff] }
 0x68a   :  { %13416 = vmatprep.mubr.msk.bf16.mxu0 %vm6906_vm1, %v7811_v55  ;;  %v7795_v41 = vmul.f32 %v21447_v17, %v21446_v48  ;;  %v7796_v55 = vmul.f32 %v21449_v28, %v21448_v23  ;;  %v21456_v23 = vld [vmem:[#allocation173_spill] sm:$0xff] }
 0x68b   :  { %v8091_v5 = vmul.f32 %v21457_v11, %v21456_v23  ;;  %v21466_v23 = vld [vmem:[#allocation181_spill] sm:$0xff] }
 0x68c   :  { %v7814_v37 = vpack.c.bf16 %v7796_v55, %v7795_v41  ;;  %v21459_v55 = vld [vmem:[#allocation178_spill] sm:$0xff] }
 0x691   :  { %13417 = vmatmul.mubr.msk.bf16.gmra.mrb[80].mxu0 %vm6906_vm1, %v7812_v45  ;;  %v7799_v45 = vmul.f32 %v18781_v10, %v21452_v39  ;;  %v21460_v10 = vld [vmem:[#allocation11_spill] sm:$0xff]  ;;  %v21463_v39 = vld [vmem:[#allocation176_spill] sm:$0xff] }
 0x692   :  { %13420 = vmatprep.mubr.msk.bf16.mxu0 %vm6906_vm1, %v7813_v24  ;;  %v21455_v24 = vld [vmem:[#allocation281_spill] sm:$0xff]  ;;  %v8096_v52 = vmul.f32 %v21460_v10, %v21459_v55  ;;  %v21468_v55 = vld [vmem:[#allocation179_spill] sm:$0xff] }
 0x693   :  { %v8092_v48 = vmul.f32 %v21455_v24, %v21454_v25  ;;  %v7816_v32 = vpack.c.bf16 %v7800_v15, %v7799_v45  ;;  %v8095_v25 = vmul.f32 %v21464_v33, %v21463_v39  ;;  %v21465_v45 = vld [vmem:[#allocation56_spill] sm:$0xff] }
 0x694   :  { %v8098_v15 = vmul.f32 %v18367_v9, %v21465_v45  ;;  %v21471_v45 = vld [vmem:[#allocation180_spill] sm:$0xff] }
 0x695   :  { %v8123_v50 = vpack.c.bf16 %v8092_v48, %v8091_v5  ;;  %v14523_v5 = vld [vmem:[%s20174_s5 + $0xa8] sm:$0xff]   ;;  %v14524_v48 = vld [vmem:[%s20174_s5 + $0xb0] sm:$0xff]  }
 0x699   :  { %13421 = vmatmul.mubr.msk.bf16.gmra.mrb[84].mxu0 %vm6906_vm1, %v7814_v37  ;;  %v21458_v37 = vld [vmem:[#allocation55_spill] sm:$0xff] }
 0x69a   :  { %13424 = vmatprep.mubr.msk.bf16.mxu0 %vm6906_vm1, %v7815_v38  ;;  %v8094_v41 = vmul.f32 %v18343_v58, %v21458_v37  ;;  %v8093_v38 = vmul.f32 %v21462_v7, %v21461_v44  ;;  %v21467_v37 = vld [vmem:[#allocation177_spill] sm:$0xff] }
 0x69c   :  { %v8124_v24 = vpack.c.bf16 %v8094_v41, %v8093_v38  ;;  %v8097_v41 = vmul.f32 %v18365_v6, %v21467_v37  ;;  %v21469_v38 = vld [vmem:[#allocation183_spill] sm:$0xff] }
 0x69d   :  { %v8102_v39 = vmul.f32 %v18395_v43, %v21469_v38 }
 0x6a1   :  { %13425 = vmatmul.mubr.msk.bf16.gmra.mrb[88].mxu0 %vm6906_vm1, %v7816_v32  ;;  %v8125_v32 = vpack.c.bf16 %v8096_v52, %v8095_v25  ;;  %v8126_v52 = vpack.c.bf16 %v8098_v15, %v8097_v41  ;;  %v14526_v25 = vld [vmem:[%s20174_s5 + $0xc0] sm:$0xff]   ;;  %v8101_v15 = vmul.f32 %v18393_v40, %v21471_v45  ;;  %v21473_v41 = vld [vmem:[#allocation187_spill] sm:$0xff] }
 0x6a2   :  { %13436 = vmatprep.mubr.msk.bf16.mxu0 %vm6906_vm1, %v8123_v50  ;;  %v8100_v50 = vmul.f32 %v18398_v0, %v21466_v23  ;;  %v21472_v23 = vld [vmem:[#allocation182_spill] sm:$0xff] }
 0x6a3   :  { %v8128_v37 = vpack.c.bf16 %v8102_v39, %v8101_v15 }
 0x6a9   :  { %13437 = vmatmul.mubr.msk.bf16.vlgmr.msra.gmra.mrb[60].mxu0 %vm6906_vm1, %v8124_v24  ;;  %v8099_v24 = vmul.f32 %v18389_v4, %v21468_v55  ;;  %v8106_v55 = vmul.f32 %v18423_v27, %v21473_v41  ;;  %v21480_v41 = vld [vmem:[#allocation190_spill] sm:$0xff] }
 0x6aa   :  { %13440 = vmatprep.mubr.msk.bf16.mxu0 %vm6906_vm1, %v8125_v32  ;;  %13469 = vmatpush3.bf16.msra.mxu0 %v14522_v16  ;;  %v14525_v16 = vld [vmem:[%s20174_s5 + $0xb8] sm:$0xff]  }
 0x6ab   :  { %13470 = vmatprep.subr.bf16.mxu0 %v14523_v5  ;;  %v8127_v44 = vpack.c.bf16 %v8100_v50, %v8099_v24  ;;  %v8103_v50 = vmul.f32 %v18417_v19, %v21472_v23  ;;  %v21474_v24 = vld [vmem:[#allocation189_spill] sm:$0xff] }
 0x6ac   :  { %v21478_v23 = vld [vmem:[#allocation193_spill] sm:$0xff] }
 0x6ae   :  { %13471 = vmatpush3.bf16.msra.mxu0 %v14523_v5  ;;  %v21470_v5 = vld [vmem:[#allocation185_spill] sm:$0xff] }
 0x6af   :  { %13472 = vmatprep.subr.bf16.mxu0 %v14524_v48  ;;  %v8104_v32 = vmul.f32 %v18426_v60, %v21470_v5  ;;  %v21476_v5 = vld [vmem:[#allocation186_spill] sm:$0xff] }
 0x6b0   :  { %v8107_v45 = vmul.f32 %v18439_v18, %v21476_v5 }
 0x6b1   :  { %13441 = vmatmul.mubr.msk.bf16.gmra.mrb[64].mxu0 %vm6906_vm1, %v8126_v52  ;;  %v8108_v52 = vmul.f32 %v18448_v21, %v21474_v24  ;;  %v8111_v24 = vmul.f32 %v18461_v14, %v21480_v41 }
 0x6b2   :  { %13444 = vmatprep.mubr.msk.bf16.mxu0 %vm6906_vm1, %v8127_v44  ;;  %13473 = vmatpush3.bf16.msra.mxu0 %v14524_v48  ;;  %v8129_v48 = vpack.c.bf16 %v8104_v32, %v8103_v50  ;;  %v21475_v44 = vld [vmem:[#allocation184_spill] sm:$0xff]  ;;  %v21477_v32 = vld [vmem:[#allocation191_spill] sm:$0xff]  ;;  %v8112_v50 = vmul.f32 %v18470_v53, %v21478_v23 }
 0x6b3   :  { %13474 = vmatprep.subr.bf16.mxu0 %v14525_v16  ;;  %v8105_v38 = vmul.f32 %v18421_v3, %v21475_v44  ;;  %v8131_v39 = vpack.c.bf16 %v8108_v52, %v8107_v45  ;;  %v8110_v15 = vmul.f32 %v18445_v8, %v21477_v32  ;;  %v21484_v32 = vld [vmem:[#allocation194_spill] sm:$0xff] }
 0x6b4   :  { %v8133_v5 = vpack.c.bf16 %v8112_v50, %v8111_v24  ;;  %v8115_v23 = vmul.f32 %v18483_v59, %v21484_v32 }
 0x6b6   :  { %13475 = vmatpush3.bf16.msra.mxu0 %v14525_v16  ;;  %v8130_v16 = vpack.c.bf16 %v8106_v55, %v8105_v38  ;;  %v21481_v55 = vld [vmem:[#allocation195_spill] sm:$0xff]  ;;  %v21482_v38 = vld [vmem:[#allocation197_spill] sm:$0xff] }
 0x6b7   :  { %13508 = vmatprep.subr.bf16.mxu0 %v14526_v25  ;;  %v8114_v52 = vmul.f32 %v18467_v46, %v21481_v55  ;;  %v8116_v45 = vmul.f32 %v18492_v51, %v21482_v38  ;;  %v21488_v55 = vld [vmem:[#allocation198_spill] sm:$0xff] }
 0x6b8   :  { %v8119_v38 = vmul.f32 %v18509_v20, %v21488_v55 }
 0x6b9   :  { %13445 = vmatmul.mubr.msk.bf16.gmra.mrb[68].mxu0 %vm6906_vm1, %v8128_v37  ;;  %v21479_v37 = vld [vmem:[#allocation188_spill] sm:$0xff]  ;;  %v8135_v41 = vpack.c.bf16 %v8116_v45, %v8115_v23 }
 0x6ba   :  { %13448 = vmatprep.mubr.msk.bf16.mxu0 %vm6906_vm1, %v8129_v48  ;;  %v8109_v48 = vmul.f32 %v18443_v36, %v21479_v37 }
 0x6bc   :  { %v8132_v44 = vpack.c.bf16 %v8110_v15, %v8109_v48  ;;  %v21485_v15 = vld [vmem:[#allocation199_spill] sm:$0xff]  ;;  %v21486_v48 = vld [vmem:[#allocation201_spill] sm:$0xff] }
 0x6bd   :  { %v8118_v50 = vmul.f32 %v18489_v29, %v21485_v15  ;;  %v8120_v24 = vmul.f32 %v18514_v22, %v21486_v48  ;;  %v21492_v15 = vld [vmem:[#allocation200_spill] sm:$0xff] }
 0x6be   :  { %v8121_v48 = vmul.f32 %v18762_v42, %v21492_v15  ;;  %v14528_v15 = vld [vmem:[%s20174_s5 + $0xd0] sm:$0xff]  }
 0x6bf   :  { %v8137_v32 = vpack.c.bf16 %v8120_v24, %v8119_v38  ;;  %v21494_v24 = vld [vmem:[#allocation43_spill] sm:$0xff]  ;;  %v21495_v38 = vld [vmem:[#allocation204_spill] sm:$0xff] }
 0x6c1   :  { %13449 = vmatmul.mubr.msk.bf16.gmra.mrb[72].mxu0 %vm6906_vm1, %v8130_v16  ;;  %v21483_v16 = vld [vmem:[#allocation192_spill] sm:$0xff] }
 0x6c2   :  { %13452 = vmatprep.mubr.msk.bf16.mxu0 %vm6906_vm1, %v8131_v39  ;;  %v8113_v39 = vmul.f32 %v18465_v30, %v21483_v16 }
 0x6c4   :  { %v8134_v37 = vpack.c.bf16 %v8114_v52, %v8113_v39  ;;  %v21489_v52 = vld [vmem:[#allocation203_spill] sm:$0xff]  ;;  %v21490_v39 = vld [vmem:[#allocation202_spill] sm:$0xff] }
 0x6c5   :  { %v8122_v45 = vmul.f32 %v18756_v34, %v21489_v52  ;;  %v8418_v23 = vmul.f32 %v18792_v56, %v21490_v39  ;;  %v21497_v56 = vld [vmem:[#allocation8_spill] sm:$0xff] }
 0x6c9   :  { %13453 = vmatmul.mubr.msk.bf16.gmra.mrb[76].mxu0 %vm6906_vm1, %v8132_v44  ;;  %v21487_v44 = vld [vmem:[#allocation196_spill] sm:$0xff] }
 0x6ca   :  { %13456 = vmatprep.mubr.msk.bf16.mxu0 %vm6906_vm1, %v8133_v5  ;;  %v8117_v5 = vmul.f32 %v18487_v63, %v21487_v44  ;;  %v8138_v44 = vpack.c.bf16 %v8122_v45, %v8121_v48  ;;  %v21498_v45 = vld [vmem:[#allocation27_spill] sm:$0xff]  ;;  %v21502_v48 = vld [vmem:[#allocation210_spill] sm:$0xff] }
 0x6cb   :  { %v21499_v39 = vpack.c.bf16 %v21497_v56, %v21498_v45 }
 0x6cc   :  { %v8136_v16 = vpack.c.bf16 %v8118_v50, %v8117_v5  ;;  %v21493_v50 = vld [vmem:[#allocation207_spill] sm:$0xff] }
 0x6cd   :  { %v8421_v5 = vmul.f32 %v21494_v24, %v21493_v50  ;;  %v21504_v50 = vld [vmem:[#allocation213_spill] sm:$0xff] }
 0x6d1   :  { %13457 = vmatmul.mubr.msk.bf16.gmra.mrb[80].mxu0 %vm6906_vm1, %v8134_v37  ;;  %v21491_v37 = vld [vmem:[#allocation205_spill] sm:$0xff] }
 0x6d2   :  { %13460 = vmatprep.mubr.msk.bf16.mxu0 %vm6906_vm1, %v8135_v41  ;;  %v8419_v41 = vmul.f32 %v18789_v49, %v21491_v37  ;;  %v14527_v49 = vld [vmem:[%s20174_s5 + $0xc8] sm:$0xff]   ;;  %v21501_v37 = vld [vmem:[#allocation50_spill] sm:$0xff] }
 0x6d4   :  { %v8450_v55 = vpack.c.bf16 %v8419_v41, %v8418_v23  ;;  %v21500_v23 = vld [vmem:[#allocation211_spill] sm:$0xff] }
 0x6d5   :  { %v8425_v41 = vmul.f32 %v21501_v37, %v21500_v23  ;;  %v21508_v23 = vld [vmem:[#allocation215_spill] sm:$0xff]  ;;  %v21519_v37 = vld [vmem:[#allocation65_spill] sm:$0xff] }
 0x6d9   :  { %13461 = vmatmul.mubr.msk.bf16.gmra.mrb[84].mxu0 %vm6906_vm1, %v8136_v16  ;;  %v21496_v16 = vld [vmem:[#allocation37_spill] sm:$0xff] }
 0x6da   :  { %13464 = vmatprep.mubr.msk.bf16.mxu0 %vm6906_vm1, %v8137_v32  ;;  %v8420_v32 = vmul.f32 %v21496_v16, %v21495_v38  ;;  %v21521_v16 = vld [vmem:[#allocation18_spill] sm:$0xff] }
 0x6dc   :  { %v8451_v52 = vpack.c.bf16 %v8421_v5, %v8420_v32  ;;  %v21505_v5 = vld [vmem:[#allocation32_spill] sm:$0xff] }
 0x6dd   :  { %v8427_v38 = vmul.f32 %v21505_v5, %v21504_v50  ;;  %v21506_v32 = vld [vmem:[#allocation208_spill] sm:$0xff] }
 0x6e1   :  { %13465 = vmatmul.mubr.msk.bf16.gmra.mrb[88].mxu0 %vm6906_vm1, %v8138_v44  ;;  %v21503_v44 = vld [vmem:[#allocation52_spill] sm:$0xff] }
 0x6e2   :  { %13476 = vmatprep.mubr.msk.bf16.mxu0 %vm6906_vm1, %v8450_v55  ;;  %v8426_v55 = vmul.f32 %v21503_v44, %v21502_v48  ;;  %v21509_v48 = vld [vmem:[#allocation57_spill] sm:$0xff]  ;;  %v21516_v44 = vld [vmem:[#allocation218_spill] sm:$0xff] }
 0x6e3   :  { %v8429_v11 = vmul.f32 %v21509_v48, %v21508_v23  ;;  %v21514_v23 = vld [vmem:[#allocation219_spill] sm:$0xff] }
 0x6e4   :  { %v21515_v48 = vld [vmem:[#allocation59_spill] sm:$0xff] }
 0x6e5   :  { %v8433_v5 = vmul.f32 %v21515_v48, %v21514_v23  ;;  %v21526_v48 = vld [vmem:[#allocation225_spill] sm:$0xff] }
 0x6e9   :  { %13477 = vmatmul.mubr.msk.bf16.vlgmr.msra.gmra.mrb[60].mxu0 %vm6906_vm1, %v8451_v52  ;;  %v21507_v52 = vld [vmem:[#allocation36_spill] sm:$0xff] }
 0x6ea   :  { %13480 = vmatprep.mubr.msk.bf16.mxu0 %vm6906_vm1, %v21499_v39  ;;  %13509 = vmatpush3.bf16.msra.mxu0 %v14526_v25  ;;  %v8424_v56 = vmul.f32 %v21507_v52, %v21506_v32  ;;  %v14529_v25 = vld [vmem:[%s20174_s5 + $0xd8] sm:$0xff]   ;;  %v8454_v39 = vpack.c.bf16 %v8427_v38, %v8426_v55  ;;  %v21512_v55 = vld [vmem:[#allocation212_spill] sm:$0xff]  ;;  %v21513_v38 = vld [vmem:[#allocation2_spill] sm:$0xff] }
 0x6eb   :  { %13510 = vmatprep.subr.bf16.mxu0 %v14527_v49  ;;  %v21511_v32 = vld [vmem:[#allocation217_spill] sm:$0xff]  ;;  %v21517_v52 = vld [vmem:[#allocation74_spill] sm:$0xff] }
 0x6ec   :  { %v8453_v45 = vpack.c.bf16 %v8425_v41, %v8424_v56  ;;  %v21510_v41 = vld [vmem:[#allocation214_spill] sm:$0xff]  ;;  %v8431_v56 = vmul.f32 %v18903_v57, %v21511_v32  ;;  %v21520_v57 = vld [vmem:[#allocation216_spill] sm:$0xff] }
 0x6ed   :  { %v8430_v50 = vmul.f32 %v18900_v12, %v21510_v41  ;;  %v8434_v41 = vmul.f32 %v21517_v52, %v21516_v44  ;;  %v21518_v12 = vld [vmem:[#allocation221_spill] sm:$0xff]  ;;  %v21527_v44 = vld [vmem:[#allocation71_spill] sm:$0xff] }
 0x6ee   :  { %13511 = vmatpush3.bf16.msra.mxu0 %v14527_v49  ;;  %v14530_v49 = vld [vmem:[%s20174_s5 + $0xe0] sm:$0xff]   ;;  %v8435_v32 = vmul.f32 %v21519_v37, %v21518_v12  ;;  %v8439_v52 = vmul.f32 %v21527_v44, %v21526_v48  ;;  %v21529_v12 = vld [vmem:[#allocation21_spill] sm:$0xff] }
 0x6ef   :  { %13512 = vmatprep.subr.bf16.mxu0 %v14528_v15  ;;  %v21535_v48 = vld [vmem:[#allocation209_spill] sm:$0xff] }
 0x6f1   :  { %13481 = vmatmul.mubr.msk.bf16.gmra.mrb[64].mxu0 %vm6906_vm1, %v8453_v45  ;;  %v8428_v45 = vmul.f32 %v21513_v38, %v21512_v55  ;;  %v8432_v55 = vmul.f32 %v21521_v16, %v21520_v57  ;;  %v21528_v38 = vld [vmem:[#allocation220_spill] sm:$0xff] }
 0x6f2   :  { %13484 = vmatprep.mubr.msk.bf16.mxu0 %vm6906_vm1, %v8454_v39  ;;  %13513 = vmatpush3.bf16.msra.mxu0 %v14528_v15  ;;  %v8456_v15 = vpack.c.bf16 %v8431_v56, %v8430_v50  ;;  %v21522_v50 = vld [vmem:[#allocation223_spill] sm:$0xff]  ;;  %v8436_v37 = vmul.f32 %v21529_v12, %v21528_v38 }
 0x6f3   :  { %13514 = vmatprep.subr.bf16.mxu0 %v14529_v25  ;;  %v8455_v39 = vpack.c.bf16 %v8429_v11, %v8428_v45  ;;  %v8458_v11 = vpack.c.bf16 %v8435_v32, %v8434_v41  ;;  %v21523_v56 = vld [vmem:[#allocation75_spill] sm:$0xff]  ;;  %v21531_v41 = vld [vmem:[#allocation206_spill] sm:$0xff] }
 0x6f4   :  { %v8437_v45 = vmul.f32 %v21523_v56, %v21522_v50 }
 0x6f6   :  { %13515 = vmatpush3.bf16.msra.mxu0 %v14529_v25  ;;  %v8457_v25 = vpack.c.bf16 %v8433_v5, %v8432_v55  ;;  %v8459_v24 = vpack.c.bf16 %v8437_v45, %v8436_v37  ;;  %v21530_v5 = vld [vmem:[#allocation132_spill] sm:$0xff]  ;;  %v21532_v55 = vld [vmem:[#allocation127_spill] sm:$0xff] }
 0x6f7   :  { %13548 = vmatprep.subr.bf16.mxu0 %v14530_v49  ;;  %v8441_v32 = vmul.f32 %v21531_v41, %v21530_v5 }
 0x6f9   :  { %13485 = vmatmul.mubr.msk.bf16.gmra.mrb[68].mxu0 %vm6906_vm1, %v8455_v39  ;;  %v21524_v39 = vld [vmem:[#allocation222_spill] sm:$0xff] }
 0x6fa   :  { %13488 = vmatprep.mubr.msk.bf16.mxu0 %vm6906_vm1, %v8456_v15  ;;  %v21525_v15 = vld [vmem:[#allocation80_spill] sm:$0xff] }
 0x6fb   :  { %v8438_v23 = vmul.f32 %v21525_v15, %v21524_v39  ;;  %v21534_v39 = vld [vmem:[#allocation224_spill] sm:$0xff] }
 0x6fc   :  { %v8440_v44 = vmul.f32 %v21535_v48, %v21534_v39 }
 0x6fd   :  { %v8460_v57 = vpack.c.bf16 %v8439_v52, %v8438_v23  ;;  %v21537_v52 = vld [vmem:[#allocation228_spill] sm:$0xff]  ;;  %v21538_v23 = vld [vmem:[#allocation231_spill] sm:$0xff] }
 0x6fe   :  { %v8461_v15 = vpack.c.bf16 %v8441_v32, %v8440_v44  ;;  %v8446_v45 = vmul.f32 %v19011_v31, %v21537_v52  ;;  %v21543_v44 = vld [vmem:[#allocation62_spill] sm:$0xff]  ;;  %v21547_v31 = vld [vmem:[#allocation235_spill] sm:$0xff] }
 0x701   :  { %13489 = vmatmul.mubr.msk.bf16.gmra.mrb[72].mxu0 %vm6906_vm1, %v8457_v25  ;;  %v8442_v25 = vmul.f32 %v18988_v47, %v21532_v55  ;;  %v21540_v55 = vld [vmem:[#allocation226_spill] sm:$0xff] }
 0x702   :  { %13492 = vmatprep.mubr.msk.bf16.mxu0 %vm6906_vm1, %v8458_v11  ;;  %v21533_v11 = vld [vmem:[#allocation227_spill] sm:$0xff] }
 0x703   :  { %v8443_v50 = vmul.f32 %v18991_v61, %v21533_v11  ;;  %v21541_v11 = vld [vmem:[#allocation86_spill] sm:$0xff] }
 0x704   :  { %v8444_v61 = vmul.f32 %v21541_v11, %v21540_v55 }
 0x705   :  { %v8462_v38 = vpack.c.bf16 %v8443_v50, %v8442_v25  ;;  %v21544_v25 = vld [vmem:[#allocation232_spill] sm:$0xff]  ;;  %v21545_v50 = vld [vmem:[#allocation42_spill] sm:$0xff] }
 0x709   :  { %13493 = vmatmul.mubr.msk.bf16.gmra.mrb[76].mxu0 %vm6906_vm1, %v8459_v24  ;;  %v21536_v24 = vld [vmem:[#allocation229_spill] sm:$0xff] }
 0x70a   :  { %13496 = vmatprep.mubr.msk.bf16.mxu0 %vm6906_vm1, %v8460_v57  ;;  %v8445_v37 = vmul.f32 %v18995_v35, %v21536_v24  ;;  %v21539_v57 = vld [vmem:[#allocation87_spill] sm:$0xff]  ;;  %v21546_v24 = vld [vmem:[#allocation140_spill] sm:$0xff] }
 0x70b   :  { %v8447_v5 = vmul.f32 %v21539_v57, %v21538_v23  ;;  %v8742_v52 = vmul.f32 %v18550_v2, %v21546_v24  ;;  %v8743_v23 = vmul.f32 %v18553_v1, %v21547_v31  ;;  %v21555_v2 = vld [vmem:[#allocation20_spill] sm:$0xff]  ;;  %v14531_v1 = vld [vmem:[%s20174_s5 + $0xe8] sm:$0xff]  }
 0x70c   :  { %v8463_v47 = vpack.c.bf16 %v8445_v37, %v8444_v61  ;;  %v21549_v61 = vld [vmem:[#allocation19_spill] sm:$0xff] }
 0x70d   :  { %v8464_v39 = vpack.c.bf16 %v8447_v5, %v8446_v45  ;;  %v8773_v55 = vpack.c.bf16 %v8743_v23, %v8742_v52  ;;  %v21550_v45 = vld [vmem:[#allocation236_spill] sm:$0xff]  ;;  %v21551_v5 = vld [vmem:[#allocation15_spill] sm:$0xff]  ;;  %v21558_v23 = vld [vmem:[#allocation49_spill] sm:$0xff] }
 0x70e   :  { %v14532_v52 = vld [vmem:[%s20174_s5 + $0xf0] sm:$0xff]  }
 0x711   :  { %13497 = vmatmul.mubr.msk.bf16.gmra.mrb[80].mxu0 %vm6906_vm1, %v8461_v15  ;;  %v21542_v15 = vld [vmem:[#allocation230_spill] sm:$0xff] }
 0x712   :  { %13500 = vmatprep.mubr.msk.bf16.mxu0 %vm6906_vm1, %v8462_v38  ;;  %v8448_v32 = vmul.f32 %v21543_v44, %v21542_v15  ;;  %v8449_v38 = vmul.f32 %v21545_v50, %v21544_v25  ;;  %v21552_v15 = vld [vmem:[#allocation239_spill] sm:$0xff]  ;;  %v21553_v44 = vld [vmem:[#allocation14_spill] sm:$0xff]  ;;  %v21554_v50 = vld [vmem:[#allocation233_spill] sm:$0xff] }
 0x713   :  { %v8747_v25 = vmul.f32 %v21553_v44, %v21552_v15  ;;  %v8744_v24 = vmul.f32 %v21555_v2, %v21554_v50  ;;  %v21565_v50 = vld [vmem:[#allocation39_spill] sm:$0xff] }
 0x714   :  { %v8465_v57 = vpack.c.bf16 %v8449_v38, %v8448_v32  ;;  %v21557_v32 = vld [vmem:[#allocation28_spill] sm:$0xff] }
 0x719   :  { %13501 = vmatmul.mubr.msk.bf16.gmra.mrb[84].mxu0 %vm6906_vm1, %v8463_v47  ;;  %v21548_v47 = vld [vmem:[#allocation237_spill] sm:$0xff] }
 0x71a   :  { %13504 = vmatprep.mubr.msk.bf16.mxu0 %vm6906_vm1, %v8464_v39  ;;  %v8745_v37 = vmul.f32 %v21549_v61, %v21548_v47  ;;  %v8746_v39 = vmul.f32 %v21551_v5, %v21550_v45  ;;  %v21560_v61 = vld [vmem:[#allocation3_spill] sm:$0xff]  ;;  %v21562_v5 = vld [vmem:[#allocation238_spill] sm:$0xff] }
 0x71c   :  { %v8774_v11 = vpack.c.bf16 %v8745_v37, %v8744_v24  ;;  %v8775_v31 = vpack.c.bf16 %v8747_v25, %v8746_v39  ;;  %v21561_v37 = vld [vmem:[#allocation24_spill] sm:$0xff]  ;;  %v21563_v39 = vld [vmem:[#allocation31_spill] sm:$0xff]  ;;  %v21564_v25 = vld [vmem:[#allocation58_spill] sm:$0xff] }
 0x71d   :  { %v8751_v45 = vmul.f32 %v21561_v37, %v21560_v61  ;;  %v8753_v2 = vmul.f32 %v21565_v50, %v21564_v25  ;;  %v14534_v24 = vld [vmem:[%s20174_s5 + $0x100] sm:$0xff]   ;;  %v21576_v25 = vld [vmem:[#allocation44_spill] sm:$0xff] }
 0x721   :  { %13505 = vmatmul.mubr.msk.bf16.gmra.mrb[88].mxu0 %vm6906_vm1, %v8465_v57  ;;  %v21556_v57 = vld [vmem:[#allocation38_spill] sm:$0xff] }
 0x722   :  { %13516 = vmatprep.mubr.msk.bf16.mxu0 %vm6906_vm1, %v8773_v55  ;;  %v8749_v38 = vmul.f32 %v21557_v32, %v21556_v57  ;;  %v21559_v55 = vld [vmem:[#allocation26_spill] sm:$0xff]  ;;  %v21568_v32 = vld [vmem:[#allocation17_spill] sm:$0xff] }
 0x723   :  { %v8750_v47 = vmul.f32 %v21559_v55, %v21558_v23  ;;  %v21570_v55 = vld [vmem:[#allocation45_spill] sm:$0xff] }
 0x725   :  { %v8777_v44 = vpack.c.bf16 %v8751_v45, %v8750_v47  ;;  %v21571_v47 = vld [vmem:[#allocation40_spill] sm:$0xff]  ;;  %v21572_v45 = vld [vmem:[#allocation6_spill] sm:$0xff] }
 0x726   :  { %v8752_v61 = vmul.f32 %v21571_v47, %v21570_v55  ;;  %v21581_v55 = vld [vmem:[#allocation73_spill] sm:$0xff] }
 0x727   :  { %v8762_v47 = vmul.f32 %v21440_v62, %v21581_v55  ;;  %v21593_v55 = vld [vmem:[#allocation78_spill] sm:$0xff] }
 0x728   :  { %v8778_v37 = vpack.c.bf16 %v8753_v2, %v8752_v61  ;;  %v21582_v61 = vld [vmem:[#allocation7_spill] sm:$0xff] }
 0x729   :  { %13517 = vmatmul.mubr.msk.bf16.vlgmr.msra.gmra.mrb[60].mxu0 %vm6906_vm1, %v8774_v11  ;;  %v8748_v11 = vmul.f32 %v21563_v39, %v21562_v5  ;;  %v21573_v5 = vld [vmem:[#allocation48_spill] sm:$0xff] }
 0x72a   :  { %13520 = vmatprep.mubr.msk.bf16.mxu0 %vm6906_vm1, %v8775_v31  ;;  %13549 = vmatpush3.bf16.msra.mxu0 %v14530_v49  ;;  %v14533_v49 = vld [vmem:[%s20174_s5 + $0xf8] sm:$0xff]   ;;  %v21567_v31 = vld [vmem:[#allocation35_spill] sm:$0xff]  ;;  %v8757_v39 = vmul.f32 %v21573_v5, %v21572_v45 }
 0x72b   :  { %13550 = vmatprep.subr.bf16.mxu0 %v14531_v1  ;;  %v8776_v15 = vpack.c.bf16 %v8749_v38, %v8748_v11  ;;  %v21569_v38 = vld [vmem:[#allocation33_spill] sm:$0xff]  ;;  %v21574_v11 = vld [vmem:[#allocation67_spill] sm:$0xff] }
 0x72c   :  { %v8755_v23 = vmul.f32 %v21569_v38, %v21568_v32  ;;  %v21580_v38 = vld [vmem:[#allocation23_spill] sm:$0xff] }
 0x72e   :  { %13551 = vmatpush3.bf16.msra.mxu0 %v14531_v1  ;;  %v21566_v1 = vld [vmem:[#allocation61_spill] sm:$0xff] }
 0x72f   :  { %13552 = vmatprep.subr.bf16.mxu0 %v14532_v52  ;;  %v8754_v57 = vmul.f32 %v21567_v31, %v21566_v1  ;;  %v21577_v1 = vld [vmem:[#allocation60_spill] sm:$0xff]  ;;  %v21578_v31 = vld [vmem:[#allocation51_spill] sm:$0xff] }
 0x730   :  { %v8756_v32 = vmul.f32 %v21578_v31, %v21577_v1  ;;  %v21588_v1 = vld [vmem:[#allocation241_spill] sm:$0xff]  ;;  %v21589_v31 = vld [vmem:[#allocation240_spill] sm:$0xff] }
 0x731   :  { %13521 = vmatmul.mubr.msk.bf16.gmra.mrb[64].mxu0 %vm6906_vm1, %v8776_v15  ;;  %v8758_v15 = vmul.f32 %v21432_v54, %v21574_v11  ;;  %v8763_v54 = vmul.f32 %v21442_v13, %v21582_v61  ;;  %v8767_v62 = vmul.f32 %v21449_v28, %v21588_v1  ;;  %v21590_v13 = vld [vmem:[#allocation34_spill] sm:$0xff]  ;;  %v21602_v1 = vld [vmem:[#allocation247_spill] sm:$0xff] }
 0x732   :  { %13524 = vmatprep.mubr.msk.bf16.mxu0 %vm6906_vm1, %v8777_v44  ;;  %13553 = vmatpush3.bf16.msra.mxu0 %v14532_v52  ;;  %v8779_v52 = vpack.c.bf16 %v8755_v23, %v8754_v57  ;;  %v21575_v44 = vld [vmem:[#allocation16_spill] sm:$0xff]  ;;  %v21579_v57 = vld [vmem:[#allocation70_spill] sm:$0xff] }
 0x733   :  { %13554 = vmatprep.subr.bf16.mxu0 %v14533_v49  ;;  %v8759_v50 = vmul.f32 %v21576_v25, %v21575_v44  ;;  %v8761_v23 = vmul.f32 %v21580_v38, %v21579_v57  ;;  %v8783_v11 = vpack.c.bf16 %v8763_v54, %v8762_v47  ;;  %v21587_v25 = vld [vmem:[#allocation79_spill] sm:$0xff]  ;;  %v21592_v38 = vld [vmem:[#allocation29_spill] sm:$0xff]  ;;  %v8768_v47 = vmul.f32 %v18768_v26, %v21593_v55 }
 0x734   :  { %v21591_v57 = vld [vmem:[#allocation83_spill] sm:$0xff] }
 0x735   :  { %v8781_v2 = vpack.c.bf16 %v8759_v50, %v8758_v15  ;;  %v21586_v15 = vld [vmem:[#allocation22_spill] sm:$0xff]  ;;  %v8766_v50 = vmul.f32 %v21447_v17, %v21587_v25  ;;  %v21594_v17 = vrot.slane %v18756_v34, 7  ;;  %v21595_v54 = vld [vmem:[#allocation47_spill] sm:$0xff] }
 0x736   :  { %13555 = vmatpush3.bf16.msra.mxu0 %v14533_v49  ;;  %v8780_v49 = vpack.c.bf16 %v8757_v39, %v8756_v32  ;;  %v21585_v39 = vld [vmem:[#allocation76_spill] sm:$0xff]  ;;  %v8764_v32 = vmul.f32 %v21590_v13, %v21589_v31  ;;  %v21603_v31 = vld [vmem:[#allocation249_spill] sm:$0xff] }
 0x737   :  { %13588 = vmatprep.subr.bf16.mxu0 %v14534_v24  ;;  %v8765_v44 = vmul.f32 %v21586_v15, %v21585_v39  ;;  %v8741_v28 = vsel %vm1959_vm2, %v21594_v17, 0.0  ;;  %v21600_v15 = vld [vmem:[#allocation89_spill] sm:$0xff]  ;;  %v9068_v13 = vmul.f32 %v18367_v9, %v21603_v31  ;;  %v14536_v17 = vld [vmem:[%s20174_s5 + $0x110] sm:$0xff]  }
 0x738   :  { %v9063_v26 = vmul.f32 %v21462_v7, %v21600_v15  ;;  %v21610_v15 = vld [vmem:[#allocation255_spill] sm:$0xff] }
 0x739   :  { %13525 = vmatmul.mubr.msk.bf16.gmra.mrb[68].mxu0 %vm6906_vm1, %v8778_v37  ;;  %v21583_v37 = vld [vmem:[#allocation66_spill] sm:$0xff] }
 0x73a   :  { %13528 = vmatprep.mubr.msk.bf16.mxu0 %vm6906_vm1, %v8779_v52  ;;  %v21584_v52 = vld [vmem:[#allocation9_spill] sm:$0xff] }
 0x73b   :  { %v8760_v45 = vmul.f32 %v21584_v52, %v21583_v37  ;;  %v21596_v37 = vld [vmem:[#allocation41_spill] sm:$0xff] }
 0x73c   :  { %v21597_v52 = vpack.c.bf16 %v21595_v54, %v21596_v37  ;;  %v21608_v37 = vld [vmem:[#allocation248_spill] sm:$0xff] }
 0x73d   :  { %v8782_v5 = vpack.c.bf16 %v8761_v23, %v8760_v45  ;;  %v8769_v23 = vmul.f32 %v21592_v38, %v21591_v57  ;;  %v21598_v45 = vld [vmem:[#allocation242_spill] sm:$0xff] }
 0x73f   :  { %v8786_v61 = vpack.c.bf16 %v8769_v23, %v8768_v47  ;;  %v14535_v23 = vld [vmem:[%s20174_s5 + $0x108] sm:$0xff]  }
 0x740   :  { %v21606_v47 = vld [vmem:[#allocation251_spill] sm:$0xff] }
 0x741   :  { %13529 = vmatmul.mubr.msk.bf16.gmra.mrb[72].mxu0 %vm6906_vm1, %v8780_v49  ;;  %v8784_v49 = vpack.c.bf16 %v8765_v44, %v8764_v32  ;;  %v21601_v44 = vld [vmem:[#allocation244_spill] sm:$0xff]  ;;  %v21604_v32 = vld [vmem:[#allocation243_spill] sm:$0xff] }
 0x742   :  { %13532 = vmatprep.mubr.msk.bf16.mxu0 %vm6906_vm1, %v8781_v2  ;;  %v8785_v2 = vpack.c.bf16 %v8767_v62, %v8766_v50  ;;  %v9066_v62 = vmul.f32 %v21460_v10, %v21602_v1 }
 0x749   :  { %13533 = vmatmul.mubr.msk.bf16.gmra.mrb[76].mxu0 %vm6906_vm1, %v8782_v5  ;;  %v8772_v5 = vmul.f32 %v8741_v28, %v21598_v45  ;;  %v21607_v28 = vld [vmem:[#allocation253_spill] sm:$0xff]  ;;  %v21609_v45 = vld [vmem:[#allocation250_spill] sm:$0xff] }
 0x74a   :  { %13536 = vmatprep.mubr.msk.bf16.mxu0 %vm6906_vm1, %v8783_v11  ;;  %v21599_v11 = vld [vmem:[#allocation245_spill] sm:$0xff]  ;;  %v9072_v54 = vmul.f32 %v18395_v43, %v21607_v28 }
 0x74b   :  { %v9064_v39 = vmul.f32 %v18343_v58, %v21599_v11  ;;  %v8788_v25 = vpack.c.bf16 %v21601_v44, %v8772_v5  ;;  %v9071_v5 = vmul.f32 %v18393_v40, %v21609_v45  ;;  %v21611_v44 = vld [vmem:[#allocation257_spill] sm:$0xff] }
 0x74d   :  { %v9093_v50 = vpack.c.bf16 %v9064_v39, %v9063_v26  ;;  %v9097_v39 = vpack.c.bf16 %v9072_v54, %v9071_v5  ;;  %v9074_v26 = vmul.f32 %v18426_v60, %v21610_v15  ;;  %v21618_v54 = vld [vmem:[#allocation263_spill] sm:$0xff]  ;;  %v21620_v5 = vld [vmem:[#allocation260_spill] sm:$0xff] }
 0x751   :  { %13537 = vmatmul.mubr.msk.bf16.gmra.mrb[80].mxu0 %vm6906_vm1, %v8784_v49  ;;  %v9065_v49 = vmul.f32 %v21464_v33, %v21604_v32 }
 0x752   :  { %13540 = vmatprep.mubr.msk.bf16.mxu0 %vm6906_vm1, %v8785_v2  ;;  %v21605_v2 = vld [vmem:[#allocation246_spill] sm:$0xff] }
 0x753   :  { %v9067_v57 = vmul.f32 %v18365_v6, %v21605_v2  ;;  %v9094_v38 = vpack.c.bf16 %v9066_v62, %v9065_v49  ;;  %v21613_v62 = vld [vmem:[#allocation254_spill] sm:$0xff]  ;;  %v21614_v49 = vld [vmem:[#allocation259_spill] sm:$0xff] }
 0x754   :  { %v9075_v31 = vmul.f32 %v18421_v3, %v21613_v62  ;;  %v9078_v2 = vmul.f32 %v18448_v21, %v21614_v49  ;;  %v21624_v62 = vld [vmem:[#allocation264_spill] sm:$0xff] }
 0x755   :  { %v9095_v55 = vpack.c.bf16 %v9068_v13, %v9067_v57  ;;  %v21615_v57 = vld [vmem:[#allocation261_spill] sm:$0xff] }
 0x759   :  { %13541 = vmatmul.mubr.msk.bf16.gmra.mrb[84].mxu0 %vm6906_vm1, %v8786_v61  ;;  %v9070_v61 = vmul.f32 %v18398_v0, %v21606_v47  ;;  %v21617_v47 = vld [vmem:[#allocation258_spill] sm:$0xff] }
 0x75a   :  { %13544 = vmatprep.mubr.msk.bf16.mxu0 %vm6906_vm1, %v21597_v52  ;;  %v9069_v52 = vmul.f32 %v18389_v4, %v21608_v37  ;;  %v9082_v37 = vmul.f32 %v18470_v53, %v21618_v54 }
 0x75c   :  { %v9096_v11 = vpack.c.bf16 %v9070_v61, %v9069_v52  ;;  %v9079_v61 = vmul.f32 %v18443_v36, %v21617_v47  ;;  %v21619_v52 = vld [vmem:[#allocation265_spill] sm:$0xff]  ;;  %v21628_v47 = vld [vmem:[#allocation268_spill] sm:$0xff] }
 0x75d   :  { %v9084_v45 = vmul.f32 %v18467_v46, %v21619_v52  ;;  %v21630_v52 = vld [vmem:[#allocation274_spill] sm:$0xff] }
 0x761   :  { %13545 = vmatmul.mubr.msk.bf16.gmra.mrb[88].mxu0 %vm6906_vm1, %v8788_v25  ;;  %v9076_v25 = vmul.f32 %v18423_v27, %v21611_v44  ;;  %v21622_v44 = vld [vmem:[#allocation267_spill] sm:$0xff] }
 0x762   :  { %13556 = vmatprep.mubr.msk.bf16.mxu0 %vm6906_vm1, %v9093_v50  ;;  %v21612_v50 = vld [vmem:[#allocation252_spill] sm:$0xff] }
 0x763   :  { %v9073_v1 = vmul.f32 %v18417_v19, %v21612_v50  ;;  %v9099_v32 = vpack.c.bf16 %v9076_v25, %v9075_v31  ;;  %v9086_v25 = vmul.f32 %v18492_v51, %v21622_v44  ;;  %v21623_v50 = vld [vmem:[#allocation269_spill] sm:$0xff]  ;;  %v9085_v31 = vmul.f32 %v18483_v59, %v21624_v62  ;;  %v21635_v44 = vld [vmem:[#allocation99_spill] sm:$0xff]  ;;  %v21638_v62 = vld [vmem:[#allocation36_spill] sm:$0xff] }
 0x765   :  { %v9098_v13 = vpack.c.bf16 %v9074_v26, %v9073_v1  ;;  %v9088_v1 = vmul.f32 %v18489_v29, %v21623_v50  ;;  %v9104_v49 = vpack.c.bf16 %v9086_v25, %v9085_v31  ;;  %v21636_v25 = vld [vmem:[#allocation50_spill] sm:$0xff] }
 0x766   :  { %v9386_v50 = vmul.f32 %v21636_v25, %v21635_v44  ;;  %v21653_v44 = vld [vmem:[#allocation63_spill] sm:$0xff] }
 0x769   :  { %13557 = vmatmul.mubr.msk.bf16.vlgmr.msra.gmra.mrb[60].mxu0 %vm6906_vm1, %v9094_v38  ;;  %v9080_v38 = vmul.f32 %v18445_v8, %v21615_v57  ;;  %v21626_v57 = vld [vmem:[#allocation271_spill] sm:$0xff] }
 0x76a   :  { %13560 = vmatprep.mubr.msk.bf16.mxu0 %vm6906_vm1, %v9095_v55  ;;  %13589 = vmatpush3.bf16.msra.mxu0 %v14534_v24  ;;  %v14537_v24 = vld [vmem:[%s20174_s5 + $0x118] sm:$0xff]  }
 0x76b   :  { %13590 = vmatprep.subr.bf16.mxu0 %v14535_v23  ;;  %v9101_v28 = vpack.c.bf16 %v9080_v38, %v9079_v61  ;;  %v9090_v38 = vmul.f32 %v18514_v22, %v21626_v57  ;;  %v9089_v61 = vmul.f32 %v18509_v20, %v21628_v47  ;;  %v21642_v57 = vld [vmem:[#allocation275_spill] sm:$0xff]  ;;  %v21645_v47 = vld [vmem:[#allocation32_spill] sm:$0xff] }
 0x76d   :  { %v9106_v54 = vpack.c.bf16 %v9090_v38, %v9089_v61  ;;  %v21643_v38 = vld [vmem:[#allocation52_spill] sm:$0xff] }
 0x76e   :  { %13591 = vmatpush3.bf16.msra.mxu0 %v14535_v23  ;;  %v21616_v23 = vld [vmem:[#allocation256_spill] sm:$0xff] }
 0x76f   :  { %13592 = vmatprep.subr.bf16.mxu0 %v14536_v17  ;;  %v9077_v55 = vmul.f32 %v18439_v18, %v21616_v23  ;;  %v21627_v23 = vld [vmem:[#allocation272_spill] sm:$0xff] }
 0x771   :  { %13561 = vmatmul.mubr.msk.bf16.gmra.mrb[64].mxu0 %vm6906_vm1, %v9096_v11  ;;  %v9081_v11 = vmul.f32 %v18461_v14, %v21620_v5 }
 0x772   :  { %13564 = vmatprep.mubr.msk.bf16.mxu0 %vm6906_vm1, %v9097_v39  ;;  %13593 = vmatpush3.bf16.msra.mxu0 %v14536_v17  ;;  %v9100_v17 = vpack.c.bf16 %v9078_v2, %v9077_v55  ;;  %v9092_v55 = vmul.f32 %v18756_v34, %v21627_v23  ;;  %v9387_v23 = vmul.f32 %v21643_v38, %v21642_v57  ;;  %v21658_v57 = vld [vmem:[#allocation74_spill] sm:$0xff] }
 0x773   :  { %13594 = vmatprep.subr.bf16.mxu0 %v14537_v24  ;;  %v9102_v15 = vpack.c.bf16 %v9082_v37, %v9081_v11  ;;  %v21632_v11 = vld [vmem:[#allocation273_spill] sm:$0xff] }
 0x776   :  { %13595 = vmatpush3.bf16.msra.mxu0 %v14537_v24  ;;  %v21621_v24 = vld [vmem:[#allocation262_spill] sm:$0xff] }
 0x777   :  { %v9083_v39 = vmul.f32 %v18465_v30, %v21621_v24  ;;  %v21633_v24 = vld [vmem:[#allocation37_spill] sm:$0xff] }
 0x779   :  { %13565 = vmatmul.mubr.msk.bf16.gmra.mrb[68].mxu0 %vm6906_vm1, %v9098_v13  ;;  %v9103_v26 = vpack.c.bf16 %v9084_v45, %v9083_v39  ;;  %v21625_v13 = vld [vmem:[#allocation266_spill] sm:$0xff]  ;;  %v21631_v45 = vld [vmem:[#allocation43_spill] sm:$0xff]  ;;  %v9381_v39 = vmul.f32 %v21633_v24, %v21632_v11 }
 0x77a   :  { %13568 = vmatprep.mubr.msk.bf16.mxu0 %vm6906_vm1, %v9099_v32  ;;  %v9087_v32 = vmul.f32 %v18487_v63, %v21625_v13  ;;  %v9382_v5 = vmul.f32 %v21631_v45, %v21630_v52  ;;  %v21649_v52 = vld [vmem:[#allocation2_spill] sm:$0xff]  ;;  %v21650_v24 = vld [vmem:[#allocation103_spill] sm:$0xff] }
 0x77c   :  { %v9105_v2 = vpack.c.bf16 %v9088_v1, %v9087_v32  ;;  %v21637_v1 = vld [vmem:[#allocation96_spill] sm:$0xff]  ;;  %v21639_v32 = vld [vmem:[#allocation13_spill] sm:$0xff] }
 0x77d   :  { %v9385_v31 = vmul.f32 %v21638_v62, %v21637_v1  ;;  %v21655_v1 = vld [vmem:[#allocation59_spill] sm:$0xff] }
 0x77f   :  { %v9413_v13 = vpack.c.bf16 %v9386_v50, %v9385_v31  ;;  %v21654_v50 = vld [vmem:[#allocation115_spill] sm:$0xff]  ;;  %v21656_v31 = vld [vmem:[#allocation112_spill] sm:$0xff] }
 0x780   :  { %v9394_v62 = vmul.f32 %v21655_v1, %v21654_v50  ;;  %v21669_v50 = vld [vmem:[#allocation276_spill] sm:$0xff]  ;;  %v21670_v1 = vld [vmem:[#allocation82_spill] sm:$0xff] }
 0x781   :  { %13569 = vmatmul.mubr.msk.bf16.gmra.mrb[72].mxu0 %vm6906_vm1, %v9100_v17  ;;  %v21629_v17 = vld [vmem:[#allocation270_spill] sm:$0xff] }
 0x782   :  { %13572 = vmatprep.mubr.msk.bf16.mxu0 %vm6906_vm1, %v9101_v28  ;;  %v9091_v28 = vmul.f32 %v18762_v42, %v21629_v17  ;;  %v21646_v17 = vld [vmem:[#allocation107_spill] sm:$0xff] }
 0x784   :  { %v9107_v37 = vpack.c.bf16 %v9092_v55, %v9091_v28  ;;  %v21644_v55 = vld [vmem:[#allocation101_spill] sm:$0xff] }
 0x785   :  { %v9388_v61 = vmul.f32 %v21645_v47, %v21644_v55  ;;  %v21647_v28 = vld [vmem:[#allocation57_spill] sm:$0xff] }
 0x786   :  { %v21660_v55 = vld [vmem:[#allocation65_spill] sm:$0xff] }
 0x789   :  { %13573 = vmatmul.mubr.msk.bf16.gmra.mrb[76].mxu0 %vm6906_vm1, %v9102_v15  ;;  %v9411_v15 = vpack.c.bf16 %v9382_v5, %v9381_v39  ;;  %v9414_v5 = vpack.c.bf16 %v9388_v61, %v9387_v23  ;;  %v21651_v39 = vld [vmem:[#allocation64_spill] sm:$0xff]  ;;  %v21659_v23 = vld [vmem:[#allocation117_spill] sm:$0xff]  ;;  %v21661_v61 = vld [vmem:[#allocation123_spill] sm:$0xff] }
 0x78a   :  { %13576 = vmatprep.mubr.msk.bf16.mxu0 %vm6906_vm1, %v9103_v26  ;;  %v21634_v26 = vld [vmem:[#allocation95_spill] sm:$0xff]  ;;  %v9396_v47 = vmul.f32 %v21660_v55, %v21659_v23  ;;  %v21676_v55 = vld [vmem:[#allocation136_spill] sm:$0xff] }
 0x791   :  { %13577 = vmatmul.mubr.msk.bf16.gmra.mrb[80].mxu0 %vm6906_vm1, %v9104_v49  ;;  %v21640_v49 = vld [vmem:[#allocation10_spill] sm:$0xff] }
 0x792   :  { %13580 = vmatprep.mubr.msk.bf16.mxu0 %vm6906_vm1, %v9105_v2  ;;  %v21641_v2 = vpack.c.bf16 %v21639_v32, %v21640_v49 }
 0x799   :  { %13581 = vmatmul.mubr.msk.bf16.gmra.mrb[84].mxu0 %vm6906_vm1, %v9106_v54  ;;  %v9390_v54 = vmul.f32 %v21647_v28, %v21646_v17  ;;  %v9398_v17 = vmul.f32 %v21523_v56, %v21661_v61  ;;  %v21662_v28 = vld [vmem:[#allocation120_spill] sm:$0xff] }
 0x79a   :  { %13584 = vmatprep.mubr.msk.bf16.mxu0 %vm6906_vm1, %v9107_v37  ;;  %v21648_v37 = vld [vmem:[#allocation104_spill] sm:$0xff] }
 0x79b   :  { %v9389_v45 = vmul.f32 %v21649_v52, %v21648_v37  ;;  %v21663_v52 = vld [vmem:[#allocation119_spill] sm:$0xff] }
 0x79d   :  { %v9415_v11 = vpack.c.bf16 %v9390_v54, %v9389_v45  ;;  %v9397_v54 = vmul.f32 %v21529_v12, %v21662_v28  ;;  %v21664_v45 = vld [vmem:[#allocation80_spill] sm:$0xff]  ;;  %v21679_v28 = vld [vmem:[#allocation87_spill] sm:$0xff] }
 0x7a1   :  { %13585 = vmatmul.mubr.msk.bf16.gmra.mrb[88].mxu0 %vm6906_vm1, %v21634_v26  ;;  %v21652_v26 = vld [vmem:[#allocation109_spill] sm:$0xff] }
 0x7a2   :  { %13596 = vmatprep.mubr.msk.bf16.mxu0 %vm6906_vm1, %v9411_v15  ;;  %v9391_v15 = vmul.f32 %v21651_v39, %v21650_v24  ;;  %v9392_v25 = vmul.f32 %v21653_v44, %v21652_v26  ;;  %v21666_v24 = vld [vmem:[#allocation71_spill] sm:$0xff]  ;;  %v21668_v44 = vld [vmem:[#allocation128_spill] sm:$0xff] }
 0x7a3   :  { %v9401_v56 = vmul.f32 %v21535_v48, %v21668_v44 }
 0x7a4   :  { %v9416_v32 = vpack.c.bf16 %v9392_v25, %v9391_v15  ;;  %v21667_v15 = vld [vmem:[#allocation130_spill] sm:$0xff] }
 0x7a5   :  { %v9402_v26 = vmul.f32 %v21531_v41, %v21667_v15  ;;  %v21675_v41 = vld [vmem:[#allocation86_spill] sm:$0xff] }
 0x7a7   :  { %v9421_v12 = vpack.c.bf16 %v9402_v26, %v9401_v56 }
 0x7a9   :  { %13597 = vmatmul.mubr.msk.bf16.vlgmr.msra.gmra.mrb[60].mxu0 %vm6906_vm1, %v21641_v2  ;;  %v21657_v2 = vld [vmem:[#allocation111_spill] sm:$0xff] }
 0x7aa   :  { %13600 = vmatprep.mubr.msk.bf16.mxu0 %vm6906_vm1, %v9413_v13  ;;  %v9393_v13 = vmul.f32 %v21521_v16, %v21656_v31  ;;  %v9395_v38 = vmul.f32 %v21658_v57, %v21657_v2  ;;  %v9419_v16 = vpack.c.bf16 %v9398_v17, %v9397_v54  ;;  %v21671_v31 = vld [vmem:[#allocation278_spill] sm:$0xff]  ;;  %v21674_v57 = vld [vmem:[#allocation277_spill] sm:$0xff]  ;;  %v21678_v17 = vld [vmem:[#allocation279_spill] sm:$0xff] }
 0x7ab   :  { %v9408_v54 = vmul.f32 %v21679_v28, %v21678_v17 }
 0x7ac   :  { %v9417_v49 = vpack.c.bf16 %v9394_v62, %v9393_v13  ;;  %v9418_v37 = vpack.c.bf16 %v9396_v47, %v9395_v38  ;;  %v9403_v62 = vmul.f32 %v21670_v1, %v21669_v50  ;;  %v21672_v13 = vld [vmem:[#allocation4_spill] sm:$0xff]  ;;  %v9405_v38 = vmul.f32 %v21675_v41, %v21674_v57  ;;  %v21677_v47 = vld [vmem:[#allocation77_spill] sm:$0xff] }
 0x7ad   :  { %v9407_v61 = vmul.f32 %v21677_v47, %v21676_v55 }
 0x7b1   :  { %13601 = vmatmul.mubr.msk.bf16.gmra.mrb[64].mxu0 %vm6906_vm1, %v9414_v5  ;;  %v9399_v5 = vmul.f32 %v21664_v45, %v21663_v52  ;;  %v21683_v45 = vld [vmem:[#allocation234_spill] sm:$0xff] }
 0x7b2   :  { %13604 = vmatprep.mubr.msk.bf16.mxu0 %vm6906_vm1, %v9415_v11  ;;  %v21665_v11 = vld [vmem:[#allocation125_spill] sm:$0xff] }
 0x7b3   :  { %v9400_v39 = vmul.f32 %v21666_v24, %v21665_v11  ;;  %v19560_v11 = vld [vmem:[%s20178_s6] ss:$0 sm:$0xff] }
 0x7b5   :  { %v9420_v25 = vpack.c.bf16 %v9400_v39, %v9399_v5  ;;  %v9771_v5 = vld [vmem:[%s20176_s8 + $0x8] sm:$0xff] }
 0x7b6   :  { %9850 = vmatprep.mubr.f32.mxu1 %v9771_v5 }
 0x7b9   :  { %13605 = vmatmul.mubr.msk.bf16.gmra.mrb[68].mxu0 %vm6906_vm1, %v9416_v32  ;;  %v9404_v32 = vmul.f32 %v21672_v13, %v21671_v31 }
 0x7ba   :  { %13608 = vmatprep.mubr.msk.bf16.mxu0 %vm6906_vm1, %v9417_v49  ;;  %v21673_v49 = vld [vmem:[#allocation137_spill] sm:$0xff] }
 0x7bb   :  { %v9406_v2 = vmul.f32 %v18995_v35, %v21673_v49  ;;  %v9422_v23 = vpack.c.bf16 %v9404_v32, %v9403_v62  ;;  %v21681_v35 = vld [vmem:[#allocation68_spill] sm:$0xff] }
 0x7bd   :  { %v9423_v48 = vpack.c.bf16 %v9406_v2, %v9405_v38 }
 0x7c1   :  { %13609 = vmatmul.mubr.msk.bf16.gmra.mrb[72].mxu0 %vm6906_vm1, %v9418_v37  ;;  %v9424_v37 = vpack.c.bf16 %v9408_v54, %v9407_v61 }
 0x7c2   :  { %13612 = vmatprep.mubr.msk.bf16.mxu0 %vm6906_vm1, %v9419_v16  ;;  %v21680_v16 = vld [vmem:[#allocation69_spill] sm:$0xff] }
 0x7c3   :  { %v21682_v52 = vpack.c.bf16 %v21680_v16, %v21681_v35 }
 0x7c9   :  { %13613 = vmatmul.mubr.msk.bf16.gmra.mrb[76].mxu0 %vm6906_vm1, %v9420_v25 }
 0x7ca   :  { %13616 = vmatprep.mubr.msk.bf16.mxu0 %vm6906_vm1, %v9421_v12 }
 0x7d1   :  { %13617 = vmatmul.mubr.msk.bf16.gmra.mrb[80].mxu0 %vm6906_vm1, %v9422_v23 }
 0x7d2   :  { %13620 = vmatprep.mubr.msk.bf16.mxu0 %vm6906_vm1, %v9423_v48 }
 0x7d9   :  { %13621 = vmatmul.mubr.msk.bf16.gmra.mrb[84].mxu0 %vm6906_vm1, %v9424_v37 }
 0x7da   :  { %13624 = vmatprep.mubr.msk.bf16.mxu0 %vm6906_vm1, %v21682_v52 }
 0x7e1   :  { %13625 = vmatmul.mubr.msk.bf16.gmra.mrb[88].mxu0 %vm6906_vm1, %v21683_v45 }
 0x87c   :  { %v13598_v24 = vpop.f32.mrb[60].mxu0 }
 0x87d   :  { %v9708_v39 = vadd.f32 %v13598_v24, %v19560_v11  ;;  %v9540_v15 = vpop.f32.mrb[61].mxu0 }
 0x87e   :  { %v9706_v26 = vadd.f32 %v19560_v11, %v9540_v15  ;;  %v13599_v44 = vpop.f32.mrb[62].mxu0 }
 0x87f   :  { %v9709_v56 = vadd.f32 %v13599_v44, %v19560_v11  ;;  %v9543_v25 = vpop.f32.mrb[63].mxu0  ;;  %v9740_v50 = vmax.f32 %v9708_v39, 0.0 }
 0x880   :  { %v9707_v12 = vadd.f32 %v19560_v11, %v9543_v25  ;;  %v9738_v62 = vmax.f32 %v9706_v26, 0.0 }
 0x881   :  { %v9741_v1 = vmax.f32 %v9709_v56, 0.0 }
 0x882   :  { %v9739_v31 = vmax.f32 %v9707_v12, 0.0 }
 0x883   :  { %v19566_v13 = vpack.c.bf16 %v9741_v1, %v9740_v50 }
 0x884   :  { %v19568_v32 = vpack.c.bf16 %v9739_v31, %v9738_v62  ;;  %v13602_v49 = vpop.f32.mrb[64].mxu0 }
 0x885   :  { %v9712_v2 = vadd.f32 %v13602_v49, %v19560_v11  ;;  %v9556_v57 = vpop.f32.mrb[65].mxu0 }
 0x886   :  { %v9710_v41 = vadd.f32 %v19560_v11, %v9556_v57  ;;  %v13603_v38 = vpop.f32.mrb[66].mxu0 }
 0x887   :  { %v9713_v23 = vadd.f32 %v13603_v38, %v19560_v11  ;;  %v9559_v48 = vpop.f32.mrb[67].mxu0  ;;  %v9744_v47 = vmax.f32 %v9712_v2, 0.0 }
 0x888   :  { %v9711_v55 = vadd.f32 %v19560_v11, %v9559_v48  ;;  %v9742_v17 = vmax.f32 %v9710_v41, 0.0 }
 0x889   :  { %v9745_v61 = vmax.f32 %v9713_v23, 0.0 }
 0x88a   :  { %v9743_v28 = vmax.f32 %v9711_v55, 0.0 }
 0x88b   :  { %v19574_v54 = vpack.c.bf16 %v9745_v61, %v9744_v47 }
 0x88c   :  { %v19576_v37 = vpack.c.bf16 %v9743_v28, %v9742_v17  ;;  %v13606_v16 = vpop.f32.mrb[68].mxu0 }
 0x88d   :  { %v9716_v35 = vadd.f32 %v13606_v16, %v19560_v11  ;;  %v9572_v52 = vpop.f32.mrb[69].mxu0 }
 0x88e   :  { %v9714_v45 = vadd.f32 %v19560_v11, %v9572_v52  ;;  %v13607_v5 = vpop.f32.mrb[70].mxu0 }
 0x88f   :  { %v9717_v24 = vadd.f32 %v13607_v5, %v19560_v11  ;;  %v9575_v39 = vpop.f32.mrb[71].mxu0  ;;  %v9748_v26 = vmax.f32 %v9716_v35, 0.0 }
 0x890   :  { %v9715_v15 = vadd.f32 %v19560_v11, %v9575_v39  ;;  %v9746_v56 = vmax.f32 %v9714_v45, 0.0 }
 0x891   :  { %v9749_v44 = vmax.f32 %v9717_v24, 0.0 }
 0x892   :  { %v9747_v25 = vmax.f32 %v9715_v15, 0.0 }
 0x893   :  { %v19582_v12 = vpack.c.bf16 %v9749_v44, %v9748_v26 }
 0x894   :  { %v19584_v50 = vpack.c.bf16 %v9747_v25, %v9746_v56  ;;  %v13610_v1 = vpop.f32.mrb[72].mxu0 }
 0x895   :  { %v9720_v62 = vadd.f32 %v13610_v1, %v19560_v11  ;;  %v9588_v31 = vpop.f32.mrb[73].mxu0 }
 0x896   :  { %v9718_v49 = vadd.f32 %v19560_v11, %v9588_v31  ;;  %v13611_v2 = vpop.f32.mrb[74].mxu0 }
 0x897   :  { %v9721_v57 = vadd.f32 %v13611_v2, %v19560_v11  ;;  %v9591_v41 = vpop.f32.mrb[75].mxu0  ;;  %v9752_v23 = vmax.f32 %v9720_v62, 0.0 }
 0x898   :  { %v9719_v38 = vadd.f32 %v19560_v11, %v9591_v41  ;;  %v9750_v55 = vmax.f32 %v9718_v49, 0.0 }
 0x899   :  { %v9753_v48 = vmax.f32 %v9721_v57, 0.0 }
 0x89a   :  { %v9751_v47 = vmax.f32 %v9719_v38, 0.0 }
 0x89b   :  { %v19590_v61 = vpack.c.bf16 %v9753_v48, %v9752_v23 }
 0x89c   :  { %v19592_v17 = vpack.c.bf16 %v9751_v47, %v9750_v55  ;;  %v13614_v28 = vpop.f32.mrb[76].mxu0 }
 0x89d   :  { %v9724_v16 = vadd.f32 %v13614_v28, %v19560_v11  ;;  %v9604_v35 = vpop.f32.mrb[77].mxu0 }
 0x89e   :  { %v9722_v52 = vadd.f32 %v19560_v11, %v9604_v35  ;;  %v13615_v45 = vpop.f32.mrb[78].mxu0 }
 0x89f   :  { %v9725_v5 = vadd.f32 %v13615_v45, %v19560_v11  ;;  %v9607_v24 = vpop.f32.mrb[79].mxu0  ;;  %v9756_v15 = vmax.f32 %v9724_v16, 0.0 }
 0x8a0   :  { %v9723_v39 = vadd.f32 %v19560_v11, %v9607_v24  ;;  %v9754_v44 = vmax.f32 %v9722_v52, 0.0 }
 0x8a1   :  { %v9757_v26 = vmax.f32 %v9725_v5, 0.0 }
 0x8a2   :  { %v9755_v56 = vmax.f32 %v9723_v39, 0.0 }
 0x8a3   :  { %v13880_v25 = vpack.c.bf16 %v9757_v26, %v9756_v15 }
 0x8a4   :  { %v13876_v1 = vpack.c.bf16 %v9755_v56, %v9754_v44  ;;  %v13618_v62 = vpop.f32.mrb[80].mxu0 }
 0x8a5   :  { %v9728_v31 = vadd.f32 %v13618_v62, %v19560_v11  ;;  %v9620_v49 = vpop.f32.mrb[81].mxu0 }
 0x8a6   :  { %v9726_v2 = vadd.f32 %v19560_v11, %v9620_v49  ;;  %v13619_v57 = vpop.f32.mrb[82].mxu0  ;;  %13877 = vmatprep.subr.bf16.mxu1 %v13876_v1 }
 0x8a7   :  { %v9729_v41 = vadd.f32 %v13619_v57, %v19560_v11  ;;  %v9623_v38 = vpop.f32.mrb[83].mxu0  ;;  %13879 = vmatpush3.bf16.msra.mxu1 %v19568_v32  ;;  %v9760_v48 = vmax.f32 %v9728_v31, 0.0 }
 0x8a8   :  { %v9727_v23 = vadd.f32 %v19560_v11, %v9623_v38  ;;  %13881 = vmatprep.subr.bf16.mxu1 %v13880_v25  ;;  %v9758_v47 = vmax.f32 %v9726_v2, 0.0 }
 0x8a9   :  { %v9761_v55 = vmax.f32 %v9729_v41, 0.0 }
 0x8aa   :  { %v9759_v28 = vmax.f32 %v9727_v23, 0.0 }
 0x8ab   :  { %v13888_v16 = vpack.c.bf16 %v9761_v55, %v9760_v48  ;;  %13883 = vmatpush3.bf16.msra.mxu1 %v19566_v13 }
 0x8ac   :  { %v13884_v35 = vpack.c.bf16 %v9759_v28, %v9758_v47  ;;  %v13622_v52 = vpop.f32.mrb[84].mxu0 }
 0x8ad   :  { %v9732_v45 = vadd.f32 %v13622_v52, %v19560_v11  ;;  %v9636_v5 = vpop.f32.mrb[85].mxu0  ;;  %v14540_v52 = vld [vmem:[%s20177_s10 + $0x10] sm:$0xff]  }
 0x8ae   :  { %v9730_v24 = vadd.f32 %v19560_v11, %v9636_v5  ;;  %v13623_v39 = vpop.f32.mrb[86].mxu0  ;;  %13885 = vmatprep.subr.bf16.mxu1 %v13884_v35  ;;  %v14538_v35 = vld [vmem:[%s20177_s10] sm:$0xff]   ;;  %v9777_v5 = vld [vmem:[%s20176_s8 + $0x38] sm:$0xff] }
 0x8af   :  { %v9733_v32 = vadd.f32 %v13623_v39, %v19560_v11  ;;  %v9639_v15 = vpop.f32.mrb[87].mxu0  ;;  %13887 = vmatpush3.bf16.msra.mxu1 %v19576_v37  ;;  %v9764_v44 = vmax.f32 %v9732_v45, 0.0  ;;  %v9774_v45 = vld [vmem:[%s20176_s8 + $0x20] sm:$0xff]  ;;  %v9776_v39 = vld [vmem:[%s20176_s8 + $0x30] sm:$0xff] }
 0x8b0   :  { %v9731_v26 = vadd.f32 %v19560_v11, %v9639_v15  ;;  %13889 = vmatprep.subr.bf16.mxu1 %v13888_v16  ;;  %v9762_v13 = vmax.f32 %v9730_v24, 0.0  ;;  %v14541_v24 = vld [vmem:[%s20177_s10 + $0x18] sm:$0xff]   ;;  %v14542_v15 = vld [vmem:[%s20179_s12] sm:$0xff]  }
 0x8b1   :  { %v9765_v56 = vmax.f32 %v9733_v32, 0.0  ;;  %v9779_v32 = vld [vmem:[%s20176_s8 + $0x48] sm:$0xff] }
 0x8b2   :  { %v9763_v25 = vmax.f32 %v9731_v26, 0.0  ;;  %v9778_v26 = vld [vmem:[%s20176_s8 + $0x40] sm:$0xff] }
 0x8b3   :  { %v13896_v1 = vpack.c.bf16 %v9765_v56, %v9764_v44  ;;  %13891 = vmatpush3.bf16.msra.mxu1 %v19574_v54  ;;  %v9781_v44 = vld [vmem:[%s20176_s8 + $0x58] sm:$0xff]  ;;  %v9780_v56 = vld [vmem:[%s20176_s8 + $0x50] sm:$0xff] }
 0x8b4   :  { %v13892_v62 = vpack.c.bf16 %v9763_v25, %v9762_v13  ;;  %v13626_v31 = vpop.f32.mrb[88].mxu0  ;;  %v9783_v13 = vld [vmem:[%s20176_s8 + $0x68] sm:$0xff]  ;;  %v9782_v25 = vld [vmem:[%s20176_s8 + $0x60] sm:$0xff] }
 0x8b5   :  { %v9736_v49 = vadd.f32 %v13626_v31, %v19560_v11  ;;  %v9652_v2 = vpop.f32.mrb[89].mxu0  ;;  %v21684_v31 = vld [vmem:[#allocation147_spill] sm:$0xff] }
 0x8b6   :  { %v9734_v57 = vadd.f32 %v19560_v11, %v9652_v2  ;;  %v13627_v41 = vpop.f32.mrb[90].mxu0  ;;  %13893 = vmatprep.subr.bf16.mxu1 %v13892_v62  ;;  %v9784_v62 = vld [vmem:[%s20176_s8 + $0x70] sm:$0xff] }
 0x8b7   :  { %v9737_v37 = vadd.f32 %v13627_v41, %v19560_v11  ;;  %v9655_v38 = vpop.f32.mrb[91].mxu0  ;;  %13895 = vmatpush3.bf16.msra.mxu1 %v19584_v50  ;;  %v9768_v48 = vmax.f32 %v9736_v49, 0.0  ;;  %v9773_v50 = vld [vmem:[%s20176_s8 + $0x18] sm:$0xff]  ;;  %v14543_v41 = vld [vmem:[%s20179_s12 + $0x8] sm:$0xff]  }
 0x8b8   :  { %v9735_v23 = vadd.f32 %v19560_v11, %v9655_v38  ;;  %13897 = vmatprep.subr.bf16.mxu1 %v13896_v1  ;;  %v9766_v54 = vmax.f32 %v9734_v57, 0.0  ;;  %v9770_v11 = vld [vmem:[%s20176_s8] sm:$0xff]  ;;  %v9785_v1 = vld [vmem:[%s20176_s8 + $0x78] sm:$0xff]  ;;  %v9892_v57 = vpack.c.bf16 %v18343_v58, %v21462_v7  ;;  %v14544_v38 = vld [vmem:[%s20179_s12 + $0x10] sm:$0xff]   ;;  %v9894_v58 = vpack.c.bf16 %v18367_v9, %v18365_v6 }
 0x8b9   :  { %v9769_v55 = vmax.f32 %v9737_v37, 0.0  ;;  %v21685_v49 = vld [vmem:[#allocation281_spill] sm:$0xff]  ;;  %v9893_v37 = vpack.c.bf16 %v21460_v10, %v21464_v33  ;;  %v9895_v10 = vpack.c.bf16 %v18398_v0, %v18389_v4  ;;  %v14546_v33 = vld [vmem:[%s20179_s12 + $0x20] sm:$0xff]   ;;  %v9896_v6 = vpack.c.bf16 %v18395_v43, %v18393_v40 }
 0x8ba   :  { %v9767_v47 = vmax.f32 %v9735_v23, 0.0  ;;  %v9891_v2 = vpack.c.bf16 %v21685_v49, %v21684_v31  ;;  %v14545_v7 = vld [vmem:[%s20179_s12 + $0x18] sm:$0xff]   ;;  %v9897_v9 = vpack.c.bf16 %v18426_v60, %v18417_v19  ;;  %v9898_v4 = vpack.c.bf16 %v18423_v27, %v18421_v3  ;;  %v14547_v27 = vld [vmem:[%s20179_s12 + $0x28] sm:$0xff]   ;;  %v14548_v60 = vld [vmem:[%s20179_s12 + $0x30] sm:$0xff]  }
 0x8bb   :  { %v13904_v28 = vpack.c.bf16 %v9769_v55, %v9768_v48  ;;  %13899 = vmatpush3.bf16.msra.mxu1 %v19582_v12  ;;  %v14539_v12 = vld [vmem:[%s20177_s10 + $0x8] sm:$0xff]   ;;  %v9899_v0 = vpack.c.bf16 %v18448_v21, %v18439_v18  ;;  %v9900_v40 = vpack.c.bf16 %v18445_v8, %v18443_v36  ;;  %v9901_v19 = vpack.c.bf16 %v18470_v53, %v18461_v14  ;;  %v14549_v36 = vld [vmem:[%s20179_s12 + $0x38] sm:$0xff]   ;;  %v14550_v8 = vld [vmem:[%s20180_s15] sm:$0xff]  }
 0x8bc   :  { %v13900_v16 = vpack.c.bf16 %v9767_v47, %v9766_v54  ;;  %v9902_v43 = vpack.c.bf16 %v18467_v46, %v18465_v30  ;;  %v9903_v18 = vpack.c.bf16 %v18492_v51, %v18483_v59  ;;  %v9904_v3 = vpack.c.bf16 %v18489_v29, %v18487_v63  ;;  %13756 = vmatprep.subr.bf16.mxu0 %v14550_v8  ;;  %v14551_v21 = vld [vmem:[%s20180_s15 + $0x8] sm:$0xff]   ;;  %v14552_v30 = vld [vmem:[%s20180_s15 + $0x10] sm:$0xff]   ;;  %v14553_v46 = vld [vmem:[%s20180_s15 + $0x18] sm:$0xff]  }
 0x8bd   :  { %v9905_v14 = vpack.c.bf16 %v18514_v22, %v18509_v20  ;;  %v9906_v59 = vpack.c.bf16 %v18756_v34, %v18762_v42  ;;  %13757 = vmatpush3.bf16.msra.mxu0 %v14550_v8 }
 0x8be   :  { %13901 = vmatprep.subr.bf16.mxu1 %v13900_v16  ;;  %13758 = vmatprep.subr.bf16.mxu0 %v14551_v21 }
 0x8bf   :  { %13903 = vmatpush3.bf16.msra.mxu1 %v19592_v17  ;;  %v9772_v17 = vld [vmem:[%s20176_s8 + $0x10] sm:$0xff] }
 0x8c0   :  { %13905 = vmatprep.subr.bf16.mxu1 %v13904_v28 }
 0x8c1   :  { %13759 = vmatpush3.bf16.msra.mxu0 %v14551_v21 }
 0x8c2   :  { %13760 = vmatprep.subr.bf16.mxu0 %v14552_v30 }
 0x8c3   :  { %13907 = vmatpush3.bf16.msra.mxu1 %v19590_v61  ;;  %v9775_v61 = vld [vmem:[%s20176_s8 + $0x28] sm:$0xff] }
 0x8c4   :  { %13628 = vmatprep.subr.bf16.mxu1 %v14538_v35 }
 0x8c5   :  { %13761 = vmatpush3.bf16.msra.mxu0 %v14552_v30 }
 0x8c6   :  { %9851 = vmatmul.mubr.f32.vlgmr.msra.gmra.mrb[36].mxu1 %v9770_v11  ;;  %13762 = vmatprep.subr.bf16.mxu0 %v14553_v46 }
 0x8c7   :  { %9855 = vmatprep.mubr.f32.mxu1 %v9773_v50  ;;  %13629 = vmatpush3.bf16.msra.mxu1 %v14538_v35 }
 0x8c8   :  { %13630 = vmatprep.subr.bf16.mxu1 %v14539_v12 }
 0x8c9   :  { %13763 = vmatpush3.bf16.msra.mxu0 %v14553_v46 }
 0x8ca   :  { %9856 = vmatmul.mubr.f32.gmra.mrb[38].mxu1 %v9772_v17 }
 0x8cb   :  { %9860 = vmatprep.mubr.f32.mxu1 %v9775_v61  ;;  %13631 = vmatpush3.bf16.msra.mxu1 %v14539_v12 }
 0x8cc   :  { %13632 = vmatprep.subr.bf16.mxu1 %v14540_v52 }
 0x8ce   :  { %9861 = vmatmul.mubr.f32.gmra.mrb[40].mxu1 %v9774_v45 }
 0x8cf   :  { %9865 = vmatprep.mubr.f32.mxu1 %v9777_v5  ;;  %13633 = vmatpush3.bf16.msra.mxu1 %v14540_v52 }
 0x8d0   :  { %13634 = vmatprep.subr.bf16.mxu1 %v14541_v24 }
 0x8d2   :  { %9866 = vmatmul.mubr.f32.gmra.mrb[42].mxu1 %v9776_v39 }
 0x8d3   :  { %9870 = vmatprep.mubr.f32.mxu1 %v9779_v32  ;;  %13635 = vmatpush3.bf16.msra.mxu1 %v14541_v24 }
 0x8d4   :  { %13668 = vmatprep.subr.bf16.mxu1 %v14542_v15 }
 0x8d6   :  { %9871 = vmatmul.mubr.f32.gmra.mrb[44].mxu1 %v9778_v26 }
 0x8d7   :  { %9875 = vmatprep.mubr.f32.mxu1 %v9781_v44 }
 0x8da   :  { %9876 = vmatmul.mubr.f32.gmra.mrb[46].mxu1 %v9780_v56 }
 0x8db   :  { %9880 = vmatprep.mubr.f32.mxu1 %v9783_v13 }
 0x8de   :  { %9881 = vmatmul.mubr.f32.gmra.mrb[48].mxu1 %v9782_v25 }
 0x8df   :  { %9885 = vmatprep.mubr.f32.mxu1 %v9785_v1 }
 0x8e2   :  { %9886 = vmatmul.mubr.f32.gmra.mrb[50].mxu1 %v9784_v62 }
 0x8e3   :  { %13636 = vmatprep.mubr.msk.bf16.mxu1 %vm6906_vm1, %v9891_v2 }
 0x8e6   :  { %13637 = vmatmul.mubr.msk.bf16.vlgmr.msra.gmra.mrb[52].mxu1 %vm6906_vm1, %v9892_v57 }
 0x8e7   :  { %13640 = vmatprep.mubr.msk.bf16.mxu1 %vm6906_vm1, %v9893_v37  ;;  %13669 = vmatpush3.bf16.msra.mxu1 %v14542_v15  ;;  %v19762_v15 = vld [vmem:[%s20181_s11] ss:$0 sm:$0xff] }
 0x8e8   :  { %13670 = vmatprep.subr.bf16.mxu1 %v14543_v41 }
 0x8eb   :  { %13671 = vmatpush3.bf16.msra.mxu1 %v14543_v41 }
 0x8ec   :  { %13672 = vmatprep.subr.bf16.mxu1 %v14544_v38 }
 0x8ee   :  { %13641 = vmatmul.mubr.msk.bf16.gmra.mrb[56].mxu1 %vm6906_vm1, %v9894_v58 }
 0x8ef   :  { %13644 = vmatprep.mubr.msk.bf16.mxu1 %vm6906_vm1, %v9895_v10  ;;  %13673 = vmatpush3.bf16.msra.mxu1 %v14544_v38 }
 0x8f0   :  { %13674 = vmatprep.subr.bf16.mxu1 %v14545_v7 }
 0x8f3   :  { %13675 = vmatpush3.bf16.msra.mxu1 %v14545_v7 }
 0x8f4   :  { %13676 = vmatprep.subr.bf16.mxu1 %v14546_v33 }
 0x8f6   :  { %13645 = vmatmul.mubr.msk.bf16.gmra.mrb[60].mxu1 %vm6906_vm1, %v9896_v6 }
 0x8f7   :  { %13648 = vmatprep.mubr.msk.bf16.mxu1 %vm6906_vm1, %v9897_v9  ;;  %13677 = vmatpush3.bf16.msra.mxu1 %v14546_v33 }
 0x8f8   :  { %13678 = vmatprep.subr.bf16.mxu1 %v14547_v27 }
 0x8fb   :  { %13679 = vmatpush3.bf16.msra.mxu1 %v14547_v27 }
 0x8fc   :  { %13680 = vmatprep.subr.bf16.mxu1 %v14548_v60 }
 0x8fe   :  { %13649 = vmatmul.mubr.msk.bf16.gmra.mrb[64].mxu1 %vm6906_vm1, %v9898_v4 }
 0x8ff   :  { %13652 = vmatprep.mubr.msk.bf16.mxu1 %vm6906_vm1, %v9899_v0  ;;  %13681 = vmatpush3.bf16.msra.mxu1 %v14548_v60 }
 0x900   :  { %13682 = vmatprep.subr.bf16.mxu1 %v14549_v36 }
 0x903   :  { %13683 = vmatpush3.bf16.msra.mxu1 %v14549_v36 }
 0x906   :  { %13653 = vmatmul.mubr.msk.bf16.gmra.mrb[68].mxu1 %vm6906_vm1, %v9900_v40 }
 0x907   :  { %13656 = vmatprep.mubr.msk.bf16.mxu1 %vm6906_vm1, %v9901_v19 }
 0x90e   :  { %13657 = vmatmul.mubr.msk.bf16.gmra.mrb[72].mxu1 %vm6906_vm1, %v9902_v43 }
 0x90f   :  { %13660 = vmatprep.mubr.msk.bf16.mxu1 %vm6906_vm1, %v9903_v18 }
 0x916   :  { %13661 = vmatmul.mubr.msk.bf16.gmra.mrb[76].mxu1 %vm6906_vm1, %v9904_v3 }
 0x917   :  { %13664 = vmatprep.mubr.msk.bf16.mxu1 %vm6906_vm1, %v9905_v14 }
 0x91e   :  { %13665 = vmatmul.mubr.msk.bf16.gmra.mrb[80].mxu1 %vm6906_vm1, %v9906_v59 }
 0x999   :  { %v12788_v53 = vpop.f32.mrb[36].mxu1 }
 0x99a   :  { %v12789_v63 = vpop.f32.mrb[37].mxu1 }
 0x99b   :  { %v12790_v29 = vadd.f32 %v12789_v63, %v12788_v53 }
 0x99d   :  { %v12791_v51 = vpop.f32.mrb[38].mxu1 }
 0x99e   :  { %v12792_v20 = vpop.f32.mrb[39].mxu1 }
 0x99f   :  { %v12793_v22 = vadd.f32 %v12792_v20, %v12791_v51 }
 0x9a1   :  { %v10187_v34 = vpack.c.bf16 %v12793_v22, %v12790_v29  ;;  %v12794_v42 = vpop.f32.mrb[40].mxu1 }
 0x9a2   :  { %v12795_v23 = vpop.f32.mrb[41].mxu1 }
 0x9a3   :  { %v12796_v48 = vadd.f32 %v12795_v23, %v12794_v42  ;;  %13684 = vmatprep.mubr.bf16.mxu1 %v10187_v34 }
 0x9a5   :  { %v12797_v55 = vpop.f32.mrb[42].mxu1 }
 0x9a6   :  { %v12798_v54 = vpop.f32.mrb[43].mxu1 }
 0x9a7   :  { %v12799_v47 = vadd.f32 %v12798_v54, %v12797_v55 }
 0x9a9   :  { %v10188_v28 = vpack.c.bf16 %v12799_v47, %v12796_v48  ;;  %v12800_v16 = vpop.f32.mrb[44].mxu1 }
 0x9aa   :  { %v12801_v35 = vpop.f32.mrb[45].mxu1 }
 0x9ab   :  { %v12802_v11 = vadd.f32 %v12801_v35, %v12800_v16  ;;  %13685 = vmatmul.mubr.bf16.vlgmr.msra.gmra.mrb[84].mxu1 %v10188_v28 }
 0x9ad   :  { %v12803_v50 = vpop.f32.mrb[46].mxu1 }
 0x9ae   :  { %v12804_v12 = vpop.f32.mrb[47].mxu1 }
 0x9af   :  { %v12805_v17 = vadd.f32 %v12804_v12, %v12803_v50 }
 0x9b1   :  { %v10189_v61 = vpack.c.bf16 %v12805_v17, %v12802_v11  ;;  %v12806_v52 = vpop.f32.mrb[48].mxu1 }
 0x9b2   :  { %v12807_v45 = vpop.f32.mrb[49].mxu1 }
 0x9b3   :  { %v12808_v5 = vadd.f32 %v12807_v45, %v12806_v52  ;;  %13688 = vmatprep.mubr.bf16.mxu1 %v10189_v61 }
 0x9b5   :  { %v12809_v24 = vpop.f32.mrb[50].mxu1 }
 0x9b6   :  { %v12810_v39 = vpop.f32.mrb[51].mxu1 }
 0x9b7   :  { %v12811_v32 = vadd.f32 %v12810_v39, %v12809_v24 }
 0x9b9   :  { %v10190_v26 = vpack.c.bf16 %v12811_v32, %v12808_v5  ;;  %v13638_v44 = vpop.f32.mrb[52].mxu1 }
 0x9ba   :  { %v10037_v56 = vadd.f32 %v13638_v44, %v19762_v15  ;;  %v10028_v13 = vpop.f32.mrb[53].mxu1 }
 0x9bb   :  { %v10029_v25 = vadd.f32 %v19762_v15, %v10028_v13  ;;  %v13639_v1 = vpop.f32.mrb[54].mxu1  ;;  %13689 = vmatmul.mubr.bf16.gmra.mrb[88].mxu1 %v10190_v26 }
 0x9bc   :  { %v10040_v62 = vadd.f32 %v13639_v1, %v19762_v15  ;;  %v10031_v31 = vpop.f32.mrb[55].mxu1  ;;  %v10157_v2 = vmax.f32 %v10037_v56, 0.0 }
 0x9bd   :  { %v10032_v49 = vadd.f32 %v19762_v15, %v10031_v31  ;;  %v10155_v41 = vmax.f32 %v10029_v25, 0.0 }
 0x9be   :  { %v10158_v57 = vmax.f32 %v10040_v62, 0.0 }
 0x9bf   :  { %v10156_v37 = vmax.f32 %v10032_v49, 0.0 }
 0x9c0   :  { %v10713_v38 = vpack.c.bf16 %v10158_v57, %v10157_v2 }
 0x9c1   :  { %v10712_v58 = vpack.c.bf16 %v10156_v37, %v10155_v41  ;;  %v13642_v7 = vpop.f32.mrb[56].mxu1 }
 0x9c2   :  { %v10053_v10 = vadd.f32 %v13642_v7, %v19762_v15  ;;  %v10044_v33 = vpop.f32.mrb[57].mxu1 }
 0x9c3   :  { %v10045_v6 = vadd.f32 %v19762_v15, %v10044_v33  ;;  %v13643_v9 = vpop.f32.mrb[58].mxu1  ;;  %13764 = vmatprep.mubr.msk.bf16.mxu0 %vm6906_vm1, %v10712_v58 }
 0x9c4   :  { %v10056_v4 = vadd.f32 %v13643_v9, %v19762_v15  ;;  %v10047_v0 = vpop.f32.mrb[59].mxu1  ;;  %13765 = vmatmul.mubr.msk.bf16.vlgmr.msra.gmra.mrb[92].mxu0 %vm6906_vm1, %v10713_v38  ;;  %v10161_v19 = vmax.f32 %v10053_v10, 0.0 }
 0x9c5   :  { %v10048_v40 = vadd.f32 %v19762_v15, %v10047_v0  ;;  %v10159_v18 = vmax.f32 %v10045_v6, 0.0 }
 0x9c6   :  { %v10162_v43 = vmax.f32 %v10056_v4, 0.0 }
 0x9c7   :  { %v10160_v3 = vmax.f32 %v10048_v40, 0.0 }
 0x9c8   :  { %v10715_v14 = vpack.c.bf16 %v10162_v43, %v10161_v19 }
 0x9c9   :  { %v10714_v27 = vpack.c.bf16 %v10160_v3, %v10159_v18  ;;  %v13646_v59 = vpop.f32.mrb[60].mxu1 }
 0x9ca   :  { %v10069_v60 = vadd.f32 %v13646_v59, %v19762_v15  ;;  %v10060_v36 = vpop.f32.mrb[61].mxu1 }
 0x9cb   :  { %v10061_v8 = vadd.f32 %v19762_v15, %v10060_v36  ;;  %v13647_v21 = vpop.f32.mrb[62].mxu1  ;;  %13768 = vmatprep.mubr.msk.bf16.mxu0 %vm6906_vm1, %v10714_v27 }
 0x9cc   :  { %v10072_v30 = vadd.f32 %v13647_v21, %v19762_v15  ;;  %v10063_v46 = vpop.f32.mrb[63].mxu1  ;;  %13769 = vmatmul.mubr.msk.bf16.gmra.mrb[96].mxu0 %vm6906_vm1, %v10715_v14  ;;  %v10165_v63 = vmax.f32 %v10069_v60, 0.0 }
 0x9cd   :  { %v10064_v53 = vadd.f32 %v19762_v15, %v10063_v46  ;;  %v10163_v51 = vmax.f32 %v10061_v8, 0.0 }
 0x9ce   :  { %v10166_v29 = vmax.f32 %v10072_v30, 0.0 }
 0x9cf   :  { %v10164_v20 = vmax.f32 %v10064_v53, 0.0 }
 0x9d0   :  { %v10717_v22 = vpack.c.bf16 %v10166_v29, %v10165_v63 }
 0x9d1   :  { %v10716_v34 = vpack.c.bf16 %v10164_v20, %v10163_v51  ;;  %v13650_v42 = vpop.f32.mrb[64].mxu1 }
 0x9d2   :  { %v10085_v23 = vadd.f32 %v13650_v42, %v19762_v15  ;;  %v10076_v48 = vpop.f32.mrb[65].mxu1 }
 0x9d3   :  { %v10077_v55 = vadd.f32 %v19762_v15, %v10076_v48  ;;  %v13651_v54 = vpop.f32.mrb[66].mxu1  ;;  %13772 = vmatprep.mubr.msk.bf16.mxu0 %vm6906_vm1, %v10716_v34 }
 0x9d4   :  { %v10088_v47 = vadd.f32 %v13651_v54, %v19762_v15  ;;  %v10079_v28 = vpop.f32.mrb[67].mxu1  ;;  %13773 = vmatmul.mubr.msk.bf16.gmra.mrb[100].mxu0 %vm6906_vm1, %v10717_v22  ;;  %v10169_v35 = vmax.f32 %v10085_v23, 0.0 }
 0x9d5   :  { %v10080_v16 = vadd.f32 %v19762_v15, %v10079_v28  ;;  %v10167_v50 = vmax.f32 %v10077_v55, 0.0 }
 0x9d6   :  { %v10170_v11 = vmax.f32 %v10088_v47, 0.0 }
 0x9d7   :  { %v10168_v12 = vmax.f32 %v10080_v16, 0.0  ;;  %v10335_v16 = vld [vmem:[%s20182_s9] sm:$0xff] }
 0x9d8   :  { %v10719_v17 = vpack.c.bf16 %v10170_v11, %v10169_v35  ;;  %13708 = vmatprep.mubr.msk.f32.mxu1 %vm6906_vm1, %v10335_v16  ;;  %v14555_v35 = vld [vmem:[%s20183_s14 + $0x8] sm:$0xff]   ;;  %v14556_v11 = vld [vmem:[%s20183_s14 + $0x10] sm:$0xff]   ;;  %v14557_v16 = vld [vmem:[%s20183_s14 + $0x18] sm:$0xff]  }
 0x9d9   :  { %v10718_v61 = vpack.c.bf16 %v10168_v12, %v10167_v50  ;;  %v13654_v52 = vpop.f32.mrb[68].mxu1  ;;  %v12311_v50 = vld [vmem:[%s20184_s13] ss:$0 sm:$0xff] }
 0x9da   :  { %v10101_v45 = vadd.f32 %v13654_v52, %v19762_v15  ;;  %v10092_v5 = vpop.f32.mrb[69].mxu1 }
 0x9db   :  { %v10093_v24 = vadd.f32 %v19762_v15, %v10092_v5  ;;  %v13655_v39 = vpop.f32.mrb[70].mxu1  ;;  %13776 = vmatprep.mubr.msk.bf16.mxu0 %vm6906_vm1, %v10718_v61 }
 0x9dc   :  { %v10104_v32 = vadd.f32 %v13655_v39, %v19762_v15  ;;  %v10095_v26 = vpop.f32.mrb[71].mxu1  ;;  %13777 = vmatmul.mubr.msk.bf16.gmra.mrb[104].mxu0 %vm6906_vm1, %v10719_v17  ;;  %v10173_v56 = vmax.f32 %v10101_v45, 0.0 }
 0x9dd   :  { %v10096_v44 = vadd.f32 %v19762_v15, %v10095_v26  ;;  %v10171_v25 = vmax.f32 %v10093_v24, 0.0 }
 0x9de   :  { %v10174_v13 = vmax.f32 %v10104_v32, 0.0 }
 0x9df   :  { %v10172_v1 = vmax.f32 %v10096_v44, 0.0 }
 0x9e0   :  { %v10721_v62 = vpack.c.bf16 %v10174_v13, %v10173_v56 }
 0x9e1   :  { %v10720_v31 = vpack.c.bf16 %v10172_v1, %v10171_v25  ;;  %v13658_v49 = vpop.f32.mrb[72].mxu1 }
 0x9e2   :  { %v10117_v2 = vadd.f32 %v13658_v49, %v19762_v15  ;;  %v10108_v57 = vpop.f32.mrb[73].mxu1 }
 0x9e3   :  { %v10109_v41 = vadd.f32 %v19762_v15, %v10108_v57  ;;  %v13659_v37 = vpop.f32.mrb[74].mxu1  ;;  %13780 = vmatprep.mubr.msk.bf16.mxu0 %vm6906_vm1, %v10720_v31 }
 0x9e4   :  { %v10120_v38 = vadd.f32 %v13659_v37, %v19762_v15  ;;  %v10111_v58 = vpop.f32.mrb[75].mxu1  ;;  %13781 = vmatmul.mubr.msk.bf16.gmra.mrb[108].mxu0 %vm6906_vm1, %v10721_v62  ;;  %v10177_v10 = vmax.f32 %v10117_v2, 0.0 }
 0x9e5   :  { %v10112_v7 = vadd.f32 %v19762_v15, %v10111_v58  ;;  %v10175_v6 = vmax.f32 %v10109_v41, 0.0 }
 0x9e6   :  { %v10178_v33 = vmax.f32 %v10120_v38, 0.0 }
 0x9e7   :  { %v10176_v9 = vmax.f32 %v10112_v7, 0.0 }
 0x9e8   :  { %v10723_v4 = vpack.c.bf16 %v10178_v33, %v10177_v10 }
 0x9e9   :  { %v10722_v0 = vpack.c.bf16 %v10176_v9, %v10175_v6  ;;  %v13662_v40 = vpop.f32.mrb[76].mxu1  ;;  %v10336_v9 = vld [vmem:[%s20182_s9 + $0x8] sm:$0xff] }
 0x9ea   :  { %v10133_v19 = vadd.f32 %v13662_v40, %v19762_v15  ;;  %v10124_v43 = vpop.f32.mrb[77].mxu1  ;;  %v10339_v40 = vld [vmem:[%s20182_s9 + $0x20] sm:$0xff] }
 0x9eb   :  { %v10125_v18 = vadd.f32 %v19762_v15, %v10124_v43  ;;  %v13663_v3 = vpop.f32.mrb[78].mxu1  ;;  %13784 = vmatprep.mubr.msk.bf16.mxu0 %vm6906_vm1, %v10722_v0  ;;  %v10338_v0 = vld [vmem:[%s20182_s9 + $0x18] sm:$0xff]  ;;  %v10341_v43 = vld [vmem:[%s20182_s9 + $0x30] sm:$0xff] }
 0x9ec   :  { %v10136_v14 = vadd.f32 %v13663_v3, %v19762_v15  ;;  %v10127_v27 = vpop.f32.mrb[79].mxu1  ;;  %13785 = vmatmul.mubr.msk.bf16.gmra.mrb[112].mxu0 %vm6906_vm1, %v10723_v4  ;;  %v10181_v60 = vmax.f32 %v10133_v19, 0.0  ;;  %v10337_v4 = vld [vmem:[%s20182_s9 + $0x10] sm:$0xff]  ;;  %v10340_v19 = vld [vmem:[%s20182_s9 + $0x28] sm:$0xff]  ;;  %v10343_v3 = vld [vmem:[%s20182_s9 + $0x40] sm:$0xff] }
 0x9ed   :  { %v10128_v59 = vadd.f32 %v19762_v15, %v10127_v27  ;;  %v10179_v8 = vmax.f32 %v10125_v18, 0.0  ;;  %v10342_v18 = vld [vmem:[%s20182_s9 + $0x38] sm:$0xff]  ;;  %v10345_v27 = vld [vmem:[%s20182_s9 + $0x50] sm:$0xff] }
 0x9ee   :  { %v10182_v36 = vmax.f32 %v10136_v14, 0.0  ;;  %v10344_v14 = vld [vmem:[%s20182_s9 + $0x48] sm:$0xff] }
 0x9ef   :  { %v10180_v21 = vmax.f32 %v10128_v59, 0.0  ;;  %v10346_v59 = vld [vmem:[%s20182_s9 + $0x58] sm:$0xff] }
 0x9f0   :  { %v10725_v30 = vpack.c.bf16 %v10182_v36, %v10181_v60  ;;  %v10347_v60 = vld [vmem:[%s20182_s9 + $0x60] sm:$0xff]  ;;  %v10348_v36 = vld [vmem:[%s20182_s9 + $0x68] sm:$0xff] }
 0x9f1   :  { %v10724_v46 = vpack.c.bf16 %v10180_v21, %v10179_v8  ;;  %v13666_v53 = vpop.f32.mrb[80].mxu1  ;;  %v10349_v8 = vld [vmem:[%s20182_s9 + $0x70] sm:$0xff]  ;;  %v10350_v21 = vld [vmem:[%s20182_s9 + $0x78] sm:$0xff] }
 0x9f2   :  { %v10149_v63 = vadd.f32 %v13666_v53, %v19762_v15  ;;  %v10140_v29 = vpop.f32.mrb[81].mxu1  ;;  %v10353_v53 = vld [vmem:[%s20182_s9 + $0x90] sm:$0xff] }
 0x9f3   :  { %v10141_v51 = vadd.f32 %v19762_v15, %v10140_v29  ;;  %v13667_v20 = vpop.f32.mrb[82].mxu1  ;;  %13788 = vmatprep.mubr.msk.bf16.mxu0 %vm6906_vm1, %v10724_v46  ;;  %v10352_v46 = vld [vmem:[%s20182_s9 + $0x88] sm:$0xff]  ;;  %v10355_v29 = vld [vmem:[%s20182_s9 + $0xa0] sm:$0xff] }
 0x9f4   :  { %v10152_v22 = vadd.f32 %v13667_v20, %v19762_v15  ;;  %v10143_v34 = vpop.f32.mrb[83].mxu1  ;;  %13789 = vmatmul.mubr.msk.bf16.gmra.mrb[116].mxu0 %vm6906_vm1, %v10725_v30  ;;  %v10185_v23 = vmax.f32 %v10149_v63, 0.0  ;;  %v10351_v30 = vld [vmem:[%s20182_s9 + $0x80] sm:$0xff]  ;;  %v10354_v63 = vld [vmem:[%s20182_s9 + $0x98] sm:$0xff]  ;;  %v10357_v20 = vld [vmem:[%s20182_s9 + $0xb0] sm:$0xff] }
 0x9f5   :  { %v10144_v42 = vadd.f32 %v19762_v15, %v10143_v34  ;;  %v10183_v55 = vmax.f32 %v10141_v51, 0.0  ;;  %v14554_v15 = vld [vmem:[%s20183_s14] sm:$0xff]   ;;  %v10356_v51 = vld [vmem:[%s20182_s9 + $0xa8] sm:$0xff] }
 0x9f6   :  { %v10186_v48 = vmax.f32 %v10152_v22, 0.0  ;;  %13796 = vmatprep.subr.bf16.mxu0 %v14554_v15  ;;  %v10358_v22 = vld [vmem:[%s20182_s9 + $0xb8] sm:$0xff]  ;;  %v10359_v34 = vld [vmem:[%s20182_s9 + $0xc0] sm:$0xff] }
 0x9f7   :  { %v10184_v54 = vmax.f32 %v10144_v42, 0.0  ;;  %13797 = vmatpush3.bf16.msra.mxu0 %v14554_v15  ;;  %v10360_v42 = vld [vmem:[%s20182_s9 + $0xc8] sm:$0xff]  ;;  %v14558_v15 = vld [vmem:[%s20185_s17] sm:$0xff]  }
 0x9f8   :  { %v10727_v47 = vpack.c.bf16 %v10186_v48, %v10185_v23  ;;  %13798 = vmatprep.subr.bf16.mxu0 %v14555_v35  ;;  %v10361_v23 = vld [vmem:[%s20182_s9 + $0xd0] sm:$0xff]  ;;  %v10362_v48 = vld [vmem:[%s20182_s9 + $0xd8] sm:$0xff] }
 0x9f9   :  { %v10726_v28 = vpack.c.bf16 %v10184_v54, %v10183_v55  ;;  %v10363_v55 = vld [vmem:[%s20182_s9 + $0xe0] sm:$0xff]  ;;  %v10364_v54 = vld [vmem:[%s20182_s9 + $0xe8] sm:$0xff] }
 0x9fb   :  { %13792 = vmatprep.mubr.msk.bf16.mxu0 %vm6906_vm1, %v10726_v28  ;;  %13799 = vmatpush3.bf16.msra.mxu0 %v14555_v35  ;;  %v10366_v28 = vld [vmem:[%s20182_s9 + $0xf8] sm:$0xff]  ;;  %v14559_v35 = vld [vmem:[%s20185_s17 + $0x8] sm:$0xff]  }
 0x9fc   :  { %13793 = vmatmul.mubr.msk.bf16.gmra.mrb[120].mxu0 %vm6906_vm1, %v10727_v47  ;;  %13800 = vmatprep.subr.bf16.mxu0 %v14556_v11  ;;  %v10365_v47 = vld [vmem:[%s20182_s9 + $0xf0] sm:$0xff] }
 0x9ff   :  { %13801 = vmatpush3.bf16.msra.mxu0 %v14556_v11 }
 0xa00   :  { %13802 = vmatprep.subr.bf16.mxu0 %v14557_v16 }
 0xa03   :  { %13803 = vmatpush3.bf16.msra.mxu0 %v14557_v16 }
 0xa7e   :  { %v13686_v12 = vpop.f32.mrb[84].mxu1 }
 0xa7f   :  { %v10305_v17 = vadd.f32 %v13686_v12, %v12311_v50  ;;  %v10296_v61 = vpop.f32.mrb[85].mxu1 }
 0xa80   :  { %v10297_v52 = vadd.f32 %v12311_v50, %v10296_v61  ;;  %v13687_v45 = vpop.f32.mrb[86].mxu1 }
 0xa81   :  { %v10308_v5 = vadd.f32 %v13687_v45, %v12311_v50  ;;  %v10299_v24 = vpop.f32.mrb[87].mxu1  ;;  %v10329_v32 = vmax.f32 %v10305_v17, 0.0 }
 0xa82   :  { %v10300_v39 = vadd.f32 %v12311_v50, %v10299_v24  ;;  %v10327_v44 = vmax.f32 %v10297_v52, 0.0 }
 0xa83   :  { %v10330_v26 = vmax.f32 %v10308_v5, 0.0 }
 0xa84   :  { %v10328_v56 = vmax.f32 %v10300_v39, 0.0 }
 0xa85   :  { %v13912_v13 = vpack.c.bf16 %v10330_v26, %v10329_v32 }
 0xa86   :  { %v13908_v25 = vpack.c.bf16 %v10328_v56, %v10327_v44 }
 0xa88   :  { %13909 = vmatprep.subr.bf16.mxu1 %v13908_v25 }
 0xa89   :  { %13911 = vmatpush3.bf16.msra.mxu1 %v13908_v25 }
 0xa8a   :  { %13913 = vmatprep.subr.bf16.mxu1 %v13912_v13 }
 0xa8d   :  { %13915 = vmatpush3.bf16.msra.mxu1 %v13912_v13 }
 0xa8e   :  { %v13690_v1 = vpop.f32.mrb[88].mxu1 }
 0xa8f   :  { %v10321_v62 = vadd.f32 %v13690_v1, %v12311_v50  ;;  %v10312_v31 = vpop.f32.mrb[89].mxu1 }
 0xa90   :  { %v10313_v49 = vadd.f32 %v12311_v50, %v10312_v31  ;;  %v13691_v2 = vpop.f32.mrb[90].mxu1 }
 0xa91   :  { %v10324_v57 = vadd.f32 %v13691_v2, %v12311_v50  ;;  %v10315_v41 = vpop.f32.mrb[91].mxu1  ;;  %v10333_v38 = vmax.f32 %v10321_v62, 0.0 }
 0xa92   :  { %v10316_v37 = vadd.f32 %v12311_v50, %v10315_v41  ;;  %v10331_v7 = vmax.f32 %v10313_v49, 0.0 }
 0xa93   :  { %v10334_v58 = vmax.f32 %v10324_v57, 0.0 }
 0xa94   :  { %v10332_v10 = vmax.f32 %v10316_v37, 0.0 }
 0xa95   :  { %v13920_v33 = vpack.c.bf16 %v10334_v58, %v10333_v38 }
 0xa96   :  { %v13916_v6 = vpack.c.bf16 %v10332_v10, %v10331_v7 }
 0xa98   :  { %13917 = vmatprep.subr.bf16.mxu1 %v13916_v6 }
 0xa99   :  { %13919 = vmatpush3.bf16.msra.mxu1 %v13916_v6 }
 0xa9a   :  { %13921 = vmatprep.subr.bf16.mxu1 %v13920_v33 }
 0xa9d   :  { %13923 = vmatpush3.bf16.msra.mxu1 %v13920_v33 }
 0xa9e   :  { %13836 = vmatprep.subr.bf16.mxu1 %v14558_v15 }
 0xaa0   :  { %13709 = vmatmul.mubr.msk.f32.vlgmr.msra.gmra.mrb[92].mxu1 %vm6906_vm1, %v10336_v9 }
 0xaa1   :  { %13711 = vmatprep.mubr.msk.f32.mxu1 %vm6906_vm1, %v10337_v4  ;;  %13837 = vmatpush3.bf16.msra.mxu1 %v14558_v15 }
 0xaa2   :  { %13838 = vmatprep.subr.bf16.mxu1 %v14559_v35 }
 0xaa4   :  { %13712 = vmatmul.mubr.msk.f32.gmra.mrb[94].mxu1 %vm6906_vm1, %v10338_v0 }
 0xaa5   :  { %13714 = vmatprep.mubr.msk.f32.mxu1 %vm6906_vm1, %v10339_v40  ;;  %13839 = vmatpush3.bf16.msra.mxu1 %v14559_v35 }
 0xaa8   :  { %13715 = vmatmul.mubr.msk.f32.gmra.mrb[96].mxu1 %vm6906_vm1, %v10340_v19 }
 0xaa9   :  { %13717 = vmatprep.mubr.msk.f32.mxu1 %vm6906_vm1, %v10341_v43 }
 0xaac   :  { %13718 = vmatmul.mubr.msk.f32.gmra.mrb[98].mxu1 %vm6906_vm1, %v10342_v18 }
 0xaad   :  { %13720 = vmatprep.mubr.msk.f32.mxu1 %vm6906_vm1, %v10343_v3 }
 0xab0   :  { %13721 = vmatmul.mubr.msk.f32.gmra.mrb[100].mxu1 %vm6906_vm1, %v10344_v14 }
 0xab1   :  { %13723 = vmatprep.mubr.msk.f32.mxu1 %vm6906_vm1, %v10345_v27 }
 0xab4   :  { %13724 = vmatmul.mubr.msk.f32.gmra.mrb[102].mxu1 %vm6906_vm1, %v10346_v59 }
 0xab5   :  { %13726 = vmatprep.mubr.msk.f32.mxu1 %vm6906_vm1, %v10347_v60 }
 0xab8   :  { %13727 = vmatmul.mubr.msk.f32.gmra.mrb[104].mxu1 %vm6906_vm1, %v10348_v36 }
 0xab9   :  { %13729 = vmatprep.mubr.msk.f32.mxu1 %vm6906_vm1, %v10349_v8 }
 0xabc   :  { %13730 = vmatmul.mubr.msk.f32.gmra.mrb[106].mxu1 %vm6906_vm1, %v10350_v21 }
 0xabd   :  { %13732 = vmatprep.mubr.msk.f32.mxu1 %vm6906_vm1, %v10351_v30 }
 0xac0   :  { %13733 = vmatmul.mubr.msk.f32.gmra.mrb[108].mxu1 %vm6906_vm1, %v10352_v46 }
 0xac1   :  { %13735 = vmatprep.mubr.msk.f32.mxu1 %vm6906_vm1, %v10353_v53 }
 0xac4   :  { %13736 = vmatmul.mubr.msk.f32.gmra.mrb[110].mxu1 %vm6906_vm1, %v10354_v63  ;;  %v14560_v63 = vld [vmem:[%s20185_s17 + $0x10] sm:$0xff]  }
 0xac5   :  { %13738 = vmatprep.mubr.msk.f32.mxu1 %vm6906_vm1, %v10355_v29  ;;  %v14561_v29 = vld [vmem:[%s20185_s17 + $0x18] sm:$0xff]   ;;  %13840 = vmatprep.subr.bf16.mxu1 %v14560_v63 }
 0xac6   :  { %13841 = vmatpush3.bf16.msra.mxu1 %v14560_v63 }
 0xac7   :  { %13842 = vmatprep.subr.bf16.mxu1 %v14561_v29 }
 0xac8   :  { %13739 = vmatmul.mubr.msk.f32.gmra.mrb[112].mxu1 %vm6906_vm1, %v10356_v51  ;;  %v19986_v51 = vld [vmem:[%s20186_s16] ss:$0 sm:$0xff] }
 0xac9   :  { %13741 = vmatprep.mubr.msk.f32.mxu1 %vm6906_vm1, %v10357_v20 }
 0xaca   :  { %13843 = vmatpush3.bf16.msra.mxu1 %v14561_v29 }
 0xacc   :  { %13742 = vmatmul.mubr.msk.f32.gmra.mrb[114].mxu1 %vm6906_vm1, %v10358_v22 }
 0xacd   :  { %13744 = vmatprep.mubr.msk.f32.mxu1 %vm6906_vm1, %v10359_v34 }
 0xad0   :  { %13745 = vmatmul.mubr.msk.f32.gmra.mrb[116].mxu1 %vm6906_vm1, %v10360_v42 }
 0xad1   :  { %13747 = vmatprep.mubr.msk.f32.mxu1 %vm6906_vm1, %v10361_v23 }
 0xad4   :  { %13748 = vmatmul.mubr.msk.f32.gmra.mrb[118].mxu1 %vm6906_vm1, %v10362_v48 }
 0xad5   :  { %13750 = vmatprep.mubr.msk.f32.mxu1 %vm6906_vm1, %v10363_v55 }
 0xad8   :  { %13751 = vmatmul.mubr.msk.f32.gmra.mrb[120].mxu1 %vm6906_vm1, %v10364_v54 }
 0xad9   :  { %13753 = vmatprep.mubr.msk.f32.mxu1 %vm6906_vm1, %v10365_v47 }
 0xadc   :  { %13754 = vmatmul.mubr.msk.f32.gmra.mrb[122].mxu1 %vm6906_vm1, %v10366_v28 }
 0xb73   :  { %v13710_v11 = vpop.f32.mrb[92].mxu1 }
 0xb74   :  { %v10529_v50 = vpop.f32.mrb[93].mxu1 }
 0xb75   :  { %v10688_v12 = vpack.c.bf16 %v13710_v11, %v10529_v50 }
 0xb77   :  { %v13713_v17 = vpop.f32.mrb[94].mxu1  ;;  %13804 = vmatprep.mubr.msk.bf16.mxu0 %vm6906_vm1, %v10688_v12 }
 0xb78   :  { %v10539_v61 = vpop.f32.mrb[95].mxu1 }
 0xb79   :  { %v10689_v52 = vpack.c.bf16 %v13713_v17, %v10539_v61 }
 0xb7b   :  { %13805 = vmatmul.mubr.msk.bf16.vlgmr.msra.gmra.mrb[92].mxu0 %vm6906_vm1, %v10689_v52  ;;  %v13716_v45 = vpop.f32.mrb[96].mxu1 }
 0xb7c   :  { %v10549_v5 = vpop.f32.mrb[97].mxu1 }
 0xb7d   :  { %v10690_v24 = vpack.c.bf16 %v13716_v45, %v10549_v5 }
 0xb7f   :  { %v13719_v39 = vpop.f32.mrb[98].mxu1  ;;  %13808 = vmatprep.mubr.msk.bf16.mxu0 %vm6906_vm1, %v10690_v24 }
 0xb80   :  { %v10559_v32 = vpop.f32.mrb[99].mxu1 }
 0xb81   :  { %v10691_v26 = vpack.c.bf16 %v13719_v39, %v10559_v32 }
 0xb83   :  { %13809 = vmatmul.mubr.msk.bf16.gmra.mrb[96].mxu0 %vm6906_vm1, %v10691_v26  ;;  %v13722_v44 = vpop.f32.mrb[100].mxu1 }
 0xb84   :  { %v10569_v56 = vpop.f32.mrb[101].mxu1 }
 0xb85   :  { %v10692_v13 = vpack.c.bf16 %v13722_v44, %v10569_v56 }
 0xb87   :  { %v13725_v25 = vpop.f32.mrb[102].mxu1  ;;  %13812 = vmatprep.mubr.msk.bf16.mxu0 %vm6906_vm1, %v10692_v13 }
 0xb88   :  { %v10579_v1 = vpop.f32.mrb[103].mxu1 }
 0xb89   :  { %v10693_v62 = vpack.c.bf16 %v13725_v25, %v10579_v1 }
 0xb8b   :  { %13813 = vmatmul.mubr.msk.bf16.gmra.mrb[100].mxu0 %vm6906_vm1, %v10693_v62  ;;  %v13728_v31 = vpop.f32.mrb[104].mxu1 }
 0xb8c   :  { %v10589_v49 = vpop.f32.mrb[105].mxu1 }
 0xb8d   :  { %v10694_v2 = vpack.c.bf16 %v13728_v31, %v10589_v49 }
 0xb8f   :  { %v13731_v57 = vpop.f32.mrb[106].mxu1  ;;  %13816 = vmatprep.mubr.msk.bf16.mxu0 %vm6906_vm1, %v10694_v2 }
 0xb90   :  { %v10599_v41 = vpop.f32.mrb[107].mxu1 }
 0xb91   :  { %v10695_v37 = vpack.c.bf16 %v13731_v57, %v10599_v41 }
 0xb93   :  { %13817 = vmatmul.mubr.msk.bf16.gmra.mrb[104].mxu0 %vm6906_vm1, %v10695_v37  ;;  %v13734_v38 = vpop.f32.mrb[108].mxu1 }
 0xb94   :  { %v10609_v58 = vpop.f32.mrb[109].mxu1 }
 0xb95   :  { %v10696_v7 = vpack.c.bf16 %v13734_v38, %v10609_v58 }
 0xb97   :  { %v13737_v10 = vpop.f32.mrb[110].mxu1  ;;  %13820 = vmatprep.mubr.msk.bf16.mxu0 %vm6906_vm1, %v10696_v7 }
 0xb98   :  { %v10619_v33 = vpop.f32.mrb[111].mxu1 }
 0xb99   :  { %v10697_v6 = vpack.c.bf16 %v13737_v10, %v10619_v33 }
 0xb9b   :  { %13821 = vmatmul.mubr.msk.bf16.gmra.mrb[108].mxu0 %vm6906_vm1, %v10697_v6  ;;  %v13740_v9 = vpop.f32.mrb[112].mxu1 }
 0xb9c   :  { %v10629_v4 = vpop.f32.mrb[113].mxu1 }
 0xb9d   :  { %v10698_v0 = vpack.c.bf16 %v13740_v9, %v10629_v4 }
 0xb9f   :  { %v13743_v40 = vpop.f32.mrb[114].mxu1  ;;  %13824 = vmatprep.mubr.msk.bf16.mxu0 %vm6906_vm1, %v10698_v0 }
 0xba0   :  { %v10639_v19 = vpop.f32.mrb[115].mxu1 }
 0xba1   :  { %v10699_v43 = vpack.c.bf16 %v13743_v40, %v10639_v19 }
 0xba3   :  { %13825 = vmatmul.mubr.msk.bf16.gmra.mrb[112].mxu0 %vm6906_vm1, %v10699_v43  ;;  %v13746_v18 = vpop.f32.mrb[116].mxu1 }
 0xba4   :  { %v10649_v3 = vpop.f32.mrb[117].mxu1 }
 0xba5   :  { %v10700_v14 = vpack.c.bf16 %v13746_v18, %v10649_v3 }
 0xba7   :  { %v13749_v27 = vpop.f32.mrb[118].mxu1  ;;  %13828 = vmatprep.mubr.msk.bf16.mxu0 %vm6906_vm1, %v10700_v14 }
 0xba8   :  { %v10659_v59 = vpop.f32.mrb[119].mxu1 }
 0xba9   :  { %v10701_v60 = vpack.c.bf16 %v13749_v27, %v10659_v59 }
 0xbab   :  { %13829 = vmatmul.mubr.msk.bf16.gmra.mrb[116].mxu0 %vm6906_vm1, %v10701_v60  ;;  %v13752_v36 = vpop.f32.mrb[120].mxu1 }
 0xbac   :  { %v10669_v8 = vpop.f32.mrb[121].mxu1 }
 0xbad   :  { %v10702_v21 = vpack.c.bf16 %v13752_v36, %v10669_v8 }
 0xbaf   :  { %v13755_v30 = vpop.f32.mrb[122].mxu1  ;;  %13832 = vmatprep.mubr.msk.bf16.mxu0 %vm6906_vm1, %v10702_v21 }
 0xbb0   :  { %v10679_v46 = vpop.f32.mrb[123].mxu1 }
 0xbb1   :  { %v10703_v53 = vpack.c.bf16 %v13755_v30, %v10679_v46 }
 0xbb3   :  { %13833 = vmatmul.mubr.msk.bf16.gmra.mrb[120].mxu0 %vm6906_vm1, %v10703_v53 }
 0xc4e   :  { %v13806_v20 = vpop.f32.mrb[92].mxu0 }
 0xc4f   :  { %v11211_v22 = vadd.f32 %v13806_v20, %v19986_v51  ;;  %v11075_v34 = vpop.f32.mrb[93].mxu0 }
 0xc50   :  { %v11209_v42 = vadd.f32 %v19986_v51, %v11075_v34  ;;  %v13807_v23 = vpop.f32.mrb[94].mxu0 }
 0xc51   :  { %v11212_v48 = vadd.f32 %v13807_v23, %v19986_v51  ;;  %v11078_v55 = vpop.f32.mrb[95].mxu0  ;;  %v11243_v47 = vmax.f32 %v11211_v22, 0.0 }
 0xc52   :  { %v11210_v54 = vadd.f32 %v19986_v51, %v11078_v55  ;;  %v11241_v16 = vmax.f32 %v11209_v42, 0.0 }
 0xc53   :  { %v11244_v28 = vmax.f32 %v11212_v48, 0.0 }
 0xc54   :  { %v11242_v15 = vmax.f32 %v11210_v54, 0.0 }
 0xc55   :  { %v11274_v35 = vpack.c.bf16 %v11244_v28, %v11243_v47 }
 0xc56   :  { %v11273_v11 = vpack.c.bf16 %v11242_v15, %v11241_v16  ;;  %v13810_v50 = vpop.f32.mrb[96].mxu0 }
 0xc57   :  { %v11215_v12 = vadd.f32 %v13810_v50, %v19986_v51  ;;  %v11091_v17 = vpop.f32.mrb[97].mxu0 }
 0xc58   :  { %v11213_v61 = vadd.f32 %v19986_v51, %v11091_v17  ;;  %v13811_v52 = vpop.f32.mrb[98].mxu0  ;;  %13844 = vmatprep.mubr.msk.bf16.mxu1 %vm6906_vm1, %v11273_v11 }
 0xc59   :  { %v11216_v45 = vadd.f32 %v13811_v52, %v19986_v51  ;;  %v11094_v5 = vpop.f32.mrb[99].mxu0  ;;  %13845 = vmatmul.mubr.msk.bf16.vlgmr.msra.gmra.mrb[124].mxu1 %vm6906_vm1, %v11274_v35  ;;  %v11247_v39 = vmax.f32 %v11215_v12, 0.0 }
 0xc5a   :  { %v11214_v24 = vadd.f32 %v19986_v51, %v11094_v5  ;;  %v11245_v26 = vmax.f32 %v11213_v61, 0.0 }
 0xc5b   :  { %v11248_v32 = vmax.f32 %v11216_v45, 0.0 }
 0xc5c   :  { %v11246_v44 = vmax.f32 %v11214_v24, 0.0 }
 0xc5d   :  { %v11276_v56 = vpack.c.bf16 %v11248_v32, %v11247_v39 }
 0xc5e   :  { %v11275_v13 = vpack.c.bf16 %v11246_v44, %v11245_v26  ;;  %v13814_v25 = vpop.f32.mrb[100].mxu0 }
 0xc5f   :  { %v11219_v1 = vadd.f32 %v13814_v25, %v19986_v51  ;;  %v11107_v62 = vpop.f32.mrb[101].mxu0 }
 0xc60   :  { %v11217_v31 = vadd.f32 %v19986_v51, %v11107_v62  ;;  %v13815_v49 = vpop.f32.mrb[102].mxu0  ;;  %13848 = vmatprep.mubr.msk.bf16.mxu1 %vm6906_vm1, %v11275_v13 }
 0xc61   :  { %v11220_v2 = vadd.f32 %v13815_v49, %v19986_v51  ;;  %v11110_v57 = vpop.f32.mrb[103].mxu0  ;;  %13849 = vmatmul.mubr.msk.bf16.gmra.mrb[128].mxu1 %vm6906_vm1, %v11276_v56  ;;  %v11251_v37 = vmax.f32 %v11219_v1, 0.0 }
 0xc62   :  { %v11218_v41 = vadd.f32 %v19986_v51, %v11110_v57  ;;  %v11249_v58 = vmax.f32 %v11217_v31, 0.0 }
 0xc63   :  { %v11252_v38 = vmax.f32 %v11220_v2, 0.0 }
 0xc64   :  { %v11250_v7 = vmax.f32 %v11218_v41, 0.0 }
 0xc65   :  { %v11278_v10 = vpack.c.bf16 %v11252_v38, %v11251_v37 }
 0xc66   :  { %v11277_v33 = vpack.c.bf16 %v11250_v7, %v11249_v58  ;;  %v13818_v6 = vpop.f32.mrb[104].mxu0 }
 0xc67   :  { %v11223_v9 = vadd.f32 %v13818_v6, %v19986_v51  ;;  %v11123_v4 = vpop.f32.mrb[105].mxu0 }
 0xc68   :  { %v11221_v0 = vadd.f32 %v19986_v51, %v11123_v4  ;;  %v13819_v40 = vpop.f32.mrb[106].mxu0  ;;  %13852 = vmatprep.mubr.msk.bf16.mxu1 %vm6906_vm1, %v11277_v33 }
 0xc69   :  { %v11224_v19 = vadd.f32 %v13819_v40, %v19986_v51  ;;  %v11126_v43 = vpop.f32.mrb[107].mxu0  ;;  %13853 = vmatmul.mubr.msk.bf16.gmra.mrb[132].mxu1 %vm6906_vm1, %v11278_v10  ;;  %v11255_v3 = vmax.f32 %v11223_v9, 0.0 }
 0xc6a   :  { %v11222_v18 = vadd.f32 %v19986_v51, %v11126_v43  ;;  %v11253_v27 = vmax.f32 %v11221_v0, 0.0 }
 0xc6b   :  { %v11256_v14 = vmax.f32 %v11224_v19, 0.0 }
 0xc6c   :  { %v11254_v59 = vmax.f32 %v11222_v18, 0.0  ;;  %v20039_v18 = vld [vmem:[%s20187_s18] ss:$0 sm:$0xff] }
 0xc6d   :  { %v11280_v60 = vpack.c.bf16 %v11256_v14, %v11255_v3 }
 0xc6e   :  { %v11279_v36 = vpack.c.bf16 %v11254_v59, %v11253_v27  ;;  %v13822_v8 = vpop.f32.mrb[108].mxu0 }
 0xc6f   :  { %v11227_v21 = vadd.f32 %v13822_v8, %v19986_v51  ;;  %v11139_v30 = vpop.f32.mrb[109].mxu0 }
 0xc70   :  { %v11225_v46 = vadd.f32 %v19986_v51, %v11139_v30  ;;  %v13823_v53 = vpop.f32.mrb[110].mxu0  ;;  %13856 = vmatprep.mubr.msk.bf16.mxu1 %vm6906_vm1, %v11279_v36 }
 0xc71   :  { %v11228_v63 = vadd.f32 %v13823_v53, %v19986_v51  ;;  %v11142_v29 = vpop.f32.mrb[111].mxu0  ;;  %13857 = vmatmul.mubr.msk.bf16.gmra.mrb[136].mxu1 %vm6906_vm1, %v11280_v60  ;;  %v11259_v22 = vmax.f32 %v11227_v21, 0.0 }
 0xc72   :  { %v11226_v20 = vadd.f32 %v19986_v51, %v11142_v29  ;;  %v11257_v42 = vmax.f32 %v11225_v46, 0.0 }
 0xc73   :  { %v11260_v34 = vmax.f32 %v11228_v63, 0.0 }
 0xc74   :  { %v11258_v23 = vmax.f32 %v11226_v20, 0.0 }
 0xc75   :  { %v11282_v48 = vpack.c.bf16 %v11260_v34, %v11259_v22 }
 0xc76   :  { %v11281_v55 = vpack.c.bf16 %v11258_v23, %v11257_v42  ;;  %v13826_v54 = vpop.f32.mrb[112].mxu0 }
 0xc77   :  { %v11231_v47 = vadd.f32 %v13826_v54, %v19986_v51  ;;  %v11155_v28 = vpop.f32.mrb[113].mxu0 }
 0xc78   :  { %v11229_v16 = vadd.f32 %v19986_v51, %v11155_v28  ;;  %v13827_v15 = vpop.f32.mrb[114].mxu0  ;;  %13860 = vmatprep.mubr.msk.bf16.mxu1 %vm6906_vm1, %v11281_v55 }
 0xc79   :  { %v11232_v35 = vadd.f32 %v13827_v15, %v19986_v51  ;;  %v11158_v11 = vpop.f32.mrb[115].mxu0  ;;  %13861 = vmatmul.mubr.msk.bf16.gmra.mrb[140].mxu1 %vm6906_vm1, %v11282_v48  ;;  %v11263_v12 = vmax.f32 %v11231_v47, 0.0 }
 0xc7a   :  { %v11230_v50 = vadd.f32 %v19986_v51, %v11158_v11  ;;  %v11261_v61 = vmax.f32 %v11229_v16, 0.0 }
 0xc7b   :  { %v11264_v17 = vmax.f32 %v11232_v35, 0.0 }
 0xc7c   :  { %v11262_v52 = vmax.f32 %v11230_v50, 0.0 }
 0xc7d   :  { %v11284_v45 = vpack.c.bf16 %v11264_v17, %v11263_v12 }
 0xc7e   :  { %v11283_v5 = vpack.c.bf16 %v11262_v52, %v11261_v61  ;;  %v13830_v24 = vpop.f32.mrb[116].mxu0 }
 0xc7f   :  { %v11235_v39 = vadd.f32 %v13830_v24, %v19986_v51  ;;  %v11171_v32 = vpop.f32.mrb[117].mxu0 }
 0xc80   :  { %v11233_v26 = vadd.f32 %v19986_v51, %v11171_v32  ;;  %v13831_v44 = vpop.f32.mrb[118].mxu0  ;;  %13864 = vmatprep.mubr.msk.bf16.mxu1 %vm6906_vm1, %v11283_v5 }
 0xc81   :  { %v11236_v56 = vadd.f32 %v13831_v44, %v19986_v51  ;;  %v11174_v13 = vpop.f32.mrb[119].mxu0  ;;  %13865 = vmatmul.mubr.msk.bf16.gmra.mrb[144].mxu1 %vm6906_vm1, %v11284_v45  ;;  %v11267_v1 = vmax.f32 %v11235_v39, 0.0 }
 0xc82   :  { %v11234_v25 = vadd.f32 %v19986_v51, %v11174_v13  ;;  %v11265_v31 = vmax.f32 %v11233_v26, 0.0 }
 0xc83   :  { %v11268_v62 = vmax.f32 %v11236_v56, 0.0 }
 0xc84   :  { %v11266_v49 = vmax.f32 %v11234_v25, 0.0 }
 0xc85   :  { %v11286_v2 = vpack.c.bf16 %v11268_v62, %v11267_v1 }
 0xc86   :  { %v11285_v57 = vpack.c.bf16 %v11266_v49, %v11265_v31  ;;  %v13834_v41 = vpop.f32.mrb[120].mxu0 }
 0xc87   :  { %v11239_v37 = vadd.f32 %v13834_v41, %v19986_v51  ;;  %v11187_v38 = vpop.f32.mrb[121].mxu0 }
 0xc88   :  { %v11237_v58 = vadd.f32 %v19986_v51, %v11187_v38  ;;  %v13835_v7 = vpop.f32.mrb[122].mxu0  ;;  %13868 = vmatprep.mubr.msk.bf16.mxu1 %vm6906_vm1, %v11285_v57 }
 0xc89   :  { %v11240_v10 = vadd.f32 %v13835_v7, %v19986_v51  ;;  %v11190_v33 = vpop.f32.mrb[123].mxu0  ;;  %13869 = vmatmul.mubr.msk.bf16.gmra.mrb[148].mxu1 %vm6906_vm1, %v11286_v2  ;;  %v11271_v9 = vmax.f32 %v11239_v37, 0.0 }
 0xc8a   :  { %v11238_v6 = vadd.f32 %v19986_v51, %v11190_v33  ;;  %v11269_v0 = vmax.f32 %v11237_v58, 0.0 }
 0xc8b   :  { %v11272_v4 = vmax.f32 %v11240_v10, 0.0 }
 0xc8c   :  { %v11270_v40 = vmax.f32 %v11238_v6, 0.0 }
 0xc8d   :  { %v11288_v19 = vpack.c.bf16 %v11272_v4, %v11271_v9 }
 0xc8e   :  { %v11287_v43 = vpack.c.bf16 %v11270_v40, %v11269_v0 }
 0xc90   :  { %13872 = vmatprep.mubr.msk.bf16.mxu1 %vm6906_vm1, %v11287_v43 }
 0xc91   :  { %13873 = vmatmul.mubr.msk.bf16.gmra.mrb[152].mxu1 %vm6906_vm1, %v11288_v19 }
 0xd2c   :  { %v13846_v3 = vpop.f32.mrb[124].mxu1 }
 0xd2d   :  { %v11419_v14 = vadd.f32 %v13846_v3, %v20039_v18  ;;  %v11410_v27 = vpop.f32.mrb[125].mxu1 }
 0xd2e   :  { %v11411_v51 = vadd.f32 %v20039_v18, %v11410_v27  ;;  %v13847_v59 = vpop.f32.mrb[126].mxu1 }
 0xd2f   :  { %11539 = vst [vmem:[%s20188_s19 + $0x10] sm:$0xff] %v11419_v14  ;;  %v11422_v60 = vadd.f32 %v13847_v59, %v20039_v18  ;;  %v11413_v36 = vpop.f32.mrb[127].mxu1 }
 0xd30   :  { %11537 = vst [vmem:[%s20188_s19] sm:$0xff] %v11411_v51  ;;  %v11414_v8 = vadd.f32 %v20039_v18, %v11413_v36 }
 0xd31   :  { %11540 = vst [vmem:[%s20188_s19 + $0x18] sm:$0xff] %v11422_v60 }
 0xd32   :  { %11538 = vst [vmem:[%s20188_s19 + $0x8] sm:$0xff] %v11414_v8 }
 0xd34   :  { %v13850_v21 = vpop.f32.mrb[128].mxu1 }
 0xd35   :  { %v11435_v30 = vadd.f32 %v13850_v21, %v20039_v18  ;;  %v11426_v46 = vpop.f32.mrb[129].mxu1 }
 0xd36   :  { %v11427_v53 = vadd.f32 %v20039_v18, %v11426_v46  ;;  %v13851_v63 = vpop.f32.mrb[130].mxu1 }
 0xd37   :  { %11543 = vst [vmem:[%s20188_s19 + $0x30] sm:$0xff] %v11435_v30  ;;  %v11438_v29 = vadd.f32 %v13851_v63, %v20039_v18  ;;  %v11429_v20 = vpop.f32.mrb[131].mxu1 }
 0xd38   :  { %11541 = vst [vmem:[%s20188_s19 + $0x20] sm:$0xff] %v11427_v53  ;;  %v11430_v22 = vadd.f32 %v20039_v18, %v11429_v20 }
 0xd39   :  { %11544 = vst [vmem:[%s20188_s19 + $0x38] sm:$0xff] %v11438_v29 }
 0xd3a   :  { %11542 = vst [vmem:[%s20188_s19 + $0x28] sm:$0xff] %v11430_v22 }
 0xd3c   :  { %v13854_v34 = vpop.f32.mrb[132].mxu1 }
 0xd3d   :  { %v11451_v42 = vadd.f32 %v13854_v34, %v20039_v18  ;;  %v11442_v23 = vpop.f32.mrb[133].mxu1 }
 0xd3e   :  { %v11443_v48 = vadd.f32 %v20039_v18, %v11442_v23  ;;  %v13855_v55 = vpop.f32.mrb[134].mxu1 }
 0xd3f   :  { %11547 = vst [vmem:[%s20188_s19 + $0x50] sm:$0xff] %v11451_v42  ;;  %v11454_v54 = vadd.f32 %v13855_v55, %v20039_v18  ;;  %v11445_v47 = vpop.f32.mrb[135].mxu1 }
 0xd40   :  { %11545 = vst [vmem:[%s20188_s19 + $0x40] sm:$0xff] %v11443_v48  ;;  %v11446_v28 = vadd.f32 %v20039_v18, %v11445_v47 }
 0xd41   :  { %11548 = vst [vmem:[%s20188_s19 + $0x58] sm:$0xff] %v11454_v54 }
 0xd42   :  { %11546 = vst [vmem:[%s20188_s19 + $0x48] sm:$0xff] %v11446_v28 }
 0xd44   :  { %v13858_v16 = vpop.f32.mrb[136].mxu1 }
 0xd45   :  { %v11467_v15 = vadd.f32 %v13858_v16, %v20039_v18  ;;  %v11458_v35 = vpop.f32.mrb[137].mxu1 }
 0xd46   :  { %v11459_v11 = vadd.f32 %v20039_v18, %v11458_v35  ;;  %v13859_v50 = vpop.f32.mrb[138].mxu1 }
 0xd47   :  { %11551 = vst [vmem:[%s20188_s19 + $0x70] sm:$0xff] %v11467_v15  ;;  %v11470_v12 = vadd.f32 %v13859_v50, %v20039_v18  ;;  %v11461_v17 = vpop.f32.mrb[139].mxu1 }
 0xd48   :  { %11549 = vst [vmem:[%s20188_s19 + $0x60] sm:$0xff] %v11459_v11  ;;  %v11462_v61 = vadd.f32 %v20039_v18, %v11461_v17 }
 0xd49   :  { %11552 = vst [vmem:[%s20188_s19 + $0x78] sm:$0xff] %v11470_v12 }
 0xd4a   :  { %11550 = vst [vmem:[%s20188_s19 + $0x68] sm:$0xff] %v11462_v61 }
 0xd4c   :  { %v13862_v52 = vpop.f32.mrb[140].mxu1 }
 0xd4d   :  { %v11483_v45 = vadd.f32 %v13862_v52, %v20039_v18  ;;  %v11474_v5 = vpop.f32.mrb[141].mxu1 }
 0xd4e   :  { %v11475_v24 = vadd.f32 %v20039_v18, %v11474_v5  ;;  %v13863_v39 = vpop.f32.mrb[142].mxu1 }
 0xd4f   :  { %11555 = vst [vmem:[%s20188_s19 + $0x90] sm:$0xff] %v11483_v45  ;;  %v11486_v32 = vadd.f32 %v13863_v39, %v20039_v18  ;;  %v11477_v26 = vpop.f32.mrb[143].mxu1 }
 0xd50   :  { %11553 = vst [vmem:[%s20188_s19 + $0x80] sm:$0xff] %v11475_v24  ;;  %v11478_v44 = vadd.f32 %v20039_v18, %v11477_v26 }
 0xd51   :  { %11556 = vst [vmem:[%s20188_s19 + $0x98] sm:$0xff] %v11486_v32 }
 0xd52   :  { %11554 = vst [vmem:[%s20188_s19 + $0x88] sm:$0xff] %v11478_v44 }
 0xd54   :  { %v13866_v56 = vpop.f32.mrb[144].mxu1 }
 0xd55   :  { %v11499_v13 = vadd.f32 %v13866_v56, %v20039_v18  ;;  %v11490_v25 = vpop.f32.mrb[145].mxu1 }
 0xd56   :  { %v11491_v1 = vadd.f32 %v20039_v18, %v11490_v25  ;;  %v13867_v62 = vpop.f32.mrb[146].mxu1 }
 0xd57   :  { %11559 = vst [vmem:[%s20188_s19 + $0xb0] sm:$0xff] %v11499_v13  ;;  %v11502_v31 = vadd.f32 %v13867_v62, %v20039_v18  ;;  %v11493_v49 = vpop.f32.mrb[147].mxu1 }
 0xd58   :  { %11557 = vst [vmem:[%s20188_s19 + $0xa0] sm:$0xff] %v11491_v1  ;;  %v11494_v2 = vadd.f32 %v20039_v18, %v11493_v49 }
 0xd59   :  { %11560 = vst [vmem:[%s20188_s19 + $0xb8] sm:$0xff] %v11502_v31 }
 0xd5a   :  { %11558 = vst [vmem:[%s20188_s19 + $0xa8] sm:$0xff] %v11494_v2 }
 0xd5c   :  { %v13870_v57 = vpop.f32.mrb[148].mxu1 }
 0xd5d   :  { %v11515_v41 = vadd.f32 %v13870_v57, %v20039_v18  ;;  %v11506_v37 = vpop.f32.mrb[149].mxu1 }
 0xd5e   :  { %v11507_v38 = vadd.f32 %v20039_v18, %v11506_v37  ;;  %v13871_v58 = vpop.f32.mrb[150].mxu1 }
 0xd5f   :  { %11563 = vst [vmem:[%s20188_s19 + $0xd0] sm:$0xff] %v11515_v41  ;;  %v11518_v7 = vadd.f32 %v13871_v58, %v20039_v18  ;;  %v11509_v10 = vpop.f32.mrb[151].mxu1 }
 0xd60   :  { %11561 = vst [vmem:[%s20188_s19 + $0xc0] sm:$0xff] %v11507_v38  ;;  %v11510_v33 = vadd.f32 %v20039_v18, %v11509_v10 }
 0xd61   :  { %11564 = vst [vmem:[%s20188_s19 + $0xd8] sm:$0xff] %v11518_v7 }
 0xd62   :  { %11562 = vst [vmem:[%s20188_s19 + $0xc8] sm:$0xff] %v11510_v33 }
 0xd64   :  { %v13874_v6 = vpop.f32.mrb[152].mxu1 }
 0xd65   :  { %v11531_v9 = vadd.f32 %v13874_v6, %v20039_v18  ;;  %v11522_v4 = vpop.f32.mrb[153].mxu1 }
 0xd66   :  { %v11523_v0 = vadd.f32 %v20039_v18, %v11522_v4  ;;  %v13875_v40 = vpop.f32.mrb[154].mxu1 }
 0xd67   :  { %11567 = vst [vmem:[%s20188_s19 + $0xf0] sm:$0xff] %v11531_v9  ;;  %v11534_v19 = vadd.f32 %v13875_v40, %v20039_v18  ;;  %v11525_v43 = vpop.f32.mrb[155].mxu1 }
 0xd68   :  { %11565 = vst [vmem:[%s20188_s19 + $0xe0] sm:$0xff] %v11523_v0  ;;  %v11526_v3 = vadd.f32 %v20039_v18, %v11525_v43 }
 0xd69   :  { %11568 = vst [vmem:[%s20188_s19 + $0xf8] sm:$0xff] %v11534_v19 }
 0xd6a   :  { %11566 = vst [vmem:[%s20188_s19 + $0xe8] sm:$0xff] %v11526_v3 }

</bundles_post_ra>
